<compile_context>
chip_gen: v6e
topology: v6e:2x2x1
jax: 0.10.0
libtpu: 0.0.40
codegen_flags: <defaults>
</compile_context>

<pallas_src>
import numpy as np
import jax
import jax.numpy as jnp
from jax.experimental import pallas as pl
from jax.experimental.pallas import tpu as pltpu

_NEG_SLOPE = 0.2
_BN_EPS = 1e-5
_KTAPS = 4                     # 4x4 conv kernels
_VMEM_LIMIT_BYTES = 32 * 1024 * 1024


# ---------------------------------------------------------------------------
# Trace-time (numpy) structural constants - zero runtime XLA ops
# ---------------------------------------------------------------------------
def _row_select(n, hin_p, ho, stride, pad_out):
    """R[i] (N*Hs, N*Hin_p): output row ho+pad picks input row stride*ho+i."""
    hs = ho + 2 * pad_out
    r = np.zeros((_KTAPS, n * hs, n * hin_p), np.float32)
    for i in range(_KTAPS):
        for b in range(n):
            for h in range(ho):
                r[i, b * hs + h + pad_out, b * hin_p + stride * h + i] = 1.0
    return r


def _col_select(win_p, wo, stride, pad_out):
    """B[j] (Win_p, Ws): output col wo+pad picks input col stride*wo+j."""
    ws = wo + 2 * pad_out
    b = np.zeros((_KTAPS, win_p, ws), np.float32)
    for j in range(_KTAPS):
        for w in range(wo):
            src = stride * w + j
            if src < win_p:
                b[j, src, w + pad_out] = 1.0
    return b


def _channel_indicator(c, ws, pad_out):
    """(C*Ws, C) 0/1 matrix mapping flat columns -> channel (valid cols only)."""
    m = np.zeros((c * ws, c), np.float32)
    for ch in range(c):
        for s in range(pad_out, ws - pad_out):
            m[ch * ws + s, ch] = 1.0
    return m


def _row_mask(n, ho, pad_out):
    hs = ho + 2 * pad_out
    m = np.zeros((n * hs, 1), np.float32)
    for b in range(n):
        m[b * hs + pad_out:b * hs + pad_out + ho, 0] = 1.0
    return m


def _fold_weights(w, col_sel):
    """torch conv weight (Cout, Cin, 4, 4) + column selector (4, Wp, Ws)
       -> D (4, Cin*Wp, Cout*Ws):  D[i, c*Wp+w, o*Ws+s] = sum_j W[o,c,i,j]*B[j,w,s]."""
    d = jnp.einsum("ocij,jws->icwos", w.astype(jnp.float32), jnp.asarray(col_sel))
    _, cin, wp, cout, ws = d.shape
    return d.reshape(_KTAPS, cin * wp, cout * ws)


def _full_spec(shape):
    # Whole-array block for the single grid step (full dims => no (8,128) rule).
    return pl.BlockSpec(shape, lambda i: (0,) * len(shape))


# ---------------------------------------------------------------------------
# Forward pass (one fused pallas_call)
# ---------------------------------------------------------------------------
def discriminator_forward(params, x_nchw):
    n, nc, h, w = x_nchw.shape
    if h != 64 or w != 64:
        raise ValueError("Discriminator expects 64x64 inputs.")
    ndf = params["w1"].shape[0]

    # (stored padded input size, output size, stride, output-store padding)
    layer_cfg = [
        (66, 32, 2, 1),   # conv1: 64(+pad) -> 32, stored padded for conv2
        (34, 16, 2, 1),   # conv2
        (18, 8, 2, 1),    # conv3
        (10, 4, 2, 0),    # conv4: stored unpadded (head conv is 'valid')
        (4, 1, 1, 0),     # conv5 head: 4x4 valid conv -> 1x1
    ]
    w_names = ["w1", "w2", "w3", "w4", "w5"]

    # --- per-layer structural matmul operands ------------------------------
    d_list, r_list = [], []
    for (hin_p, ho, stride, pad_out), name in zip(layer_cfg, w_names):
        col_sel = _col_select(hin_p, ho, stride, pad_out)        # square maps
        d_list.append(_fold_weights(params[name], col_sel))
        r_list.append(jnp.asarray(_row_select(n, hin_p, ho, stride, pad_out)))

    # --- BatchNorm helpers for conv2/3/4 outputs ----------------------------
    bn_cfg = [(ndf * 2, 18, 1, 16),   # (channels, stored width, pad_out, Ho)
              (ndf * 4, 10, 1, 8),
              (ndf * 8, 4, 0, 4)]
    mc_l, mct_l, rm_l, cnt_l = [], [], [], []
    for c, ws, po, ho in bn_cfg:
        mc = _channel_indicator(c, ws, po)
        mc_l.append(jnp.asarray(mc))
        mct_l.append(jnp.asarray(np.ascontiguousarray(mc.T)))
        rm_l.append(jnp.asarray(_row_mask(n, ho, po)))
        cnt_l.append(float(n * ho * ho))
    g2 = params["g2"].reshape(1, -1).astype(jnp.float32)
    b2 = params["b2"].reshape(1, -1).astype(jnp.float32)
    g3 = params["g3"].reshape(1, -1).astype(jnp.float32)
    b3 = params["b3"].reshape(1, -1).astype(jnp.float32)
    g4 = params["g4"].reshape(1, -1).astype(jnp.float32)
    b4 = params["b4"].reshape(1, -1).astype(jnp.float32)

    # --- padded input slab: A1[n*66+hp, c*66+wp] = xpad[n,c,hp,wp] ----------
    xp = jnp.pad(x_nchw.astype(jnp.float32),
                 ((0, 0), (0, 0), (1, 1), (1, 1)))
    a1 = jnp.transpose(xp, (0, 2, 1, 3)).reshape(n * 66, nc * 66)

    cnt2, cnt3, cnt4 = cnt_l

    # --- fused kernel -------------------------------------------------------
    def kernel(a1_ref,
               d1_ref, r1_ref, d2_ref, r2_ref, d3_ref, r3_ref,
               d4_ref, r4_ref, d5_ref, r5_ref,
               mc2_ref, mct2_ref, g2_ref, b2_ref, rm2_ref,
               mc3_ref, mct3_ref, g3_ref, b3_ref, rm3_ref,
               mc4_ref, mct4_ref, g4_ref, b4_ref,
               o_ref):
        def conv(act, d_ref, r_ref):
            # y = sum_i (R_i @ act) @ D_i
            # R_i: exact strided row selection; D_i: channel mix + col taps.
            acc = None
            for i in range(_KTAPS):
                rows = jnp.dot(r_ref[i], act,
                               preferred_element_type=jnp.float32)
                part = jnp.dot(rows, d_ref[i],
                               preferred_element_type=jnp.float32)
                acc = part if acc is None else acc + part
            return acc

        def lrelu(v):
            return jnp.where(v >= 0, v, _NEG_SLOPE * v)

        def bn_lrelu(y, mc_ref, mct_ref, g_ref, b_ref, count):
            # One-pass batch stats (pad rows/cols of y are exactly zero).
            ch_sum = jnp.sum(jnp.dot(y, mc_ref[...],
                                     preferred_element_type=jnp.float32),
                             axis=0, keepdims=True)
            ch_sq = jnp.sum(jnp.dot(y * y, mc_ref[...],
                                    preferred_element_type=jnp.float32),
                            axis=0, keepdims=True)
            inv_n = 1.0 / count
            mean = ch_sum * inv_n
            var = ch_sq * inv_n - mean * mean          # biased (training mode)
            scale = g_ref[...] * jax.lax.rsqrt(var + _BN_EPS)
            shift = b_ref[...] - mean * scale
            # Broadcast per-channel scalars to the flat column axis; mct has
            # zero columns at pad positions so padding stays exactly zero.
            scale_c = jnp.dot(scale, mct_ref[...],
                              preferred_element_type=jnp.float32)
            shift_c = jnp.dot(shift, mct_ref[...],
                              preferred_element_type=jnp.float32)
            return lrelu(y * scale_c + shift_c)

        a2 = lrelu(conv(a1_ref[...], d1_ref, r1_ref))             # (2N*34?, ..)
        a3 = bn_lrelu(conv(a2, d2_ref, r2_ref),
                      mc2_ref, mct2_ref, g2_ref, b2_ref, cnt2) * rm2_ref[...]
        a4 = bn_lrelu(conv(a3, d3_ref, r3_ref),
                      mc3_ref, mct3_ref, g3_ref, b3_ref, cnt3) * rm3_ref[...]
        a5 = bn_lrelu(conv(a4, d4_ref, r4_ref),
                      mc4_ref, mct4_ref, g4_ref, b4_ref, cnt4)
        logits = conv(a5, d5_ref, r5_ref)                          # (N, 1)
        o_ref[...] = 1.0 / (1.0 + jnp.exp(-logits))

    operands = [a1,
                d_list[0], r_list[0], d_list[1], r_list[1],
                d_list[2], r_list[2], d_list[3], r_list[3],
                d_list[4], r_list[4],
                mc_l[0], mct_l[0], g2, b2, rm_l[0],
                mc_l[1], mct_l[1], g3, b3, rm_l[1],
                mc_l[2], mct_l[2], g4, b4]
    in_specs = [_full_spec(op.shape) for op in operands]

    probs = pl.pallas_call(
        kernel,
        out_shape=jax.ShapeDtypeStruct((n, 1), jnp.float32),
        grid_spec=pltpu.PrefetchScalarGridSpec(
            num_scalar_prefetch=0, grid=(1,),
            in_specs=in_specs,
            out_specs=_full_spec((n, 1))),
        compiler_params=pltpu.CompilerParams(
            dimension_semantics=("arbitrary",),
            vmem_limit_bytes=_VMEM_LIMIT_BYTES),
    )(*operands)
    return probs.reshape(n, 1, 1, 1)


# ---------------------------------------------------------------------------
# Parameters + pure-JAX reference (for correctness checking)
# ---------------------------------------------------------------------------
def init_params(key, nc=3, ndf=8):
    ks = jax.random.split(key, 8)

    def conv_w(k, cout, cin):
        return 0.02 * jax.random.normal(k, (cout, cin, 4, 4), jnp.float32)

    return {
        "w1": conv_w(ks[0], ndf, nc),
        "w2": conv_w(ks[1], ndf * 2, ndf),
        "w3": conv_w(ks[2], ndf * 4, ndf * 2),
        "w4": conv_w(ks[3], ndf * 8, ndf * 4),
        "w5": conv_w(ks[4], 1, ndf * 8),
        "g2": 1.0 + 0.02 * jax.random.normal(ks[5], (ndf * 2,), jnp.float32),
        "b2": jnp.zeros((ndf * 2,), jnp.float32),
        "g3": 1.0 + 0.02 * jax.random.normal(ks[6], (ndf * 4,), jnp.float32),
        "b3": jnp.zeros((ndf * 4,), jnp.float32),
        "g4": 1.0 + 0.02 * jax.random.normal(ks[7], (ndf * 8,), jnp.float32),
        "b4": jnp.zeros((ndf * 8,), jnp.float32),
    }


def _reference_forward(params, x):
    def conv(inp, wgt, stride, pad):
        dn = jax.lax.conv_dimension_numbers(inp.shape, wgt.shape,
                                            ("NCHW", "OIHW", "NCHW"))
        return jax.lax.conv_general_dilated(
            inp, wgt, (stride, stride), ((pad, pad), (pad, pad)),
            dimension_numbers=dn, precision=jax.lax.Precision.HIGHEST)

    def bn(v, g, b):
        mean = jnp.mean(v, axis=(0, 2, 3), keepdims=True)
        var = jnp.mean((v - mean) ** 2, axis=(0, 2, 3), keepdims=True)
        return ((v - mean) * jax.lax.rsqrt(var + _BN_EPS)
                * g.reshape(1, -1, 1, 1) + b.reshape(1, -1, 1, 1))

    def lrelu(v):
        return jnp.where(v >= 0, v, _NEG_SLOPE * v)

    a = lrelu(conv(x, params["w1"], 2, 1))
    a = lrelu(bn(conv(a, params["w2"], 2, 1), params["g2"], params["b2"]))
    a = lrelu(bn(conv(a, params["w3"], 2, 1), params["g3"], params["b3"]))
    a = lrelu(bn(conv(a, params["w4"], 2, 1), params["g4"], params["b4"]))
    a = conv(a, params["w5"], 1, 0)
    return 1.0 / (1.0 + jnp.exp(-a))


if __name__ == "__main__":
    key = jax.random.PRNGKey(0)
    kp, kx = jax.random.split(key)
    nc, ndf = 3, 8                    # small depth; spatial must be 64 so the
    x = jax.random.normal(kx, (2, nc, 64, 64), jnp.float32)  # final conv -> 1x1
    params = init_params(kp, nc=nc, ndf=ndf)

    out = jax.jit(discriminator_forward)(params, x)
    out = jax.block_until_ready(out)

    assert out.shape == (2, 1, 1, 1), out.shape
    assert bool(jnp.all((out >= 0.0) & (out <= 1.0)))
    ref = jax.jit(_reference_forward)(params, x)
    assert bool(jnp.allclose(out, ref, atol=5e-3)), (out.ravel(), ref.ravel())
    print("KERNEL_OK")
</pallas_src>

<mosaic_0001>
module attributes {stable_mosaic.version = 11 : i64} {
  func.func @kernel(%arg0: i32, %arg1: memref<132x198xf32, #tpu.memory_space<vmem>>, %arg2: memref<4x198x272xf32, #tpu.memory_space<vmem>>, %arg3: memref<4x68x132xf32, #tpu.memory_space<vmem>>, %arg4: memref<4x272x288xf32, #tpu.memory_space<vmem>>, %arg5: memref<4x36x68xf32, #tpu.memory_space<vmem>>, %arg6: memref<4x288x320xf32, #tpu.memory_space<vmem>>, %arg7: memref<4x20x36xf32, #tpu.memory_space<vmem>>, %arg8: memref<4x320x256xf32, #tpu.memory_space<vmem>>, %arg9: memref<4x8x20xf32, #tpu.memory_space<vmem>>, %arg10: memref<4x256x1xf32, #tpu.memory_space<vmem>>, %arg11: memref<4x2x8xf32, #tpu.memory_space<vmem>>, %arg12: memref<288x16xf32, #tpu.memory_space<vmem>>, %arg13: memref<16x288xf32, #tpu.memory_space<vmem>>, %arg14: memref<1x16xf32, #tpu.memory_space<vmem>>, %arg15: memref<1x16xf32, #tpu.memory_space<vmem>>, %arg16: memref<36x1xf32, #tpu.memory_space<vmem>>, %arg17: memref<320x32xf32, #tpu.memory_space<vmem>>, %arg18: memref<32x320xf32, #tpu.memory_space<vmem>>, %arg19: memref<1x32xf32, #tpu.memory_space<vmem>>, %arg20: memref<1x32xf32, #tpu.memory_space<vmem>>, %arg21: memref<20x1xf32, #tpu.memory_space<vmem>>, %arg22: memref<256x64xf32, #tpu.memory_space<vmem>>, %arg23: memref<64x256xf32, #tpu.memory_space<vmem>>, %arg24: memref<1x64xf32, #tpu.memory_space<vmem>>, %arg25: memref<1x64xf32, #tpu.memory_space<vmem>>, %arg26: memref<2x1xf32, #tpu.memory_space<vmem>>) attributes {dimension_semantics = [#tpu.dimension_semantics<arbitrary>], iteration_bounds = array<i64: 1>, scalar_prefetch = 0 : i64, scratch_operands = 0 : i64, tpu.core_type = #tpu.core_type<tc>, window_params = [{pipeline_mode = #tpu.pipeline_mode<synchronous>, transform_indices = @transform_0, window_bounds = array<i64: 132, 198>}, {pipeline_mode = #tpu.pipeline_mode<synchronous>, transform_indices = @transform_1, window_bounds = array<i64: 4, 198, 272>}, {pipeline_mode = #tpu.pipeline_mode<synchronous>, transform_indices = @transform_2, window_bounds = array<i64: 4, 68, 132>}, {pipeline_mode = #tpu.pipeline_mode<synchronous>, transform_indices = @transform_3, window_bounds = array<i64: 4, 272, 288>}, {pipeline_mode = #tpu.pipeline_mode<synchronous>, transform_indices = @transform_4, window_bounds = array<i64: 4, 36, 68>}, {pipeline_mode = #tpu.pipeline_mode<synchronous>, transform_indices = @transform_5, window_bounds = array<i64: 4, 288, 320>}, {pipeline_mode = #tpu.pipeline_mode<synchronous>, transform_indices = @transform_6, window_bounds = array<i64: 4, 20, 36>}, {pipeline_mode = #tpu.pipeline_mode<synchronous>, transform_indices = @transform_7, window_bounds = array<i64: 4, 320, 256>}, {pipeline_mode = #tpu.pipeline_mode<synchronous>, transform_indices = @transform_8, window_bounds = array<i64: 4, 8, 20>}, {pipeline_mode = #tpu.pipeline_mode<synchronous>, transform_indices = @transform_9, window_bounds = array<i64: 4, 256, 1>}, {pipeline_mode = #tpu.pipeline_mode<synchronous>, transform_indices = @transform_10, window_bounds = array<i64: 4, 2, 8>}, {pipeline_mode = #tpu.pipeline_mode<synchronous>, transform_indices = @transform_11, window_bounds = array<i64: 288, 16>}, {pipeline_mode = #tpu.pipeline_mode<synchronous>, transform_indices = @transform_12, window_bounds = array<i64: 16, 288>}, {pipeline_mode = #tpu.pipeline_mode<synchronous>, transform_indices = @transform_13, window_bounds = array<i64: 1, 16>}, {pipeline_mode = #tpu.pipeline_mode<synchronous>, transform_indices = @transform_14, window_bounds = array<i64: 1, 16>}, {pipeline_mode = #tpu.pipeline_mode<synchronous>, transform_indices = @transform_15, window_bounds = array<i64: 36, 1>}, {pipeline_mode = #tpu.pipeline_mode<synchronous>, transform_indices = @transform_16, window_bounds = array<i64: 320, 32>}, {pipeline_mode = #tpu.pipeline_mode<synchronous>, transform_indices = @transform_17, window_bounds = array<i64: 32, 320>}, {pipeline_mode = #tpu.pipeline_mode<synchronous>, transform_indices = @transform_18, window_bounds = array<i64: 1, 32>}, {pipeline_mode = #tpu.pipeline_mode<synchronous>, transform_indices = @transform_19, window_bounds = array<i64: 1, 32>}, {pipeline_mode = #tpu.pipeline_mode<synchronous>, transform_indices = @transform_20, window_bounds = array<i64: 20, 1>}, {pipeline_mode = #tpu.pipeline_mode<synchronous>, transform_indices = @transform_21, window_bounds = array<i64: 256, 64>}, {pipeline_mode = #tpu.pipeline_mode<synchronous>, transform_indices = @transform_22, window_bounds = array<i64: 64, 256>}, {pipeline_mode = #tpu.pipeline_mode<synchronous>, transform_indices = @transform_23, window_bounds = array<i64: 1, 64>}, {pipeline_mode = #tpu.pipeline_mode<synchronous>, transform_indices = @transform_24, window_bounds = array<i64: 1, 64>}, {pipeline_mode = #tpu.pipeline_mode<synchronous>, transform_indices = @transform_25, window_bounds = array<i64: 2, 1>}]} {
    %c0 = arith.constant 0 : index
    %c0_0 = arith.constant 0 : index
    %0 = vector.load %arg1[%c0, %c0_0] : memref<132x198xf32, #tpu.memory_space<vmem>>, vector<132x198xf32>
    %c0_1 = arith.constant 0 : index
    %c0_2 = arith.constant 0 : index
    %c0_3 = arith.constant 0 : index
    %1 = vector.load %arg3[%c0_1, %c0_2, %c0_3] : memref<4x68x132xf32, #tpu.memory_space<vmem>>, vector<1x68x132xf32>
    %2 = vector.shape_cast %1 : vector<1x68x132xf32> to vector<68x132xf32>
    %cst = arith.constant dense<0.000000e+00> : vector<68x198xf32>
    %3 = tpu.matmul %2, %0, %cst {dimension_numbers = #tpu.dot_dimension_numbers<[1], [0], [0], [1], [0, 0, 1, 1], [], []>} : vector<68x132xf32>, vector<132x198xf32>, vector<68x198xf32> -> vector<68x198xf32>
    %c0_4 = arith.constant 0 : index
    %c0_5 = arith.constant 0 : index
    %c0_6 = arith.constant 0 : index
    %4 = vector.load %arg2[%c0_4, %c0_5, %c0_6] : memref<4x198x272xf32, #tpu.memory_space<vmem>>, vector<1x198x272xf32>
    %5 = vector.shape_cast %4 : vector<1x198x272xf32> to vector<198x272xf32>
    %cst_7 = arith.constant dense<0.000000e+00> : vector<68x272xf32>
    %6 = tpu.matmul %3, %5, %cst_7 {dimension_numbers = #tpu.dot_dimension_numbers<[1], [0], [0], [1], [0, 0, 1, 1], [], []>} : vector<68x198xf32>, vector<198x272xf32>, vector<68x272xf32> -> vector<68x272xf32>
    %c1 = arith.constant 1 : index
    %c0_8 = arith.constant 0 : index
    %c0_9 = arith.constant 0 : index
    %7 = vector.load %arg3[%c1, %c0_8, %c0_9] : memref<4x68x132xf32, #tpu.memory_space<vmem>>, vector<1x68x132xf32>
    %8 = vector.shape_cast %7 : vector<1x68x132xf32> to vector<68x132xf32>
    %cst_10 = arith.constant dense<0.000000e+00> : vector<68x198xf32>
    %9 = tpu.matmul %8, %0, %cst_10 {dimension_numbers = #tpu.dot_dimension_numbers<[1], [0], [0], [1], [0, 0, 1, 1], [], []>} : vector<68x132xf32>, vector<132x198xf32>, vector<68x198xf32> -> vector<68x198xf32>
    %c1_11 = arith.constant 1 : index
    %c0_12 = arith.constant 0 : index
    %c0_13 = arith.constant 0 : index
    %10 = vector.load %arg2[%c1_11, %c0_12, %c0_13] : memref<4x198x272xf32, #tpu.memory_space<vmem>>, vector<1x198x272xf32>
    %11 = vector.shape_cast %10 : vector<1x198x272xf32> to vector<198x272xf32>
    %cst_14 = arith.constant dense<0.000000e+00> : vector<68x272xf32>
    %12 = tpu.matmul %9, %11, %cst_14 {dimension_numbers = #tpu.dot_dimension_numbers<[1], [0], [0], [1], [0, 0, 1, 1], [], []>} : vector<68x198xf32>, vector<198x272xf32>, vector<68x272xf32> -> vector<68x272xf32>
    %13 = arith.addf %6, %12 : vector<68x272xf32>
    %c2 = arith.constant 2 : index
    %c0_15 = arith.constant 0 : index
    %c0_16 = arith.constant 0 : index
    %14 = vector.load %arg3[%c2, %c0_15, %c0_16] : memref<4x68x132xf32, #tpu.memory_space<vmem>>, vector<1x68x132xf32>
    %15 = vector.shape_cast %14 : vector<1x68x132xf32> to vector<68x132xf32>
    %cst_17 = arith.constant dense<0.000000e+00> : vector<68x198xf32>
    %16 = tpu.matmul %15, %0, %cst_17 {dimension_numbers = #tpu.dot_dimension_numbers<[1], [0], [0], [1], [0, 0, 1, 1], [], []>} : vector<68x132xf32>, vector<132x198xf32>, vector<68x198xf32> -> vector<68x198xf32>
    %c2_18 = arith.constant 2 : index
    %c0_19 = arith.constant 0 : index
    %c0_20 = arith.constant 0 : index
    %17 = vector.load %arg2[%c2_18, %c0_19, %c0_20] : memref<4x198x272xf32, #tpu.memory_space<vmem>>, vector<1x198x272xf32>
    %18 = vector.shape_cast %17 : vector<1x198x272xf32> to vector<198x272xf32>
    %cst_21 = arith.constant dense<0.000000e+00> : vector<68x272xf32>
    %19 = tpu.matmul %16, %18, %cst_21 {dimension_numbers = #tpu.dot_dimension_numbers<[1], [0], [0], [1], [0, 0, 1, 1], [], []>} : vector<68x198xf32>, vector<198x272xf32>, vector<68x272xf32> -> vector<68x272xf32>
    %20 = arith.addf %13, %19 : vector<68x272xf32>
    %c3 = arith.constant 3 : index
    %c0_22 = arith.constant 0 : index
    %c0_23 = arith.constant 0 : index
    %21 = vector.load %arg3[%c3, %c0_22, %c0_23] : memref<4x68x132xf32, #tpu.memory_space<vmem>>, vector<1x68x132xf32>
    %22 = vector.shape_cast %21 : vector<1x68x132xf32> to vector<68x132xf32>
    %cst_24 = arith.constant dense<0.000000e+00> : vector<68x198xf32>
    %23 = tpu.matmul %22, %0, %cst_24 {dimension_numbers = #tpu.dot_dimension_numbers<[1], [0], [0], [1], [0, 0, 1, 1], [], []>} : vector<68x132xf32>, vector<132x198xf32>, vector<68x198xf32> -> vector<68x198xf32>
    %c3_25 = arith.constant 3 : index
    %c0_26 = arith.constant 0 : index
    %c0_27 = arith.constant 0 : index
    %24 = vector.load %arg2[%c3_25, %c0_26, %c0_27] : memref<4x198x272xf32, #tpu.memory_space<vmem>>, vector<1x198x272xf32>
    %25 = vector.shape_cast %24 : vector<1x198x272xf32> to vector<198x272xf32>
    %cst_28 = arith.constant dense<0.000000e+00> : vector<68x272xf32>
    %26 = tpu.matmul %23, %25, %cst_28 {dimension_numbers = #tpu.dot_dimension_numbers<[1], [0], [0], [1], [0, 0, 1, 1], [], []>} : vector<68x198xf32>, vector<198x272xf32>, vector<68x272xf32> -> vector<68x272xf32>
    %27 = arith.addf %20, %26 : vector<68x272xf32>
    %cst_29 = arith.constant 0.000000e+00 : f32
    %28 = vector.broadcast %cst_29 : f32 to vector<68x272xf32>
    %29 = arith.cmpf oge, %27, %28 : vector<68x272xf32>
    %cst_30 = arith.constant 2.000000e-01 : f32
    %30 = vector.broadcast %cst_30 : f32 to vector<68x272xf32>
    %31 = arith.mulf %30, %27 : vector<68x272xf32>
    %32 = arith.select %29, %27, %31 : vector<68x272xi1>, vector<68x272xf32>
    %c0_31 = arith.constant 0 : index
    %c0_32 = arith.constant 0 : index
    %c0_33 = arith.constant 0 : index
    %33 = vector.load %arg5[%c0_31, %c0_32, %c0_33] : memref<4x36x68xf32, #tpu.memory_space<vmem>>, vector<1x36x68xf32>
    %34 = vector.shape_cast %33 : vector<1x36x68xf32> to vector<36x68xf32>
    %cst_34 = arith.constant dense<0.000000e+00> : vector<36x272xf32>
    %35 = tpu.matmul %34, %32, %cst_34 {dimension_numbers = #tpu.dot_dimension_numbers<[1], [0], [0], [1], [0, 0, 1, 1], [], []>} : vector<36x68xf32>, vector<68x272xf32>, vector<36x272xf32> -> vector<36x272xf32>
    %c0_35 = arith.constant 0 : index
    %c0_36 = arith.constant 0 : index
    %c0_37 = arith.constant 0 : index
    %36 = vector.load %arg4[%c0_35, %c0_36, %c0_37] : memref<4x272x288xf32, #tpu.memory_space<vmem>>, vector<1x272x288xf32>
    %37 = vector.shape_cast %36 : vector<1x272x288xf32> to vector<272x288xf32>
    %cst_38 = arith.constant dense<0.000000e+00> : vector<36x288xf32>
    %38 = tpu.matmul %35, %37, %cst_38 {dimension_numbers = #tpu.dot_dimension_numbers<[1], [0], [0], [1], [0, 0, 1, 1], [], []>} : vector<36x272xf32>, vector<272x288xf32>, vector<36x288xf32> -> vector<36x288xf32>
    %c1_39 = arith.constant 1 : index
    %c0_40 = arith.constant 0 : index
    %c0_41 = arith.constant 0 : index
    %39 = vector.load %arg5[%c1_39, %c0_40, %c0_41] : memref<4x36x68xf32, #tpu.memory_space<vmem>>, vector<1x36x68xf32>
    %40 = vector.shape_cast %39 : vector<1x36x68xf32> to vector<36x68xf32>
    %cst_42 = arith.constant dense<0.000000e+00> : vector<36x272xf32>
    %41 = tpu.matmul %40, %32, %cst_42 {dimension_numbers = #tpu.dot_dimension_numbers<[1], [0], [0], [1], [0, 0, 1, 1], [], []>} : vector<36x68xf32>, vector<68x272xf32>, vector<36x272xf32> -> vector<36x272xf32>
    %c1_43 = arith.constant 1 : index
    %c0_44 = arith.constant 0 : index
    %c0_45 = arith.constant 0 : index
    %42 = vector.load %arg4[%c1_43, %c0_44, %c0_45] : memref<4x272x288xf32, #tpu.memory_space<vmem>>, vector<1x272x288xf32>
    %43 = vector.shape_cast %42 : vector<1x272x288xf32> to vector<272x288xf32>
    %cst_46 = arith.constant dense<0.000000e+00> : vector<36x288xf32>
    %44 = tpu.matmul %41, %43, %cst_46 {dimension_numbers = #tpu.dot_dimension_numbers<[1], [0], [0], [1], [0, 0, 1, 1], [], []>} : vector<36x272xf32>, vector<272x288xf32>, vector<36x288xf32> -> vector<36x288xf32>
    %45 = arith.addf %38, %44 : vector<36x288xf32>
    %c2_47 = arith.constant 2 : index
    %c0_48 = arith.constant 0 : index
    %c0_49 = arith.constant 0 : index
    %46 = vector.load %arg5[%c2_47, %c0_48, %c0_49] : memref<4x36x68xf32, #tpu.memory_space<vmem>>, vector<1x36x68xf32>
    %47 = vector.shape_cast %46 : vector<1x36x68xf32> to vector<36x68xf32>
    %cst_50 = arith.constant dense<0.000000e+00> : vector<36x272xf32>
    %48 = tpu.matmul %47, %32, %cst_50 {dimension_numbers = #tpu.dot_dimension_numbers<[1], [0], [0], [1], [0, 0, 1, 1], [], []>} : vector<36x68xf32>, vector<68x272xf32>, vector<36x272xf32> -> vector<36x272xf32>
    %c2_51 = arith.constant 2 : index
    %c0_52 = arith.constant 0 : index
    %c0_53 = arith.constant 0 : index
    %49 = vector.load %arg4[%c2_51, %c0_52, %c0_53] : memref<4x272x288xf32, #tpu.memory_space<vmem>>, vector<1x272x288xf32>
    %50 = vector.shape_cast %49 : vector<1x272x288xf32> to vector<272x288xf32>
    %cst_54 = arith.constant dense<0.000000e+00> : vector<36x288xf32>
    %51 = tpu.matmul %48, %50, %cst_54 {dimension_numbers = #tpu.dot_dimension_numbers<[1], [0], [0], [1], [0, 0, 1, 1], [], []>} : vector<36x272xf32>, vector<272x288xf32>, vector<36x288xf32> -> vector<36x288xf32>
    %52 = arith.addf %45, %51 : vector<36x288xf32>
    %c3_55 = arith.constant 3 : index
    %c0_56 = arith.constant 0 : index
    %c0_57 = arith.constant 0 : index
    %53 = vector.load %arg5[%c3_55, %c0_56, %c0_57] : memref<4x36x68xf32, #tpu.memory_space<vmem>>, vector<1x36x68xf32>
    %54 = vector.shape_cast %53 : vector<1x36x68xf32> to vector<36x68xf32>
    %cst_58 = arith.constant dense<0.000000e+00> : vector<36x272xf32>
    %55 = tpu.matmul %54, %32, %cst_58 {dimension_numbers = #tpu.dot_dimension_numbers<[1], [0], [0], [1], [0, 0, 1, 1], [], []>} : vector<36x68xf32>, vector<68x272xf32>, vector<36x272xf32> -> vector<36x272xf32>
    %c3_59 = arith.constant 3 : index
    %c0_60 = arith.constant 0 : index
    %c0_61 = arith.constant 0 : index
    %56 = vector.load %arg4[%c3_59, %c0_60, %c0_61] : memref<4x272x288xf32, #tpu.memory_space<vmem>>, vector<1x272x288xf32>
    %57 = vector.shape_cast %56 : vector<1x272x288xf32> to vector<272x288xf32>
    %cst_62 = arith.constant dense<0.000000e+00> : vector<36x288xf32>
    %58 = tpu.matmul %55, %57, %cst_62 {dimension_numbers = #tpu.dot_dimension_numbers<[1], [0], [0], [1], [0, 0, 1, 1], [], []>} : vector<36x272xf32>, vector<272x288xf32>, vector<36x288xf32> -> vector<36x288xf32>
    %59 = arith.addf %52, %58 : vector<36x288xf32>
    %c0_63 = arith.constant 0 : index
    %c0_64 = arith.constant 0 : index
    %60 = vector.load %arg12[%c0_63, %c0_64] : memref<288x16xf32, #tpu.memory_space<vmem>>, vector<288x16xf32>
    %cst_65 = arith.constant dense<0.000000e+00> : vector<36x16xf32>
    %61 = tpu.matmul %59, %60, %cst_65 {dimension_numbers = #tpu.dot_dimension_numbers<[1], [0], [0], [1], [0, 0, 1, 1], [], []>} : vector<36x288xf32>, vector<288x16xf32>, vector<36x16xf32> -> vector<36x16xf32>
    %cst_66 = arith.constant dense<0.000000e+00> : vector<16xf32>
    %62 = vector.multi_reduction <add>, %61, %cst_66 [0] : vector<36x16xf32> to vector<16xf32>
    %63 = vector.shape_cast %62 : vector<16xf32> to vector<1x16xf32>
    %64 = arith.mulf %59, %59 : vector<36x288xf32>
    %c0_67 = arith.constant 0 : index
    %c0_68 = arith.constant 0 : index
    %65 = vector.load %arg12[%c0_67, %c0_68] : memref<288x16xf32, #tpu.memory_space<vmem>>, vector<288x16xf32>
    %cst_69 = arith.constant dense<0.000000e+00> : vector<36x16xf32>
    %66 = tpu.matmul %64, %65, %cst_69 {dimension_numbers = #tpu.dot_dimension_numbers<[1], [0], [0], [1], [0, 0, 1, 1], [], []>} : vector<36x288xf32>, vector<288x16xf32>, vector<36x16xf32> -> vector<36x16xf32>
    %cst_70 = arith.constant dense<0.000000e+00> : vector<16xf32>
    %67 = vector.multi_reduction <add>, %66, %cst_70 [0] : vector<36x16xf32> to vector<16xf32>
    %68 = vector.shape_cast %67 : vector<16xf32> to vector<1x16xf32>
    %cst_71 = arith.constant 0.001953125 : f32
    %69 = vector.broadcast %cst_71 : f32 to vector<1x16xf32>
    %70 = arith.mulf %63, %69 : vector<1x16xf32>
    %cst_72 = arith.constant 0.001953125 : f32
    %71 = vector.broadcast %cst_72 : f32 to vector<1x16xf32>
    %72 = arith.mulf %68, %71 : vector<1x16xf32>
    %73 = arith.mulf %70, %70 : vector<1x16xf32>
    %74 = arith.subf %72, %73 : vector<1x16xf32>
    %c0_73 = arith.constant 0 : index
    %c0_74 = arith.constant 0 : index
    %75 = vector.load %arg14[%c0_73, %c0_74] : memref<1x16xf32, #tpu.memory_space<vmem>>, vector<1x16xf32>
    %cst_75 = arith.constant 9.99999974E-6 : f32
    %76 = vector.broadcast %cst_75 : f32 to vector<1x16xf32>
    %77 = arith.addf %74, %76 : vector<1x16xf32>
    %78 = math.rsqrt %77 : vector<1x16xf32>
    %79 = arith.mulf %75, %78 : vector<1x16xf32>
    %c0_76 = arith.constant 0 : index
    %c0_77 = arith.constant 0 : index
    %80 = vector.load %arg15[%c0_76, %c0_77] : memref<1x16xf32, #tpu.memory_space<vmem>>, vector<1x16xf32>
    %81 = arith.mulf %70, %79 : vector<1x16xf32>
    %82 = arith.subf %80, %81 : vector<1x16xf32>
    %c0_78 = arith.constant 0 : index
    %c0_79 = arith.constant 0 : index
    %83 = vector.load %arg13[%c0_78, %c0_79] : memref<16x288xf32, #tpu.memory_space<vmem>>, vector<16x288xf32>
    %cst_80 = arith.constant dense<0.000000e+00> : vector<1x288xf32>
    %84 = tpu.matmul %79, %83, %cst_80 {dimension_numbers = #tpu.dot_dimension_numbers<[1], [0], [0], [1], [0, 0, 1, 1], [], []>} : vector<1x16xf32>, vector<16x288xf32>, vector<1x288xf32> -> vector<1x288xf32>
    %c0_81 = arith.constant 0 : index
    %c0_82 = arith.constant 0 : index
    %85 = vector.load %arg13[%c0_81, %c0_82] : memref<16x288xf32, #tpu.memory_space<vmem>>, vector<16x288xf32>
    %cst_83 = arith.constant dense<0.000000e+00> : vector<1x288xf32>
    %86 = tpu.matmul %82, %85, %cst_83 {dimension_numbers = #tpu.dot_dimension_numbers<[1], [0], [0], [1], [0, 0, 1, 1], [], []>} : vector<1x16xf32>, vector<16x288xf32>, vector<1x288xf32> -> vector<1x288xf32>
    %87 = vector.broadcast %84 : vector<1x288xf32> to vector<36x288xf32>
    %88 = arith.mulf %59, %87 : vector<36x288xf32>
    %89 = vector.broadcast %86 : vector<1x288xf32> to vector<36x288xf32>
    %90 = arith.addf %88, %89 : vector<36x288xf32>
    %cst_84 = arith.constant 0.000000e+00 : f32
    %91 = vector.broadcast %cst_84 : f32 to vector<36x288xf32>
    %92 = arith.cmpf oge, %90, %91 : vector<36x288xf32>
    %cst_85 = arith.constant 2.000000e-01 : f32
    %93 = vector.broadcast %cst_85 : f32 to vector<36x288xf32>
    %94 = arith.mulf %93, %90 : vector<36x288xf32>
    %95 = arith.select %92, %90, %94 : vector<36x288xi1>, vector<36x288xf32>
    %c0_86 = arith.constant 0 : index
    %c0_87 = arith.constant 0 : index
    %96 = vector.load %arg16[%c0_86, %c0_87] : memref<36x1xf32, #tpu.memory_space<vmem>>, vector<36x1xf32>
    %97 = vector.broadcast %96 : vector<36x1xf32> to vector<36x288xf32>
    %98 = arith.mulf %95, %97 : vector<36x288xf32>
    %c0_88 = arith.constant 0 : index
    %c0_89 = arith.constant 0 : index
    %c0_90 = arith.constant 0 : index
    %99 = vector.load %arg7[%c0_88, %c0_89, %c0_90] : memref<4x20x36xf32, #tpu.memory_space<vmem>>, vector<1x20x36xf32>
    %100 = vector.shape_cast %99 : vector<1x20x36xf32> to vector<20x36xf32>
    %cst_91 = arith.constant dense<0.000000e+00> : vector<20x288xf32>
    %101 = tpu.matmul %100, %98, %cst_91 {dimension_numbers = #tpu.dot_dimension_numbers<[1], [0], [0], [1], [0, 0, 1, 1], [], []>} : vector<20x36xf32>, vector<36x288xf32>, vector<20x288xf32> -> vector<20x288xf32>
    %c0_92 = arith.constant 0 : index
    %c0_93 = arith.constant 0 : index
    %c0_94 = arith.constant 0 : index
    %102 = vector.load %arg6[%c0_92, %c0_93, %c0_94] : memref<4x288x320xf32, #tpu.memory_space<vmem>>, vector<1x288x320xf32>
    %103 = vector.shape_cast %102 : vector<1x288x320xf32> to vector<288x320xf32>
    %cst_95 = arith.constant dense<0.000000e+00> : vector<20x320xf32>
    %104 = tpu.matmul %101, %103, %cst_95 {dimension_numbers = #tpu.dot_dimension_numbers<[1], [0], [0], [1], [0, 0, 1, 1], [], []>} : vector<20x288xf32>, vector<288x320xf32>, vector<20x320xf32> -> vector<20x320xf32>
    %c1_96 = arith.constant 1 : index
    %c0_97 = arith.constant 0 : index
    %c0_98 = arith.constant 0 : index
    %105 = vector.load %arg7[%c1_96, %c0_97, %c0_98] : memref<4x20x36xf32, #tpu.memory_space<vmem>>, vector<1x20x36xf32>
    %106 = vector.shape_cast %105 : vector<1x20x36xf32> to vector<20x36xf32>
    %cst_99 = arith.constant dense<0.000000e+00> : vector<20x288xf32>
    %107 = tpu.matmul %106, %98, %cst_99 {dimension_numbers = #tpu.dot_dimension_numbers<[1], [0], [0], [1], [0, 0, 1, 1], [], []>} : vector<20x36xf32>, vector<36x288xf32>, vector<20x288xf32> -> vector<20x288xf32>
    %c1_100 = arith.constant 1 : index
    %c0_101 = arith.constant 0 : index
    %c0_102 = arith.constant 0 : index
    %108 = vector.load %arg6[%c1_100, %c0_101, %c0_102] : memref<4x288x320xf32, #tpu.memory_space<vmem>>, vector<1x288x320xf32>
    %109 = vector.shape_cast %108 : vector<1x288x320xf32> to vector<288x320xf32>
    %cst_103 = arith.constant dense<0.000000e+00> : vector<20x320xf32>
    %110 = tpu.matmul %107, %109, %cst_103 {dimension_numbers = #tpu.dot_dimension_numbers<[1], [0], [0], [1], [0, 0, 1, 1], [], []>} : vector<20x288xf32>, vector<288x320xf32>, vector<20x320xf32> -> vector<20x320xf32>
    %111 = arith.addf %104, %110 : vector<20x320xf32>
    %c2_104 = arith.constant 2 : index
    %c0_105 = arith.constant 0 : index
    %c0_106 = arith.constant 0 : index
    %112 = vector.load %arg7[%c2_104, %c0_105, %c0_106] : memref<4x20x36xf32, #tpu.memory_space<vmem>>, vector<1x20x36xf32>
    %113 = vector.shape_cast %112 : vector<1x20x36xf32> to vector<20x36xf32>
    %cst_107 = arith.constant dense<0.000000e+00> : vector<20x288xf32>
    %114 = tpu.matmul %113, %98, %cst_107 {dimension_numbers = #tpu.dot_dimension_numbers<[1], [0], [0], [1], [0, 0, 1, 1], [], []>} : vector<20x36xf32>, vector<36x288xf32>, vector<20x288xf32> -> vector<20x288xf32>
    %c2_108 = arith.constant 2 : index
    %c0_109 = arith.constant 0 : index
    %c0_110 = arith.constant 0 : index
    %115 = vector.load %arg6[%c2_108, %c0_109, %c0_110] : memref<4x288x320xf32, #tpu.memory_space<vmem>>, vector<1x288x320xf32>
    %116 = vector.shape_cast %115 : vector<1x288x320xf32> to vector<288x320xf32>
    %cst_111 = arith.constant dense<0.000000e+00> : vector<20x320xf32>
    %117 = tpu.matmul %114, %116, %cst_111 {dimension_numbers = #tpu.dot_dimension_numbers<[1], [0], [0], [1], [0, 0, 1, 1], [], []>} : vector<20x288xf32>, vector<288x320xf32>, vector<20x320xf32> -> vector<20x320xf32>
    %118 = arith.addf %111, %117 : vector<20x320xf32>
    %c3_112 = arith.constant 3 : index
    %c0_113 = arith.constant 0 : index
    %c0_114 = arith.constant 0 : index
    %119 = vector.load %arg7[%c3_112, %c0_113, %c0_114] : memref<4x20x36xf32, #tpu.memory_space<vmem>>, vector<1x20x36xf32>
    %120 = vector.shape_cast %119 : vector<1x20x36xf32> to vector<20x36xf32>
    %cst_115 = arith.constant dense<0.000000e+00> : vector<20x288xf32>
    %121 = tpu.matmul %120, %98, %cst_115 {dimension_numbers = #tpu.dot_dimension_numbers<[1], [0], [0], [1], [0, 0, 1, 1], [], []>} : vector<20x36xf32>, vector<36x288xf32>, vector<20x288xf32> -> vector<20x288xf32>
    %c3_116 = arith.constant 3 : index
    %c0_117 = arith.constant 0 : index
    %c0_118 = arith.constant 0 : index
    %122 = vector.load %arg6[%c3_116, %c0_117, %c0_118] : memref<4x288x320xf32, #tpu.memory_space<vmem>>, vector<1x288x320xf32>
    %123 = vector.shape_cast %122 : vector<1x288x320xf32> to vector<288x320xf32>
    %cst_119 = arith.constant dense<0.000000e+00> : vector<20x320xf32>
    %124 = tpu.matmul %121, %123, %cst_119 {dimension_numbers = #tpu.dot_dimension_numbers<[1], [0], [0], [1], [0, 0, 1, 1], [], []>} : vector<20x288xf32>, vector<288x320xf32>, vector<20x320xf32> -> vector<20x320xf32>
    %125 = arith.addf %118, %124 : vector<20x320xf32>
    %c0_120 = arith.constant 0 : index
    %c0_121 = arith.constant 0 : index
    %126 = vector.load %arg17[%c0_120, %c0_121] : memref<320x32xf32, #tpu.memory_space<vmem>>, vector<320x32xf32>
    %cst_122 = arith.constant dense<0.000000e+00> : vector<20x32xf32>
    %127 = tpu.matmul %125, %126, %cst_122 {dimension_numbers = #tpu.dot_dimension_numbers<[1], [0], [0], [1], [0, 0, 1, 1], [], []>} : vector<20x320xf32>, vector<320x32xf32>, vector<20x32xf32> -> vector<20x32xf32>
    %cst_123 = arith.constant dense<0.000000e+00> : vector<32xf32>
    %128 = vector.multi_reduction <add>, %127, %cst_123 [0] : vector<20x32xf32> to vector<32xf32>
    %129 = vector.shape_cast %128 : vector<32xf32> to vector<1x32xf32>
    %130 = arith.mulf %125, %125 : vector<20x320xf32>
    %c0_124 = arith.constant 0 : index
    %c0_125 = arith.constant 0 : index
    %131 = vector.load %arg17[%c0_124, %c0_125] : memref<320x32xf32, #tpu.memory_space<vmem>>, vector<320x32xf32>
    %cst_126 = arith.constant dense<0.000000e+00> : vector<20x32xf32>
    %132 = tpu.matmul %130, %131, %cst_126 {dimension_numbers = #tpu.dot_dimension_numbers<[1], [0], [0], [1], [0, 0, 1, 1], [], []>} : vector<20x320xf32>, vector<320x32xf32>, vector<20x32xf32> -> vector<20x32xf32>
    %cst_127 = arith.constant dense<0.000000e+00> : vector<32xf32>
    %133 = vector.multi_reduction <add>, %132, %cst_127 [0] : vector<20x32xf32> to vector<32xf32>
    %134 = vector.shape_cast %133 : vector<32xf32> to vector<1x32xf32>
    %cst_128 = arith.constant 7.812500e-03 : f32
    %135 = vector.broadcast %cst_128 : f32 to vector<1x32xf32>
    %136 = arith.mulf %129, %135 : vector<1x32xf32>
    %cst_129 = arith.constant 7.812500e-03 : f32
    %137 = vector.broadcast %cst_129 : f32 to vector<1x32xf32>
    %138 = arith.mulf %134, %137 : vector<1x32xf32>
    %139 = arith.mulf %136, %136 : vector<1x32xf32>
    %140 = arith.subf %138, %139 : vector<1x32xf32>
    %c0_130 = arith.constant 0 : index
    %c0_131 = arith.constant 0 : index
    %141 = vector.load %arg19[%c0_130, %c0_131] : memref<1x32xf32, #tpu.memory_space<vmem>>, vector<1x32xf32>
    %cst_132 = arith.constant 9.99999974E-6 : f32
    %142 = vector.broadcast %cst_132 : f32 to vector<1x32xf32>
    %143 = arith.addf %140, %142 : vector<1x32xf32>
    %144 = math.rsqrt %143 : vector<1x32xf32>
    %145 = arith.mulf %141, %144 : vector<1x32xf32>
    %c0_133 = arith.constant 0 : index
    %c0_134 = arith.constant 0 : index
    %146 = vector.load %arg20[%c0_133, %c0_134] : memref<1x32xf32, #tpu.memory_space<vmem>>, vector<1x32xf32>
    %147 = arith.mulf %136, %145 : vector<1x32xf32>
    %148 = arith.subf %146, %147 : vector<1x32xf32>
    %c0_135 = arith.constant 0 : index
    %c0_136 = arith.constant 0 : index
    %149 = vector.load %arg18[%c0_135, %c0_136] : memref<32x320xf32, #tpu.memory_space<vmem>>, vector<32x320xf32>
    %cst_137 = arith.constant dense<0.000000e+00> : vector<1x320xf32>
    %150 = tpu.matmul %145, %149, %cst_137 {dimension_numbers = #tpu.dot_dimension_numbers<[1], [0], [0], [1], [0, 0, 1, 1], [], []>} : vector<1x32xf32>, vector<32x320xf32>, vector<1x320xf32> -> vector<1x320xf32>
    %c0_138 = arith.constant 0 : index
    %c0_139 = arith.constant 0 : index
    %151 = vector.load %arg18[%c0_138, %c0_139] : memref<32x320xf32, #tpu.memory_space<vmem>>, vector<32x320xf32>
    %cst_140 = arith.constant dense<0.000000e+00> : vector<1x320xf32>
    %152 = tpu.matmul %148, %151, %cst_140 {dimension_numbers = #tpu.dot_dimension_numbers<[1], [0], [0], [1], [0, 0, 1, 1], [], []>} : vector<1x32xf32>, vector<32x320xf32>, vector<1x320xf32> -> vector<1x320xf32>
    %153 = vector.broadcast %150 : vector<1x320xf32> to vector<20x320xf32>
    %154 = arith.mulf %125, %153 : vector<20x320xf32>
    %155 = vector.broadcast %152 : vector<1x320xf32> to vector<20x320xf32>
    %156 = arith.addf %154, %155 : vector<20x320xf32>
    %cst_141 = arith.constant 0.000000e+00 : f32
    %157 = vector.broadcast %cst_141 : f32 to vector<20x320xf32>
    %158 = arith.cmpf oge, %156, %157 : vector<20x320xf32>
    %cst_142 = arith.constant 2.000000e-01 : f32
    %159 = vector.broadcast %cst_142 : f32 to vector<20x320xf32>
    %160 = arith.mulf %159, %156 : vector<20x320xf32>
    %161 = arith.select %158, %156, %160 : vector<20x320xi1>, vector<20x320xf32>
    %c0_143 = arith.constant 0 : index
    %c0_144 = arith.constant 0 : index
    %162 = vector.load %arg21[%c0_143, %c0_144] : memref<20x1xf32, #tpu.memory_space<vmem>>, vector<20x1xf32>
    %163 = vector.broadcast %162 : vector<20x1xf32> to vector<20x320xf32>
    %164 = arith.mulf %161, %163 : vector<20x320xf32>
    %c0_145 = arith.constant 0 : index
    %c0_146 = arith.constant 0 : index
    %c0_147 = arith.constant 0 : index
    %165 = vector.load %arg9[%c0_145, %c0_146, %c0_147] : memref<4x8x20xf32, #tpu.memory_space<vmem>>, vector<1x8x20xf32>
    %166 = vector.shape_cast %165 : vector<1x8x20xf32> to vector<8x20xf32>
    %cst_148 = arith.constant dense<0.000000e+00> : vector<8x320xf32>
    %167 = tpu.matmul %166, %164, %cst_148 {dimension_numbers = #tpu.dot_dimension_numbers<[1], [0], [0], [1], [0, 0, 1, 1], [], []>} : vector<8x20xf32>, vector<20x320xf32>, vector<8x320xf32> -> vector<8x320xf32>
    %c0_149 = arith.constant 0 : index
    %c0_150 = arith.constant 0 : index
    %c0_151 = arith.constant 0 : index
    %168 = vector.load %arg8[%c0_149, %c0_150, %c0_151] : memref<4x320x256xf32, #tpu.memory_space<vmem>>, vector<1x320x256xf32>
    %169 = vector.shape_cast %168 : vector<1x320x256xf32> to vector<320x256xf32>
    %cst_152 = arith.constant dense<0.000000e+00> : vector<8x256xf32>
    %170 = tpu.matmul %167, %169, %cst_152 {dimension_numbers = #tpu.dot_dimension_numbers<[1], [0], [0], [1], [0, 0, 1, 1], [], []>} : vector<8x320xf32>, vector<320x256xf32>, vector<8x256xf32> -> vector<8x256xf32>
    %c1_153 = arith.constant 1 : index
    %c0_154 = arith.constant 0 : index
    %c0_155 = arith.constant 0 : index
    %171 = vector.load %arg9[%c1_153, %c0_154, %c0_155] : memref<4x8x20xf32, #tpu.memory_space<vmem>>, vector<1x8x20xf32>
    %172 = vector.shape_cast %171 : vector<1x8x20xf32> to vector<8x20xf32>
    %cst_156 = arith.constant dense<0.000000e+00> : vector<8x320xf32>
    %173 = tpu.matmul %172, %164, %cst_156 {dimension_numbers = #tpu.dot_dimension_numbers<[1], [0], [0], [1], [0, 0, 1, 1], [], []>} : vector<8x20xf32>, vector<20x320xf32>, vector<8x320xf32> -> vector<8x320xf32>
    %c1_157 = arith.constant 1 : index
    %c0_158 = arith.constant 0 : index
    %c0_159 = arith.constant 0 : index
    %174 = vector.load %arg8[%c1_157, %c0_158, %c0_159] : memref<4x320x256xf32, #tpu.memory_space<vmem>>, vector<1x320x256xf32>
    %175 = vector.shape_cast %174 : vector<1x320x256xf32> to vector<320x256xf32>
    %cst_160 = arith.constant dense<0.000000e+00> : vector<8x256xf32>
    %176 = tpu.matmul %173, %175, %cst_160 {dimension_numbers = #tpu.dot_dimension_numbers<[1], [0], [0], [1], [0, 0, 1, 1], [], []>} : vector<8x320xf32>, vector<320x256xf32>, vector<8x256xf32> -> vector<8x256xf32>
    %177 = arith.addf %170, %176 : vector<8x256xf32>
    %c2_161 = arith.constant 2 : index
    %c0_162 = arith.constant 0 : index
    %c0_163 = arith.constant 0 : index
    %178 = vector.load %arg9[%c2_161, %c0_162, %c0_163] : memref<4x8x20xf32, #tpu.memory_space<vmem>>, vector<1x8x20xf32>
    %179 = vector.shape_cast %178 : vector<1x8x20xf32> to vector<8x20xf32>
    %cst_164 = arith.constant dense<0.000000e+00> : vector<8x320xf32>
    %180 = tpu.matmul %179, %164, %cst_164 {dimension_numbers = #tpu.dot_dimension_numbers<[1], [0], [0], [1], [0, 0, 1, 1], [], []>} : vector<8x20xf32>, vector<20x320xf32>, vector<8x320xf32> -> vector<8x320xf32>
    %c2_165 = arith.constant 2 : index
    %c0_166 = arith.constant 0 : index
    %c0_167 = arith.constant 0 : index
    %181 = vector.load %arg8[%c2_165, %c0_166, %c0_167] : memref<4x320x256xf32, #tpu.memory_space<vmem>>, vector<1x320x256xf32>
    %182 = vector.shape_cast %181 : vector<1x320x256xf32> to vector<320x256xf32>
    %cst_168 = arith.constant dense<0.000000e+00> : vector<8x256xf32>
    %183 = tpu.matmul %180, %182, %cst_168 {dimension_numbers = #tpu.dot_dimension_numbers<[1], [0], [0], [1], [0, 0, 1, 1], [], []>} : vector<8x320xf32>, vector<320x256xf32>, vector<8x256xf32> -> vector<8x256xf32>
    %184 = arith.addf %177, %183 : vector<8x256xf32>
    %c3_169 = arith.constant 3 : index
    %c0_170 = arith.constant 0 : index
    %c0_171 = arith.constant 0 : index
    %185 = vector.load %arg9[%c3_169, %c0_170, %c0_171] : memref<4x8x20xf32, #tpu.memory_space<vmem>>, vector<1x8x20xf32>
    %186 = vector.shape_cast %185 : vector<1x8x20xf32> to vector<8x20xf32>
    %cst_172 = arith.constant dense<0.000000e+00> : vector<8x320xf32>
    %187 = tpu.matmul %186, %164, %cst_172 {dimension_numbers = #tpu.dot_dimension_numbers<[1], [0], [0], [1], [0, 0, 1, 1], [], []>} : vector<8x20xf32>, vector<20x320xf32>, vector<8x320xf32> -> vector<8x320xf32>
    %c3_173 = arith.constant 3 : index
    %c0_174 = arith.constant 0 : index
    %c0_175 = arith.constant 0 : index
    %188 = vector.load %arg8[%c3_173, %c0_174, %c0_175] : memref<4x320x256xf32, #tpu.memory_space<vmem>>, vector<1x320x256xf32>
    %189 = vector.shape_cast %188 : vector<1x320x256xf32> to vector<320x256xf32>
    %cst_176 = arith.constant dense<0.000000e+00> : vector<8x256xf32>
    %190 = tpu.matmul %187, %189, %cst_176 {dimension_numbers = #tpu.dot_dimension_numbers<[1], [0], [0], [1], [0, 0, 1, 1], [], []>} : vector<8x320xf32>, vector<320x256xf32>, vector<8x256xf32> -> vector<8x256xf32>
    %191 = arith.addf %184, %190 : vector<8x256xf32>
    %c0_177 = arith.constant 0 : index
    %c0_178 = arith.constant 0 : index
    %192 = vector.load %arg22[%c0_177, %c0_178] : memref<256x64xf32, #tpu.memory_space<vmem>>, vector<256x64xf32>
    %cst_179 = arith.constant dense<0.000000e+00> : vector<8x64xf32>
    %193 = tpu.matmul %191, %192, %cst_179 {dimension_numbers = #tpu.dot_dimension_numbers<[1], [0], [0], [1], [0, 0, 1, 1], [], []>} : vector<8x256xf32>, vector<256x64xf32>, vector<8x64xf32> -> vector<8x64xf32>
    %cst_180 = arith.constant dense<0.000000e+00> : vector<64xf32>
    %194 = vector.multi_reduction <add>, %193, %cst_180 [0] : vector<8x64xf32> to vector<64xf32>
    %195 = vector.shape_cast %194 : vector<64xf32> to vector<1x64xf32>
    %196 = arith.mulf %191, %191 : vector<8x256xf32>
    %c0_181 = arith.constant 0 : index
    %c0_182 = arith.constant 0 : index
    %197 = vector.load %arg22[%c0_181, %c0_182] : memref<256x64xf32, #tpu.memory_space<vmem>>, vector<256x64xf32>
    %cst_183 = arith.constant dense<0.000000e+00> : vector<8x64xf32>
    %198 = tpu.matmul %196, %197, %cst_183 {dimension_numbers = #tpu.dot_dimension_numbers<[1], [0], [0], [1], [0, 0, 1, 1], [], []>} : vector<8x256xf32>, vector<256x64xf32>, vector<8x64xf32> -> vector<8x64xf32>
    %cst_184 = arith.constant dense<0.000000e+00> : vector<64xf32>
    %199 = vector.multi_reduction <add>, %198, %cst_184 [0] : vector<8x64xf32> to vector<64xf32>
    %200 = vector.shape_cast %199 : vector<64xf32> to vector<1x64xf32>
    %cst_185 = arith.constant 3.125000e-02 : f32
    %201 = vector.broadcast %cst_185 : f32 to vector<1x64xf32>
    %202 = arith.mulf %195, %201 : vector<1x64xf32>
    %cst_186 = arith.constant 3.125000e-02 : f32
    %203 = vector.broadcast %cst_186 : f32 to vector<1x64xf32>
    %204 = arith.mulf %200, %203 : vector<1x64xf32>
    %205 = arith.mulf %202, %202 : vector<1x64xf32>
    %206 = arith.subf %204, %205 : vector<1x64xf32>
    %c0_187 = arith.constant 0 : index
    %c0_188 = arith.constant 0 : index
    %207 = vector.load %arg24[%c0_187, %c0_188] : memref<1x64xf32, #tpu.memory_space<vmem>>, vector<1x64xf32>
    %cst_189 = arith.constant 9.99999974E-6 : f32
    %208 = vector.broadcast %cst_189 : f32 to vector<1x64xf32>
    %209 = arith.addf %206, %208 : vector<1x64xf32>
    %210 = math.rsqrt %209 : vector<1x64xf32>
    %211 = arith.mulf %207, %210 : vector<1x64xf32>
    %c0_190 = arith.constant 0 : index
    %c0_191 = arith.constant 0 : index
    %212 = vector.load %arg25[%c0_190, %c0_191] : memref<1x64xf32, #tpu.memory_space<vmem>>, vector<1x64xf32>
    %213 = arith.mulf %202, %211 : vector<1x64xf32>
    %214 = arith.subf %212, %213 : vector<1x64xf32>
    %c0_192 = arith.constant 0 : index
    %c0_193 = arith.constant 0 : index
    %215 = vector.load %arg23[%c0_192, %c0_193] : memref<64x256xf32, #tpu.memory_space<vmem>>, vector<64x256xf32>
    %cst_194 = arith.constant dense<0.000000e+00> : vector<1x256xf32>
    %216 = tpu.matmul %211, %215, %cst_194 {dimension_numbers = #tpu.dot_dimension_numbers<[1], [0], [0], [1], [0, 0, 1, 1], [], []>} : vector<1x64xf32>, vector<64x256xf32>, vector<1x256xf32> -> vector<1x256xf32>
    %c0_195 = arith.constant 0 : index
    %c0_196 = arith.constant 0 : index
    %217 = vector.load %arg23[%c0_195, %c0_196] : memref<64x256xf32, #tpu.memory_space<vmem>>, vector<64x256xf32>
    %cst_197 = arith.constant dense<0.000000e+00> : vector<1x256xf32>
    %218 = tpu.matmul %214, %217, %cst_197 {dimension_numbers = #tpu.dot_dimension_numbers<[1], [0], [0], [1], [0, 0, 1, 1], [], []>} : vector<1x64xf32>, vector<64x256xf32>, vector<1x256xf32> -> vector<1x256xf32>
    %219 = vector.broadcast %216 : vector<1x256xf32> to vector<8x256xf32>
    %220 = arith.mulf %191, %219 : vector<8x256xf32>
    %221 = vector.broadcast %218 : vector<1x256xf32> to vector<8x256xf32>
    %222 = arith.addf %220, %221 : vector<8x256xf32>
    %cst_198 = arith.constant 0.000000e+00 : f32
    %223 = vector.broadcast %cst_198 : f32 to vector<8x256xf32>
    %224 = arith.cmpf oge, %222, %223 : vector<8x256xf32>
    %cst_199 = arith.constant 2.000000e-01 : f32
    %225 = vector.broadcast %cst_199 : f32 to vector<8x256xf32>
    %226 = arith.mulf %225, %222 : vector<8x256xf32>
    %227 = arith.select %224, %222, %226 : vector<8x256xi1>, vector<8x256xf32>
    %c0_200 = arith.constant 0 : index
    %c0_201 = arith.constant 0 : index
    %c0_202 = arith.constant 0 : index
    %228 = vector.load %arg11[%c0_200, %c0_201, %c0_202] : memref<4x2x8xf32, #tpu.memory_space<vmem>>, vector<1x2x8xf32>
    %229 = vector.shape_cast %228 : vector<1x2x8xf32> to vector<2x8xf32>
    %cst_203 = arith.constant dense<0.000000e+00> : vector<2x256xf32>
    %230 = tpu.matmul %229, %227, %cst_203 {dimension_numbers = #tpu.dot_dimension_numbers<[1], [0], [0], [1], [0, 0, 1, 1], [], []>} : vector<2x8xf32>, vector<8x256xf32>, vector<2x256xf32> -> vector<2x256xf32>
    %c0_204 = arith.constant 0 : index
    %c0_205 = arith.constant 0 : index
    %c0_206 = arith.constant 0 : index
    %231 = vector.load %arg10[%c0_204, %c0_205, %c0_206] : memref<4x256x1xf32, #tpu.memory_space<vmem>>, vector<1x256x1xf32>
    %232 = vector.shape_cast %231 : vector<1x256x1xf32> to vector<256x1xf32>
    %cst_207 = arith.constant dense<0.000000e+00> : vector<2x1xf32>
    %233 = tpu.matmul %230, %232, %cst_207 {dimension_numbers = #tpu.dot_dimension_numbers<[1], [0], [0], [1], [0, 0, 1, 1], [], []>} : vector<2x256xf32>, vector<256x1xf32>, vector<2x1xf32> -> vector<2x1xf32>
    %c1_208 = arith.constant 1 : index
    %c0_209 = arith.constant 0 : index
    %c0_210 = arith.constant 0 : index
    %234 = vector.load %arg11[%c1_208, %c0_209, %c0_210] : memref<4x2x8xf32, #tpu.memory_space<vmem>>, vector<1x2x8xf32>
    %235 = vector.shape_cast %234 : vector<1x2x8xf32> to vector<2x8xf32>
    %cst_211 = arith.constant dense<0.000000e+00> : vector<2x256xf32>
    %236 = tpu.matmul %235, %227, %cst_211 {dimension_numbers = #tpu.dot_dimension_numbers<[1], [0], [0], [1], [0, 0, 1, 1], [], []>} : vector<2x8xf32>, vector<8x256xf32>, vector<2x256xf32> -> vector<2x256xf32>
    %c1_212 = arith.constant 1 : index
    %c0_213 = arith.constant 0 : index
    %c0_214 = arith.constant 0 : index
    %237 = vector.load %arg10[%c1_212, %c0_213, %c0_214] : memref<4x256x1xf32, #tpu.memory_space<vmem>>, vector<1x256x1xf32>
    %238 = vector.shape_cast %237 : vector<1x256x1xf32> to vector<256x1xf32>
    %cst_215 = arith.constant dense<0.000000e+00> : vector<2x1xf32>
    %239 = tpu.matmul %236, %238, %cst_215 {dimension_numbers = #tpu.dot_dimension_numbers<[1], [0], [0], [1], [0, 0, 1, 1], [], []>} : vector<2x256xf32>, vector<256x1xf32>, vector<2x1xf32> -> vector<2x1xf32>
    %240 = arith.addf %233, %239 : vector<2x1xf32>
    %c2_216 = arith.constant 2 : index
    %c0_217 = arith.constant 0 : index
    %c0_218 = arith.constant 0 : index
    %241 = vector.load %arg11[%c2_216, %c0_217, %c0_218] : memref<4x2x8xf32, #tpu.memory_space<vmem>>, vector<1x2x8xf32>
    %242 = vector.shape_cast %241 : vector<1x2x8xf32> to vector<2x8xf32>
    %cst_219 = arith.constant dense<0.000000e+00> : vector<2x256xf32>
    %243 = tpu.matmul %242, %227, %cst_219 {dimension_numbers = #tpu.dot_dimension_numbers<[1], [0], [0], [1], [0, 0, 1, 1], [], []>} : vector<2x8xf32>, vector<8x256xf32>, vector<2x256xf32> -> vector<2x256xf32>
    %c2_220 = arith.constant 2 : index
    %c0_221 = arith.constant 0 : index
    %c0_222 = arith.constant 0 : index
    %244 = vector.load %arg10[%c2_220, %c0_221, %c0_222] : memref<4x256x1xf32, #tpu.memory_space<vmem>>, vector<1x256x1xf32>
    %245 = vector.shape_cast %244 : vector<1x256x1xf32> to vector<256x1xf32>
    %cst_223 = arith.constant dense<0.000000e+00> : vector<2x1xf32>
    %246 = tpu.matmul %243, %245, %cst_223 {dimension_numbers = #tpu.dot_dimension_numbers<[1], [0], [0], [1], [0, 0, 1, 1], [], []>} : vector<2x256xf32>, vector<256x1xf32>, vector<2x1xf32> -> vector<2x1xf32>
    %247 = arith.addf %240, %246 : vector<2x1xf32>
    %c3_224 = arith.constant 3 : index
    %c0_225 = arith.constant 0 : index
    %c0_226 = arith.constant 0 : index
    %248 = vector.load %arg11[%c3_224, %c0_225, %c0_226] : memref<4x2x8xf32, #tpu.memory_space<vmem>>, vector<1x2x8xf32>
    %249 = vector.shape_cast %248 : vector<1x2x8xf32> to vector<2x8xf32>
    %cst_227 = arith.constant dense<0.000000e+00> : vector<2x256xf32>
    %250 = tpu.matmul %249, %227, %cst_227 {dimension_numbers = #tpu.dot_dimension_numbers<[1], [0], [0], [1], [0, 0, 1, 1], [], []>} : vector<2x8xf32>, vector<8x256xf32>, vector<2x256xf32> -> vector<2x256xf32>
    %c3_228 = arith.constant 3 : index
    %c0_229 = arith.constant 0 : index
    %c0_230 = arith.constant 0 : index
    %251 = vector.load %arg10[%c3_228, %c0_229, %c0_230] : memref<4x256x1xf32, #tpu.memory_space<vmem>>, vector<1x256x1xf32>
    %252 = vector.shape_cast %251 : vector<1x256x1xf32> to vector<256x1xf32>
    %cst_231 = arith.constant dense<0.000000e+00> : vector<2x1xf32>
    %253 = tpu.matmul %250, %252, %cst_231 {dimension_numbers = #tpu.dot_dimension_numbers<[1], [0], [0], [1], [0, 0, 1, 1], [], []>} : vector<2x256xf32>, vector<256x1xf32>, vector<2x1xf32> -> vector<2x1xf32>
    %254 = arith.addf %247, %253 : vector<2x1xf32>
    %cst_232 = arith.constant 0.000000e+00 : f32
    %255 = vector.broadcast %cst_232 : f32 to vector<2x1xf32>
    %256 = arith.subf %255, %254 : vector<2x1xf32>
    %257 = math.exp %256 : vector<2x1xf32>
    %cst_233 = arith.constant 1.000000e+00 : f32
    %258 = vector.broadcast %cst_233 : f32 to vector<2x1xf32>
    %259 = arith.addf %258, %257 : vector<2x1xf32>
    %cst_234 = arith.constant 1.000000e+00 : f32
    %260 = vector.broadcast %cst_234 : f32 to vector<2x1xf32>
    %261 = arith.divf %260, %259 : vector<2x1xf32>
    %c0_235 = arith.constant 0 : index
    %c0_236 = arith.constant 0 : index
    %262 = vector.load %arg26[%c0_235, %c0_236] : memref<2x1xf32, #tpu.memory_space<vmem>>, vector<2x1xf32>
    tpu.vector_store %arg26[%c0_235, %c0_236], %261 {strides = array<i32>} : memref<2x1xf32, #tpu.memory_space<vmem>>, vector<2x1xf32>,
    return
  }
  func.func @transform_0(%arg0: i32) -> (i32, i32) {
    %c0_i32 = arith.constant 0 : i32
    %c0_i32_0 = arith.constant 0 : i32
    %c0_i32_1 = arith.constant 0 : i32
    return %c0_i32, %c0_i32_0 : i32, i32
  }
  func.func @transform_1(%arg0: i32) -> (i32, i32, i32) {
    %c0_i32 = arith.constant 0 : i32
    %c0_i32_0 = arith.constant 0 : i32
    %c0_i32_1 = arith.constant 0 : i32
    %c0_i32_2 = arith.constant 0 : i32
    return %c0_i32, %c0_i32_0, %c0_i32_1 : i32, i32, i32
  }
  func.func @transform_2(%arg0: i32) -> (i32, i32, i32) {
    %c0_i32 = arith.constant 0 : i32
    %c0_i32_0 = arith.constant 0 : i32
    %c0_i32_1 = arith.constant 0 : i32
    %c0_i32_2 = arith.constant 0 : i32
    return %c0_i32, %c0_i32_0, %c0_i32_1 : i32, i32, i32
  }
  func.func @transform_3(%arg0: i32) -> (i32, i32, i32) {
    %c0_i32 = arith.constant 0 : i32
    %c0_i32_0 = arith.constant 0 : i32
    %c0_i32_1 = arith.constant 0 : i32
    %c0_i32_2 = arith.constant 0 : i32
    return %c0_i32, %c0_i32_0, %c0_i32_1 : i32, i32, i32
  }
  func.func @transform_4(%arg0: i32) -> (i32, i32, i32) {
    %c0_i32 = arith.constant 0 : i32
    %c0_i32_0 = arith.constant 0 : i32
    %c0_i32_1 = arith.constant 0 : i32
    %c0_i32_2 = arith.constant 0 : i32
    return %c0_i32, %c0_i32_0, %c0_i32_1 : i32, i32, i32
  }
  func.func @transform_5(%arg0: i32) -> (i32, i32, i32) {
    %c0_i32 = arith.constant 0 : i32
    %c0_i32_0 = arith.constant 0 : i32
    %c0_i32_1 = arith.constant 0 : i32
    %c0_i32_2 = arith.constant 0 : i32
    return %c0_i32, %c0_i32_0, %c0_i32_1 : i32, i32, i32
  }
  func.func @transform_6(%arg0: i32) -> (i32, i32, i32) {
    %c0_i32 = arith.constant 0 : i32
    %c0_i32_0 = arith.constant 0 : i32
    %c0_i32_1 = arith.constant 0 : i32
    %c0_i32_2 = arith.constant 0 : i32
    return %c0_i32, %c0_i32_0, %c0_i32_1 : i32, i32, i32
  }
  func.func @transform_7(%arg0: i32) -> (i32, i32, i32) {
    %c0_i32 = arith.constant 0 : i32
    %c0_i32_0 = arith.constant 0 : i32
    %c0_i32_1 = arith.constant 0 : i32
    %c0_i32_2 = arith.constant 0 : i32
    return %c0_i32, %c0_i32_0, %c0_i32_1 : i32, i32, i32
  }
  func.func @transform_8(%arg0: i32) -> (i32, i32, i32) {
    %c0_i32 = arith.constant 0 : i32
    %c0_i32_0 = arith.constant 0 : i32
    %c0_i32_1 = arith.constant 0 : i32
    %c0_i32_2 = arith.constant 0 : i32
    return %c0_i32, %c0_i32_0, %c0_i32_1 : i32, i32, i32
  }
  func.func @transform_9(%arg0: i32) -> (i32, i32, i32) {
    %c0_i32 = arith.constant 0 : i32
    %c0_i32_0 = arith.constant 0 : i32
    %c0_i32_1 = arith.constant 0 : i32
    %c0_i32_2 = arith.constant 0 : i32
    return %c0_i32, %c0_i32_0, %c0_i32_1 : i32, i32, i32
  }
  func.func @transform_10(%arg0: i32) -> (i32, i32, i32) {
    %c0_i32 = arith.constant 0 : i32
    %c0_i32_0 = arith.constant 0 : i32
    %c0_i32_1 = arith.constant 0 : i32
    %c0_i32_2 = arith.constant 0 : i32
    return %c0_i32, %c0_i32_0, %c0_i32_1 : i32, i32, i32
  }
  func.func @transform_11(%arg0: i32) -> (i32, i32) {
    %c0_i32 = arith.constant 0 : i32
    %c0_i32_0 = arith.constant 0 : i32
    %c0_i32_1 = arith.constant 0 : i32
    return %c0_i32, %c0_i32_0 : i32, i32
  }
  func.func @transform_12(%arg0: i32) -> (i32, i32) {
    %c0_i32 = arith.constant 0 : i32
    %c0_i32_0 = arith.constant 0 : i32
    %c0_i32_1 = arith.constant 0 : i32
    return %c0_i32, %c0_i32_0 : i32, i32
  }
  func.func @transform_13(%arg0: i32) -> (i32, i32) {
    %c0_i32 = arith.constant 0 : i32
    %c0_i32_0 = arith.constant 0 : i32
    %c0_i32_1 = arith.constant 0 : i32
    return %c0_i32, %c0_i32_0 : i32, i32
  }
  func.func @transform_14(%arg0: i32) -> (i32, i32) {
    %c0_i32 = arith.constant 0 : i32
    %c0_i32_0 = arith.constant 0 : i32
    %c0_i32_1 = arith.constant 0 : i32
    return %c0_i32, %c0_i32_0 : i32, i32
  }
  func.func @transform_15(%arg0: i32) -> (i32, i32) {
    %c0_i32 = arith.constant 0 : i32
    %c0_i32_0 = arith.constant 0 : i32
    %c0_i32_1 = arith.constant 0 : i32
    return %c0_i32, %c0_i32_0 : i32, i32
  }
  func.func @transform_16(%arg0: i32) -> (i32, i32) {
    %c0_i32 = arith.constant 0 : i32
    %c0_i32_0 = arith.constant 0 : i32
    %c0_i32_1 = arith.constant 0 : i32
    return %c0_i32, %c0_i32_0 : i32, i32
  }
  func.func @transform_17(%arg0: i32) -> (i32, i32) {
    %c0_i32 = arith.constant 0 : i32
    %c0_i32_0 = arith.constant 0 : i32
    %c0_i32_1 = arith.constant 0 : i32
    return %c0_i32, %c0_i32_0 : i32, i32
  }
  func.func @transform_18(%arg0: i32) -> (i32, i32) {
    %c0_i32 = arith.constant 0 : i32
    %c0_i32_0 = arith.constant 0 : i32
    %c0_i32_1 = arith.constant 0 : i32
    return %c0_i32, %c0_i32_0 : i32, i32
  }
  func.func @transform_19(%arg0: i32) -> (i32, i32) {
    %c0_i32 = arith.constant 0 : i32
    %c0_i32_0 = arith.constant 0 : i32
    %c0_i32_1 = arith.constant 0 : i32
    return %c0_i32, %c0_i32_0 : i32, i32
  }
  func.func @transform_20(%arg0: i32) -> (i32, i32) {
    %c0_i32 = arith.constant 0 : i32
    %c0_i32_0 = arith.constant 0 : i32
    %c0_i32_1 = arith.constant 0 : i32
    return %c0_i32, %c0_i32_0 : i32, i32
  }
  func.func @transform_21(%arg0: i32) -> (i32, i32) {
    %c0_i32 = arith.constant 0 : i32
    %c0_i32_0 = arith.constant 0 : i32
    %c0_i32_1 = arith.constant 0 : i32
    return %c0_i32, %c0_i32_0 : i32, i32
  }
  func.func @transform_22(%arg0: i32) -> (i32, i32) {
    %c0_i32 = arith.constant 0 : i32
    %c0_i32_0 = arith.constant 0 : i32
    %c0_i32_1 = arith.constant 0 : i32
    return %c0_i32, %c0_i32_0 : i32, i32
  }
  func.func @transform_23(%arg0: i32) -> (i32, i32) {
    %c0_i32 = arith.constant 0 : i32
    %c0_i32_0 = arith.constant 0 : i32
    %c0_i32_1 = arith.constant 0 : i32
    return %c0_i32, %c0_i32_0 : i32, i32
  }
  func.func @transform_24(%arg0: i32) -> (i32, i32) {
    %c0_i32 = arith.constant 0 : i32
    %c0_i32_0 = arith.constant 0 : i32
    %c0_i32_1 = arith.constant 0 : i32
    return %c0_i32, %c0_i32_0 : i32, i32
  }
  func.func @transform_25(%arg0: i32) -> (i32, i32) {
    %c0_i32 = arith.constant 0 : i32
    %c0_i32_0 = arith.constant 0 : i32
    %c0_i32_1 = arith.constant 0 : i32
    return %c0_i32, %c0_i32_0 : i32, i32
  }
}

</mosaic_0001>

<bundles_post_ra>
// kernel: discriminator_forward.1
= control target key start
LH: loop header
LB: loop body
LE: loop exit
PB: predicated region body
PF: predicated region fallthrough
CT: control target
= control target key end

     0   :  { %vm132_vm0 = vcmask 31744   ;;  %vm160_vm1 = vcmask 1043456   ;;  %v23875_v46 = vmov 0.0   ;;  %vm630_vm2 = vcmask 1045504   ;;  %s23840_s0 = inlined_call_operand.vmem [shape: f32[132,198], index: 0, kind: input, shape index: {}]   ;;  %s23841_s2 = inlined_call_operand.vmem [shape: f32[4,68,132], index: 2, kind: input, shape index: {}]   ;;  %s23842_s1 = inlined_call_operand.vmem [shape: f32[4,198,272], index: 1, kind: input, shape index: {}]   ;;  %s23843_s4 = inlined_call_operand.vmem [shape: f32[4,36,68], index: 4, kind: input, shape index: {}]   ;;  %s23844_s3 = inlined_call_operand.vmem [shape: f32[4,272,288], index: 3, kind: input, shape index: {}]   ;;  %s23845_s11 = inlined_call_operand.vmem [shape: f32[288,16], index: 11, kind: input, shape index: {}]   ;;  %s23846_s12 = inlined_call_operand.vmem [shape: f32[16,288], index: 12, kind: input, shape index: {}]   ;;  %s23847_s15 = inlined_call_operand.vmem [shape: f32[36,1], index: 15, kind: input, shape index: {}]   ;;  %s23848_s20 = inlined_call_operand.vmem [shape: f32[20,1], index: 20, kind: input, shape index: {}]   ;;  %s23849_s13 = inlined_call_operand.vmem [shape: f32[1,16], index: 13, kind: input, shape index: {}]   ;;  %s23850_s14 = inlined_call_operand.vmem [shape: f32[1,16], index: 14, kind: input, shape index: {}]   ;;  %s23851_s6 = inlined_call_operand.vmem [shape: f32[4,20,36], index: 6, kind: input, shape index: {}]   ;;  %s23852_s5 = inlined_call_operand.vmem [shape: f32[4,288,320], index: 5, kind: input, shape index: {}]   ;;  %s23853_s16 = inlined_call_operand.vmem [shape: f32[320,32], index: 16, kind: input, shape index: {}]   ;;  %s23854_s17 = inlined_call_operand.vmem [shape: f32[32,320], index: 17, kind: input, shape index: {}]   ;;  %s23855_s18 = inlined_call_operand.vmem [shape: f32[1,32], index: 18, kind: input, shape index: {}]   ;;  %s23856_s19 = inlined_call_operand.vmem [shape: f32[1,32], index: 19, kind: input, shape index: {}]   ;;  %s23857_s8 = inlined_call_operand.vmem [shape: f32[4,8,20], index: 8, kind: input, shape index: {}]   ;;  %s23858_s7 = inlined_call_operand.vmem [shape: f32[4,320,256], index: 7, kind: input, shape index: {}]   ;;  %s23859_s21 = inlined_call_operand.vmem [shape: f32[256,64], index: 21, kind: input, shape index: {}]   ;;  %s23860_s22 = inlined_call_operand.vmem [shape: f32[64,256], index: 22, kind: input, shape index: {}]   ;;  %s23861_s9 = inlined_call_operand.vmem [shape: f32[4,256,1], index: 9, kind: input, shape index: {}]   ;;  %s23862_s23 = inlined_call_operand.vmem [shape: f32[1,64], index: 23, kind: input, shape index: {}]   ;;  %s23863_s24 = inlined_call_operand.vmem [shape: f32[1,64], index: 24, kind: input, shape index: {}]   ;;  %s23864_s10 = inlined_call_operand.vmem [shape: f32[4,2,8], index: 10, kind: input, shape index: {}]   ;;  %s23865_s25 = inlined_call_operand.vmem [shape: f32[2,1], index: 25, kind: output, shape index: {}]  }
   0x1   :  { %23911 = sst [smem:[#allocation42_spill]] %s23840_s0  ;;  %vm602_vm3 = vcmask 572416   ;;  %vm15093_vm4 = vmmov 0  }
   0x2   :  { %23912 = sst [smem:[#allocation43_spill]] %s23841_s2 }
   0x3   :  { %23913 = sst [smem:[#allocation44_spill]] %s23842_s1 }
   0x4   :  { %23914 = sst [smem:[#allocation45_spill]] %s23843_s4 }
   0x5   :  { %23915 = sst [smem:[#allocation46_spill]] %s23844_s3 }
   0x6   :  { %23916 = sst [smem:[#allocation47_spill]] %s23845_s11 }
   0x7   :  { %23917 = sst [smem:[#allocation48_spill]] %s23846_s12 }
   0x8   :  { %23918 = sst [smem:[#allocation49_spill]] %s23847_s15 }
   0x9   :  { %23919 = sst [smem:[#allocation50_spill]] %s23848_s20 }
   0xa   :  { %23920 = sst [smem:[#allocation51_spill]] %s23849_s13 }
   0xb   :  { %s23921_s12 = sld [smem:[#allocation42_spill]] }
   0xc   :  { %s23922_s30 = sld [smem:[#allocation43_spill]] }
   0xd   :  { %s23923_s29 = sld [smem:[#allocation44_spill]] }
   0xe   :  { %s23976_s13 = sld [smem:[#allocation45_spill]] }
   0xf   :  { %s24068_s3 = sld [smem:[#allocation48_spill]] }
  0x11   :  { %v111_v0 = vld [vmem:[%s23921_s12 + $0xf8] sm:$0xff]  ;;  %v110_v1 = vld [vmem:[%s23921_s12 + $0xf0] sm:$0xff]  ;;  %v109_v2 = vld [vmem:[%s23921_s12 + $0xe8] sm:$0xff] }
  0x12   :  { %407 = vmatprep.subr.mxu1 %v111_v0  ;;  %v108_v3 = vld [vmem:[%s23921_s12 + $0xe0] sm:$0xff]  ;;  %167 = vmatprep.subr.mxu0 %v111_v0  ;;  %v107_v4 = vld [vmem:[%s23921_s12 + $0xd8] sm:$0xff]  ;;  %v106_v5 = vld [vmem:[%s23921_s12 + $0xd0] sm:$0xff] }
  0x13   :  { %408 = vmatpush1.msra.mxu1 %v110_v1  ;;  %168 = vmatpush1.msra.mxu0 %v110_v1  ;;  %v105_v6 = vld [vmem:[%s23921_s12 + $0xc8] sm:$0xff]  ;;  %v104_v7 = vld [vmem:[%s23921_s12 + $0xc0] sm:$0xff]  ;;  %v103_v8 = vld [vmem:[%s23921_s12 + $0xb8] sm:$0xff] }
  0x14   :  { %409 = vmatprep.subr.mxu1 %v109_v2  ;;  %169 = vmatprep.subr.mxu0 %v109_v2  ;;  %v102_v9 = vld [vmem:[%s23921_s12 + $0xb0] sm:$0xff]  ;;  %v101_v10 = vld [vmem:[%s23921_s12 + $0xa8] sm:$0xff]  ;;  %v100_v11 = vld [vmem:[%s23921_s12 + $0xa0] sm:$0xff] }
  0x15   :  { %410 = vmatpush1.msra.mxu1 %v108_v3  ;;  %170 = vmatpush1.msra.mxu0 %v108_v3  ;;  %v99_v12 = vld [vmem:[%s23921_s12 + $0x98] sm:$0xff]  ;;  %v98_v13 = vld [vmem:[%s23921_s12 + $0x90] sm:$0xff]  ;;  %v97_v15 = vld [vmem:[%s23921_s12 + $0x88] sm:$0xff] }
  0x16   :  { %411 = vmatprep.subr.mxu1 %v107_v4  ;;  %171 = vmatprep.subr.mxu0 %v107_v4  ;;  %v11972_v14 = vld [vmem:[%s23922_s30 + $0x98] sm:$0xff]  ;;  %v96_v16 = vld [vmem:[%s23921_s12 + $0x80] sm:$0xff]  ;;  %v94_v18 = vld [vmem:[%s23921_s12 + $0x70] sm:$0xff] }
  0x17   :  { %412 = vmatpush1.msra.mxu1 %v106_v5  ;;  %172 = vmatpush1.msra.mxu0 %v106_v5  ;;  %v95_v17 = vld [vmem:[%s23921_s12 + $0x78] sm:$0xff]  ;;  %v93_v19 = vld [vmem:[%s23921_s12 + $0x68] sm:$0xff]  ;;  %v92_v20 = vld [vmem:[%s23921_s12 + $0x60] sm:$0xff] }
  0x18   :  { %413 = vmatprep.subr.mxu1 %v105_v6  ;;  %173 = vmatprep.subr.mxu0 %v105_v6  ;;  %v91_v21 = vld [vmem:[%s23921_s12 + $0x58] sm:$0xff]  ;;  %v90_v22 = vld [vmem:[%s23921_s12 + $0x50] sm:$0xff]  ;;  %v89_v23 = vld [vmem:[%s23921_s12 + $0x48] sm:$0xff] }
  0x19   :  { %414 = vmatpush1.msra.mxu1 %v104_v7  ;;  %174 = vmatpush1.msra.mxu0 %v104_v7  ;;  %v88_v24 = vld [vmem:[%s23921_s12 + $0x40] sm:$0xff]  ;;  %v87_v25 = vld [vmem:[%s23921_s12 + $0x38] sm:$0xff]  ;;  %v86_v26 = vld [vmem:[%s23921_s12 + $0x30] sm:$0xff] }
  0x1a   :  { %415 = vmatprep.subr.mxu1 %v103_v8  ;;  %175 = vmatprep.subr.mxu0 %v103_v8  ;;  %v85_v27 = vld [vmem:[%s23921_s12 + $0x28] sm:$0xff]  ;;  %v84_v28 = vld [vmem:[%s23921_s12 + $0x20] sm:$0xff]  ;;  %v83_v29 = vld [vmem:[%s23921_s12 + $0x18] sm:$0xff] }
  0x1b   :  { %416 = vmatpush1.msra.mxu1 %v102_v9  ;;  %176 = vmatpush1.msra.mxu0 %v102_v9  ;;  %v82_v30 = vld [vmem:[%s23921_s12 + $0x10] sm:$0xff]  ;;  %v81_v31 = vld [vmem:[%s23921_s12 + $0x8] sm:$0xff]  ;;  %v80_v32 = vld [vmem:[%s23921_s12] sm:$0xff] }
  0x1c   :  { %417 = vmatprep.subr.mxu1 %v101_v10  ;;  %177 = vmatprep.subr.mxu0 %v101_v10  ;;  %v113_v33 = vld [vmem:[%s23921_s12 + $0x108] sm:$0xf]  ;;  %v112_v34 = vld [vmem:[%s23921_s12 + $0x100] sm:$0xf]  ;;  %v11971_v35 = vld [vmem:[%s23922_s30 + $0x90] sm:$0xff] }
  0x1d   :  { %418 = vmatpush1.msra.mxu1 %v100_v11  ;;  %11991 = vmatprep.mubr.msk.f32.mxu1 %vm132_vm0, %v11972_v14  ;;  %v11974_v36 = vld [vmem:[%s23922_s30 + $0xa8] sm:$0xff]  ;;  %v114_v38 = vld [vmem:[%s23922_s30] sm:$0xff]  ;;  %v117_v40 = vld [vmem:[%s23922_s30 + $0x18] sm:$0xff] }
  0x1e   :  { %419 = vmatprep.subr.mxu1 %v99_v12  ;;  %178 = vmatpush1.msra.mxu0 %v100_v11  ;;  %v115_v37 = vld [vmem:[%s23922_s30 + $0x8] sm:$0xff]  ;;  %v11973_v41 = vld [vmem:[%s23922_s30 + $0xa0] sm:$0xff]  ;;  %v11976_v43 = vld [vmem:[%s23922_s30 + $0xb8] sm:$0xff] }
  0x1f   :  { %420 = vmatpush1.msra.mxu1 %v98_v13  ;;  %179 = vmatprep.subr.mxu0 %v99_v12  ;;  %v12046_v39 = vld [vmem:[%s23923_s29 + $0x3c8] sm:$0xff]  ;;  %v12045_v42 = vld [vmem:[%s23923_s29 + $0x3c0] sm:$0xff]  ;;  %v12047_v44 = vld [vmem:[%s23923_s29 + $0x3d0] sm:$0xff] }
  0x20   :  { %421 = vmatprep.subr.mxu1 %v97_v15  ;;  %180 = vmatpush1.msra.mxu0 %v98_v13  ;;  %v116_v45 = vld [vmem:[%s23922_s30 + $0x10] sm:$0xff]  ;;  %v119_v48 = vld [vmem:[%s23922_s30 + $0x28] sm:$0xff]  ;;  %v12044_v52 = vld [vmem:[%s23923_s29 + $0x3b8] sm:$0xff] }
  0x21   :  { %422 = vmatpush1.msra.mxu1 %v96_v16  ;;  %181 = vmatprep.subr.mxu0 %v97_v15  ;;  %v12043_v47 = vld [vmem:[%s23923_s29 + $0x3b0] sm:$0xff]  ;;  %v12042_v50 = vld [vmem:[%s23923_s29 + $0x3a8] sm:$0xff]  ;;  %v118_v53 = vld [vmem:[%s23922_s30 + $0x20] sm:$0xff] }
  0x22   :  { %423 = vmatprep.subr.mxu1 %v95_v17  ;;  %182 = vmatpush1.msra.mxu0 %v96_v16  ;;  %v11975_v49 = vld [vmem:[%s23922_s30 + $0xb0] sm:$0xff]  ;;  %v11978_v51 = vld [vmem:[%s23922_s30 + $0xc8] sm:$0xff]  ;;  %v12040_v54 = vld [vmem:[%s23923_s29 + $0x398] sm:$0xff] }
  0x23   :  { %424 = vmatpush1.msra.mxu1 %v94_v18  ;;  %183 = vmatprep.subr.mxu0 %v95_v17  ;;  %v121_v55 = vld [vmem:[%s23922_s30 + $0x38] sm:$0xff]  ;;  %v11977_v56 = vld [vmem:[%s23922_s30 + $0xc0] sm:$0xff]  ;;  %v12039_v57 = vld [vmem:[%s23923_s29 + $0x390] sm:$0xff] }
  0x24   :  { %425 = vmatprep.subr.mxu1 %v93_v19  ;;  %184 = vmatpush1.msra.mxu0 %v94_v18  ;;  %v11980_v58 = vld [vmem:[%s23922_s30 + $0xd8] sm:$0xff]  ;;  %v12041_v59 = vld [vmem:[%s23923_s29 + $0x3a0] sm:$0xff]  ;;  %v120_v60 = vld [vmem:[%s23922_s30 + $0x30] sm:$0xff] }
  0x25   :  { %426 = vmatpush1.msra.mxu1 %v92_v20  ;;  %185 = vmatprep.subr.mxu0 %v93_v19  ;;  %v12037_v61 = vld [vmem:[%s23923_s29 + $0x380] sm:$0xff]  ;;  %v123_v62 = vld [vmem:[%s23922_s30 + $0x48] sm:$0xff]  ;;  %v11979_v63 = vld [vmem:[%s23922_s30 + $0xd0] sm:$0xff] }
  0x26   :  { %427 = vmatprep.subr.mxu1 %v91_v21  ;;  %186 = vmatpush1.msra.mxu0 %v92_v20  ;;  %v12036_v0 = vld [vmem:[%s23923_s29 + $0x378] sm:$0xff]  ;;  %v11982_v1 = vld [vmem:[%s23922_s30 + $0xe8] sm:$0xff]  ;;  %v122_v3 = vld [vmem:[%s23922_s30 + $0x40] sm:$0xff] }
  0x27   :  { %428 = vmatpush1.msra.mxu1 %v90_v22  ;;  %187 = vmatprep.subr.mxu0 %v91_v21  ;;  %v12038_v2 = vld [vmem:[%s23923_s29 + $0x388] sm:$0xff]  ;;  %v125_v5 = vld [vmem:[%s23922_s30 + $0x58] sm:$0xff]  ;;  %v11981_v6 = vld [vmem:[%s23922_s30 + $0xe0] sm:$0xff] }
  0x28   :  { %429 = vmatprep.subr.mxu1 %v89_v23  ;;  %188 = vmatpush1.msra.mxu0 %v90_v22  ;;  %v12034_v4 = vld [vmem:[%s23923_s29 + $0x368] sm:$0xff]  ;;  %v12033_v7 = vld [vmem:[%s23923_s29 + $0x360] sm:$0xff]  ;;  %v11984_v8 = vld [vmem:[%s23922_s30 + $0xf8] sm:$0xff] }
  0x29   :  { %430 = vmatpush1.msra.mxu1 %v88_v24  ;;  %189 = vmatprep.subr.mxu0 %v89_v23  ;;  %v12035_v9 = vld [vmem:[%s23923_s29 + $0x370] sm:$0xff]  ;;  %v127_v12 = vld [vmem:[%s23922_s30 + $0x68] sm:$0xff]  ;;  %v12032_v16 = vld [vmem:[%s23923_s29 + $0x358] sm:$0xff] }
  0x2a   :  { %431 = vmatprep.subr.mxu1 %v87_v25  ;;  %190 = vmatpush1.msra.mxu0 %v88_v24  ;;  %v124_v10 = vld [vmem:[%s23922_s30 + $0x50] sm:$0xff]  ;;  %v12030_v14 = vld [vmem:[%s23923_s29 + $0x348] sm:$0xff]  ;;  %v126_v17 = vld [vmem:[%s23922_s30 + $0x60] sm:$0xff] }
  0x2b   :  { %432 = vmatpush1.msra.mxu1 %v86_v26  ;;  %191 = vmatprep.subr.mxu0 %v87_v25  ;;  %v12031_v11 = vld [vmem:[%s23923_s29 + $0x350] sm:$0xff]  ;;  %v11986_v15 = vld [vmem:[%s23922_s30 + $0x108] sm:$0xff]  ;;  %v12028_v18 = vld [vmem:[%s23923_s29 + $0x338] sm:$0xff] }
  0x2c   :  { %433 = vmatprep.subr.mxu1 %v85_v27  ;;  %192 = vmatpush1.msra.mxu0 %v86_v26  ;;  %v11983_v13 = vld [vmem:[%s23922_s30 + $0xf0] sm:$0xff]  ;;  %v129_v19 = vld [vmem:[%s23922_s30 + $0x78] sm:$0xff]  ;;  %v11985_v20 = vld [vmem:[%s23922_s30 + $0x100] sm:$0xff] }
  0x2d   :  { %434 = vmatpush1.msra.mxu1 %v84_v28  ;;  %193 = vmatprep.subr.mxu0 %v85_v27  ;;  %v12027_v21 = vld [vmem:[%s23923_s29 + $0x330] sm:$0xff]  ;;  %v11988_v22 = vld [vmem:[%s23922_s30 + $0x118] sm:$0xf]  ;;  %v12029_v23 = vld [vmem:[%s23923_s29 + $0x340] sm:$0xff] }
  0x2e   :  { %435 = vmatprep.subr.mxu1 %v83_v29  ;;  %194 = vmatpush1.msra.mxu0 %v84_v28  ;;  %v128_v24 = vld [vmem:[%s23922_s30 + $0x70] sm:$0xff]  ;;  %v12025_v25 = vld [vmem:[%s23923_s29 + $0x320] sm:$0xff]  ;;  %v131_v26 = vld [vmem:[%s23922_s30 + $0x88] sm:$0xf] }
  0x2f   :  { %436 = vmatpush1.msra.mxu1 %v82_v30  ;;  %195 = vmatprep.subr.mxu0 %v83_v29  ;;  %v11987_v27 = vld [vmem:[%s23922_s30 + $0x110] sm:$0xf]  ;;  %v12024_v28 = vld [vmem:[%s23923_s29 + $0x318] sm:$0xff]  ;;  %v12026_v29 = vld [vmem:[%s23923_s29 + $0x328] sm:$0xff] }
  0x30   :  { %437 = vmatprep.subr.mxu1 %v81_v31  ;;  %196 = vmatpush1.msra.mxu0 %v82_v30  ;;  %v12022_v30 = vld [vmem:[%s23923_s29 + $0x308] sm:$0xff] }
  0x31   :  { %438 = vmatpush1.msra.mxu1 %v80_v32  ;;  %197 = vmatprep.subr.mxu0 %v81_v31  ;;  %v130_v31 = vld [vmem:[%s23922_s30 + $0x80] sm:$0xf] }
  0x32   :  { %11989 = vmatprep.subr.msk.mxu1 %vm160_vm1, %v113_v33  ;;  %198 = vmatpush1.msra.mxu0 %v80_v32  ;;  %v12021_v32 = vld [vmem:[%s23923_s29 + $0x300] sm:$0xff] }
  0x33   :  { %11990 = vmatpush2.msk.msra.mxu1 %vm160_vm1, %v112_v34  ;;  %11960 = vmatprep.subr.msk.mxu0 %vm160_vm1, %v113_v33  ;;  %v12023_v33 = vld [vmem:[%s23923_s29 + $0x310] sm:$0xff] }
  0x34   :  { %472 = vmatmul.mubr.f32.vlgmr.msra.gmra.mxu1 %v11971_v35  ;;  %11961 = vmatpush2.msk.msra.mxu0 %vm160_vm1, %v112_v34  ;;  %v12019_v34 = vld [vmem:[%s23923_s29 + $0x2f0] sm:$0xff]  ;;  %v12018_v35 = vld [vmem:[%s23923_s29 + $0x2e8] sm:$0xff] }
  0x35   :  { %11992 = vmatprep.mubr.msk.f32.mxu1 %vm132_vm0, %v11974_v36  ;;  %11962 = vmatprep.mubr.msk.f32.mxu0 %vm132_vm0, %v115_v37  ;;  %v12020_v36 = vld [vmem:[%s23923_s29 + $0x2f8] sm:$0xff] }
  0x36   :  { %232 = vmatmul.mubr.f32.vlgmr.msra.gmra.mxu0 %v114_v38  ;;  %640 = vmatprep.subr.mxu0 %v12046_v39  ;;  %v12016_v37 = vld [vmem:[%s23923_s29 + $0x2d8] sm:$0xff]  ;;  %v12015_v38 = vld [vmem:[%s23923_s29 + $0x2d0] sm:$0xff]  ;;  %v12017_v39 = vld [vmem:[%s23923_s29 + $0x2e0] sm:$0xff] }
  0x37   :  { %11963 = vmatprep.mubr.msk.f32.mxu0 %vm132_vm0, %v117_v40  ;;  %759 = vmatprep.subr.mxu1 %v23875_v46  ;;  %v12013_v40 = vld [vmem:[%s23923_s29 + $0x2c0] sm:$0xff] }
  0x38   :  { %478 = vmatmul.mubr.f32.gmra.mxu1 %v11973_v41  ;;  %641 = vmatpush1.msra.mxu0 %v12045_v42  ;;  %v12012_v41 = vld [vmem:[%s23923_s29 + $0x2b8] sm:$0xff]  ;;  %v12014_v42 = vld [vmem:[%s23923_s29 + $0x2c8] sm:$0xff] }
  0x39   :  { %11993 = vmatprep.mubr.msk.f32.mxu1 %vm132_vm0, %v11976_v43  ;;  %760 = vmatpush1.msra.mxu1 %v12047_v44  ;;  %v12010_v43 = vld [vmem:[%s23923_s29 + $0x2a8] sm:$0xff]  ;;  %v12009_v44 = vld [vmem:[%s23923_s29 + $0x2a0] sm:$0xff] }
  0x3a   :  { %238 = vmatmul.mubr.f32.gmra.mxu0 %v116_v45  ;;  %642 = vmatprep.subr.mxu0 %v12043_v47  ;;  %v12011_v45 = vld [vmem:[%s23923_s29 + $0x2b0] sm:$0xff] }
  0x3b   :  { %11964 = vmatprep.mubr.msk.f32.mxu0 %vm132_vm0, %v119_v48  ;;  %761 = vmatprep.subr.mxu1 %v23875_v46  ;;  %v12007_v47 = vld [vmem:[%s23923_s29 + $0x290] sm:$0xff]  ;;  %v12006_v48 = vld [vmem:[%s23923_s29 + $0x288] sm:$0xff] }
  0x3c   :  { %484 = vmatmul.mubr.f32.gmra.mxu1 %v11975_v49  ;;  %643 = vmatpush1.msra.mxu0 %v12042_v50  ;;  %v12008_v49 = vld [vmem:[%s23923_s29 + $0x298] sm:$0xff] }
  0x3d   :  { %11994 = vmatprep.mubr.msk.f32.mxu1 %vm132_vm0, %v11978_v51  ;;  %762 = vmatpush1.msra.mxu1 %v12044_v52  ;;  %v12004_v50 = vld [vmem:[%s23923_s29 + $0x278] sm:$0xff]  ;;  %v12003_v51 = vld [vmem:[%s23923_s29 + $0x270] sm:$0xff]  ;;  %v12005_v52 = vld [vmem:[%s23923_s29 + $0x280] sm:$0xff] }
  0x3e   :  { %244 = vmatmul.mubr.f32.gmra.mxu0 %v118_v53  ;;  %644 = vmatprep.subr.mxu0 %v12040_v54  ;;  %v12001_v53 = vld [vmem:[%s23923_s29 + $0x260] sm:$0xff]  ;;  %v12000_v54 = vld [vmem:[%s23923_s29 + $0x258] sm:$0xff] }
  0x3f   :  { %11965 = vmatprep.mubr.msk.f32.mxu0 %vm132_vm0, %v121_v55  ;;  %763 = vmatprep.subr.mxu1 %v23875_v46  ;;  %v12002_v55 = vld [vmem:[%s23923_s29 + $0x268] sm:$0xff] }
  0x40   :  { %490 = vmatmul.mubr.f32.gmra.mxu1 %v11977_v56  ;;  %645 = vmatpush1.msra.mxu0 %v12039_v57  ;;  %v12073_v56 = vld [vmem:[%s23923_s29 + $0x4a0] sm:$0x3f]  ;;  %v12072_v57 = vld [vmem:[%s23923_s29 + $0x498] sm:$0x3f] }
  0x41   :  { %11995 = vmatprep.mubr.msk.f32.mxu1 %vm132_vm0, %v11980_v58  ;;  %764 = vmatpush1.msra.mxu1 %v12041_v59  ;;  %v12074_v58 = vld [vmem:[%s23923_s29 + $0x4a8] sm:$0x3f] }
  0x42   :  { %250 = vmatmul.mubr.f32.gmra.mxu0 %v120_v60  ;;  %646 = vmatprep.subr.mxu0 %v12037_v61  ;;  %v12070_v59 = vld [vmem:[%s23923_s29 + $0x488] sm:$0xff]  ;;  %v12069_v60 = vld [vmem:[%s23923_s29 + $0x480] sm:$0xff]  ;;  %v12071_v61 = vld [vmem:[%s23923_s29 + $0x490] sm:$0xff] }
  0x43   :  { %11966 = vmatprep.mubr.msk.f32.mxu0 %vm132_vm0, %v123_v62  ;;  %765 = vmatprep.subr.mxu1 %v23875_v46  ;;  %v12067_v62 = vld [vmem:[%s23923_s29 + $0x470] sm:$0xff] }
  0x44   :  { %496 = vmatmul.mubr.f32.gmra.mxu1 %v11979_v63  ;;  %647 = vmatpush1.msra.mxu0 %v12036_v0  ;;  %v12066_v63 = vld [vmem:[%s23923_s29 + $0x468] sm:$0xff]  ;;  %v12068_v0 = vld [vmem:[%s23923_s29 + $0x478] sm:$0xff] }
  0x45   :  { %11996 = vmatprep.mubr.msk.f32.mxu1 %vm132_vm0, %v11982_v1  ;;  %766 = vmatpush1.msra.mxu1 %v12038_v2  ;;  %v12064_v1 = vld [vmem:[%s23923_s29 + $0x458] sm:$0xff]  ;;  %v12063_v2 = vld [vmem:[%s23923_s29 + $0x450] sm:$0xff] }
  0x46   :  { %256 = vmatmul.mubr.f32.gmra.mxu0 %v122_v3  ;;  %648 = vmatprep.subr.mxu0 %v12034_v4  ;;  %v12065_v3 = vld [vmem:[%s23923_s29 + $0x460] sm:$0xff] }
  0x47   :  { %11967 = vmatprep.mubr.msk.f32.mxu0 %vm132_vm0, %v125_v5  ;;  %767 = vmatprep.subr.mxu1 %v23875_v46  ;;  %v12061_v4 = vld [vmem:[%s23923_s29 + $0x440] sm:$0xff]  ;;  %v12060_v5 = vld [vmem:[%s23923_s29 + $0x438] sm:$0xff] }
  0x48   :  { %502 = vmatmul.mubr.f32.gmra.mxu1 %v11981_v6  ;;  %649 = vmatpush1.msra.mxu0 %v12033_v7  ;;  %v12062_v6 = vld [vmem:[%s23923_s29 + $0x448] sm:$0xff] }
  0x49   :  { %11997 = vmatprep.mubr.msk.f32.mxu1 %vm132_vm0, %v11984_v8  ;;  %768 = vmatpush1.msra.mxu1 %v12035_v9  ;;  %v12058_v7 = vld [vmem:[%s23923_s29 + $0x428] sm:$0xff]  ;;  %v12057_v8 = vld [vmem:[%s23923_s29 + $0x420] sm:$0xff]  ;;  %v12059_v9 = vld [vmem:[%s23923_s29 + $0x430] sm:$0xff] }
  0x4a   :  { %262 = vmatmul.mubr.f32.gmra.mxu0 %v124_v10  ;;  %650 = vmatprep.subr.mxu0 %v12031_v11  ;;  %v12055_v10 = vld [vmem:[%s23923_s29 + $0x410] sm:$0xff]  ;;  %v12054_v11 = vld [vmem:[%s23923_s29 + $0x408] sm:$0xff] }
  0x4b   :  { %11968 = vmatprep.mubr.msk.f32.mxu0 %vm132_vm0, %v127_v12  ;;  %769 = vmatprep.subr.mxu1 %v23875_v46  ;;  %v12056_v12 = vld [vmem:[%s23923_s29 + $0x418] sm:$0xff] }
  0x4c   :  { %508 = vmatmul.mubr.f32.gmra.mxu1 %v11983_v13  ;;  %651 = vmatpush1.msra.mxu0 %v12030_v14  ;;  %v12052_v13 = vld [vmem:[%s23923_s29 + $0x3f8] sm:$0xff]  ;;  %v12051_v14 = vld [vmem:[%s23923_s29 + $0x3f0] sm:$0xff] }
  0x4d   :  { %11998 = vmatprep.mubr.msk.f32.mxu1 %vm132_vm0, %v11986_v15  ;;  %770 = vmatpush1.msra.mxu1 %v12032_v16  ;;  %v12053_v15 = vld [vmem:[%s23923_s29 + $0x400] sm:$0xff] }
  0x4e   :  { %268 = vmatmul.mubr.f32.gmra.mxu0 %v126_v17  ;;  %652 = vmatprep.subr.mxu0 %v12028_v18  ;;  %v12049_v16 = vld [vmem:[%s23923_s29 + $0x3e0] sm:$0xff]  ;;  %v12048_v17 = vld [vmem:[%s23923_s29 + $0x3d8] sm:$0xff]  ;;  %v12050_v18 = vld [vmem:[%s23923_s29 + $0x3e8] sm:$0xff] }
  0x4f   :  { %11969 = vmatprep.mubr.msk.f32.mxu0 %vm132_vm0, %v129_v19  ;;  %771 = vmatprep.subr.mxu1 %v23875_v46  ;;  %v332_v19 = vld [vmem:[%s23923_s29 + $0x170] sm:$0xff] }
  0x50   :  { %514 = vmatmul.mubr.f32.gmra.mxu1 %v11985_v20  ;;  %653 = vmatpush1.msra.mxu0 %v12027_v21 }
  0x51   :  { %11999 = vmatprep.mubr.msk.f32.mxu1 %vm132_vm0, %v11988_v22  ;;  %772 = vmatpush1.msra.mxu1 %v12029_v23  ;;  %v331_v22 = vld [vmem:[%s23923_s29 + $0x168] sm:$0xff]  ;;  %v333_v23 = vld [vmem:[%s23923_s29 + $0x178] sm:$0xff] }
  0x52   :  { %274 = vmatmul.mubr.f32.gmra.mxu0 %v128_v24  ;;  %654 = vmatprep.subr.mxu0 %v12025_v25  ;;  %v329_v24 = vld [vmem:[%s23923_s29 + $0x158] sm:$0xff]  ;;  %v328_v25 = vld [vmem:[%s23923_s29 + $0x150] sm:$0xff] }
  0x53   :  { %11970 = vmatprep.mubr.msk.f32.mxu0 %vm132_vm0, %v131_v26  ;;  %773 = vmatprep.subr.mxu1 %v23875_v46  ;;  %v330_v26 = vld [vmem:[%s23923_s29 + $0x160] sm:$0xff] }
  0x54   :  { %520 = vmatmul.mubr.f32.gmra.mxu1 %v11987_v27  ;;  %655 = vmatpush1.msra.mxu0 %v12024_v28  ;;  %v326_v28 = vld [vmem:[%s23923_s29 + $0x140] sm:$0xff] }
  0x55   :  { %774 = vmatpush1.msra.mxu1 %v12026_v29  ;;  %656 = vmatprep.subr.mxu0 %v12022_v30  ;;  %v325_v29 = vld [vmem:[%s23923_s29 + $0x138] sm:$0xff]  ;;  %v327_v30 = vld [vmem:[%s23923_s29 + $0x148] sm:$0xff] }
  0x56   :  { %280 = vmatmul.mubr.f32.gmra.mxu0 %v130_v31  ;;  %775 = vmatprep.subr.mxu1 %v23875_v46 }
  0x57   :  { %657 = vmatpush1.msra.mxu0 %v12021_v32  ;;  %776 = vmatpush1.msra.mxu1 %v12023_v33  ;;  %v323_v32 = vld [vmem:[%s23923_s29 + $0x128] sm:$0xff]  ;;  %v322_v33 = vld [vmem:[%s23923_s29 + $0x120] sm:$0xff] }
  0x58   :  { %658 = vmatprep.subr.mxu0 %v12019_v34  ;;  %777 = vmatprep.subr.mxu1 %v23875_v46  ;;  %v324_v34 = vld [vmem:[%s23923_s29 + $0x130] sm:$0xff] }
  0x59   :  { %659 = vmatpush1.msra.mxu0 %v12018_v35  ;;  %778 = vmatpush1.msra.mxu1 %v12020_v36  ;;  %v320_v36 = vld [vmem:[%s23923_s29 + $0x110] sm:$0xff] }
  0x5a   :  { %660 = vmatprep.subr.mxu0 %v12016_v37  ;;  %779 = vmatprep.subr.mxu1 %v23875_v46  ;;  %v319_v37 = vld [vmem:[%s23923_s29 + $0x108] sm:$0xff] }
  0x5b   :  { %661 = vmatpush1.msra.mxu0 %v12015_v38  ;;  %780 = vmatpush1.msra.mxu1 %v12017_v39  ;;  %v321_v38 = vld [vmem:[%s23923_s29 + $0x118] sm:$0xff] }
  0x5c   :  { %662 = vmatprep.subr.mxu0 %v12013_v40  ;;  %781 = vmatprep.subr.mxu1 %v23875_v46  ;;  %v317_v40 = vld [vmem:[%s23923_s29 + $0xf8] sm:$0xff] }
  0x5d   :  { %663 = vmatpush1.msra.mxu0 %v12012_v41  ;;  %782 = vmatpush1.msra.mxu1 %v12014_v42  ;;  %v316_v41 = vld [vmem:[%s23923_s29 + $0xf0] sm:$0xff]  ;;  %v318_v42 = vld [vmem:[%s23923_s29 + $0x100] sm:$0xff] }
  0x5e   :  { %664 = vmatprep.subr.mxu0 %v12010_v43  ;;  %783 = vmatprep.subr.mxu1 %v23875_v46 }
  0x5f   :  { %665 = vmatpush1.msra.mxu0 %v12009_v44  ;;  %784 = vmatpush1.msra.mxu1 %v12011_v45  ;;  %v314_v44 = vld [vmem:[%s23923_s29 + $0xe0] sm:$0xff] }
  0x60   :  { %666 = vmatprep.subr.mxu0 %v12007_v47  ;;  %785 = vmatprep.subr.mxu1 %v23875_v46  ;;  %v313_v47 = vld [vmem:[%s23923_s29 + $0xd8] sm:$0xff] }
  0x61   :  { %667 = vmatpush1.msra.mxu0 %v12006_v48  ;;  %786 = vmatpush1.msra.mxu1 %v12008_v49  ;;  %v315_v48 = vld [vmem:[%s23923_s29 + $0xe8] sm:$0xff] }
  0x62   :  { %668 = vmatprep.subr.mxu0 %v12004_v50  ;;  %787 = vmatprep.subr.mxu1 %v23875_v46  ;;  %v311_v49 = vld [vmem:[%s23923_s29 + $0xc8] sm:$0xff]  ;;  %v310_v50 = vld [vmem:[%s23923_s29 + $0xc0] sm:$0xff] }
  0x63   :  { %669 = vmatpush1.msra.mxu0 %v12003_v51  ;;  %788 = vmatpush1.msra.mxu1 %v12005_v52  ;;  %v312_v51 = vld [vmem:[%s23923_s29 + $0xd0] sm:$0xff] }
  0x64   :  { %670 = vmatprep.subr.mxu0 %v12001_v53  ;;  %789 = vmatprep.subr.mxu1 %v23875_v46  ;;  %v308_v53 = vld [vmem:[%s23923_s29 + $0xb0] sm:$0xff] }
  0x65   :  { %671 = vmatpush1.msra.mxu0 %v12000_v54  ;;  %790 = vmatpush1.msra.mxu1 %v12002_v55  ;;  %v307_v54 = vld [vmem:[%s23923_s29 + $0xa8] sm:$0xff]  ;;  %v309_v55 = vld [vmem:[%s23923_s29 + $0xb8] sm:$0xff] }
  0x66   :  { %12075 = vmatprep.subr.msk.mxu0 %vm630_vm2, %v12073_v56  ;;  %805 = vmatprep.subr.mxu1 %v23875_v46  ;;  %v305_v56 = vld [vmem:[%s23923_s29 + $0x98] sm:$0xff] }
  0x67   :  { %12076 = vmatpush2.msk.msra.mxu0 %vm630_vm2, %v12072_v57  ;;  %12086 = vmatpush2.msk.msra.mxu1 %vm630_vm2, %v12074_v58  ;;  %v304_v58 = vld [vmem:[%s23923_s29 + $0x90] sm:$0xff] }
  0x68   :  { %688 = vmatprep.subr.mxu0 %v12070_v59  ;;  %807 = vmatprep.subr.mxu1 %v23875_v46  ;;  %v306_v59 = vld [vmem:[%s23923_s29 + $0xa0] sm:$0xff] }
  0x69   :  { %689 = vmatpush2.msra.mxu0 %v12069_v60  ;;  %808 = vmatpush2.msra.mxu1 %v12071_v61  ;;  %v302_v60 = vld [vmem:[%s23923_s29 + $0x80] sm:$0xff] }
  0x6a   :  { %690 = vmatprep.subr.mxu0 %v12067_v62  ;;  %809 = vmatprep.subr.mxu1 %v23875_v46  ;;  %v301_v62 = vld [vmem:[%s23923_s29 + $0x78] sm:$0xff] }
  0x6b   :  { %691 = vmatpush2.msra.mxu0 %v12066_v63  ;;  %810 = vmatpush2.msra.mxu1 %v12068_v0  ;;  %v303_v63 = vld [vmem:[%s23923_s29 + $0x88] sm:$0xff] }
  0x6c   :  { %692 = vmatprep.subr.mxu0 %v12064_v1  ;;  %811 = vmatprep.subr.mxu1 %v23875_v46  ;;  %v299_v0 = vld [vmem:[%s23923_s29 + $0x68] sm:$0xff] }
  0x6d   :  { %693 = vmatpush2.msra.mxu0 %v12063_v2  ;;  %812 = vmatpush2.msra.mxu1 %v12065_v3  ;;  %v298_v2 = vld [vmem:[%s23923_s29 + $0x60] sm:$0xff]  ;;  %v300_v3 = vld [vmem:[%s23923_s29 + $0x70] sm:$0xff] }
  0x6e   :  { %694 = vmatprep.subr.mxu0 %v12061_v4  ;;  %813 = vmatprep.subr.mxu1 %v23875_v46 }
  0x6f   :  { %695 = vmatpush2.msra.mxu0 %v12060_v5  ;;  %814 = vmatpush2.msra.mxu1 %v12062_v6  ;;  %v296_v5 = vld [vmem:[%s23923_s29 + $0x50] sm:$0xff] }
  0x70   :  { %696 = vmatprep.subr.mxu0 %v12058_v7  ;;  %815 = vmatprep.subr.mxu1 %v23875_v46  ;;  %v295_v7 = vld [vmem:[%s23923_s29 + $0x48] sm:$0xff] }
  0x71   :  { %697 = vmatpush2.msra.mxu0 %v12057_v8  ;;  %816 = vmatpush2.msra.mxu1 %v12059_v9  ;;  %v297_v8 = vld [vmem:[%s23923_s29 + $0x58] sm:$0xff] }
  0x72   :  { %698 = vmatprep.subr.mxu0 %v12055_v10  ;;  %817 = vmatprep.subr.mxu1 %v23875_v46  ;;  %v293_v9 = vld [vmem:[%s23923_s29 + $0x38] sm:$0xff] }
  0x73   :  { %699 = vmatpush2.msra.mxu0 %v12054_v11  ;;  %818 = vmatpush2.msra.mxu1 %v12056_v12  ;;  %v292_v11 = vld [vmem:[%s23923_s29 + $0x30] sm:$0xff]  ;;  %v294_v12 = vld [vmem:[%s23923_s29 + $0x40] sm:$0xff] }
  0x74   :  { %700 = vmatprep.subr.mxu0 %v12052_v13  ;;  %819 = vmatprep.subr.mxu1 %v23875_v46 }
  0x75   :  { %701 = vmatpush2.msra.mxu0 %v12051_v14  ;;  %820 = vmatpush2.msra.mxu1 %v12053_v15  ;;  %v290_v14 = vld [vmem:[%s23923_s29 + $0x20] sm:$0xff] }
  0x76   :  { %702 = vmatprep.subr.mxu0 %v12049_v16  ;;  %821 = vmatprep.subr.mxu1 %v23875_v46  ;;  %v289_v16 = vld [vmem:[%s23923_s29 + $0x18] sm:$0xff] }
  0x77   :  { %703 = vmatpush2.msra.mxu0 %v12048_v17  ;;  %822 = vmatpush2.msra.mxu1 %v12050_v18  ;;  %v291_v17 = vld [vmem:[%s23923_s29 + $0x28] sm:$0xff] }
  0x78   :  { %905 = vmatprep.subr.mxu0 %v332_v19  ;;  %1024 = vmatprep.subr.mxu1 %v23875_v46  ;;  %v287_v18 = vld [vmem:[%s23923_s29 + $0x8] sm:$0xff] }
  0xf4   :  { %v473_v20 = vpop.f32.mrf.mxu1 }
  0xf6   :  { %v475_v21 = vpop.f32.mrf.mxu1  ;;  %v15831_v1 = vpop.f32.mrf.mxu0 }
  0xf7   :  { %12077 = vmatprep.mubr.msk.f32.mxu0 %vm602_vm3, %v475_v21  ;;  %12087 = vmatprep.mubr.msk.f32.mxu1 %vm602_vm3, %v475_v21  ;;  %v288_v21 = vld [vmem:[%s23923_s29 + $0x10] sm:$0xff] }
  0xf8   :  { %705 = vmatmul.mubr.f32.vlgmr.msra.gmra.mxu0 %v473_v20  ;;  %824 = vmatmul.mubr.f32.vlgmr.msra.gmra.mxu1 %v473_v20  ;;  %v479_v27 = vpop.f32.mrf.mxu1  ;;  %v15843_v6 = vpop.f32.mrf.mxu0  ;;  %v286_v20 = vld [vmem:[%s23923_s29] sm:$0xff] }
  0xf9   :  { %906 = vmatpush1.msra.mxu0 %v331_v22  ;;  %1025 = vmatpush1.msra.mxu1 %v333_v23  ;;  %v359_v23 = vld [vmem:[%s23923_s29 + $0x248] sm:$0x3f] }
  0xfa   :  { %907 = vmatprep.subr.mxu0 %v329_v24  ;;  %1026 = vmatprep.subr.mxu1 %v23875_v46  ;;  %v481_v31 = vpop.f32.mrf.mxu1  ;;  %v15863_v13 = vpop.f32.mrf.mxu0 }
  0xfb   :  { %908 = vmatpush1.msra.mxu0 %v328_v25  ;;  %1027 = vmatpush1.msra.mxu1 %v330_v26  ;;  %v358_v25 = vld [vmem:[%s23923_s29 + $0x240] sm:$0x3f]  ;;  %v360_v26 = vld [vmem:[%s23923_s29 + $0x250] sm:$0x3f] }
  0xfc   :  { %909 = vmatprep.subr.mxu0 %v326_v28  ;;  %1028 = vmatprep.subr.mxu1 %v23875_v46  ;;  %v485_v35 = vpop.f32.mrf.mxu1  ;;  %v15881_v19 = vpop.f32.mrf.mxu0 }
  0xfd   :  { %910 = vmatpush1.msra.mxu0 %v325_v29  ;;  %1029 = vmatpush1.msra.mxu1 %v327_v30  ;;  %v355_v29 = vld [vmem:[%s23923_s29 + $0x228] sm:$0xff]  ;;  %v357_v30 = vld [vmem:[%s23923_s29 + $0x238] sm:$0xff] }
  0xfe   :  { %911 = vmatprep.subr.mxu0 %v323_v32  ;;  %1030 = vmatprep.subr.mxu1 %v23875_v46  ;;  %v487_v39 = vpop.f32.mrf.mxu1  ;;  %v15893_v24 = vpop.f32.mrf.mxu0  ;;  %v353_v32 = vld [vmem:[%s23923_s29 + $0x218] sm:$0xff] }
  0xff   :  { %912 = vmatpush1.msra.mxu0 %v322_v33  ;;  %1031 = vmatpush1.msra.mxu1 %v324_v34  ;;  %v352_v34 = vld [vmem:[%s23923_s29 + $0x210] sm:$0xff] }
 0x100   :  { %913 = vmatprep.subr.mxu0 %v320_v36  ;;  %1032 = vmatprep.subr.mxu1 %v23875_v46  ;;  %v491_v43 = vpop.f32.mrf.mxu1  ;;  %v350_v36 = vld [vmem:[%s23923_s29 + $0x200] sm:$0xff] }
 0x101   :  { %914 = vmatpush1.msra.mxu0 %v319_v37  ;;  %1033 = vmatpush1.msra.mxu1 %v321_v38  ;;  %v349_v38 = vld [vmem:[%s23923_s29 + $0x1f8] sm:$0xff] }
 0x102   :  { %915 = vmatprep.subr.mxu0 %v317_v40  ;;  %1034 = vmatprep.subr.mxu1 %v23875_v46  ;;  %v493_v45 = vpop.f32.mrf.mxu1 }
 0x103   :  { %916 = vmatpush1.msra.mxu0 %v316_v41  ;;  %1035 = vmatpush1.msra.mxu1 %v318_v42  ;;  %v347_v41 = vld [vmem:[%s23923_s29 + $0x1e8] sm:$0xff] }
 0x104   :  { %12078 = vmatprep.mubr.msk.f32.mxu0 %vm602_vm3, %v481_v31  ;;  %12088 = vmatprep.mubr.msk.f32.mxu1 %vm602_vm3, %v481_v31  ;;  %v497_v52 = vpop.f32.mrf.mxu1  ;;  %v15916_v31 = vpop.f32.mrf.mxu0 }
 0x105   :  { %917 = vmatprep.subr.mxu0 %v314_v44  ;;  %1036 = vmatprep.subr.mxu1 %v23875_v46  ;;  %v348_v44 = vld [vmem:[%s23923_s29 + $0x1f0] sm:$0xff] }
 0x106   :  { %711 = vmatmul.mubr.f32.gmra.mxu0 %v479_v27  ;;  %829 = vmatmul.mubr.f32.gmra.mxu1 %v479_v27  ;;  %v499_v57 = vpop.f32.mrf.mxu1  ;;  %v356_v27 = vld [vmem:[%s23923_s29 + $0x230] sm:$0xff]  ;;  %v15934_v37 = vpop.f32.mrf.mxu0 }
 0x107   :  { %918 = vmatpush1.msra.mxu0 %v313_v47  ;;  %1037 = vmatpush1.msra.mxu1 %v315_v48  ;;  %v343_v47 = vld [vmem:[%s23923_s29 + $0x1c8] sm:$0xff]  ;;  %v345_v48 = vld [vmem:[%s23923_s29 + $0x1d8] sm:$0xff] }
 0x108   :  { %919 = vmatprep.subr.mxu0 %v311_v49  ;;  %1038 = vmatprep.subr.mxu1 %v23875_v46  ;;  %v503_v61 = vpop.f32.mrf.mxu1  ;;  %v15946_v42 = vpop.f32.mrf.mxu0  ;;  %v341_v49 = vld [vmem:[%s23923_s29 + $0x1b8] sm:$0xff] }
 0x109   :  { %920 = vmatpush1.msra.mxu0 %v310_v50  ;;  %1039 = vmatpush1.msra.mxu1 %v312_v51  ;;  %v340_v51 = vld [vmem:[%s23923_s29 + $0x1b0] sm:$0xff] }
 0x10a   :  { %12079 = vmatprep.mubr.msk.f32.mxu0 %vm602_vm3, %v487_v39  ;;  %12089 = vmatprep.mubr.msk.f32.mxu1 %vm602_vm3, %v487_v39  ;;  %v505_v4 = vpop.f32.mrf.mxu1  ;;  %v351_v39 = vld [vmem:[%s23923_s29 + $0x208] sm:$0xff]  ;;  %v15969_v50 = vpop.f32.mrf.mxu0 }
 0x10b   :  { %921 = vmatprep.subr.mxu0 %v308_v53  ;;  %1040 = vmatprep.subr.mxu1 %v23875_v46  ;;  %v338_v53 = vld [vmem:[%s23923_s29 + $0x1a0] sm:$0xff] }
 0x10c   :  { %717 = vmatmul.mubr.f32.gmra.mxu0 %v485_v35  ;;  %834 = vmatmul.mubr.f32.gmra.mxu1 %v485_v35  ;;  %v509_v10 = vpop.f32.mrf.mxu1  ;;  %v354_v35 = vld [vmem:[%s23923_s29 + $0x220] sm:$0xff] }
 0x10d   :  { %922 = vmatpush1.msra.mxu0 %v307_v54  ;;  %1041 = vmatpush1.msra.mxu1 %v309_v55  ;;  %v337_v54 = vld [vmem:[%s23923_s29 + $0x198] sm:$0xff]  ;;  %v339_v55 = vld [vmem:[%s23923_s29 + $0x1a8] sm:$0xff] }
 0x10e   :  { %923 = vmatprep.subr.mxu0 %v305_v56  ;;  %1042 = vmatprep.subr.mxu1 %v23875_v46  ;;  %v511_v15 = vpop.f32.mrf.mxu1  ;;  %v259_v56 = vpop.f32.mrf.mxu0 }
 0x10f   :  { %924 = vmatpush1.msra.mxu0 %v304_v58  ;;  %1043 = vmatpush1.msra.mxu1 %v306_v59  ;;  %v334_v58 = vld [vmem:[%s23923_s29 + $0x180] sm:$0xff]  ;;  %v336_v59 = vld [vmem:[%s23923_s29 + $0x190] sm:$0xff] }
 0x110   :  { %12080 = vmatprep.mubr.msk.f32.mxu0 %vm602_vm3, %v493_v45  ;;  %12090 = vmatprep.mubr.msk.f32.mxu1 %vm602_vm3, %v493_v45  ;;  %v515_v22 = vpop.f32.mrf.mxu1  ;;  %v344_v45 = vld [vmem:[%s23923_s29 + $0x1d0] sm:$0xff] }
 0x111   :  { %925 = vmatprep.subr.mxu0 %v302_v60  ;;  %1044 = vmatprep.subr.mxu1 %v23875_v46  ;;  %v16003_v60 = vpop.f32.mrf.mxu0 }
 0x112   :  { %723 = vmatmul.mubr.f32.gmra.mxu0 %v491_v43  ;;  %839 = vmatmul.mubr.f32.gmra.mxu1 %v491_v43  ;;  %v517_v28 = vpop.f32.mrf.mxu1  ;;  %v346_v43 = vld [vmem:[%s23923_s29 + $0x1e0] sm:$0xff] }
 0x113   :  { %926 = vmatpush1.msra.mxu0 %v301_v62  ;;  %1045 = vmatpush1.msra.mxu1 %v303_v63  ;;  %v265_v62 = vpop.f32.mrf.mxu0  ;;  %v16020_v63 = vld [vmem:[%s23921_s12 + $0xf0] sm:$0xff] }
 0x114   :  { %927 = vmatprep.subr.mxu0 %v299_v0  ;;  %1046 = vmatprep.subr.mxu1 %v23875_v46  ;;  %v521_v33 = vpop.f32.mrf.mxu1  ;;  %v16028_v0 = vld [vmem:[%s23921_s12 + $0xe8] sm:$0xff] }
 0x115   :  { %928 = vmatpush1.msra.mxu0 %v298_v2  ;;  %1047 = vmatpush1.msra.mxu1 %v300_v3  ;;  %v269_v2 = vpop.f32.mrf.mxu0  ;;  %v16044_v3 = vld [vmem:[%s23921_s12 + $0xd8] sm:$0xff] }
 0x116   :  { %12081 = vmatprep.mubr.msk.f32.mxu0 %vm602_vm3, %v499_v57  ;;  %12091 = vmatprep.mubr.msk.f32.mxu1 %vm602_vm3, %v499_v57  ;;  %v523_v40 = vpop.f32.mrf.mxu1  ;;  %v335_v57 = vld [vmem:[%s23923_s29 + $0x188] sm:$0xff] }
 0x117   :  { %929 = vmatprep.subr.mxu0 %v296_v5  ;;  %1048 = vmatprep.subr.mxu1 %v23875_v46  ;;  %v16058_v5 = vld [vmem:[%s23921_s12 + $0xc8] sm:$0xff] }
 0x118   :  { %729 = vmatmul.mubr.f32.gmra.mxu0 %v497_v52  ;;  %844 = vmatmul.mubr.f32.gmra.mxu1 %v497_v52  ;;  %v342_v52 = vld [vmem:[%s23923_s29 + $0x1c0] sm:$0xff] }
 0x119   :  { %930 = vmatpush1.msra.mxu0 %v295_v7  ;;  %1049 = vmatpush1.msra.mxu1 %v297_v8  ;;  %v16068_v7 = vld [vmem:[%s23921_s12 + $0xc0] sm:$0xff]  ;;  %v16074_v8 = vld [vmem:[%s23921_s12 + $0xb8] sm:$0xff] }
 0x11a   :  { %931 = vmatprep.subr.mxu0 %v293_v9  ;;  %1050 = vmatprep.subr.mxu1 %v23875_v46  ;;  %v16081_v9 = vld [vmem:[%s23921_s12 + $0xb0] sm:$0xff] }
 0x11b   :  { %932 = vmatpush1.msra.mxu0 %v292_v11  ;;  %1051 = vmatpush1.msra.mxu1 %v294_v12  ;;  %v16096_v12 = vld [vmem:[%s23921_s12 + $0xa0] sm:$0xff] }
 0x11c   :  { %12082 = vmatprep.mubr.msk.f32.mxu0 %vm602_vm3, %v505_v4  ;;  %12092 = vmatprep.mubr.msk.f32.mxu1 %vm602_vm3, %v505_v4  ;;  %v16050_v4 = vld [vmem:[%s23921_s12 + $0xd0] sm:$0xff] }
 0x11d   :  { %933 = vmatprep.subr.mxu0 %v290_v14  ;;  %1052 = vmatprep.subr.mxu1 %v23875_v46  ;;  %v16109_v14 = vld [vmem:[%s23921_s12 + $0x90] sm:$0xff] }
 0x11e   :  { %735 = vmatmul.mubr.f32.gmra.mxu0 %v503_v61  ;;  %849 = vmatmul.mubr.f32.gmra.mxu1 %v503_v61  ;;  %v16014_v61 = vld [vmem:[%s23921_s12 + $0xf8] sm:$0xff] }
 0x11f   :  { %934 = vmatpush1.msra.mxu0 %v289_v16  ;;  %1053 = vmatpush1.msra.mxu1 %v291_v17  ;;  %v16124_v17 = vld [vmem:[%s23921_s12 + $0x80] sm:$0xff] }
 0x120   :  { %935 = vmatprep.subr.mxu0 %v287_v18  ;;  %1054 = vmatprep.subr.mxu1 %v23875_v46  ;;  %v16130_v18 = vld [vmem:[%s23921_s12 + $0x78] sm:$0xff] }
 0x121   :  { %936 = vmatpush1.msra.mxu0 %v286_v20  ;;  %1055 = vmatpush1.msra.mxu1 %v288_v21  ;;  %v16145_v20 = vld [vmem:[%s23921_s12 + $0x68] sm:$0xff] }
 0x122   :  { %12083 = vmatprep.mubr.msk.f32.mxu0 %vm602_vm3, %v511_v15  ;;  %12093 = vmatprep.mubr.msk.f32.mxu1 %vm602_vm3, %v511_v15  ;;  %v16117_v15 = vld [vmem:[%s23921_s12 + $0x88] sm:$0xff] }
 0x123   :  { %12096 = vmatprep.subr.msk.mxu0 %vm630_vm2, %v359_v23  ;;  %1070 = vmatprep.subr.mxu1 %v23875_v46  ;;  %v16158_v23 = vld [vmem:[%s23921_s12 + $0x58] sm:$0xff] }
 0x124   :  { %741 = vmatmul.mubr.f32.gmra.mxu0 %v509_v10  ;;  %854 = vmatmul.mubr.f32.gmra.mxu1 %v509_v10  ;;  %v16089_v10 = vld [vmem:[%s23921_s12 + $0xa8] sm:$0xff] }
 0x125   :  { %12097 = vmatpush2.msk.msra.mxu0 %vm630_vm2, %v358_v25  ;;  %12107 = vmatpush2.msk.msra.mxu1 %vm630_vm2, %v360_v26  ;;  %v16171_v25 = vld [vmem:[%s23921_s12 + $0x48] sm:$0xff] }
 0x126   :  { %953 = vmatprep.subr.mxu0 %v356_v27  ;;  %1072 = vmatprep.subr.mxu1 %v23875_v46  ;;  %v16178_v27 = vld [vmem:[%s23921_s12 + $0x40] sm:$0xff] }
 0x127   :  { %954 = vmatpush2.msra.mxu0 %v355_v29  ;;  %1073 = vmatpush2.msra.mxu1 %v357_v30  ;;  %v16190_v29 = vld [vmem:[%s23921_s12 + $0x30] sm:$0xff]  ;;  %v16197_v30 = vld [vmem:[%s23921_s12 + $0x28] sm:$0xff] }
 0x128   :  { %12084 = vmatprep.mubr.msk.f32.mxu0 %vm602_vm3, %v517_v28  ;;  %12094 = vmatprep.mubr.msk.f32.mxu1 %vm602_vm3, %v517_v28  ;;  %v16184_v28 = vld [vmem:[%s23921_s12 + $0x38] sm:$0xff] }
 0x129   :  { %955 = vmatprep.subr.mxu0 %v353_v32  ;;  %1074 = vmatprep.subr.mxu1 %v23875_v46  ;;  %v16210_v32 = vld [vmem:[%s23921_s12 + $0x18] sm:$0xff] }
 0x12a   :  { %747 = vmatmul.mubr.f32.gmra.mxu0 %v515_v22  ;;  %859 = vmatmul.mubr.f32.gmra.mxu1 %v515_v22  ;;  %v16152_v22 = vld [vmem:[%s23921_s12 + $0x60] sm:$0xff] }
 0x12b   :  { %956 = vmatpush2.msra.mxu0 %v352_v34  ;;  %1075 = vmatpush2.msra.mxu1 %v354_v35  ;;  %v16219_v34 = vld [vmem:[%s23921_s12 + $0x10] sm:$0xff]  ;;  %v16225_v35 = vld [vmem:[%s23921_s12 + $0x8] sm:$0xff] }
 0x12c   :  { %957 = vmatprep.subr.mxu0 %v350_v36  ;;  %1076 = vmatprep.subr.mxu1 %v23875_v46  ;;  %v16231_v36 = vld [vmem:[%s23921_s12] sm:$0xff] }
 0x12d   :  { %958 = vmatpush2.msra.mxu0 %v349_v38  ;;  %1077 = vmatpush2.msra.mxu1 %v351_v39  ;;  %v16241_v38 = vld [vmem:[%s23921_s12 + $0x108] sm:$0xf]  ;;  %v12120_v39 = vld [vmem:[%s23922_s30 + $0x138] sm:$0xff] }
 0x12e   :  { %12085 = vmatprep.mubr.msk.f32.mxu0 %vm602_vm3, %v523_v40  ;;  %12095 = vmatprep.mubr.msk.f32.mxu1 %vm602_vm3, %v523_v40  ;;  %v16251_v40 = vld [vmem:[%s23921_s12 + $0x100] sm:$0xf] }
 0x12f   :  { %959 = vmatprep.subr.mxu0 %v347_v41  ;;  %1078 = vmatprep.subr.mxu1 %v23875_v46  ;;  %v12119_v41 = vld [vmem:[%s23922_s30 + $0x130] sm:$0xff] }
 0x130   :  { %753 = vmatmul.mubr.f32.gmra.mxu0 %v521_v33  ;;  %864 = vmatmul.mubr.f32.gmra.mxu1 %v521_v33  ;;  %v12118_v33 = vld [vmem:[%s23922_s30 + $0x128] sm:$0xff] }
 0x131   :  { %960 = vmatpush2.msra.mxu0 %v346_v43  ;;  %1079 = vmatpush2.msra.mxu1 %v348_v44  ;;  %v12121_v43 = vld [vmem:[%s23922_s30 + $0x140] sm:$0xff]  ;;  %v12124_v44 = vld [vmem:[%s23922_s30 + $0x158] sm:$0xff] }
 0x132   :  { %961 = vmatprep.subr.mxu0 %v344_v45  ;;  %1080 = vmatprep.subr.mxu1 %v23875_v46  ;;  %v12123_v45 = vld [vmem:[%s23922_s30 + $0x150] sm:$0xff] }
 0x133   :  { %962 = vmatpush2.msra.mxu0 %v343_v47  ;;  %1081 = vmatpush2.msra.mxu1 %v345_v48  ;;  %v12126_v47 = vld [vmem:[%s23922_s30 + $0x168] sm:$0xff]  ;;  %v12192_v48 = vld [vmem:[%s23923_s29 + $0x620] sm:$0xff] }
 0x134   :  { %963 = vmatprep.subr.mxu0 %v341_v49  ;;  %1082 = vmatprep.subr.mxu1 %v23875_v46  ;;  %v12125_v49 = vld [vmem:[%s23922_s30 + $0x160] sm:$0xff] }
 0x135   :  { %964 = vmatpush2.msra.mxu0 %v340_v51  ;;  %1083 = vmatpush2.msra.mxu1 %v342_v52  ;;  %v12191_v51 = vld [vmem:[%s23923_s29 + $0x618] sm:$0xff]  ;;  %v12193_v52 = vld [vmem:[%s23923_s29 + $0x628] sm:$0xff] }
 0x136   :  { %965 = vmatprep.subr.mxu0 %v338_v53  ;;  %1084 = vmatprep.subr.mxu1 %v23875_v46  ;;  %v12189_v53 = vld [vmem:[%s23923_s29 + $0x608] sm:$0xff] }
 0x137   :  { %966 = vmatpush2.msra.mxu0 %v337_v54  ;;  %12098 = vmatprep.mubr.msk.f32.mxu0 %vm602_vm3, %v15843_v6  ;;  %v12127_v54 = vld [vmem:[%s23922_s30 + $0x170] sm:$0xff] }
 0x138   :  { %1085 = vmatpush2.msra.mxu1 %v339_v55  ;;  %12108 = vmatprep.mubr.msk.f32.mxu1 %vm602_vm3, %v15843_v6  ;;  %v271_v6 = vpop.f32.mrf.mxu0  ;;  %v12188_v55 = vld [vmem:[%s23923_s29 + $0x600] sm:$0xff] }
 0x139   :  { %967 = vmatprep.subr.mxu0 %v335_v57  ;;  %1086 = vmatprep.subr.mxu1 %v23875_v46  ;;  %v12186_v57 = vld [vmem:[%s23923_s29 + $0x5f0] sm:$0xff] }
 0x13a   :  { %968 = vmatpush2.msra.mxu0 %v334_v58  ;;  %1087 = vmatpush2.msra.mxu1 %v336_v59  ;;  %v275_v11 = vpop.f32.mrf.mxu0  ;;  %v12130_v58 = vld [vmem:[%s23922_s30 + $0x188] sm:$0xff] }
 0x13b   :  { %970 = vmatmul.mubr.f32.vlgmr.msra.gmra.mxu0 %v15831_v1  ;;  %1089 = vmatmul.mubr.f32.vlgmr.msra.gmra.mxu1 %v15831_v1  ;;  %v16038_v1 = vld [vmem:[%s23921_s12 + $0xe0] sm:$0xff]  ;;  %v12185_v59 = vld [vmem:[%s23923_s29 + $0x5e8] sm:$0xff] }
 0x13c   :  { %12099 = vmatprep.mubr.msk.f32.mxu0 %vm602_vm3, %v15881_v19  ;;  %12109 = vmatprep.mubr.msk.f32.mxu1 %vm602_vm3, %v15881_v19  ;;  %v277_v16 = vpop.f32.mrf.mxu0  ;;  %v16137_v19 = vld [vmem:[%s23921_s12 + $0x70] sm:$0xff] }
 0x13d   :  { %1180 = vmatprep.subr.mxu0 %v16014_v61  ;;  %1411 = vmatprep.subr.mxu1 %v12192_v48  ;;  %v12175_v48 = vld [vmem:[%s23923_s29 + $0x598] sm:$0xff] }
 0x13e   :  { %1181 = vmatpush1.msra.mxu0 %v16020_v63  ;;  %v281_v21 = vpop.f32.mrf.mxu0  ;;  %1412 = vmatpush1.msra.mxu1 %v12191_v51  ;;  %v12172_v51 = vld [vmem:[%s23923_s29 + $0x580] sm:$0xff] }
 0x13f   :  { %976 = vmatmul.mubr.f32.gmra.mxu0 %v15863_v13  ;;  %1094 = vmatmul.mubr.f32.gmra.mxu1 %v15863_v13  ;;  %v16102_v13 = vld [vmem:[%s23921_s12 + $0x98] sm:$0xff] }
 0x140   :  { %1182 = vmatprep.subr.mxu0 %v16028_v0  ;;  %12100 = vmatprep.mubr.msk.f32.mxu0 %vm602_vm3, %v15916_v31  ;;  %v283_v26 = vpop.f32.mrf.mxu0 }
 0x141   :  { %12110 = vmatprep.mubr.msk.f32.mxu1 %vm602_vm3, %v15916_v31  ;;  %1183 = vmatpush1.msra.mxu0 %v16038_v1  ;;  %v16204_v31 = vld [vmem:[%s23921_s12 + $0x20] sm:$0xff] }
 0x142   :  { %1184 = vmatprep.subr.mxu0 %v16044_v3  ;;  %1413 = vmatprep.subr.mxu1 %v12189_v53  ;;  %v12167_v53 = vld [vmem:[%s23923_s29 + $0x558] sm:$0xff] }
 0x143   :  { %1185 = vmatpush1.msra.mxu0 %v16050_v4  ;;  %1099 = vmatmul.mubr.f32.gmra.mxu1 %v15893_v24 }
 0x144   :  { %982 = vmatmul.mubr.f32.gmra.mxu0 %v15893_v24  ;;  %1186 = vmatprep.subr.mxu0 %v16058_v5  ;;  %v16164_v24 = vld [vmem:[%s23921_s12 + $0x50] sm:$0xff]  ;;  %s24009_s12 = sld [smem:[#allocation47_spill]] }
 0x145   :  { %12101 = vmatprep.mubr.msk.f32.mxu0 %vm602_vm3, %v15946_v42  ;;  %12111 = vmatprep.mubr.msk.f32.mxu1 %vm602_vm3, %v15946_v42  ;;  %v12122_v42 = vld [vmem:[%s23922_s30 + $0x148] sm:$0xff] }
 0x146   :  { %1187 = vmatpush1.msra.mxu0 %v16068_v7  ;;  %1414 = vmatpush1.msra.mxu1 %v12188_v55  ;;  %v12165_v55 = vld [vmem:[%s23923_s29 + $0x548] sm:$0xff] }
 0x147   :  { %1188 = vmatprep.subr.mxu0 %v16074_v8  ;;  %1104 = vmatmul.mubr.f32.gmra.mxu1 %v15934_v37 }
 0x148   :  { %1189 = vmatpush1.msra.mxu0 %v16081_v9  ;;  %12112 = vmatprep.mubr.msk.f32.mxu1 %vm602_vm3, %v259_v56 }
 0x149   :  { %988 = vmatmul.mubr.f32.gmra.mxu0 %v15934_v37  ;;  %1190 = vmatprep.subr.mxu0 %v16089_v10  ;;  %v12117_v37 = vld [vmem:[%s23922_s30 + $0x120] sm:$0xff] }
 0x14a   :  { %12102 = vmatprep.mubr.msk.f32.mxu0 %vm602_vm3, %v259_v56  ;;  %1191 = vmatpush1.msra.mxu0 %v16096_v12  ;;  %v12190_v56 = vld [vmem:[%s23923_s29 + $0x610] sm:$0xff] }
 0x14b   :  { %1192 = vmatprep.subr.mxu0 %v16102_v13  ;;  %1109 = vmatmul.mubr.f32.gmra.mxu1 %v15969_v50 }
 0x14c   :  { %1193 = vmatpush1.msra.mxu0 %v16109_v14  ;;  %12113 = vmatprep.mubr.msk.f32.mxu1 %vm602_vm3, %v265_v62 }
 0x14d   :  { %994 = vmatmul.mubr.f32.gmra.mxu0 %v15969_v50  ;;  %1194 = vmatprep.subr.mxu0 %v16117_v15  ;;  %v12128_v50 = vld [vmem:[%s23922_s30 + $0x178] sm:$0xff] }
 0x14e   :  { %12103 = vmatprep.mubr.msk.f32.mxu0 %vm602_vm3, %v265_v62  ;;  %1195 = vmatpush1.msra.mxu0 %v16124_v17  ;;  %v12183_v62 = vld [vmem:[%s23923_s29 + $0x5d8] sm:$0xff] }
 0x14f   :  { %1196 = vmatprep.subr.mxu0 %v16130_v18  ;;  %1114 = vmatmul.mubr.f32.gmra.mxu1 %v16003_v60 }
 0x150   :  { %1197 = vmatpush1.msra.mxu0 %v16137_v19  ;;  %12114 = vmatprep.mubr.msk.f32.mxu1 %vm602_vm3, %v271_v6 }
 0x151   :  { %1000 = vmatmul.mubr.f32.gmra.mxu0 %v16003_v60  ;;  %1198 = vmatprep.subr.mxu0 %v16145_v20  ;;  %v12187_v60 = vld [vmem:[%s23923_s29 + $0x5f8] sm:$0xff] }
 0x152   :  { %12104 = vmatprep.mubr.msk.f32.mxu0 %vm602_vm3, %v271_v6  ;;  %1199 = vmatpush1.msra.mxu0 %v16152_v22  ;;  %v12182_v6 = vld [vmem:[%s23923_s29 + $0x5d0] sm:$0xff] }
 0x153   :  { %1200 = vmatprep.subr.mxu0 %v16158_v23  ;;  %1119 = vmatmul.mubr.f32.gmra.mxu1 %v269_v2 }
 0x154   :  { %1201 = vmatpush1.msra.mxu0 %v16164_v24  ;;  %12115 = vmatprep.mubr.msk.f32.mxu1 %vm602_vm3, %v277_v16 }
 0x155   :  { %1006 = vmatmul.mubr.f32.gmra.mxu0 %v269_v2  ;;  %1202 = vmatprep.subr.mxu0 %v16171_v25  ;;  %v12129_v2 = vld [vmem:[%s23922_s30 + $0x180] sm:$0xff] }
 0x156   :  { %12105 = vmatprep.mubr.msk.f32.mxu0 %vm602_vm3, %v277_v16  ;;  %1203 = vmatpush1.msra.mxu0 %v16178_v27  ;;  %v12184_v16 = vld [vmem:[%s23923_s29 + $0x5e0] sm:$0xff] }
 0x157   :  { %1204 = vmatprep.subr.mxu0 %v16184_v28  ;;  %1124 = vmatmul.mubr.f32.gmra.mxu1 %v275_v11 }
 0x158   :  { %1205 = vmatpush1.msra.mxu0 %v16190_v29  ;;  %12116 = vmatprep.mubr.msk.f32.mxu1 %vm602_vm3, %v283_v26 }
 0x159   :  { %1012 = vmatmul.mubr.f32.gmra.mxu0 %v275_v11  ;;  %1206 = vmatprep.subr.mxu0 %v16197_v30  ;;  %v12132_v11 = vld [vmem:[%s23922_s30 + $0x198] sm:$0xff] }
 0x15a   :  { %12106 = vmatprep.mubr.msk.f32.mxu0 %vm602_vm3, %v283_v26  ;;  %1207 = vmatpush1.msra.mxu0 %v16204_v31  ;;  %v12179_v26 = vld [vmem:[%s23923_s29 + $0x5b8] sm:$0xff] }
 0x15b   :  { %1208 = vmatprep.subr.mxu0 %v16210_v32  ;;  %1129 = vmatmul.mubr.f32.gmra.mxu1 %v281_v21 }
 0x15c   :  { %1209 = vmatpush1.msra.mxu0 %v16219_v34  ;;  %1415 = vmatprep.subr.mxu1 %v12186_v57  ;;  %v12166_v57 = vld [vmem:[%s23923_s29 + $0x550] sm:$0xff] }
 0x15d   :  { %1018 = vmatmul.mubr.f32.gmra.mxu0 %v281_v21  ;;  %1210 = vmatprep.subr.mxu0 %v16225_v35  ;;  %v12180_v21 = vld [vmem:[%s23923_s29 + $0x5c0] sm:$0xff] }
 0x15e   :  { %1211 = vmatpush1.msra.mxu0 %v16231_v36  ;;  %12137 = vmatprep.mubr.msk.f32.mxu0 %vm132_vm0, %v12118_v33  ;;  %v12181_v33 = vld [vmem:[%s23923_s29 + $0x5c8] sm:$0xff] }
 0x15f   :  { %12135 = vmatprep.subr.msk.mxu0 %vm160_vm1, %v16241_v38  ;;  %1416 = vmatpush1.msra.mxu1 %v12185_v59  ;;  %v12161_v59 = vld [vmem:[%s23923_s29 + $0x528] sm:$0xff] }
 0x160   :  { %12136 = vmatpush2.msk.msra.mxu0 %vm160_vm1, %v16251_v40  ;;  %1417 = vmatprep.subr.mxu1 %v12183_v62  ;;  %v12159_v62 = vld [vmem:[%s23923_s29 + $0x518] sm:$0xff] }
 0x161   :  { %1245 = vmatmul.mubr.f32.vlgmr.msra.gmra.mxu0 %v12117_v37  ;;  %1530 = vmatprep.subr.mxu0 %v23875_v46  ;;  %v12131_v37 = vld [vmem:[%s23922_s30 + $0x190] sm:$0xff] }
 0x162   :  { %12138 = vmatprep.mubr.msk.f32.mxu0 %vm132_vm0, %v12120_v39  ;;  %1531 = vmatpush1.msra.mxu0 %v12193_v52  ;;  %v12134_v39 = vld [vmem:[%s23922_s30 + $0x1a8] sm:$0xf]  ;;  %v12168_v52 = vld [vmem:[%s23923_s29 + $0x560] sm:$0xff] }
 0x163   :  { %1532 = vmatprep.subr.mxu0 %v23875_v46  ;;  %1418 = vmatpush1.msra.mxu1 %v12182_v6  ;;  %v12160_v6 = vld [vmem:[%s23923_s29 + $0x520] sm:$0xff] }
 0x164   :  { %1533 = vmatpush1.msra.mxu0 %v12190_v56  ;;  %1419 = vmatprep.subr.mxu1 %v12180_v21  ;;  %v12164_v56 = vld [vmem:[%s23923_s29 + $0x540] sm:$0xff]  ;;  %v12157_v21 = vld [vmem:[%s23923_s29 + $0x508] sm:$0xff] }
 0x165   :  { %1251 = vmatmul.mubr.f32.gmra.mxu0 %v12119_v41  ;;  %1534 = vmatprep.subr.mxu0 %v23875_v46  ;;  %v12177_v41 = vld [vmem:[%s23923_s29 + $0x5a8] sm:$0xff] }
 0x166   :  { %12139 = vmatprep.mubr.msk.f32.mxu0 %vm132_vm0, %v12122_v42  ;;  %1535 = vmatpush1.msra.mxu0 %v12187_v60  ;;  %v12176_v42 = vld [vmem:[%s23923_s29 + $0x5a0] sm:$0xff]  ;;  %v12163_v60 = vld [vmem:[%s23923_s29 + $0x538] sm:$0xff] }
 0x167   :  { %1536 = vmatprep.subr.mxu0 %v23875_v46  ;;  %1420 = vmatpush1.msra.mxu1 %v12179_v26  ;;  %v12153_v26 = vld [vmem:[%s23923_s29 + $0x4e8] sm:$0xff] }
 0x168   :  { %1537 = vmatpush1.msra.mxu0 %v12184_v16  ;;  %1421 = vmatprep.subr.mxu1 %v12177_v41  ;;  %v12155_v16 = vld [vmem:[%s23923_s29 + $0x4f8] sm:$0xff]  ;;  %v12149_v41 = vld [vmem:[%s23923_s29 + $0x4c8] sm:$0xff] }
 0x169   :  { %1257 = vmatmul.mubr.f32.gmra.mxu0 %v12121_v43  ;;  %1538 = vmatprep.subr.mxu0 %v23875_v46  ;;  %v12178_v43 = vld [vmem:[%s23923_s29 + $0x5b0] sm:$0xff] }
 0x16a   :  { %12140 = vmatprep.mubr.msk.f32.mxu0 %vm132_vm0, %v12124_v44  ;;  %1539 = vmatpush1.msra.mxu0 %v12181_v33  ;;  %v12133_v44 = vld [vmem:[%s23922_s30 + $0x1a0] sm:$0xf] }
 0x16b   :  { %1540 = vmatprep.subr.mxu0 %v23875_v46  ;;  %1422 = vmatpush1.msra.mxu1 %v12176_v42  ;;  %v12152_v33 = vld [vmem:[%s23923_s29 + $0x4e0] sm:$0xff]  ;;  %v12151_v42 = vld [vmem:[%s23923_s29 + $0x4d8] sm:$0xff] }
 0x16c   :  { %1541 = vmatpush1.msra.mxu0 %v12178_v43  ;;  %v12147_v43 = vld [vmem:[%s23923_s29 + $0x4b8] sm:$0xff] }
 0x16d   :  { %1263 = vmatmul.mubr.f32.gmra.mxu0 %v12123_v45  ;;  %v12174_v45 = vld [vmem:[%s23923_s29 + $0x590] sm:$0xff]  ;;  %1542 = vmatprep.subr.mxu0 %v23875_v46 }
 0x16e   :  { %12141 = vmatprep.mubr.msk.f32.mxu0 %vm132_vm0, %v12126_v47  ;;  %v12173_v47 = vld [vmem:[%s23923_s29 + $0x588] sm:$0xff]  ;;  %1423 = vmatprep.subr.mxu1 %v12174_v45  ;;  %v12148_v45 = vld [vmem:[%s23923_s29 + $0x4c0] sm:$0xff] }
 0x16f   :  { %1424 = vmatpush1.msra.mxu1 %v12173_v47  ;;  %1543 = vmatpush1.msra.mxu0 %v12175_v48  ;;  %v12219_v47 = vld [vmem:[%s23923_s29 + $0x6f8] sm:$0x3f]  ;;  %v12218_v48 = vld [vmem:[%s23923_s29 + $0x6f0] sm:$0x3f] }
 0x170   :  { %1544 = vmatprep.subr.mxu0 %v23875_v46 }
 0x171   :  { %1269 = vmatmul.mubr.f32.gmra.mxu0 %v12125_v49  ;;  %v12171_v49 = vld [vmem:[%s23923_s29 + $0x578] sm:$0xff] }
 0x172   :  { %12142 = vmatprep.mubr.msk.f32.mxu0 %vm132_vm0, %v12128_v50  ;;  %v12170_v50 = vld [vmem:[%s23923_s29 + $0x570] sm:$0xff]  ;;  %1425 = vmatprep.subr.mxu1 %v12171_v49  ;;  %v12220_v49 = vld [vmem:[%s23923_s29 + $0x700] sm:$0x3f] }
 0x173   :  { %1426 = vmatpush1.msra.mxu1 %v12170_v50  ;;  %1545 = vmatpush1.msra.mxu0 %v12172_v51  ;;  %v12216_v50 = vld [vmem:[%s23923_s29 + $0x6e0] sm:$0xff]  ;;  %v12215_v51 = vld [vmem:[%s23923_s29 + $0x6d8] sm:$0xff] }
 0x174   :  { %1427 = vmatprep.subr.mxu1 %v12168_v52  ;;  %1546 = vmatprep.subr.mxu0 %v23875_v46  ;;  %v12217_v52 = vld [vmem:[%s23923_s29 + $0x6e8] sm:$0xff] }
 0x175   :  { %1275 = vmatmul.mubr.f32.gmra.mxu0 %v12127_v54  ;;  %v12169_v54 = vld [vmem:[%s23923_s29 + $0x568] sm:$0xff]  ;;  %1428 = vmatpush1.msra.mxu1 %v12167_v53 }
 0x176   :  { %12143 = vmatprep.mubr.msk.f32.mxu0 %vm132_vm0, %v12130_v58  ;;  %1547 = vmatpush1.msra.mxu0 %v12169_v54  ;;  %v12162_v58 = vld [vmem:[%s23923_s29 + $0x530] sm:$0xff]  ;;  %v12213_v53 = vld [vmem:[%s23923_s29 + $0x6c8] sm:$0xff]  ;;  %v12212_v54 = vld [vmem:[%s23923_s29 + $0x6c0] sm:$0xff] }
 0x177   :  { %1429 = vmatprep.subr.mxu1 %v12165_v55  ;;  %1548 = vmatprep.subr.mxu0 %v23875_v46  ;;  %v12214_v55 = vld [vmem:[%s23923_s29 + $0x6d0] sm:$0xff] }
 0x178   :  { %1430 = vmatpush1.msra.mxu1 %v12164_v56  ;;  %1549 = vmatpush1.msra.mxu0 %v12166_v57  ;;  %v12210_v56 = vld [vmem:[%s23923_s29 + $0x6b0] sm:$0xff]  ;;  %v12209_v57 = vld [vmem:[%s23923_s29 + $0x6a8] sm:$0xff] }
 0x179   :  { %1281 = vmatmul.mubr.f32.gmra.mxu0 %v12129_v2  ;;  %1431 = vmatprep.subr.mxu1 %v12162_v58  ;;  %v12158_v2 = vld [vmem:[%s23923_s29 + $0x510] sm:$0xff]  ;;  %v12211_v58 = vld [vmem:[%s23923_s29 + $0x6b8] sm:$0xff] }
 0x17a   :  { %12144 = vmatprep.mubr.msk.f32.mxu0 %vm132_vm0, %v12132_v11  ;;  %1550 = vmatprep.subr.mxu0 %v23875_v46  ;;  %v12156_v11 = vld [vmem:[%s23923_s29 + $0x500] sm:$0xff] }
 0x17b   :  { %1432 = vmatpush1.msra.mxu1 %v12161_v59  ;;  %1551 = vmatpush1.msra.mxu0 %v12163_v60  ;;  %v12207_v59 = vld [vmem:[%s23923_s29 + $0x698] sm:$0xff]  ;;  %v12206_v60 = vld [vmem:[%s23923_s29 + $0x690] sm:$0xff] }
 0x17c   :  { %1433 = vmatprep.subr.mxu1 %v12159_v62  ;;  %1552 = vmatprep.subr.mxu0 %v23875_v46  ;;  %v12208_v62 = vld [vmem:[%s23923_s29 + $0x6a0] sm:$0xff] }
 0x17d   :  { %1287 = vmatmul.mubr.f32.gmra.mxu0 %v12131_v37  ;;  %1434 = vmatpush1.msra.mxu1 %v12158_v2  ;;  %v12154_v37 = vld [vmem:[%s23923_s29 + $0x4f0] sm:$0xff]  ;;  %v12204_v2 = vld [vmem:[%s23923_s29 + $0x680] sm:$0xff] }
 0x17e   :  { %12145 = vmatprep.mubr.msk.f32.mxu0 %vm132_vm0, %v12134_v39  ;;  %1553 = vmatpush1.msra.mxu0 %v12160_v6  ;;  %v12150_v39 = vld [vmem:[%s23923_s29 + $0x4d0] sm:$0xff]  ;;  %v12203_v6 = vld [vmem:[%s23923_s29 + $0x678] sm:$0xff] }
 0x17f   :  { %1435 = vmatprep.subr.mxu1 %v12156_v11  ;;  %1554 = vmatprep.subr.mxu0 %v23875_v46  ;;  %v12205_v11 = vld [vmem:[%s23923_s29 + $0x688] sm:$0xff] }
 0x180   :  { %1436 = vmatpush1.msra.mxu1 %v12155_v16  ;;  %1555 = vmatpush1.msra.mxu0 %v12157_v21  ;;  %v12201_v16 = vld [vmem:[%s23923_s29 + $0x668] sm:$0xff]  ;;  %v12200_v21 = vld [vmem:[%s23923_s29 + $0x660] sm:$0xff] }
 0x181   :  { %1293 = vmatmul.mubr.f32.gmra.mxu0 %v12133_v44  ;;  %1437 = vmatprep.subr.mxu1 %v12153_v26  ;;  %v12146_v44 = vld [vmem:[%s23923_s29 + $0x4b0] sm:$0xff] }
 0x182   :  { %1556 = vmatprep.subr.mxu0 %v23875_v46  ;;  %1438 = vmatpush1.msra.mxu1 %v12152_v33  ;;  %v12202_v26 = vld [vmem:[%s23923_s29 + $0x670] sm:$0xff] }
 0x183   :  { %1557 = vmatpush1.msra.mxu0 %v12154_v37  ;;  %1439 = vmatprep.subr.mxu1 %v12150_v39  ;;  %v12198_v33 = vld [vmem:[%s23923_s29 + $0x650] sm:$0xff]  ;;  %v12197_v37 = vld [vmem:[%s23923_s29 + $0x648] sm:$0xff]  ;;  %v12199_v39 = vld [vmem:[%s23923_s29 + $0x658] sm:$0xff] }
 0x184   :  { %1558 = vmatprep.subr.mxu0 %v23875_v46  ;;  %1440 = vmatpush1.msra.mxu1 %v12149_v41  ;;  %v12195_v41 = vld [vmem:[%s23923_s29 + $0x638] sm:$0xff] }
 0x185   :  { %1559 = vmatpush1.msra.mxu0 %v12151_v42  ;;  %1441 = vmatprep.subr.mxu1 %v12147_v43  ;;  %v12194_v42 = vld [vmem:[%s23923_s29 + $0x630] sm:$0xff]  ;;  %v12196_v43 = vld [vmem:[%s23923_s29 + $0x640] sm:$0xff] }
 0x186   :  { %1560 = vmatprep.subr.mxu0 %v23875_v46  ;;  %1442 = vmatpush1.msra.mxu1 %v12146_v44 }
 0x187   :  { %1561 = vmatpush1.msra.mxu0 %v12148_v45  ;;  %12221 = vmatprep.subr.msk.mxu1 %vm630_vm2, %v12219_v47 }
 0x188   :  { %1576 = vmatprep.subr.mxu0 %v23875_v46  ;;  %12222 = vmatpush2.msk.msra.mxu1 %vm630_vm2, %v12218_v48 }
 0x189   :  { %12232 = vmatpush2.msk.msra.mxu0 %vm630_vm2, %v12220_v49  ;;  %1459 = vmatprep.subr.mxu1 %v12216_v50 }
 0x18a   :  { %1578 = vmatprep.subr.mxu0 %v23875_v46  ;;  %1460 = vmatpush2.msra.mxu1 %v12215_v51 }
 0x18b   :  { %1579 = vmatpush2.msra.mxu0 %v12217_v52  ;;  %1461 = vmatprep.subr.mxu1 %v12213_v53 }
 0x18c   :  { %1580 = vmatprep.subr.mxu0 %v23875_v46  ;;  %1462 = vmatpush2.msra.mxu1 %v12212_v54 }
 0x18d   :  { %1581 = vmatpush2.msra.mxu0 %v12214_v55  ;;  %1463 = vmatprep.subr.mxu1 %v12210_v56 }
 0x18e   :  { %1582 = vmatprep.subr.mxu0 %v23875_v46  ;;  %1464 = vmatpush2.msra.mxu1 %v12209_v57 }
 0x18f   :  { %1583 = vmatpush2.msra.mxu0 %v12211_v58  ;;  %1465 = vmatprep.subr.mxu1 %v12207_v59 }
 0x190   :  { %1584 = vmatprep.subr.mxu0 %v23875_v46  ;;  %1466 = vmatpush2.msra.mxu1 %v12206_v60 }
 0x191   :  { %1585 = vmatpush2.msra.mxu0 %v12208_v62  ;;  %1467 = vmatprep.subr.mxu1 %v12204_v2 }
 0x192   :  { %1586 = vmatprep.subr.mxu0 %v23875_v46  ;;  %1468 = vmatpush2.msra.mxu1 %v12203_v6 }
 0x193   :  { %1587 = vmatpush2.msra.mxu0 %v12205_v11  ;;  %1469 = vmatprep.subr.mxu1 %v12201_v16 }
 0x194   :  { %1588 = vmatprep.subr.mxu0 %v23875_v46  ;;  %1470 = vmatpush2.msra.mxu1 %v12200_v21 }
 0x195   :  { %1589 = vmatpush2.msra.mxu0 %v12202_v26  ;;  %1471 = vmatprep.subr.mxu1 %v12198_v33 }
 0x196   :  { %1590 = vmatprep.subr.mxu0 %v23875_v46  ;;  %1472 = vmatpush2.msra.mxu1 %v12197_v37 }
 0x197   :  { %1591 = vmatpush2.msra.mxu0 %v12199_v39  ;;  %1473 = vmatprep.subr.mxu1 %v12195_v41 }
 0x198   :  { %1592 = vmatprep.subr.mxu0 %v23875_v46  ;;  %1474 = vmatpush2.msra.mxu1 %v12194_v42 }
 0x199   :  { %1593 = vmatpush2.msra.mxu0 %v12196_v43  ;;  %1713 = vmatprep.subr.mxu1 %v16014_v61  ;;  %v12317_v43 = vld [vmem:[%s23923_s29 + $0x878] sm:$0xff] }
 0x19a   :  { %1944 = vmatprep.subr.mxu0 %v12317_v43 }
 0x1b8   :  { %v16562_v44 = vpop.f32.mrf.mxu1  ;;  %v16564_v47 = vpop.f32.mrf.mxu0 }
 0x1b9   :  { %23924 = vst [vmem:[#allocation2_spill] sm:$0xff] %v16562_v44  ;;  %23925 = vst [vmem:[#allocation3_spill] sm:$0xff] %v16564_v47 }
 0x1ba   :  { %v827_v45 = vpop.f32.mrf.mxu1  ;;  %v16566_v48 = vpop.f32.mrf.mxu0 }
 0x1bb   :  { %23926 = vst [vmem:[#allocation4_spill] sm:$0xff] %v16566_v48 }
 0x1c6   :  { %v712_v49 = vpop.f32.mrf.mxu0  ;;  %v830_v50 = vpop.f32.mrf.mxu1 }
 0x1c8   :  { %v16568_v51 = vpop.f32.mrf.mxu0  ;;  %v832_v52 = vpop.f32.mrf.mxu1 }
 0x1c9   :  { %23927 = vst [vmem:[#allocation5_spill] sm:$0xff] %v16568_v51 }
 0x1cc   :  { %v718_v53 = vpop.f32.mrf.mxu0  ;;  %v835_v54 = vpop.f32.mrf.mxu1 }
 0x1ce   :  { %v16570_v55 = vpop.f32.mrf.mxu0  ;;  %v837_v56 = vpop.f32.mrf.mxu1 }
 0x1cf   :  { %23928 = vst [vmem:[#allocation6_spill] sm:$0xff] %v16570_v55 }
 0x1d2   :  { %v724_v57 = vpop.f32.mrf.mxu0  ;;  %v840_v58 = vpop.f32.mrf.mxu1 }
 0x1d4   :  { %v16572_v61 = vpop.f32.mrf.mxu0  ;;  %v842_v59 = vpop.f32.mrf.mxu1 }
 0x1d5   :  { %23929 = vst [vmem:[#allocation7_spill] sm:$0xff] %v16572_v61 }
 0x1d8   :  { %v730_v60 = vpop.f32.mrf.mxu0  ;;  %v845_v62 = vpop.f32.mrf.mxu1 }
 0x1da   :  { %v16574_v2 = vpop.f32.mrf.mxu0  ;;  %v847_v6 = vpop.f32.mrf.mxu1 }
 0x1db   :  { %23930 = vst [vmem:[#allocation8_spill] sm:$0xff] %v16574_v2 }
 0x1de   :  { %v736_v11 = vpop.f32.mrf.mxu0  ;;  %v850_v16 = vpop.f32.mrf.mxu1 }
 0x1e0   :  { %v852_v21 = vpop.f32.mrf.mxu1  ;;  %v16576_v26 = vpop.f32.mrf.mxu0 }
 0x1e1   :  { %23931 = vst [vmem:[#allocation9_spill] sm:$0xff] %v16576_v26 }
 0x1e4   :  { %v855_v33 = vpop.f32.mrf.mxu1  ;;  %v742_v37 = vpop.f32.mrf.mxu0 }
 0x1e6   :  { %v857_v39 = vpop.f32.mrf.mxu1  ;;  %v16578_v41 = vpop.f32.mrf.mxu0 }
 0x1e7   :  { %23932 = vst [vmem:[#allocation10_spill] sm:$0xff] %v16578_v41 }
 0x1ea   :  { %v860_v42 = vpop.f32.mrf.mxu1  ;;  %v748_v52 = vpop.f32.mrf.mxu0 }
 0x1ec   :  { %v862_v45 = vpop.f32.mrf.mxu1  ;;  %v16583_v59 = vpop.f32.mrf.mxu0 }
 0x1ed   :  { %23933 = vst [vmem:[#allocation11_spill] sm:$0xff] %v16583_v59 }
 0x1f0   :  { %v865_v56 = vpop.f32.mrf.mxu1  ;;  %v754_v21 = vpop.f32.mrf.mxu0 }
 0x1f2   :  { %v867_v6 = vpop.f32.mrf.mxu1  ;;  %v16585_v46 = vpop.f32.mrf.mxu0 }
 0x1f3   :  { %23934 = vst [vmem:[#allocation12_spill] sm:$0xff] %v16585_v46 }
 0x1fb   :  { %v16587_v26 = vpop.f32.mrf.mxu0  ;;  %v16589_v39 = vpop.f32.mrf.mxu1 }
 0x1fc   :  { %23935 = vst [vmem:[#allocation13_spill] sm:$0xff] %v16587_v26  ;;  %23936 = vst [vmem:[#allocation14_spill] sm:$0xff] %v16589_v39 }
 0x1fd   :  { %v16591_v41 = vpop.f32.mrf.mxu0  ;;  %v1092_v2 = vpop.f32.mrf.mxu1 }
 0x1fe   :  { %23937 = vst [vmem:[#allocation15_spill] sm:$0xff] %v16591_v41 }
 0x1ff   :  { %v977_v61 = vpop.f32.mrf.mxu0  ;;  %v1095_v55 = vpop.f32.mrf.mxu1 }
 0x200   :  { %v16593_v51 = vadd.f32 %v977_v61, %v712_v49  ;;  %v16595_v43 = vadd.f32 %v1095_v55, %v830_v50 }
 0x201   :  { %v16597_v45 = vpop.f32.mrf.mxu0  ;;  %v1097_v59 = vpop.f32.mrf.mxu1 }
 0x202   :  { %23938 = vst [vmem:[#allocation16_spill] sm:$0xff] %v16597_v45 }
 0x203   :  { %v1100_v6 = vpop.f32.mrf.mxu1 }
 0x204   :  { %v983_v48 = vpop.f32.mrf.mxu0  ;;  %v16599_v44 = vadd.f32 %v1100_v6, %v835_v54 }
 0x205   :  { %v16601_v46 = vadd.f32 %v983_v48, %v718_v53  ;;  %v1102_v26 = vpop.f32.mrf.mxu1 }
 0x206   :  { %v16603_v39 = vpop.f32.mrf.mxu0 }
 0x207   :  { %23939 = vst [vmem:[#allocation17_spill] sm:$0xff] %v16603_v39  ;;  %v1105_v41 = vpop.f32.mrf.mxu1 }
 0x208   :  { %v16605_v2 = vadd.f32 %v1105_v41, %v840_v58 }
 0x209   :  { %v989_v47 = vpop.f32.mrf.mxu0  ;;  %v1107_v49 = vpop.f32.mrf.mxu1 }
 0x20a   :  { %v16607_v61 = vadd.f32 %v989_v47, %v724_v57 }
 0x20b   :  { %v16609_v50 = vpop.f32.mrf.mxu0  ;;  %v1110_v55 = vpop.f32.mrf.mxu1 }
 0x20c   :  { %23940 = vst [vmem:[#allocation18_spill] sm:$0xff] %v16609_v50  ;;  %v16611_v59 = vadd.f32 %v1110_v55, %v845_v62 }
 0x20d   :  { %v995_v45 = vpop.f32.mrf.mxu0  ;;  %v1112_v54 = vpop.f32.mrf.mxu1 }
 0x20e   :  { %v16613_v6 = vadd.f32 %v995_v45, %v730_v60 }
 0x20f   :  { %v16615_v48 = vpop.f32.mrf.mxu0  ;;  %v1115_v53 = vpop.f32.mrf.mxu1 }
 0x210   :  { %23941 = vst [vmem:[#allocation19_spill] sm:$0xff] %v16615_v48  ;;  %v16617_v26 = vadd.f32 %v1115_v53, %v850_v16 }
 0x211   :  { %v1001_v58 = vpop.f32.mrf.mxu0  ;;  %v1117_v41 = vpop.f32.mrf.mxu1 }
 0x212   :  { %v16619_v39 = vadd.f32 %v1001_v58, %v736_v11 }
 0x213   :  { %v16621_v47 = vpop.f32.mrf.mxu0  ;;  %v1120_v57 = vpop.f32.mrf.mxu1 }
 0x214   :  { %23942 = vst [vmem:[#allocation20_spill] sm:$0xff] %v16621_v47  ;;  %v16623_v49 = vadd.f32 %v1120_v57, %v855_v33 }
 0x215   :  { %v1007_v62 = vpop.f32.mrf.mxu0  ;;  %v1122_v55 = vpop.f32.mrf.mxu1 }
 0x216   :  { %v16625_v50 = vadd.f32 %v1007_v62, %v742_v37 }
 0x217   :  { %v16627_v60 = vpop.f32.mrf.mxu0  ;;  %v1125_v45 = vpop.f32.mrf.mxu1 }
 0x218   :  { %v16629_v54 = vadd.f32 %v1125_v45, %v860_v42  ;;  %v12316_v42 = vld [vmem:[%s23923_s29 + $0x870] sm:$0xff]  ;;  %v12313_v45 = vld [vmem:[%s23923_s29 + $0x858] sm:$0xff] }
 0x219   :  { %v1013_v16 = vpop.f32.mrf.mxu0  ;;  %v1127_v53 = vpop.f32.mrf.mxu1 }
 0x21a   :  { %v16631_v48 = vadd.f32 %v1013_v16, %v748_v52  ;;  %v12314_v52 = vld [vmem:[%s23923_s29 + $0x860] sm:$0xff]  ;;  %v12311_v16 = vld [vmem:[%s23923_s29 + $0x848] sm:$0xff] }
 0x21b   :  { %v16633_v11 = vpop.f32.mrf.mxu0  ;;  %v1130_v58 = vpop.f32.mrf.mxu1 }
 0x21c   :  { %v16635_v41 = vadd.f32 %v1130_v58, %v865_v56 }
 0x21d   :  { %v1019_v33 = vpop.f32.mrf.mxu0  ;;  %v1132_v57 = vpop.f32.mrf.mxu1 }
 0x21e   :  { %v16637_v47 = vadd.f32 %v1019_v33, %v754_v21  ;;  %v12253_v33 = vld [vmem:[%s23922_s30 + $0x208] sm:$0xff]  ;;  %v12252_v57 = vld [vmem:[%s23922_s30 + $0x200] sm:$0xff] }
 0x21f   :  { %v16639_v37 = vpop.f32.mrf.mxu0 }
 0x221   :  { %v1246_v62 = vpop.f32.mrf.mxu0 }
 0x223   :  { %v1248_v55 = vpop.f32.mrf.mxu0 }
 0x224   :  { %12223 = vmatprep.mubr.msk.f32.mxu1 %vm602_vm3, %v1248_v55  ;;  %12233 = vmatprep.mubr.msk.f32.mxu0 %vm602_vm3, %v1248_v55  ;;  %v12254_v55 = vld [vmem:[%s23922_s30 + $0x210] sm:$0xff] }
 0x225   :  { %v1252_v56 = vpop.f32.mrf.mxu0  ;;  %1476 = vmatmul.mubr.f32.vlgmr.msra.gmra.mxu1 %v1246_v62  ;;  %1595 = vmatmul.mubr.f32.vlgmr.msra.gmra.mxu0 %v1246_v62  ;;  %v12255_v62 = vld [vmem:[%s23922_s30 + $0x218] sm:$0xff] }
 0x226   :  { %1714 = vmatpush1.msra.mxu1 %v16020_v63  ;;  %1945 = vmatpush1.msra.mxu0 %v12316_v42  ;;  %v12257_v42 = vld [vmem:[%s23922_s30 + $0x228] sm:$0xff] }
 0x227   :  { %v1254_v21 = vpop.f32.mrf.mxu0  ;;  %1715 = vmatprep.subr.mxu1 %v16028_v0  ;;  %1946 = vmatprep.subr.mxu0 %v12314_v52  ;;  %v12310_v0 = vld [vmem:[%s23923_s29 + $0x840] sm:$0xff] }
 0x228   :  { %12224 = vmatprep.mubr.msk.f32.mxu1 %vm602_vm3, %v1254_v21  ;;  %12234 = vmatprep.mubr.msk.f32.mxu0 %vm602_vm3, %v1254_v21  ;;  %v12256_v52 = vld [vmem:[%s23922_s30 + $0x220] sm:$0xff] }
 0x229   :  { %v1258_v53 = vpop.f32.mrf.mxu0  ;;  %1482 = vmatmul.mubr.f32.gmra.mxu1 %v1252_v56  ;;  %1600 = vmatmul.mubr.f32.gmra.mxu0 %v1252_v56  ;;  %v12259_v56 = vld [vmem:[%s23922_s30 + $0x238] sm:$0xf]  ;;  %v12302_v21 = vld [vmem:[%s23923_s29 + $0x800] sm:$0xff] }
 0x22a   :  { %1716 = vmatpush1.msra.mxu1 %v16038_v1  ;;  %1947 = vmatpush1.msra.mxu0 %v12313_v45  ;;  %v12301_v45 = vld [vmem:[%s23923_s29 + $0x7f8] sm:$0xff] }
 0x22b   :  { %v1260_v63 = vpop.f32.mrf.mxu0  ;;  %1717 = vmatprep.subr.mxu1 %v16044_v3  ;;  %1948 = vmatprep.subr.mxu0 %v12311_v16  ;;  %v12308_v3 = vld [vmem:[%s23923_s29 + $0x830] sm:$0xff]  ;;  %v12303_v16 = vld [vmem:[%s23923_s29 + $0x808] sm:$0xff] }
 0x22c   :  { %12225 = vmatprep.mubr.msk.f32.mxu1 %vm602_vm3, %v1260_v63  ;;  %12235 = vmatprep.mubr.msk.f32.mxu0 %vm602_vm3, %v1260_v63  ;;  %v12299_v63 = vld [vmem:[%s23923_s29 + $0x7e8] sm:$0xff] }
 0x22d   :  { %1718 = vmatpush1.msra.mxu1 %v16050_v4  ;;  %v1264_v58 = vpop.f32.mrf.mxu0  ;;  %1605 = vmatmul.mubr.f32.gmra.mxu0 %v1258_v53 }
 0x22e   :  { %1488 = vmatmul.mubr.f32.gmra.mxu1 %v1258_v53  ;;  %1719 = vmatprep.subr.mxu1 %v16058_v5  ;;  %v12258_v53 = vld [vmem:[%s23922_s30 + $0x230] sm:$0xf] }
 0x22f   :  { %1720 = vmatpush1.msra.mxu1 %v16068_v7  ;;  %v1266_v1 = vpop.f32.mrf.mxu0  ;;  %1949 = vmatpush1.msra.mxu0 %v12310_v0  ;;  %v12298_v0 = vld [vmem:[%s23923_s29 + $0x7e0] sm:$0xff] }
 0x230   :  { %1721 = vmatprep.subr.mxu1 %v16074_v8  ;;  %12226 = vmatprep.mubr.msk.f32.mxu1 %vm602_vm3, %v1266_v1 }
 0x231   :  { %12236 = vmatprep.mubr.msk.f32.mxu0 %vm602_vm3, %v1266_v1  ;;  %1722 = vmatpush1.msra.mxu1 %v16081_v9  ;;  %v1270_v4 = vpop.f32.mrf.mxu0  ;;  %v12296_v1 = vld [vmem:[%s23923_s29 + $0x7d0] sm:$0xff] }
 0x232   :  { %1494 = vmatmul.mubr.f32.gmra.mxu1 %v1264_v58  ;;  %1610 = vmatmul.mubr.f32.gmra.mxu0 %v1264_v58  ;;  %v12300_v58 = vld [vmem:[%s23923_s29 + $0x7f0] sm:$0xff] }
 0x233   :  { %1723 = vmatprep.subr.mxu1 %v16089_v10  ;;  %v1272_v5 = vpop.f32.mrf.mxu0  ;;  %1950 = vmatprep.subr.mxu0 %v12308_v3  ;;  %v12295_v3 = vld [vmem:[%s23923_s29 + $0x7c8] sm:$0xff] }
 0x234   :  { %1724 = vmatpush1.msra.mxu1 %v16096_v12  ;;  %12227 = vmatprep.mubr.msk.f32.mxu1 %vm602_vm3, %v1272_v5 }
 0x235   :  { %1725 = vmatprep.subr.mxu1 %v16102_v13  ;;  %12237 = vmatprep.mubr.msk.f32.mxu0 %vm602_vm3, %v1272_v5  ;;  %v1276_v7 = vpop.f32.mrf.mxu0  ;;  %v12293_v5 = vld [vmem:[%s23923_s29 + $0x7b8] sm:$0xff] }
 0x236   :  { %1726 = vmatpush1.msra.mxu1 %v16109_v14  ;;  %1615 = vmatmul.mubr.f32.gmra.mxu0 %v1270_v4 }
 0x237   :  { %1500 = vmatmul.mubr.f32.gmra.mxu1 %v1270_v4  ;;  %1727 = vmatprep.subr.mxu1 %v16117_v15  ;;  %v1278_v8 = vpop.f32.mrf.mxu0  ;;  %v12297_v4 = vld [vmem:[%s23923_s29 + $0x7d8] sm:$0xff] }
 0x238   :  { %1728 = vmatpush1.msra.mxu1 %v16124_v17  ;;  %12228 = vmatprep.mubr.msk.f32.mxu1 %vm602_vm3, %v1278_v8  ;;  %v12243_v17 = vld [vmem:[%s23922_s30 + $0x1b8] sm:$0xff] }
 0x239   :  { %1729 = vmatprep.subr.mxu1 %v16130_v18  ;;  %12238 = vmatprep.mubr.msk.f32.mxu0 %vm602_vm3, %v1278_v8  ;;  %v1282_v9 = vpop.f32.mrf.mxu0  ;;  %v12307_v18 = vld [vmem:[%s23923_s29 + $0x828] sm:$0xff]  ;;  %v12294_v8 = vld [vmem:[%s23923_s29 + $0x7c0] sm:$0xff] }
 0x23a   :  { %1730 = vmatpush1.msra.mxu1 %v16137_v19  ;;  %1620 = vmatmul.mubr.f32.gmra.mxu0 %v1276_v7  ;;  %v12305_v19 = vld [vmem:[%s23923_s29 + $0x818] sm:$0xff] }
 0x23b   :  { %1506 = vmatmul.mubr.f32.gmra.mxu1 %v1276_v7  ;;  %1731 = vmatprep.subr.mxu1 %v16145_v20  ;;  %v1284_v10 = vpop.f32.mrf.mxu0  ;;  %v12242_v20 = vld [vmem:[%s23922_s30 + $0x1b0] sm:$0xff] }
 0x23c   :  { %1732 = vmatpush1.msra.mxu1 %v16152_v22  ;;  %12229 = vmatprep.mubr.msk.f32.mxu1 %vm602_vm3, %v1284_v10  ;;  %v12245_v22 = vld [vmem:[%s23922_s30 + $0x1c8] sm:$0xff]  ;;  %v12292_v7 = vld [vmem:[%s23923_s29 + $0x7b0] sm:$0xff] }
 0x23d   :  { %1733 = vmatprep.subr.mxu1 %v16158_v23  ;;  %12239 = vmatprep.mubr.msk.f32.mxu0 %vm602_vm3, %v1284_v10  ;;  %v1288_v12 = vpop.f32.mrf.mxu0  ;;  %v12318_v23 = vld [vmem:[%s23923_s29 + $0x880] sm:$0xff]  ;;  %v12289_v10 = vld [vmem:[%s23923_s29 + $0x798] sm:$0xff] }
 0x23e   :  { %1734 = vmatpush1.msra.mxu1 %v16164_v24  ;;  %1625 = vmatmul.mubr.f32.gmra.mxu0 %v1282_v9  ;;  %v12304_v24 = vld [vmem:[%s23923_s29 + $0x810] sm:$0xff] }
 0x23f   :  { %1512 = vmatmul.mubr.f32.gmra.mxu1 %v1282_v9  ;;  %1735 = vmatprep.subr.mxu1 %v16171_v25  ;;  %v1290_v13 = vpop.f32.mrf.mxu0  ;;  %v23943_v25 = vmov 0.0   ;;  %v12290_v9 = vld [vmem:[%s23923_s29 + $0x7a0] sm:$0xff] }
 0x240   :  { %1736 = vmatpush1.msra.mxu1 %v16178_v27  ;;  %12230 = vmatprep.mubr.msk.f32.mxu1 %vm602_vm3, %v1290_v13  ;;  %v12315_v27 = vld [vmem:[%s23923_s29 + $0x868] sm:$0xff] }
 0x241   :  { %1737 = vmatprep.subr.mxu1 %v16184_v28  ;;  %12240 = vmatprep.mubr.msk.f32.mxu0 %vm602_vm3, %v1290_v13  ;;  %v1294_v14 = vpop.f32.mrf.mxu0  ;;  %v12244_v28 = vld [vmem:[%s23922_s30 + $0x1c0] sm:$0xff]  ;;  %v12287_v13 = vld [vmem:[%s23923_s29 + $0x788] sm:$0xff] }
 0x242   :  { %1738 = vmatpush1.msra.mxu1 %v16190_v29  ;;  %1630 = vmatmul.mubr.f32.gmra.mxu0 %v1288_v12  ;;  %v12247_v29 = vld [vmem:[%s23922_s30 + $0x1d8] sm:$0xff] }
 0x243   :  { %1518 = vmatmul.mubr.f32.gmra.mxu1 %v1288_v12  ;;  %1739 = vmatprep.subr.mxu1 %v16197_v30  ;;  %v1296_v15 = vpop.f32.mrf.mxu0  ;;  %v12312_v30 = vld [vmem:[%s23923_s29 + $0x850] sm:$0xff]  ;;  %v12291_v12 = vld [vmem:[%s23923_s29 + $0x7a8] sm:$0xff] }
 0x244   :  { %1740 = vmatpush1.msra.mxu1 %v16204_v31  ;;  %12231 = vmatprep.mubr.msk.f32.mxu1 %vm602_vm3, %v1296_v15  ;;  %v12309_v31 = vld [vmem:[%s23923_s29 + $0x838] sm:$0xff] }
 0x245   :  { %1741 = vmatprep.subr.mxu1 %v16210_v32  ;;  %12241 = vmatprep.mubr.msk.f32.mxu0 %vm602_vm3, %v1296_v15  ;;  %v12246_v32 = vld [vmem:[%s23922_s30 + $0x1d0] sm:$0xff] }
 0x246   :  { %1742 = vmatpush1.msra.mxu1 %v16219_v34  ;;  %1635 = vmatmul.mubr.f32.gmra.mxu0 %v1294_v14  ;;  %v12249_v34 = vld [vmem:[%s23922_s30 + $0x1e8] sm:$0xff]  ;;  %v12288_v15 = vld [vmem:[%s23923_s29 + $0x790] sm:$0xff] }
 0x247   :  { %1524 = vmatmul.mubr.f32.gmra.mxu1 %v1294_v14  ;;  %1743 = vmatprep.subr.mxu1 %v16225_v35  ;;  %v12306_v35 = vld [vmem:[%s23923_s29 + $0x820] sm:$0xff] }
 0x248   :  { %1744 = vmatpush1.msra.mxu1 %v16231_v36  ;;  %12262 = vmatprep.mubr.msk.f32.mxu1 %vm132_vm0, %v12243_v17  ;;  %v12248_v36 = vld [vmem:[%s23922_s30 + $0x1e0] sm:$0xff]  ;;  %v12284_v17 = vld [vmem:[%s23923_s29 + $0x770] sm:$0xff] }
 0x249   :  { %12260 = vmatprep.subr.msk.mxu1 %vm160_vm1, %v16241_v38  ;;  %1951 = vmatpush1.msra.mxu0 %v12307_v18  ;;  %v12251_v38 = vld [vmem:[%s23922_s30 + $0x1f8] sm:$0xff]  ;;  %v12286_v14 = vld [vmem:[%s23923_s29 + $0x780] sm:$0xff]  ;;  %v12283_v18 = vld [vmem:[%s23923_s29 + $0x768] sm:$0xff] }
 0x24a   :  { %12261 = vmatpush2.msk.msra.mxu1 %vm160_vm1, %v16251_v40  ;;  %1952 = vmatprep.subr.mxu0 %v12305_v19  ;;  %v12250_v40 = vld [vmem:[%s23922_s30 + $0x1f0] sm:$0xff]  ;;  %v12285_v19 = vld [vmem:[%s23923_s29 + $0x778] sm:$0xff]  ;;  %s24070_s30 = sld [smem:[#allocation50_spill]] }
 0x24b   :  { %1778 = vmatmul.mubr.f32.vlgmr.msra.gmra.mxu1 %v12242_v20  ;;  %2063 = vmatprep.subr.mxu1 %v23943_v25  ;;  %v12281_v20 = vld [vmem:[%s23923_s29 + $0x758] sm:$0xff] }
 0x24c   :  { %12263 = vmatprep.mubr.msk.f32.mxu1 %vm132_vm0, %v12245_v22  ;;  %2064 = vmatpush1.msra.mxu1 %v12318_v23  ;;  %v12280_v22 = vld [vmem:[%s23923_s29 + $0x750] sm:$0xff]  ;;  %v12282_v23 = vld [vmem:[%s23923_s29 + $0x760] sm:$0xff] }
 0x24d   :  { %2065 = vmatprep.subr.mxu1 %v23943_v25  ;;  %1953 = vmatpush1.msra.mxu0 %v12304_v24  ;;  %v12278_v24 = vld [vmem:[%s23923_s29 + $0x740] sm:$0xff] }
 0x24e   :  { %2066 = vmatpush1.msra.mxu1 %v12315_v27  ;;  %1954 = vmatprep.subr.mxu0 %v12302_v21  ;;  %v12277_v27 = vld [vmem:[%s23923_s29 + $0x738] sm:$0xff]  ;;  %v12334_v21 = vld [vmem:[%s23923_s29 + $0x900] sm:$0xff] }
 0x24f   :  { %1784 = vmatmul.mubr.f32.gmra.mxu1 %v12244_v28  ;;  %2067 = vmatprep.subr.mxu1 %v23943_v25  ;;  %v12279_v28 = vld [vmem:[%s23923_s29 + $0x748] sm:$0xff] }
 0x250   :  { %12264 = vmatprep.mubr.msk.f32.mxu1 %vm132_vm0, %v12247_v29  ;;  %2068 = vmatpush1.msra.mxu1 %v12312_v30  ;;  %v12275_v29 = vld [vmem:[%s23923_s29 + $0x728] sm:$0xff]  ;;  %v12274_v30 = vld [vmem:[%s23923_s29 + $0x720] sm:$0xff] }
 0x251   :  { %2069 = vmatprep.subr.mxu1 %v23943_v25  ;;  %1955 = vmatpush1.msra.mxu0 %v12301_v45  ;;  %v12336_v45 = vld [vmem:[%s23923_s29 + $0x910] sm:$0xff] }
 0x252   :  { %2070 = vmatpush1.msra.mxu1 %v12309_v31  ;;  %1956 = vmatprep.subr.mxu0 %v12299_v63  ;;  %v12276_v31 = vld [vmem:[%s23923_s29 + $0x730] sm:$0xff]  ;;  %v12333_v63 = vld [vmem:[%s23923_s29 + $0x8f8] sm:$0xff] }
 0x253   :  { %1790 = vmatmul.mubr.f32.gmra.mxu1 %v12246_v32  ;;  %2071 = vmatprep.subr.mxu1 %v23943_v25  ;;  %v12272_v32 = vld [vmem:[%s23923_s29 + $0x710] sm:$0xff] }
 0x254   :  { %12265 = vmatprep.mubr.msk.f32.mxu1 %vm132_vm0, %v12249_v34  ;;  %2072 = vmatpush1.msra.mxu1 %v12306_v35  ;;  %v12271_v34 = vld [vmem:[%s23923_s29 + $0x708] sm:$0xff]  ;;  %v12273_v35 = vld [vmem:[%s23923_s29 + $0x718] sm:$0xff] }
 0x255   :  { %2073 = vmatprep.subr.mxu1 %v23943_v25  ;;  %1957 = vmatpush1.msra.mxu0 %v12298_v0  ;;  %v12329_v0 = vld [vmem:[%s23923_s29 + $0x8d8] sm:$0xff] }
 0x256   :  { %2074 = vmatpush1.msra.mxu1 %v12303_v16  ;;  %1958 = vmatprep.subr.mxu0 %v12296_v1  ;;  %v12332_v16 = vld [vmem:[%s23923_s29 + $0x8f0] sm:$0xff]  ;;  %v12330_v1 = vld [vmem:[%s23923_s29 + $0x8e0] sm:$0xff] }
 0x257   :  { %1796 = vmatmul.mubr.f32.gmra.mxu1 %v12248_v36  ;;  %2075 = vmatprep.subr.mxu1 %v23943_v25  ;;  %v12344_v36 = vld [vmem:[%s23923_s29 + $0x950] sm:$0x3f] }
 0x258   :  { %12266 = vmatprep.mubr.msk.f32.mxu1 %vm132_vm0, %v12251_v38  ;;  %2076 = vmatpush1.msra.mxu1 %v12300_v58  ;;  %v12343_v38 = vld [vmem:[%s23923_s29 + $0x948] sm:$0x3f]  ;;  %v12328_v58 = vld [vmem:[%s23923_s29 + $0x8d0] sm:$0xff] }
 0x259   :  { %1959 = vmatpush1.msra.mxu0 %v12295_v3  ;;  %2077 = vmatprep.subr.mxu1 %v23943_v25  ;;  %v12326_v3 = vld [vmem:[%s23923_s29 + $0x8c0] sm:$0xff] }
 0x25a   :  { %1960 = vmatprep.subr.mxu0 %v12293_v5  ;;  %2078 = vmatpush1.msra.mxu1 %v12297_v4  ;;  %v12325_v4 = vld [vmem:[%s23923_s29 + $0x8b8] sm:$0xff]  ;;  %v12327_v5 = vld [vmem:[%s23923_s29 + $0x8c8] sm:$0xff] }
 0x25b   :  { %1802 = vmatmul.mubr.f32.gmra.mxu1 %v12250_v40  ;;  %1961 = vmatpush1.msra.mxu0 %v12292_v7  ;;  %v12345_v40 = vld [vmem:[%s23923_s29 + $0x958] sm:$0x3f]  ;;  %v12323_v7 = vld [vmem:[%s23923_s29 + $0x8a8] sm:$0xff] }
 0x25c   :  { %12267 = vmatprep.mubr.msk.f32.mxu1 %vm132_vm0, %v12253_v33  ;;  %2079 = vmatprep.subr.mxu1 %v23943_v25  ;;  %v12341_v33 = vld [vmem:[%s23923_s29 + $0x938] sm:$0xff] }
 0x25d   :  { %1962 = vmatprep.subr.mxu0 %v12290_v9  ;;  %2080 = vmatpush1.msra.mxu1 %v12294_v8  ;;  %v12322_v8 = vld [vmem:[%s23923_s29 + $0x8a0] sm:$0xff]  ;;  %v12324_v9 = vld [vmem:[%s23923_s29 + $0x8b0] sm:$0xff] }
 0x25e   :  { %1963 = vmatpush1.msra.mxu0 %v12289_v10  ;;  %2081 = vmatprep.subr.mxu1 %v23943_v25  ;;  %v12320_v10 = vld [vmem:[%s23923_s29 + $0x890] sm:$0xff] }
 0x25f   :  { %1808 = vmatmul.mubr.f32.gmra.mxu1 %v12252_v57  ;;  %1964 = vmatprep.subr.mxu0 %v12287_v13  ;;  %v12340_v57 = vld [vmem:[%s23923_s29 + $0x930] sm:$0xff]  ;;  %v12321_v13 = vld [vmem:[%s23923_s29 + $0x898] sm:$0xff] }
 0x260   :  { %12268 = vmatprep.mubr.msk.f32.mxu1 %vm132_vm0, %v12255_v62  ;;  %2082 = vmatpush1.msra.mxu1 %v12291_v12  ;;  %v12342_v62 = vld [vmem:[%s23923_s29 + $0x940] sm:$0xff]  ;;  %v12319_v12 = vld [vmem:[%s23923_s29 + $0x888] sm:$0xff] }
 0x261   :  { %1965 = vmatpush1.msra.mxu0 %v12286_v14  ;;  %2083 = vmatprep.subr.mxu1 %v23943_v25  ;;  %v23944_v14 = vld [vmem:[#allocation3_spill] sm:$0xff] }
 0x262   :  { %1966 = vmatprep.subr.mxu0 %v12284_v17  ;;  %2084 = vmatpush1.msra.mxu1 %v12288_v15  ;;  %v23945_v15 = vld [vmem:[#allocation13_spill] sm:$0xff] }
 0x263   :  { %1814 = vmatmul.mubr.f32.gmra.mxu1 %v12254_v55  ;;  %1967 = vmatpush1.msra.mxu0 %v12283_v18  ;;  %v12338_v55 = vld [vmem:[%s23923_s29 + $0x920] sm:$0xff]  ;;  %v972_v17 = vadd.f32 %v23945_v15, %v23944_v14 }
 0x264   :  { %12269 = vmatprep.mubr.msk.f32.mxu1 %vm132_vm0, %v12257_v42  ;;  %2085 = vmatprep.subr.mxu1 %v23943_v25  ;;  %v12337_v42 = vld [vmem:[%s23923_s29 + $0x918] sm:$0xff]  ;;  %v23946_v18 = vld [vmem:[#allocation2_spill] sm:$0xff] }
 0x265   :  { %1968 = vmatprep.subr.mxu0 %v12281_v20  ;;  %2086 = vmatpush1.msra.mxu1 %v12285_v19  ;;  %v23947_v19 = vld [vmem:[#allocation14_spill] sm:$0xff] }
 0x266   :  { %1969 = vmatpush1.msra.mxu0 %v12280_v22  ;;  %2087 = vmatprep.subr.mxu1 %v23943_v25  ;;  %v1091_v20 = vadd.f32 %v23947_v19, %v23946_v18 }
 0x267   :  { %1820 = vmatmul.mubr.f32.gmra.mxu1 %v12256_v52  ;;  %1970 = vmatprep.subr.mxu0 %v12278_v24  ;;  %v12339_v52 = vld [vmem:[%s23923_s29 + $0x928] sm:$0xff] }
 0x268   :  { %12270 = vmatprep.mubr.msk.f32.mxu1 %vm132_vm0, %v12259_v56  ;;  %2088 = vmatpush1.msra.mxu1 %v12282_v23  ;;  %v12335_v56 = vld [vmem:[%s23923_s29 + $0x908] sm:$0xff] }
 0x269   :  { %1971 = vmatpush1.msra.mxu0 %v12277_v27  ;;  %2089 = vmatprep.subr.mxu1 %v23943_v25 }
 0x26a   :  { %1972 = vmatprep.subr.mxu0 %v12275_v29  ;;  %2090 = vmatpush1.msra.mxu1 %v12279_v28 }
 0x26b   :  { %1826 = vmatmul.mubr.f32.gmra.mxu1 %v12258_v53  ;;  %1973 = vmatpush1.msra.mxu0 %v12274_v30  ;;  %v12331_v53 = vld [vmem:[%s23923_s29 + $0x8e8] sm:$0xff]  ;;  %s23978_s29 = sld [smem:[#allocation46_spill]] }
 0x26c   :  { %2091 = vmatprep.subr.mxu1 %v23943_v25  ;;  %1974 = vmatprep.subr.mxu0 %v12272_v32 }
 0x26d   :  { %2092 = vmatpush1.msra.mxu1 %v12276_v31  ;;  %1975 = vmatpush1.msra.mxu0 %v12271_v34 }
 0x26e   :  { %2093 = vmatprep.subr.mxu1 %v23943_v25  ;;  %12346 = vmatprep.subr.msk.mxu0 %vm630_vm2, %v12344_v36 }
 0x26f   :  { %2094 = vmatpush1.msra.mxu1 %v12273_v35  ;;  %12347 = vmatpush2.msk.msra.mxu0 %vm630_vm2, %v12343_v38 }
 0x270   :  { %2109 = vmatprep.subr.mxu1 %v23943_v25  ;;  %1992 = vmatprep.subr.mxu0 %v12341_v33 }
 0x271   :  { %12357 = vmatpush2.msk.msra.mxu1 %vm630_vm2, %v12345_v40  ;;  %1993 = vmatpush2.msra.mxu0 %v12340_v57 }
 0x272   :  { %2111 = vmatprep.subr.mxu1 %v23943_v25  ;;  %1994 = vmatprep.subr.mxu0 %v12338_v55 }
 0x273   :  { %2112 = vmatpush2.msra.mxu1 %v12342_v62  ;;  %1995 = vmatpush2.msra.mxu0 %v12337_v42 }
 0x274   :  { %2113 = vmatprep.subr.mxu1 %v23943_v25  ;;  %1996 = vmatprep.subr.mxu0 %v12335_v56 }
 0x275   :  { %2114 = vmatpush2.msra.mxu1 %v12339_v52  ;;  %1997 = vmatpush2.msra.mxu0 %v12334_v21 }
 0x276   :  { %2115 = vmatprep.subr.mxu1 %v23943_v25  ;;  %1998 = vmatprep.subr.mxu0 %v12332_v16 }
 0x277   :  { %2116 = vmatpush2.msra.mxu1 %v12336_v45  ;;  %1999 = vmatpush2.msra.mxu0 %v12331_v53 }
 0x278   :  { %2117 = vmatprep.subr.mxu1 %v23943_v25  ;;  %2000 = vmatprep.subr.mxu0 %v12329_v0 }
 0x279   :  { %2118 = vmatpush2.msra.mxu1 %v12333_v63  ;;  %2001 = vmatpush2.msra.mxu0 %v12328_v58 }
 0x27a   :  { %2119 = vmatprep.subr.mxu1 %v23943_v25  ;;  %2002 = vmatprep.subr.mxu0 %v12326_v3 }
 0x27b   :  { %2120 = vmatpush2.msra.mxu1 %v12330_v1  ;;  %2003 = vmatpush2.msra.mxu0 %v12325_v4 }
 0x27c   :  { %2121 = vmatprep.subr.mxu1 %v23943_v25  ;;  %2004 = vmatprep.subr.mxu0 %v12323_v7 }
 0x27d   :  { %2122 = vmatpush2.msra.mxu1 %v12327_v5  ;;  %2005 = vmatpush2.msra.mxu0 %v12322_v8 }
 0x27e   :  { %2123 = vmatprep.subr.mxu1 %v23943_v25  ;;  %2006 = vmatprep.subr.mxu0 %v12320_v10 }
 0x27f   :  { %2124 = vmatpush2.msra.mxu1 %v12324_v9  ;;  %2007 = vmatpush2.msra.mxu0 %v12319_v12 }
 0x280   :  { %2125 = vmatprep.subr.mxu1 %v23943_v25 }
 0x281   :  { %2126 = vmatpush2.msra.mxu1 %v12321_v13 }
 0x282   :  { %14523 = vmatprep.subr.mxu1 %v23943_v25 }
 0x2e5   :  { %v1477_v22 = vpop.f32.mrf.mxu1  ;;  %v1596_v23 = vpop.f32.mrf.mxu0 }
 0x2e6   :  { %v17012_v24 = vadd.f32 %v1477_v22, %v972_v17  ;;  %v17014_v27 = vadd.f32 %v1596_v23, %v1091_v20 }
 0x2e7   :  { %v17016_v28 = vpop.f32.mrf.mxu1  ;;  %v1598_v29 = vpop.f32.mrf.mxu0 }
 0x2e9   :  { %v1483_v30 = vpop.f32.mrf.mxu1  ;;  %v1601_v31 = vpop.f32.mrf.mxu0 }
 0x2ea   :  { %v17019_v32 = vadd.f32 %v1483_v30, %v16593_v51  ;;  %v17022_v34 = vadd.f32 %v1601_v31, %v16595_v43 }
 0x2eb   :  { %v17024_v35 = vpop.f32.mrf.mxu1  ;;  %v1603_v36 = vpop.f32.mrf.mxu0 }
 0x2ed   :  { %v1606_v38 = vpop.f32.mrf.mxu0 }
 0x2ee   :  { %v1489_v40 = vpop.f32.mrf.mxu1  ;;  %v17027_v33 = vadd.f32 %v1606_v38, %v16599_v44 }
 0x2ef   :  { %v17030_v57 = vadd.f32 %v1489_v40, %v16601_v46  ;;  %v1608_v62 = vpop.f32.mrf.mxu0 }
 0x2f0   :  { %v17032_v55 = vpop.f32.mrf.mxu1 }
 0x2f2   :  { %v1495_v42 = vpop.f32.mrf.mxu1  ;;  %v1611_v51 = vpop.f32.mrf.mxu0 }
 0x2f3   :  { %v17035_v52 = vadd.f32 %v1495_v42, %v16607_v61  ;;  %v17038_v43 = vadd.f32 %v1611_v51, %v16605_v2 }
 0x2f4   :  { %v17040_v56 = vpop.f32.mrf.mxu1  ;;  %v1613_v21 = vpop.f32.mrf.mxu0 }
 0x2f6   :  { %v1616_v45 = vpop.f32.mrf.mxu0 }
 0x2f7   :  { %v1501_v44 = vpop.f32.mrf.mxu1  ;;  %v17043_v16 = vadd.f32 %v1616_v45, %v16611_v59 }
 0x2f8   :  { %v17046_v46 = vadd.f32 %v1501_v44, %v16613_v6  ;;  %v1618_v53 = vpop.f32.mrf.mxu0 }
 0x2f9   :  { %v17048_v63 = vpop.f32.mrf.mxu1 }
 0x2fa   :  { %v1621_v0 = vpop.f32.mrf.mxu0 }
 0x2fb   :  { %v1507_v61 = vpop.f32.mrf.mxu1  ;;  %v17051_v58 = vadd.f32 %v1621_v0, %v16617_v26 }
 0x2fc   :  { %v17054_v2 = vadd.f32 %v1507_v61, %v16619_v39  ;;  %v1623_v1 = vpop.f32.mrf.mxu0 }
 0x2fd   :  { %23948 = vst [vmem:[#allocation3_spill] sm:$0xff] %v17051_v58  ;;  %v17056_v3 = vpop.f32.mrf.mxu1 }
 0x2fe   :  { %23949 = vst [vmem:[#allocation13_spill] sm:$0xff] %v17054_v2  ;;  %v1626_v4 = vpop.f32.mrf.mxu0 }
 0x2ff   :  { %v1513_v59 = vpop.f32.mrf.mxu1  ;;  %v17059_v5 = vadd.f32 %v1626_v4, %v16623_v49 }
 0x300   :  { %v17062_v6 = vadd.f32 %v1513_v59, %v16625_v50  ;;  %v1628_v7 = vpop.f32.mrf.mxu0 }
 0x301   :  { %v17064_v8 = vpop.f32.mrf.mxu1 }
 0x302   :  { %23950 = vst [vmem:[#allocation2_spill] sm:$0xff] %v17062_v6  ;;  %v1631_v9 = vpop.f32.mrf.mxu0 }
 0x303   :  { %v1519_v26 = vpop.f32.mrf.mxu1  ;;  %v17067_v10 = vadd.f32 %v1631_v9, %v16629_v54 }
 0x304   :  { %v17070_v39 = vadd.f32 %v1519_v26, %v16631_v48  ;;  %v1633_v12 = vpop.f32.mrf.mxu0 }
 0x305   :  { %v17072_v13 = vpop.f32.mrf.mxu1 }
 0x306   :  { %23951 = vst [vmem:[#allocation14_spill] sm:$0xff] %v17070_v39  ;;  %v1636_v14 = vpop.f32.mrf.mxu0  ;;  %v23964_v39 = vld [vmem:[#allocation20_spill] sm:$0xff] }
 0x307   :  { %v1525_v49 = vpop.f32.mrf.mxu1  ;;  %v17075_v15 = vadd.f32 %v1636_v14, %v16635_v41 }
 0x308   :  { %v17078_v50 = vadd.f32 %v1525_v49, %v16637_v47  ;;  %v1638_v17 = vpop.f32.mrf.mxu0 }
 0x309   :  { %23952 = vst [vmem:[#allocation21_spill] sm:$0xff] %v17075_v15  ;;  %v17080_v18 = vpop.f32.mrf.mxu1  ;;  %v23965_v15 = vld [vmem:[#allocation10_spill] sm:$0xff] }
 0x30b   :  { %v1779_v19 = vpop.f32.mrf.mxu1 }
 0x30d   :  { %v1781_v54 = vpop.f32.mrf.mxu1 }
 0x30e   :  { %12348 = vmatprep.mubr.msk.f32.mxu0 %vm602_vm3, %v1781_v54  ;;  %12358 = vmatprep.mubr.msk.f32.mxu1 %vm602_vm3, %v1781_v54 }
 0x30f   :  { %v1785_v48 = vpop.f32.mrf.mxu1  ;;  %2009 = vmatmul.mubr.f32.vlgmr.msra.gmra.mxu0 %v1779_v19  ;;  %2128 = vmatmul.mubr.f32.vlgmr.msra.gmra.mxu1 %v1779_v19 }
 0x311   :  { %v1787_v20 = vpop.f32.mrf.mxu1 }
 0x312   :  { %12349 = vmatprep.mubr.msk.f32.mxu0 %vm602_vm3, %v1787_v20  ;;  %12359 = vmatprep.mubr.msk.f32.mxu1 %vm602_vm3, %v1787_v20 }
 0x313   :  { %v1791_v41 = vpop.f32.mrf.mxu1  ;;  %2015 = vmatmul.mubr.f32.gmra.mxu0 %v1785_v48  ;;  %2133 = vmatmul.mubr.f32.gmra.mxu1 %v1785_v48 }
 0x315   :  { %v1793_v47 = vpop.f32.mrf.mxu1 }
 0x316   :  { %12350 = vmatprep.mubr.msk.f32.mxu0 %vm602_vm3, %v1793_v47  ;;  %12360 = vmatprep.mubr.msk.f32.mxu1 %vm602_vm3, %v1793_v47 }
 0x317   :  { %v1797_v22 = vpop.f32.mrf.mxu1  ;;  %2021 = vmatmul.mubr.f32.gmra.mxu0 %v1791_v41  ;;  %2138 = vmatmul.mubr.f32.gmra.mxu1 %v1791_v41 }
 0x319   :  { %v1799_v23 = vpop.f32.mrf.mxu1 }
 0x31a   :  { %12351 = vmatprep.mubr.msk.f32.mxu0 %vm602_vm3, %v1799_v23  ;;  %12361 = vmatprep.mubr.msk.f32.mxu1 %vm602_vm3, %v1799_v23 }
 0x31b   :  { %v1803_v29 = vpop.f32.mrf.mxu1  ;;  %2027 = vmatmul.mubr.f32.gmra.mxu0 %v1797_v22  ;;  %2143 = vmatmul.mubr.f32.gmra.mxu1 %v1797_v22 }
 0x31d   :  { %v1805_v30 = vpop.f32.mrf.mxu1 }
 0x31e   :  { %12352 = vmatprep.mubr.msk.f32.mxu0 %vm602_vm3, %v1805_v30  ;;  %12362 = vmatprep.mubr.msk.f32.mxu1 %vm602_vm3, %v1805_v30  ;;  %v23953_v30 = vld [vmem:[#allocation4_spill] sm:$0xff] }
 0x31f   :  { %v1809_v31 = vpop.f32.mrf.mxu1  ;;  %2033 = vmatmul.mubr.f32.gmra.mxu0 %v1803_v29  ;;  %2148 = vmatmul.mubr.f32.gmra.mxu1 %v1803_v29 }
 0x321   :  { %v1811_v36 = vpop.f32.mrf.mxu1 }
 0x322   :  { %12353 = vmatprep.mubr.msk.f32.mxu0 %vm602_vm3, %v1811_v36  ;;  %12363 = vmatprep.mubr.msk.f32.mxu1 %vm602_vm3, %v1811_v36 }
 0x323   :  { %v1815_v38 = vpop.f32.mrf.mxu1  ;;  %2039 = vmatmul.mubr.f32.gmra.mxu0 %v1809_v31  ;;  %2153 = vmatmul.mubr.f32.gmra.mxu1 %v1809_v31  ;;  %v23954_v31 = vld [vmem:[#allocation15_spill] sm:$0xff] }
 0x324   :  { %v974_v36 = vadd.f32 %v23954_v31, %v23953_v30  ;;  %v1010_v30 = vadd.f32 %v16627_v60, %v23965_v15  ;;  %v23966_v31 = vld [vmem:[#allocation11_spill] sm:$0xff] }
 0x325   :  { %v1817_v40 = vpop.f32.mrf.mxu1 }
 0x326   :  { %12354 = vmatprep.mubr.msk.f32.mxu0 %vm602_vm3, %v1817_v40  ;;  %12364 = vmatprep.mubr.msk.f32.mxu1 %vm602_vm3, %v1817_v40  ;;  %v23956_v40 = vld [vmem:[#allocation16_spill] sm:$0xff] }
 0x327   :  { %v1821_v62 = vpop.f32.mrf.mxu1  ;;  %2045 = vmatmul.mubr.f32.gmra.mxu0 %v1815_v38  ;;  %2158 = vmatmul.mubr.f32.gmra.mxu1 %v1815_v38  ;;  %v23955_v38 = vld [vmem:[#allocation5_spill] sm:$0xff] }
 0x329   :  { %v1823_v42 = vpop.f32.mrf.mxu1 }
 0x32a   :  { %12355 = vmatprep.mubr.msk.f32.mxu0 %vm602_vm3, %v1823_v42  ;;  %12365 = vmatprep.mubr.msk.f32.mxu1 %vm602_vm3, %v1823_v42  ;;  %v23957_v42 = vld [vmem:[#allocation6_spill] sm:$0xff] }
 0x32b   :  { %v1827_v51 = vpop.f32.mrf.mxu1  ;;  %2051 = vmatmul.mubr.f32.gmra.mxu0 %v1821_v62  ;;  %2163 = vmatmul.mubr.f32.gmra.mxu1 %v1821_v62  ;;  %v980_v62 = vadd.f32 %v23956_v40, %v23955_v38  ;;  %v1016_v38 = vadd.f32 %v16633_v11, %v23966_v31  ;;  %v23967_v40 = vld [vmem:[#allocation12_spill] sm:$0xff] }
 0x32d   :  { %v1829_v21 = vpop.f32.mrf.mxu1 }
 0x32e   :  { %12356 = vmatprep.mubr.msk.f32.mxu0 %vm602_vm3, %v1829_v21  ;;  %12366 = vmatprep.mubr.msk.f32.mxu1 %vm602_vm3, %v1829_v21 }
 0x32f   :  { %2057 = vmatmul.mubr.f32.gmra.mxu0 %v1827_v51  ;;  %2168 = vmatmul.mubr.f32.gmra.mxu1 %v1827_v51  ;;  %v23958_v51 = vld [vmem:[#allocation17_spill] sm:$0xff] }
 0x330   :  { %2375 = vmatprep.mubr.f32.mxu0 %v23943_v25  ;;  %14541 = vmatprep.mubr.msk.f32.mxu1 %vm15093_vm4, %v23943_v25  ;;  %v986_v21 = vadd.f32 %v23958_v51, %v23957_v42  ;;  %v23962_v25 = vld [vmem:[#allocation19_spill] sm:$0xff]  ;;  %v1022_v42 = vadd.f32 %v16639_v37, %v23967_v40 }
 0x3cf   :  { %v2010_v45 = vpop.f32.mrf.mxu0  ;;  %v2129_v44 = vpop.f32.mrf.mxu1 }
 0x3d0   :  { %v17122_v51 = vadd.f32 %v2129_v44, %v17014_v27 }
 0x3d1   :  { %v2012_v53 = vpop.f32.mrf.mxu0  ;;  %v2131_v0 = vpop.f32.mrf.mxu1 }
 0x3d2   :  { %v23959_v0 = vld [vmem:[#allocation7_spill] sm:$0xff] }
 0x3d3   :  { %v2016_v61 = vpop.f32.mrf.mxu0  ;;  %v2134_v1 = vpop.f32.mrf.mxu1 }
 0x3d5   :  { %v2018_v4 = vpop.f32.mrf.mxu0  ;;  %v2136_v59 = vpop.f32.mrf.mxu1 }
 0x3d6   :  { %v23960_v59 = vld [vmem:[#allocation18_spill] sm:$0xff] }
 0x3d7   :  { %v2022_v7 = vpop.f32.mrf.mxu0  ;;  %v2139_v9 = vpop.f32.mrf.mxu1 }
 0x3d8   :  { %v17134_v27 = vadd.f32 %v2139_v9, %v17027_v33  ;;  %v17149_v33 = vmul.f32 0.2, %v17122_v51 }
 0x3d9   :  { %v2024_v26 = vpop.f32.mrf.mxu0  ;;  %v2141_v12 = vpop.f32.mrf.mxu1 }
 0x3da   :  { %v992_v12 = vadd.f32 %v23960_v59, %v23959_v0  ;;  %v1641_v0 = vadd.f32 %v17016_v28, %v974_v36  ;;  %v17128_v59 = vadd.f32 %v2134_v1, %v17022_v34  ;;  %v1659_v28 = vadd.f32 %v17064_v8, %v1010_v30 }
 0x3db   :  { %v2028_v14 = vpop.f32.mrf.mxu0  ;;  %v2144_v49 = vpop.f32.mrf.mxu1 }
 0x3dc   :  { %v1650_v15 = vadd.f32 %v17040_v56, %v992_v12  ;;  %v1665_v56 = vadd.f32 %v17080_v18, %v1022_v42 }
 0x3dd   :  { %v2030_v17 = vpop.f32.mrf.mxu0  ;;  %v2146_v19 = vpop.f32.mrf.mxu1 }
 0x3de   :  { %v23961_v19 = vld [vmem:[#allocation8_spill] sm:$0xff] }
 0x3df   :  { %v2034_v54 = vpop.f32.mrf.mxu0  ;;  %v2149_v48 = vpop.f32.mrf.mxu1  ;;  %v998_v6 = vadd.f32 %v23962_v25, %v23961_v19  ;;  %v1644_v25 = vadd.f32 %v17024_v35, %v980_v62  ;;  %v1662_v35 = vadd.f32 %v17072_v13, %v1016_v38 }
 0x3e0   :  { %v17142_v34 = vadd.f32 %v2149_v48, %v17043_v16  ;;  %v23969_v48 = vld [vmem:[#allocation13_spill] sm:$0xff] }
 0x3e1   :  { %v2036_v20 = vpop.f32.mrf.mxu0  ;;  %v2151_v41 = vpop.f32.mrf.mxu1  ;;  %v1653_v11 = vadd.f32 %v17048_v63, %v998_v6  ;;  %v17146_v63 = vadd.f32 %v2010_v45, %v17012_v24  ;;  %v17159_v16 = vadd.f32 %v2018_v4, %v1644_v25  ;;  %v17162_v6 = vadd.f32 %v2022_v7, %v17030_v57 }
 0x3e2   :  { %v23963_v41 = vld [vmem:[#allocation9_spill] sm:$0xff]  ;;  %v17165_v24 = vmul.f32 0.2, %v17134_v27  ;;  %v17170_v45 = vadd.f32 %v2028_v14, %v17035_v52  ;;  %v17179_v57 = vadd.f32 %v2034_v54, %v17046_v46  ;;  %v17182_v4 = vmul.f32 0.2, %v17142_v34 }
 0x3e3   :  { %v2040_v47 = vpop.f32.mrf.mxu0  ;;  %v2154_v22 = vpop.f32.mrf.mxu1  ;;  %v1004_v58 = vadd.f32 %v23964_v39, %v23963_v41  ;;  %v1647_v39 = vadd.f32 %v17032_v55, %v986_v21  ;;  %v17139_v55 = vadd.f32 %v2144_v49, %v17038_v43  ;;  %v17157_v43 = vmul.f32 0.2, %v17128_v59  ;;  %v23971_v41 = vld [vmem:[#allocation14_spill] sm:$0xff] }
 0x3e4   :  { %v17190_v36 = vadd.f32 %v2040_v47, %v23969_v48  ;;  %vm2214_vm14 = vcmp.ge.f32.partialorder %v17142_v34, 0.0 }
 0x3e5   :  { %v2042_v23 = vpop.f32.mrf.mxu0  ;;  %v2156_v29 = vpop.f32.mrf.mxu1  ;;  %v1656_v37 = vadd.f32 %v17056_v3, %v1004_v58  ;;  %v17151_v58 = vadd.f32 %v2012_v53, %v1641_v0  ;;  %v17154_v3 = vadd.f32 %v2016_v61, %v17019_v32  ;;  %v17167_v18 = vadd.f32 %v2024_v26, %v1647_v39 }
 0x3e6   :  { %v17174_v53 = vmul.f32 0.2, %v17139_v55  ;;  %v17176_v61 = vadd.f32 %v2030_v17, %v1650_v15  ;;  %v17184_v26 = vadd.f32 %v2036_v20, %v1653_v11  ;;  %v23970_v17 = vld [vmem:[#allocation3_spill] sm:$0xff]  ;;  %v23973_v39 = vmov 0.0  }
 0x3e7   :  { %v2046_v2 = vpop.f32.mrf.mxu0  ;;  %v2159_v29 = vpop.f32.mrf.mxu1  ;;  %v2190_v62 = vadd.f32 %v2154_v22, %v23970_v17  ;;  %v17193_v46 = vadd.f32 %v2042_v23, %v1656_v37  ;;  %vm2211_vm2 = vcmp.ge.f32.partialorder %v17139_v55, 0.0  ;;  %vm2215_vm3 = vcmp.ge.f32.partialorder %v17190_v36, 0.0 }
 0x3e8   :  { %v2193_v52 = vadd.f32 %v2159_v29, %v17059_v5  ;;  %v23972_v5 = vld [vmem:[#allocation2_spill] sm:$0xff] }
 0x3e9   :  { %v2048_v19 = vpop.f32.mrf.mxu0  ;;  %v2161_v60 = vpop.f32.mrf.mxu1  ;;  %v2191_v29 = vadd.f32 %v2046_v2, %v23972_v5  ;;  %v2244_v0 = vmul.f32 0.2, %v2190_v62  ;;  %vm2217_vm11 = vcmp.ge.f32.partialorder %v2190_v62, 0.0  ;;  %vm2216_vm0 = vcmp.ge.f32.partialorder %v17193_v46, 0.0  ;;  %v12438_v5 = vld [vmem:[%s23978_s29 + $0x470] sm:$0xff] }
 0x3ea   :  { %vm2220_vm7 = vcmp.ge.f32.partialorder %v2193_v52, 0.0  ;;  %v2247_v47 = vmul.f32 0.2, %v2193_v52 }
 0x3eb   :  { %v2052_v44 = vpop.f32.mrf.mxu0  ;;  %v2164_v1 = vpop.f32.mrf.mxu1  ;;  %v2245_v15 = vmul.f32 0.2, %v2191_v29  ;;  %vm2218_vm15 = vcmp.ge.f32.partialorder %v2191_v29, 0.0 }
 0x3ec   :  { %v2196_v32 = vadd.f32 %v2164_v1, %v17067_v10  ;;  %v23968_v10 = vld [vmem:[#allocation21_spill] sm:$0xff]  ;;  %v2194_v30 = vadd.f32 %v2052_v44, %v23971_v41  ;;  %v17213_v37 = vsel %vm2220_vm7, %v2193_v52, %v2247_v47  ;;  %v2242_v44 = vmul.f32 0.2, %v17190_v36  ;;  %v12381_v41 = vld [vmem:[%s23976_s13 + $0x30] sm:$0xff] }
 0x3ed   :  { %v2054_v8 = vpop.f32.mrf.mxu0  ;;  %v2166_v13 = vpop.f32.mrf.mxu1  ;;  %v2237_v52 = vmul.f32 0.2, %v17176_v61  ;;  %vm2212_vm7 = vcmp.ge.f32.partialorder %v17179_v57, 0.0  ;;  %v12434_v47 = vld [vmem:[%s23978_s29 + $0x450] sm:$0xff] }
 0x3ee   :  { %v2195_v54 = vadd.f32 %v2054_v8, %v1662_v35  ;;  %v2250_v20 = vmul.f32 0.2, %v2196_v32  ;;  %vm2223_vm6 = vcmp.ge.f32.partialorder %v2196_v32, 0.0  ;;  %v2248_v25 = vmul.f32 0.2, %v2194_v30 }
 0x3ef   :  { %v2058_v7 = vpop.f32.mrf.mxu0  ;;  %v2169_v9 = vpop.f32.mrf.mxu1  ;;  %vm2221_vm12 = vcmp.ge.f32.partialorder %v2194_v30, 0.0  ;;  %v2240_v8 = vmul.f32 0.2, %v17184_v26 }
 0x3f0   :  { %v2197_v14 = vadd.f32 %v2058_v7, %v17078_v50  ;;  %v2199_v49 = vadd.f32 %v2169_v9, %v23968_v10  ;;  %v2192_v50 = vadd.f32 %v2048_v19, %v1659_v28  ;;  %v2249_v22 = vmul.f32 0.2, %v2195_v54 }
 0x3f1   :  { %v2060_v21 = vpop.f32.mrf.mxu0  ;;  %v2171_v12 = vpop.f32.mrf.mxu1  ;;  %v17202_v2 = vsel %vm2223_vm6, %v2196_v32, %v2250_v20  ;;  %vm2222_vm10 = vcmp.ge.f32.partialorder %v2195_v54, 0.0  ;;  %v2243_v28 = vmul.f32 0.2, %v17193_v46  ;;  %v17226_v1 = vsel %vm2221_vm12, %v2194_v30, %v2248_v25  ;;  %v12441_v30 = vld [vmem:[%s23978_s29 + $0x488] sm:$0xff]  ;;  %v12440_v20 = vld [vmem:[%s23978_s29 + $0x480] sm:$0xff] }
 0x3f2   :  { %vm2226_vm5 = vcmp.ge.f32.partialorder %v2199_v49, 0.0  ;;  %v2253_v31 = vmul.f32 0.2, %v2199_v49  ;;  %v2198_v38 = vadd.f32 %v2060_v21, %v1665_v56  ;;  %v2251_v40 = vmul.f32 0.2, %v2197_v14  ;;  %v12444_v21 = vld [vmem:[%s23978_s29 + $0x4a0] sm:$0xff] }
 0x3f3   :  { %vm2224_vm8 = vcmp.ge.f32.partialorder %v2197_v14, 0.0  ;;  %v2246_v19 = vmul.f32 0.2, %v2192_v50  ;;  %vm2219_vm13 = vcmp.ge.f32.partialorder %v2192_v50, 0.0  ;;  %v17220_v35 = vsel %vm2222_vm10, %v2195_v54, %v2249_v22  ;;  %v12380_v54 = vld [vmem:[%s23976_s13 + $0x28] sm:$0xff]  ;;  %v12443_v12 = vld [vmem:[%s23978_s29 + $0x498] sm:$0xff] }
 0x3f4   :  { %v17197_v42 = vsel %vm2226_vm5, %v2199_v49, %v2253_v31  ;;  %v2252_v23 = vmul.f32 0.2, %v2198_v38  ;;  %vm2225_vm9 = vcmp.ge.f32.partialorder %v2198_v38, 0.0  ;;  %v17207_v11 = vsel %vm2224_vm8, %v2197_v14, %v2251_v40  ;;  %v12382_v31 = vld [vmem:[%s23976_s13 + $0x38] sm:$0xff]  ;;  %v12384_v40 = vld [vmem:[%s23976_s13 + $0x48] sm:$0xf] }
 0x3f5   :  { %14524 = vmatpush3.msk.msra.mxu1 %vm160_vm1, %v17197_v42  ;;  %v17230_v56 = vsel %vm2217_vm11, %v2190_v62, %v2244_v0  ;;  %v17238_v13 = vsel %vm2219_vm13, %v2192_v50, %v2246_v19  ;;  %v2239_v32 = vmul.f32 0.2, %v17179_v57  ;;  %v17244_v7 = vsel %vm2218_vm15, %v2191_v29, %v2245_v15  ;;  %v12437_v29 = vld [vmem:[%s23978_s29 + $0x468] sm:$0xff]  ;;  %v12383_v50 = vld [vmem:[%s23976_s13 + $0x40] sm:$0xff]  ;;  %v12426_v19 = vld [vmem:[%s23978_s29 + $0x410] sm:$0xff] }
 0x3f6   :  { %14525 = vmatprep.subr.mxu1 %v23973_v39  ;;  %v17204_v60 = vsel %vm2225_vm9, %v2198_v38, %v2252_v23  ;;  %v17251_v9 = vsel %vm2214_vm14, %v17142_v34, %v17182_v4  ;;  %vm2213_vm5 = vcmp.ge.f32.partialorder %v17184_v26, 0.0  ;;  %vm2208_vm6 = vcmp.ge.f32.partialorder %v17134_v27, 0.0  ;;  %v12435_v38 = vld [vmem:[%s23978_s29 + $0x458] sm:$0xff]  ;;  %v12432_v22 = vld [vmem:[%s23978_s29 + $0x440] sm:$0xff]  ;;  %v12429_v0 = vld [vmem:[%s23978_s29 + $0x428] sm:$0xff] }
 0x3f7   :  { %14526 = vmatpush3.msra.mxu1 %v17202_v2  ;;  %12367 = vmatprep.subr.msk.mxu0 %vm160_vm1, %v17204_v60  ;;  %v17261_v14 = vsel %vm2216_vm0, %v17193_v46, %v2243_v28  ;;  %v2236_v34 = vmul.f32 0.2, %v17170_v45  ;;  %v17269_v4 = vsel %vm2215_vm3, %v17190_v36, %v2242_v44  ;;  %v17276_v10 = vsel %vm2211_vm2, %v17139_v55, %v17174_v53  ;;  %v12431_v23 = vld [vmem:[%s23978_s29 + $0x438] sm:$0xff]  ;;  %v12428_v25 = vld [vmem:[%s23978_s29 + $0x420] sm:$0xff]  ;;  %v12425_v15 = vld [vmem:[%s23978_s29 + $0x408] sm:$0xff] }
 0x3f8   :  { %14527 = vmatprep.subr.mxu1 %v23973_v39  ;;  %12368 = vmatpush1.msk.msra.mxu0 %vm160_vm1, %v17207_v11  ;;  %vm2210_vm8 = vcmp.ge.f32.partialorder %v17176_v61, 0.0  ;;  %vm2205_vm9 = vcmp.ge.f32.partialorder %v17128_v59, 0.0  ;;  %v2234_v49 = vmul.f32 0.2, %v17167_v18  ;;  %vm2209_vm10 = vcmp.ge.f32.partialorder %v17170_v45, 0.0  ;;  %v12423_v28 = vld [vmem:[%s23978_s29 + $0x3f8] sm:$0xff] }
 0x3f9   :  { %14528 = vmatpush3.msra.mxu1 %v17213_v37  ;;  %2327 = vmatprep.subr.mxu0 %v17220_v35  ;;  %v17286_v48 = vsel %vm2213_vm5, %v17184_v26, %v2240_v8  ;;  %v2233_v55 = vmul.f32 0.2, %v17162_v6  ;;  %v17294_v53 = vsel %vm2212_vm7, %v17179_v57, %v2239_v32  ;;  %v17301_v36 = vsel %vm2208_vm6, %v17134_v27, %v17165_v24  ;;  %v12422_v44 = vld [vmem:[%s23978_s29 + $0x3f0] sm:$0xff]  ;;  %v12420_v8 = vld [vmem:[%s23978_s29 + $0x3e0] sm:$0xff]  ;;  %v12419_v32 = vld [vmem:[%s23978_s29 + $0x3d8] sm:$0xff] }
 0x3fa   :  { %14529 = vmatprep.subr.mxu1 %v23973_v39  ;;  %2328 = vmatpush1.msra.mxu0 %v17226_v1  ;;  %23974 = vst [vmem:[#allocation4_spill] sm:$0xff] %v17301_v36  ;;  %vm2207_vm11 = vcmp.ge.f32.partialorder %v17167_v18, 0.0  ;;  %vm2202_vm12 = vcmp.ge.f32.partialorder %v17122_v51, 0.0  ;;  %v2231_v26 = vmul.f32 0.2, %v17159_v16  ;;  %vm2206_vm13 = vcmp.ge.f32.partialorder %v17162_v6, 0.0 }
 0x3fb   :  { %14530 = vmatpush3.msra.mxu1 %v17230_v56  ;;  %2329 = vmatprep.subr.mxu0 %v17238_v13  ;;  %v17311_v57 = vsel %vm2210_vm8, %v17176_v61, %v2237_v52  ;;  %v2230_v27 = vmul.f32 0.2, %v17154_v3  ;;  %v17319_v24 = vsel %vm2209_vm10, %v17170_v45, %v2236_v34  ;;  %v17326_v17 = vsel %vm2205_vm9, %v17128_v59, %v17157_v43  ;;  %v2281_v59 = vld [vmem:[%s23976_s13] sm:$0xff]  ;;  %v12417_v52 = vld [vmem:[%s23978_s29 + $0x3c8] sm:$0xff] }
 0x3fc   :  { %14531 = vmatprep.subr.mxu1 %v23973_v39  ;;  %2330 = vmatpush1.msra.mxu0 %v17244_v7  ;;  %23975 = vst [vmem:[#allocation15_spill] sm:$0xff] %v17326_v17  ;;  %vm2204_vm14 = vcmp.ge.f32.partialorder %v17159_v16, 0.0  ;;  %v2228_v61 = vmul.f32 0.2, %v17151_v58  ;;  %vm2203_vm15 = vcmp.ge.f32.partialorder %v17154_v3, 0.0  ;;  %v17335_v45 = vsel %vm2207_vm11, %v17167_v18, %v2234_v49  ;;  %v12416_v34 = vld [vmem:[%s23978_s29 + $0x3c0] sm:$0xff] }
 0x3fd   :  { %14532 = vmatpush3.msra.mxu1 %v17251_v9  ;;  %2331 = vmatprep.subr.mxu0 %v17261_v14  ;;  %vm2286_vm0 = vcmask 556032   ;;  %v2227_v43 = vmul.f32 0.2, %v17146_v63  ;;  %v17346_v62 = vsel %vm2206_vm13, %v17162_v6, %v2233_v55  ;;  %v17353_v18 = vsel %vm2202_vm12, %v17122_v51, %v17149_v33  ;;  %v2285_v6 = vld [vmem:[%s23976_s13 + $0x20] sm:$0xf]  ;;  %v12414_v49 = vld [vmem:[%s23978_s29 + $0x3b0] sm:$0xff] }
 0x3fe   :  { %14533 = vmatprep.subr.mxu1 %v23973_v39  ;;  %2332 = vmatpush1.msra.mxu0 %v17269_v4  ;;  %23977 = vst [vmem:[#allocation5_spill] sm:$0xff] %v17353_v18  ;;  %vm2201_vm2 = vcmp.ge.f32.partialorder %v17151_v58, 0.0  ;;  %vm2200_vm3 = vcmp.ge.f32.partialorder %v17146_v63, 0.0  ;;  %v17361_v46 = vsel %vm2204_vm14, %v17159_v16, %v2231_v26  ;;  %v17368_v51 = vsel %vm2203_vm15, %v17154_v3, %v2230_v27  ;;  %v2282_v3 = vld [vmem:[%s23976_s13 + $0x8] sm:$0xff]  ;;  %v12411_v26 = vld [vmem:[%s23978_s29 + $0x398] sm:$0xff]  ;;  %v12410_v27 = vld [vmem:[%s23978_s29 + $0x390] sm:$0xff] }
 0x3ff   :  { %14534 = vmatpush3.msra.mxu1 %v17276_v10  ;;  %2333 = vmatprep.subr.mxu0 %v17286_v48  ;;  %v17374_v33 = vsel %vm2201_vm2, %v17151_v58, %v2228_v61  ;;  %v17380_v16 = vsel %vm2200_vm3, %v17146_v63, %v2227_v43  ;;  %v2283_v63 = vld [vmem:[%s23976_s13 + $0x10] sm:$0xff]  ;;  %v2284_v58 = vld [vmem:[%s23976_s13 + $0x18] sm:$0xff]  ;;  %v12413_v55 = vld [vmem:[%s23978_s29 + $0x3a8] sm:$0xff]  ;;  %vm2907_vm5 = vcmask 130048   ;;  %vm5132_vm6 = vcmask 261120  }
 0x400   :  { %14535 = vmatprep.subr.mxu1 %v23973_v39  ;;  %2334 = vmatpush1.msra.mxu0 %v17294_v53  ;;  %v12408_v61 = vld [vmem:[%s23978_s29 + $0x380] sm:$0xff]  ;;  %v12405_v43 = vld [vmem:[%s23978_s29 + $0x368] sm:$0xff]  ;;  %vm5335_vm7 = vcmask 125952  }
 0x401   :  { %14536 = vmatpush3.msra.mxu1 %v17301_v36  ;;  %2335 = vmatprep.subr.mxu0 %v17311_v57 }
 0x402   :  { %14537 = vmatprep.subr.mxu1 %v23973_v39  ;;  %2336 = vmatpush1.msra.mxu0 %v17319_v24 }
 0x403   :  { %14538 = vmatpush3.msra.mxu1 %v17326_v17  ;;  %2337 = vmatprep.subr.mxu0 %v17335_v45 }
 0x404   :  { %14539 = vmatprep.subr.mxu1 %v23973_v39  ;;  %2338 = vmatpush1.msra.mxu0 %v17346_v62 }
 0x405   :  { %14540 = vmatpush3.msra.mxu1 %v17353_v18  ;;  %2339 = vmatprep.subr.mxu0 %v17361_v46 }
 0x406   :  { %14542 = vmatmul.mubr.msk.f32.vlgmr.msra.gmra.mxu1 %vm2286_vm0, %v2281_v59  ;;  %2340 = vmatpush1.msra.mxu0 %v17368_v51 }
 0x407   :  { %14556 = vmatprep.subr.mxu1 %v23973_v39  ;;  %2341 = vmatprep.subr.mxu0 %v17374_v33 }
 0x408   :  { %14557 = vmatpush3.msk.msra.mxu1 %vm160_vm1, %v17197_v42  ;;  %2342 = vmatpush1.msra.mxu0 %v17380_v16 }
 0x409   :  { %14558 = vmatprep.subr.mxu1 %v23973_v39  ;;  %12369 = vmatmul.mubr.msk.f32.vlgmr.msra.gmra.mxu0 %vm2286_vm0, %v2281_v59  ;;  %v12407_v59 = vld [vmem:[%s23978_s29 + $0x378] sm:$0xff] }
 0x40a   :  { %14544 = vmatprep.mubr.msk.f32.mxu1 %vm15093_vm4, %v23973_v39  ;;  %12385 = vmatprep.subr.msk.mxu0 %vm160_vm1, %v17204_v60 }
 0x40b   :  { %14559 = vmatpush3.msra.mxu1 %v17202_v2  ;;  %12386 = vmatpush1.msk.msra.mxu0 %vm160_vm1, %v17207_v11 }
 0x40c   :  { %14545 = vmatmul.mubr.msk.f32.gmra.mxu1 %vm2286_vm0, %v2282_v3  ;;  %14560 = vmatprep.subr.mxu1 %v23973_v39 }
 0x40d   :  { %2635 = vmatprep.subr.mxu0 %v17220_v35  ;;  %14561 = vmatpush3.msra.mxu1 %v17213_v37 }
 0x40e   :  { %2381 = vmatprep.mubr.f32.mxu0 %v23973_v39  ;;  %2636 = vmatpush1.msra.mxu0 %v17226_v1 }
 0x40f   :  { %14562 = vmatprep.subr.mxu1 %v23973_v39  ;;  %12370 = vmatmul.mubr.msk.f32.gmra.mxu0 %vm2286_vm0, %v2282_v3  ;;  %v12404_v3 = vld [vmem:[%s23978_s29 + $0x360] sm:$0xff] }
 0x410   :  { %14547 = vmatprep.mubr.msk.f32.mxu1 %vm15093_vm4, %v23973_v39  ;;  %2637 = vmatprep.subr.mxu0 %v17238_v13 }
 0x411   :  { %14563 = vmatpush3.msra.mxu1 %v17230_v56  ;;  %2638 = vmatpush1.msra.mxu0 %v17244_v7 }
 0x412   :  { %14548 = vmatmul.mubr.msk.f32.gmra.mxu1 %vm2286_vm0, %v2283_v63  ;;  %14564 = vmatprep.subr.mxu1 %v23973_v39 }
 0x413   :  { %2639 = vmatprep.subr.mxu0 %v17261_v14  ;;  %14565 = vmatpush3.msra.mxu1 %v17251_v9 }
 0x414   :  { %2387 = vmatprep.mubr.f32.mxu0 %v23973_v39  ;;  %2640 = vmatpush1.msra.mxu0 %v17269_v4 }
 0x415   :  { %14566 = vmatprep.subr.mxu1 %v23973_v39  ;;  %12371 = vmatmul.mubr.msk.f32.gmra.mxu0 %vm2286_vm0, %v2283_v63  ;;  %v12402_v63 = vld [vmem:[%s23978_s29 + $0x350] sm:$0xff] }
 0x416   :  { %14550 = vmatprep.mubr.msk.f32.mxu1 %vm15093_vm4, %v23973_v39  ;;  %2641 = vmatprep.subr.mxu0 %v17286_v48 }
 0x417   :  { %14567 = vmatpush3.msra.mxu1 %v17276_v10  ;;  %2642 = vmatpush1.msra.mxu0 %v17294_v53 }
 0x418   :  { %14551 = vmatmul.mubr.msk.f32.gmra.mxu1 %vm2286_vm0, %v2284_v58  ;;  %14568 = vmatprep.subr.mxu1 %v23973_v39 }
 0x419   :  { %2643 = vmatprep.subr.mxu0 %v17311_v57  ;;  %14569 = vmatpush3.msra.mxu1 %v17301_v36  ;;  %v2502_v36 = vld [vmem:[%s23978_s29 + $0x30] sm:$0xff] }
 0x41a   :  { %2393 = vmatprep.mubr.f32.mxu0 %v23973_v39  ;;  %2644 = vmatpush1.msra.mxu0 %v17319_v24 }
 0x41b   :  { %14570 = vmatprep.subr.mxu1 %v23973_v39  ;;  %12372 = vmatmul.mubr.msk.f32.gmra.mxu0 %vm2286_vm0, %v2284_v58  ;;  %v12401_v58 = vld [vmem:[%s23978_s29 + $0x348] sm:$0xff] }
 0x41c   :  { %14553 = vmatprep.mubr.msk.f32.mxu1 %vm15093_vm4, %v23973_v39  ;;  %2645 = vmatprep.subr.mxu0 %v17335_v45 }
 0x41d   :  { %14571 = vmatpush3.msra.mxu1 %v17326_v17  ;;  %2646 = vmatpush1.msra.mxu0 %v17346_v62  ;;  %v2517_v17 = vld [vmem:[%s23978_s29 + $0xa8] sm:$0xff] }
 0x41e   :  { %14554 = vmatmul.mubr.msk.f32.gmra.mxu1 %vm2286_vm0, %v2285_v6  ;;  %14572 = vmatprep.subr.mxu1 %v23973_v39 }
 0x41f   :  { %2647 = vmatprep.subr.mxu0 %v17361_v46  ;;  %14573 = vmatpush3.msra.mxu1 %v17353_v18  ;;  %v12418_v18 = vld [vmem:[%s23978_s29 + $0x3d0] sm:$0xff] }
 0x420   :  { %2399 = vmatprep.mubr.f32.mxu0 %v23973_v39  ;;  %2648 = vmatpush1.msra.mxu0 %v17368_v51 }
 0x421   :  { %14574 = vmatprep.mubr.msk.f32.mxu1 %vm15093_vm4, %v23973_v39  ;;  %12373 = vmatmul.mubr.msk.f32.gmra.mxu0 %vm2286_vm0, %v2285_v6  ;;  %v12399_v6 = vld [vmem:[%s23978_s29 + $0x338] sm:$0xff] }
 0x422   :  { %2649 = vmatprep.subr.mxu0 %v17374_v33  ;;  %14575 = vmatmul.mubr.msk.f32.vlgmr.msra.gmra.mxu1 %vm2286_vm0, %v12380_v54 }
 0x423   :  { %2650 = vmatpush1.msra.mxu0 %v17380_v16  ;;  %2683 = vmatprep.mubr.f32.mxu0 %v23973_v39 }
 0x424   :  { %14577 = vmatprep.mubr.msk.f32.mxu1 %vm15093_vm4, %v23973_v39  ;;  %2923 = vmatprep.subr.mxu0 %v12444_v21  ;;  %v12492_v21 = vld [vmem:[%s23978_s29 + $0x620] sm:$0xff] }
 0x425   :  { %12387 = vmatmul.mubr.msk.f32.vlgmr.msra.gmra.mxu0 %vm2286_vm0, %v12380_v54  ;;  %v12398_v54 = vld [vmem:[%s23978_s29 + $0x330] sm:$0xff] }
 0x426   :  { %2689 = vmatprep.mubr.f32.mxu0 %v23973_v39  ;;  %14578 = vmatmul.mubr.msk.f32.gmra.mxu1 %vm2286_vm0, %v12381_v41 }
 0x427   :  { %14580 = vmatprep.mubr.msk.f32.mxu1 %vm15093_vm4, %v23973_v39  ;;  %2924 = vmatpush1.msra.mxu0 %v12443_v12  ;;  %v12491_v12 = vld [vmem:[%s23978_s29 + $0x618] sm:$0xff] }
 0x428   :  { %2925 = vmatprep.subr.mxu0 %v12441_v30  ;;  %v12488_v30 = vld [vmem:[%s23978_s29 + $0x600] sm:$0xff] }
 0x429   :  { %12388 = vmatmul.mubr.msk.f32.gmra.mxu0 %vm2286_vm0, %v12381_v41  ;;  %v12489_v41 = vld [vmem:[%s23978_s29 + $0x608] sm:$0xff] }
 0x42a   :  { %2695 = vmatprep.mubr.f32.mxu0 %v23973_v39  ;;  %14581 = vmatmul.mubr.msk.f32.gmra.mxu1 %vm2286_vm0, %v12382_v31 }
 0x42b   :  { %14583 = vmatprep.mubr.msk.f32.mxu1 %vm15093_vm4, %v23973_v39  ;;  %2926 = vmatpush1.msra.mxu0 %v12440_v20  ;;  %v12486_v20 = vld [vmem:[%s23978_s29 + $0x5f0] sm:$0xff] }
 0x42c   :  { %2927 = vmatprep.subr.mxu0 %v12438_v5  ;;  %v12483_v5 = vld [vmem:[%s23978_s29 + $0x5d8] sm:$0xff] }
 0x42d   :  { %12389 = vmatmul.mubr.msk.f32.gmra.mxu0 %vm2286_vm0, %v12382_v31  ;;  %v12485_v31 = vld [vmem:[%s23978_s29 + $0x5e8] sm:$0xff] }
 0x42e   :  { %2701 = vmatprep.mubr.f32.mxu0 %v23973_v39  ;;  %14584 = vmatmul.mubr.msk.f32.gmra.mxu1 %vm2286_vm0, %v12383_v50 }
 0x42f   :  { %14586 = vmatprep.mubr.msk.f32.mxu1 %vm15093_vm4, %v23973_v39  ;;  %2928 = vmatpush1.msra.mxu0 %v12437_v29  ;;  %v12482_v29 = vld [vmem:[%s23978_s29 + $0x5d0] sm:$0xff] }
 0x430   :  { %2929 = vmatprep.subr.mxu0 %v12435_v38  ;;  %v12479_v38 = vld [vmem:[%s23978_s29 + $0x5b8] sm:$0xff] }
 0x431   :  { %12390 = vmatmul.mubr.msk.f32.gmra.mxu0 %vm2286_vm0, %v12383_v50  ;;  %v12480_v50 = vld [vmem:[%s23978_s29 + $0x5c0] sm:$0xff] }
 0x432   :  { %2707 = vmatprep.mubr.f32.mxu0 %v23973_v39  ;;  %14587 = vmatmul.mubr.msk.f32.gmra.mxu1 %vm2286_vm0, %v12384_v40 }
 0x433   :  { %2930 = vmatpush1.msra.mxu0 %v12434_v47  ;;  %3082 = vmatprep.mubr.f32.mxu1 %v23973_v39  ;;  %v12477_v47 = vld [vmem:[%s23978_s29 + $0x5a8] sm:$0xff] }
 0x434   :  { %2931 = vmatprep.subr.mxu0 %v12432_v22  ;;  %v12474_v22 = vld [vmem:[%s23978_s29 + $0x590] sm:$0xff] }
 0x435   :  { %12391 = vmatmul.mubr.msk.f32.gmra.mxu0 %vm2286_vm0, %v12384_v40  ;;  %v12476_v40 = vld [vmem:[%s23978_s29 + $0x5a0] sm:$0xff] }
 0x436   :  { %2932 = vmatpush1.msra.mxu0 %v12431_v23  ;;  %v12473_v23 = vld [vmem:[%s23978_s29 + $0x588] sm:$0xff] }
 0x437   :  { %2933 = vmatprep.subr.mxu0 %v12429_v0  ;;  %v12471_v0 = vld [vmem:[%s23978_s29 + $0x578] sm:$0xff] }
 0x438   :  { %2934 = vmatpush1.msra.mxu0 %v12428_v25  ;;  %v12470_v25 = vld [vmem:[%s23978_s29 + $0x570] sm:$0xff] }
 0x439   :  { %2935 = vmatprep.subr.mxu0 %v12426_v19  ;;  %v12468_v19 = vld [vmem:[%s23978_s29 + $0x560] sm:$0xff] }
 0x43a   :  { %2936 = vmatpush1.msra.mxu0 %v12425_v15  ;;  %v12467_v15 = vld [vmem:[%s23978_s29 + $0x558] sm:$0xff] }
 0x43b   :  { %2937 = vmatprep.subr.mxu0 %v12423_v28  ;;  %v12465_v28 = vld [vmem:[%s23978_s29 + $0x548] sm:$0xff] }
 0x43c   :  { %2938 = vmatpush1.msra.mxu0 %v12422_v44  ;;  %v12464_v44 = vld [vmem:[%s23978_s29 + $0x540] sm:$0xff] }
 0x43d   :  { %2939 = vmatprep.subr.mxu0 %v12420_v8  ;;  %v12498_v8 = vld [vmem:[%s23978_s29 + $0x650] sm:$0xff] }
 0x43e   :  { %2940 = vmatpush1.msra.mxu0 %v12419_v32  ;;  %v12462_v32 = vld [vmem:[%s23978_s29 + $0x530] sm:$0xff]  ;;  %3046 = vmatprep.subr.mxu1 %v12498_v8 }
 0x43f   :  { %2941 = vmatprep.subr.mxu0 %v12417_v52  ;;  %v12497_v52 = vld [vmem:[%s23978_s29 + $0x648] sm:$0xff] }
 0x440   :  { %2942 = vmatpush1.msra.mxu0 %v12416_v34  ;;  %v12461_v34 = vld [vmem:[%s23978_s29 + $0x528] sm:$0xff]  ;;  %3047 = vmatpush1.msra.mxu1 %v12497_v52 }
 0x441   :  { %2943 = vmatprep.subr.mxu0 %v12414_v49  ;;  %v12495_v49 = vld [vmem:[%s23978_s29 + $0x638] sm:$0xff] }
 0x442   :  { %2944 = vmatpush1.msra.mxu0 %v12413_v55  ;;  %v12459_v55 = vld [vmem:[%s23978_s29 + $0x518] sm:$0xff]  ;;  %3048 = vmatprep.subr.mxu1 %v12495_v49 }
 0x443   :  { %2945 = vmatprep.subr.mxu0 %v12411_v26  ;;  %v12494_v26 = vld [vmem:[%s23978_s29 + $0x630] sm:$0xff] }
 0x444   :  { %2946 = vmatpush1.msra.mxu0 %v12410_v27  ;;  %v12458_v27 = vld [vmem:[%s23978_s29 + $0x510] sm:$0xff]  ;;  %3049 = vmatpush1.msra.mxu1 %v12494_v26  ;;  %v12487_v26 = vld [vmem:[%s23978_s29 + $0x5f8] sm:$0xff] }
 0x445   :  { %2947 = vmatprep.subr.mxu0 %v12408_v61  ;;  %v12493_v61 = vld [vmem:[%s23978_s29 + $0x628] sm:$0xff] }
 0x446   :  { %2948 = vmatpush1.msra.mxu0 %v12407_v59  ;;  %v12456_v59 = vld [vmem:[%s23978_s29 + $0x500] sm:$0xff]  ;;  %13597 = vmatprep.subr.mxu1 %v12493_v61 }
 0x447   :  { %2949 = vmatprep.subr.mxu0 %v12405_v43  ;;  %v12455_v43 = vld [vmem:[%s23978_s29 + $0x4f8] sm:$0xff] }
 0x448   :  { %2950 = vmatpush1.msra.mxu0 %v12404_v3  ;;  %v12453_v3 = vld [vmem:[%s23978_s29 + $0x4e8] sm:$0xff] }
 0x449   :  { %2951 = vmatprep.subr.mxu0 %v12402_v63  ;;  %v12452_v63 = vld [vmem:[%s23978_s29 + $0x4e0] sm:$0xff] }
 0x44a   :  { %2952 = vmatpush1.msra.mxu0 %v12401_v58  ;;  %v12450_v58 = vld [vmem:[%s23978_s29 + $0x4d0] sm:$0xff] }
 0x44b   :  { %2953 = vmatprep.subr.mxu0 %v12399_v6  ;;  %v12449_v6 = vld [vmem:[%s23978_s29 + $0x4c8] sm:$0xff] }
 0x44c   :  { %2954 = vmatpush1.msra.mxu0 %v12398_v54  ;;  %v12447_v54 = vld [vmem:[%s23978_s29 + $0x4b8] sm:$0xff] }
 0x44d   :  { %2955 = vmatprep.subr.mxu0 %v12492_v21  ;;  %v12446_v21 = vld [vmem:[%s23978_s29 + $0x4b0] sm:$0xff] }
 0x44e   :  { %2956 = vmatpush2.msra.mxu0 %v12491_v12  ;;  %v2542_v12 = vld [vmem:[%s23978_s29 + $0x170] sm:$0xff] }
 0x44f   :  { %2957 = vmatprep.subr.mxu0 %v12489_v41 }
 0x450   :  { %2958 = vmatpush2.msra.mxu0 %v12488_v30 }
 0x451   :  { %2959 = vmatprep.subr.mxu0 %v12486_v20 }
 0x452   :  { %2960 = vmatpush2.msra.mxu0 %v12485_v31 }
 0x453   :  { %2961 = vmatprep.subr.mxu0 %v12483_v5 }
 0x454   :  { %2962 = vmatpush2.msra.mxu0 %v12482_v29 }
 0x455   :  { %2963 = vmatprep.subr.mxu0 %v12480_v50 }
 0x456   :  { %2964 = vmatpush2.msra.mxu0 %v12479_v38 }
 0x457   :  { %2965 = vmatprep.subr.mxu0 %v12477_v47 }
 0x458   :  { %2966 = vmatpush2.msra.mxu0 %v12476_v40 }
 0x459   :  { %2967 = vmatprep.subr.mxu0 %v12474_v22 }
 0x45a   :  { %2968 = vmatpush2.msra.mxu0 %v12473_v23 }
 0x45b   :  { %2969 = vmatprep.subr.mxu0 %v12471_v0 }
 0x45c   :  { %2970 = vmatpush2.msra.mxu0 %v12470_v25 }
 0x45d   :  { %2971 = vmatprep.subr.mxu0 %v12468_v19 }
 0x45e   :  { %2972 = vmatpush2.msra.mxu0 %v12467_v15 }
 0x45f   :  { %2973 = vmatprep.subr.mxu0 %v12465_v28 }
 0x460   :  { %2974 = vmatpush2.msra.mxu0 %v12464_v44 }
 0x461   :  { %2975 = vmatprep.subr.mxu0 %v12462_v32  ;;  %v12445_v32 = vld [vmem:[%s23978_s29 + $0x4a8] sm:$0xff] }
 0x462   :  { %2976 = vmatpush2.msra.mxu0 %v12461_v34  ;;  %v12490_v34 = vld [vmem:[%s23978_s29 + $0x610] sm:$0xff] }
 0x463   :  { %2977 = vmatprep.subr.mxu0 %v12459_v55  ;;  %v12442_v55 = vld [vmem:[%s23978_s29 + $0x490] sm:$0xff] }
 0x464   :  { %2978 = vmatpush2.msra.mxu0 %v12458_v27 }
 0x465   :  { %2979 = vmatprep.subr.mxu0 %v12456_v59  ;;  %v12439_v59 = vld [vmem:[%s23978_s29 + $0x478] sm:$0xff] }
 0x466   :  { %2980 = vmatpush2.msra.mxu0 %v12455_v43  ;;  %v12484_v43 = vld [vmem:[%s23978_s29 + $0x5e0] sm:$0xff] }
 0x467   :  { %2981 = vmatprep.subr.mxu0 %v12453_v3 }
 0x468   :  { %2982 = vmatpush2.msra.mxu0 %v12452_v63 }
 0x469   :  { %2983 = vmatprep.subr.mxu0 %v12450_v58  ;;  %v12436_v58 = vld [vmem:[%s23978_s29 + $0x460] sm:$0xff] }
 0x46a   :  { %2984 = vmatpush2.msra.mxu0 %v12449_v6  ;;  %v2541_v6 = vld [vmem:[%s23978_s29 + $0x168] sm:$0xff] }
 0x46b   :  { %2985 = vmatprep.subr.mxu0 %v12447_v54  ;;  %v12481_v54 = vld [vmem:[%s23978_s29 + $0x5c8] sm:$0xff] }
 0x46c   :  { %2986 = vmatpush2.msra.mxu0 %v12446_v21  ;;  %v2539_v21 = vld [vmem:[%s23978_s29 + $0x158] sm:$0xff] }
 0x46d   :  { %3308 = vmatprep.subr.mxu0 %v2542_v12 }
 0x4c6   :  { %v17703_v41 = vpop.f32.mrf.mxu1 }
 0x4c8   :  { %v14543_v30 = vpop.f32.mrf.mxu1 }
 0x4c9   :  { %v17705_v20 = vpop.f32.mrf.mxu0 }
 0x4cb   :  { %v17709_v5 = vpop.f32.mrf.mxu0 }
 0x4cc   :  { %v17707_v31 = vpop.f32.mrf.mxu1 }
 0x4ce   :  { %v14546_v29 = vpop.f32.mrf.mxu1 }
 0x4cf   :  { %v17711_v50 = vpop.f32.mrf.mxu0  ;;  %v12433_v29 = vld [vmem:[%s23978_s29 + $0x448] sm:$0xff] }
 0x4d1   :  { %v17715_v47 = vpop.f32.mrf.mxu0 }
 0x4d2   :  { %v17713_v38 = vpop.f32.mrf.mxu1 }
 0x4d4   :  { %v14549_v40 = vpop.f32.mrf.mxu1 }
 0x4d5   :  { %v17717_v22 = vpop.f32.mrf.mxu0  ;;  %v2538_v40 = vld [vmem:[%s23978_s29 + $0x150] sm:$0xff] }
 0x4d7   :  { %v17721_v0 = vpop.f32.mrf.mxu0 }
 0x4d8   :  { %v17719_v23 = vpop.f32.mrf.mxu1 }
 0x4da   :  { %v14552_v25 = vpop.f32.mrf.mxu1 }
 0x4db   :  { %v17723_v19 = vpop.f32.mrf.mxu0  ;;  %v12478_v25 = vld [vmem:[%s23978_s29 + $0x5b0] sm:$0xff] }
 0x4dd   :  { %v17727_v28 = vpop.f32.mrf.mxu0 }
 0x4de   :  { %v17725_v15 = vpop.f32.mrf.mxu1 }
 0x4e0   :  { %v14555_v44 = vpop.f32.mrf.mxu1 }
 0x4e1   :  { %v17729_v8 = vpop.f32.mrf.mxu0  ;;  %v2536_v44 = vld [vmem:[%s23978_s29 + $0x140] sm:$0xff] }
 0x4e2   :  { %v17734_v52 = vpop.f32.mrf.mxu1 }
 0x4e3   :  { %v17739_v49 = vpop.f32.mrf.mxu0  ;;  %12500 = vmatmul.mubr.msk.f32.vlgmr.msra.gmra.mxu1 %vm2907_vm5, %v17734_v52 }
 0x4e4   :  { %13598 = vmatpush3.msra.mxu1 %v12445_v32  ;;  %v14576_v27 = vpop.f32.mrf.mxu1  ;;  %3088 = vmatprep.mubr.f32.mxu1 %v23973_v39 }
 0x4e5   :  { %13599 = vmatprep.subr.mxu1 %v12490_v34  ;;  %v17750_v61 = vpop.f32.mrf.mxu0  ;;  %v12475_v27 = vld [vmem:[%s23978_s29 + $0x598] sm:$0xff] }
 0x4e6   :  { %13600 = vmatpush3.msra.mxu1 %v12442_v55  ;;  %v17758_v3 = vpop.f32.mrf.mxu1  ;;  %v12430_v55 = vld [vmem:[%s23978_s29 + $0x430] sm:$0xff] }
 0x4e7   :  { %13601 = vmatprep.subr.mxu1 %v12487_v26  ;;  %v17760_v63 = vpop.f32.mrf.mxu0  ;;  %12501 = vmatmul.mubr.msk.f32.gmra.mxu1 %vm2907_vm5, %v17758_v3  ;;  %v2535_v26 = vld [vmem:[%s23978_s29 + $0x138] sm:$0xff] }
 0x4e8   :  { %13602 = vmatpush3.msra.mxu1 %v12439_v59  ;;  %2987 = vmatprep.mubr.f32.mxu0 %v17760_v63  ;;  %v14579_v12 = vpop.f32.mrf.mxu1 }
 0x4e9   :  { %13603 = vmatprep.subr.mxu1 %v12484_v43  ;;  %2988 = vmatmul.mubr.f32.vlgmr.msra.gmra.mxu0 %v17750_v61  ;;  %v17778_v30 = vpop.f32.mrf.mxu0 }
 0x4ea   :  { %13604 = vmatpush3.msra.mxu1 %v12436_v58  ;;  %3309 = vmatpush1.msra.mxu0 %v2541_v6  ;;  %v17792_v32 = vpop.f32.mrf.mxu1  ;;  %v2533_v58 = vld [vmem:[%s23978_s29 + $0x128] sm:$0xff]  ;;  %v12427_v6 = vld [vmem:[%s23978_s29 + $0x418] sm:$0xff] }
 0x4eb   :  { %13605 = vmatprep.subr.mxu1 %v12481_v54  ;;  %3310 = vmatprep.subr.mxu0 %v2539_v21  ;;  %v17794_v34 = vpop.f32.mrf.mxu0  ;;  %v2532_v54 = vld [vmem:[%s23978_s29 + $0x120] sm:$0xff] }
 0x4ec   :  { %13606 = vmatpush3.msra.mxu1 %v12433_v29  ;;  %3311 = vmatpush1.msra.mxu0 %v2538_v40  ;;  %v14582_v59 = vpop.f32.mrf.mxu1  ;;  %v12472_v29 = vld [vmem:[%s23978_s29 + $0x580] sm:$0xff]  ;;  %v2530_v40 = vld [vmem:[%s23978_s29 + $0x110] sm:$0xff] }
 0x4ed   :  { %13607 = vmatprep.subr.mxu1 %v12478_v25  ;;  %3312 = vmatprep.subr.mxu0 %v2536_v44  ;;  %v17805_v43 = vpop.f32.mrf.mxu0  ;;  %v12424_v25 = vld [vmem:[%s23978_s29 + $0x400] sm:$0xff]  ;;  %v2527_v59 = vld [vmem:[%s23978_s29 + $0xf8] sm:$0xff] }
 0x4ee   :  { %2993 = vmatprep.mubr.f32.mxu0 %v17794_v34  ;;  %13608 = vmatpush3.msra.mxu1 %v12430_v55  ;;  %v17817_v21 = vpop.f32.mrf.mxu1  ;;  %v2529_v55 = vld [vmem:[%s23978_s29 + $0x108] sm:$0xff] }
 0x4ef   :  { %3313 = vmatpush1.msra.mxu0 %v2535_v26  ;;  %13609 = vmatprep.subr.mxu1 %v12475_v27  ;;  %v17819_v12 = vpop.f32.mrf.mxu0  ;;  %v12469_v27 = vld [vmem:[%s23978_s29 + $0x568] sm:$0xff] }
 0x4f0   :  { %2994 = vmatmul.mubr.f32.gmra.mxu0 %v17778_v30  ;;  %3314 = vmatprep.subr.mxu0 %v2533_v58  ;;  %v14585_v44 = vpop.f32.mrf.mxu1 }
 0x4f1   :  { %13610 = vmatpush3.msra.mxu1 %v12427_v6  ;;  %3315 = vmatpush1.msra.mxu0 %v2532_v54  ;;  %v17834_v26 = vpop.f32.mrf.mxu0  ;;  %v12421_v6 = vld [vmem:[%s23978_s29 + $0x3e8] sm:$0xff]  ;;  %v2526_v54 = vld [vmem:[%s23978_s29 + $0xf0] sm:$0xff] }
 0x4f2   :  { %13611 = vmatprep.subr.mxu1 %v12472_v29  ;;  %3316 = vmatprep.subr.mxu0 %v2530_v40  ;;  %v17842_v58 = vpop.f32.mrf.mxu1  ;;  %v12466_v29 = vld [vmem:[%s23978_s29 + $0x550] sm:$0xff]  ;;  %v2524_v40 = vld [vmem:[%s23978_s29 + $0xe0] sm:$0xff] }
 0x4f3   :  { %2999 = vmatprep.mubr.f32.mxu0 %v17819_v12  ;;  %13612 = vmatpush3.msra.mxu1 %v12424_v25  ;;  %v17851_v44 = vpop.f32.mrf.mxu0 }
 0x4f4   :  { %3317 = vmatpush1.msra.mxu0 %v2529_v55  ;;  %13613 = vmatprep.subr.mxu1 %v12469_v27  ;;  %v14588_v25 = vpop.f32.mrf.mxu1  ;;  %v2523_v55 = vld [vmem:[%s23978_s29 + $0xd8] sm:$0xff] }
 0x4f5   :  { %3000 = vmatmul.mubr.f32.gmra.mxu0 %v17805_v43  ;;  %3318 = vmatprep.subr.mxu0 %v2527_v59  ;;  %v17866_v27 = vpop.f32.mrf.mxu0  ;;  %v12463_v59 = vld [vmem:[%s23978_s29 + $0x538] sm:$0xff] }
 0x4f6   :  { %13614 = vmatpush3.msra.mxu1 %v12421_v6  ;;  %3319 = vmatpush1.msra.mxu0 %v2526_v54  ;;  %v2521_v6 = vld [vmem:[%s23978_s29 + $0xc8] sm:$0xff]  ;;  %v12415_v54 = vld [vmem:[%s23978_s29 + $0x3b8] sm:$0xff] }
 0x4f7   :  { %13615 = vmatprep.subr.mxu1 %v12466_v29  ;;  %3320 = vmatprep.subr.mxu0 %v2524_v40  ;;  %v2520_v29 = vld [vmem:[%s23978_s29 + $0xc0] sm:$0xff]  ;;  %v17891_v25 = vpop.f32.mrf.mxu0 }
 0x4f8   :  { %3005 = vmatprep.mubr.f32.mxu0 %v17851_v44  ;;  %3094 = vmatprep.mubr.f32.mxu1 %v23973_v39  ;;  %v12460_v40 = vld [vmem:[%s23978_s29 + $0x520] sm:$0xff] }
 0x4f9   :  { %13616 = vmatpush3.msra.mxu1 %v12418_v18  ;;  %3321 = vmatpush1.msra.mxu0 %v2523_v55  ;;  %v2518_v18 = vld [vmem:[%s23978_s29 + $0xb0] sm:$0xff]  ;;  %v12412_v55 = vld [vmem:[%s23978_s29 + $0x3a0] sm:$0xff] }
 0x4fa   :  { %3006 = vmatmul.mubr.f32.gmra.mxu0 %v17834_v26  ;;  %12502 = vmatmul.mubr.msk.f32.gmra.mxu1 %vm2907_vm5, %v17792_v32 }
 0x4fb   :  { %13617 = vmatprep.subr.mxu1 %v12463_v59  ;;  %3322 = vmatprep.subr.mxu0 %v2521_v6  ;;  %v12457_v59 = vld [vmem:[%s23978_s29 + $0x508] sm:$0xff]  ;;  %v2515_v6 = vld [vmem:[%s23978_s29 + $0x98] sm:$0xff] }
 0x4fc   :  { %13618 = vmatpush3.msra.mxu1 %v12415_v54  ;;  %3323 = vmatpush1.msra.mxu0 %v2520_v29  ;;  %v12409_v54 = vld [vmem:[%s23978_s29 + $0x388] sm:$0xff]  ;;  %v2514_v29 = vld [vmem:[%s23978_s29 + $0x90] sm:$0xff] }
 0x4fd   :  { %13619 = vmatprep.subr.mxu1 %v12460_v40  ;;  %3324 = vmatprep.subr.mxu0 %v2518_v18  ;;  %v12454_v40 = vld [vmem:[%s23978_s29 + $0x4f0] sm:$0xff] }
 0x4fe   :  { %3011 = vmatprep.mubr.f32.mxu0 %v17891_v25  ;;  %3100 = vmatprep.mubr.f32.mxu1 %v23973_v39  ;;  %v12406_v18 = vld [vmem:[%s23978_s29 + $0x370] sm:$0xff] }
 0x4ff   :  { %13620 = vmatpush3.msra.mxu1 %v12412_v55  ;;  %3325 = vmatpush1.msra.mxu0 %v2517_v17  ;;  %v2512_v17 = vld [vmem:[%s23978_s29 + $0x80] sm:$0xff]  ;;  %v2511_v55 = vld [vmem:[%s23978_s29 + $0x78] sm:$0xff] }
 0x500   :  { %3012 = vmatmul.mubr.f32.gmra.mxu0 %v17866_v27  ;;  %12503 = vmatmul.mubr.msk.f32.gmra.mxu1 %vm2907_vm5, %v17817_v21 }
 0x501   :  { %13621 = vmatprep.subr.mxu1 %v12457_v59  ;;  %3326 = vmatprep.subr.mxu0 %v2515_v6  ;;  %v12451_v59 = vld [vmem:[%s23978_s29 + $0x4d8] sm:$0xff]  ;;  %v2509_v6 = vld [vmem:[%s23978_s29 + $0x68] sm:$0xff] }
 0x502   :  { %13622 = vmatpush3.msra.mxu1 %v12409_v54  ;;  %3327 = vmatpush1.msra.mxu0 %v2514_v29  ;;  %v12403_v54 = vld [vmem:[%s23978_s29 + $0x358] sm:$0xff]  ;;  %v2508_v29 = vld [vmem:[%s23978_s29 + $0x60] sm:$0xff] }
 0x503   :  { %3372 = vmatprep.mubr.f32.mxu0 %v17709_v5  ;;  %13623 = vmatprep.subr.mxu1 %v12454_v40  ;;  %v12448_v40 = vld [vmem:[%s23978_s29 + $0x4c0] sm:$0xff] }
 0x504   :  { %3328 = vmatprep.subr.mxu0 %v2512_v17  ;;  %3106 = vmatprep.mubr.f32.mxu1 %v23973_v39  ;;  %v2506_v17 = vld [vmem:[%s23978_s29 + $0x50] sm:$0xff] }
 0x505   :  { %13624 = vmatpush3.msra.mxu1 %v12406_v18  ;;  %3329 = vmatpush1.msra.mxu0 %v2511_v55  ;;  %v12400_v18 = vld [vmem:[%s23978_s29 + $0x340] sm:$0xff]  ;;  %v2505_v55 = vld [vmem:[%s23978_s29 + $0x48] sm:$0xff] }
 0x506   :  { %12504 = vmatmul.mubr.msk.f32.gmra.mxu1 %vm2907_vm5, %v17842_v58  ;;  %13625 = vmatprep.subr.mxu1 %v12451_v59  ;;  %v2503_v59 = vld [vmem:[%s23978_s29 + $0x38] sm:$0xff] }
 0x507   :  { %3330 = vmatprep.subr.mxu0 %v2509_v6  ;;  %13626 = vmatpush3.msra.mxu1 %v12403_v54  ;;  %v2500_v6 = vld [vmem:[%s23978_s29 + $0x20] sm:$0xff]  ;;  %v2499_v54 = vld [vmem:[%s23978_s29 + $0x18] sm:$0xff] }
 0x508   :  { %3331 = vmatpush1.msra.mxu0 %v2508_v29  ;;  %13627 = vmatprep.subr.mxu1 %v12448_v40  ;;  %v12499_v29 = vld [vmem:[%s23978_s29 + $0x658] sm:$0xff]  ;;  %v2590_v40 = vld [vmem:[%s23978_s29 + $0x2f0] sm:$0xff] }
 0x509   :  { %3332 = vmatprep.subr.mxu0 %v2506_v17  ;;  %13628 = vmatpush3.msra.mxu1 %v12400_v18  ;;  %v2587_v17 = vld [vmem:[%s23978_s29 + $0x2d8] sm:$0xff]  ;;  %v2584_v18 = vld [vmem:[%s23978_s29 + $0x2c0] sm:$0xff] }
 0x50a   :  { %3177 = vmatprep.mubr.f32.mxu1 %v17760_v63  ;;  %3333 = vmatpush1.msra.mxu0 %v2505_v55  ;;  %v2497_v63 = vld [vmem:[%s23978_s29 + $0x8] sm:$0xff]  ;;  %v2583_v55 = vld [vmem:[%s23978_s29 + $0x2b8] sm:$0xff] }
 0x50b   :  { %3178 = vmatmul.mubr.f32.vlgmr.msra.gmra.mxu1 %v17750_v61  ;;  %3334 = vmatprep.subr.mxu0 %v2503_v59  ;;  %v2496_v61 = vld [vmem:[%s23978_s29] sm:$0xff]  ;;  %v2581_v59 = vld [vmem:[%s23978_s29 + $0x2a8] sm:$0xff] }
 0x50c   :  { %3335 = vmatpush1.msra.mxu0 %v2502_v36  ;;  %3182 = vmatprep.mubr.f32.mxu1 %v17794_v34  ;;  %v2589_v36 = vld [vmem:[%s23978_s29 + $0x2e8] sm:$0xff]  ;;  %v12496_v34 = vld [vmem:[%s23978_s29 + $0x640] sm:$0xff] }
 0x50d   :  { %3336 = vmatprep.subr.mxu0 %v2500_v6  ;;  %14589 = vmatprep.subr.mxu1 %v23973_v39  ;;  %v2580_v6 = vld [vmem:[%s23978_s29 + $0x2a0] sm:$0xff] }
 0x50e   :  { %3337 = vmatpush1.msra.mxu0 %v2499_v54  ;;  %14590 = vmatpush3.msra.mxu1 %v12499_v29  ;;  %v2575_v54 = vld [vmem:[%s23978_s29 + $0x278] sm:$0xff]  ;;  %v2574_v29 = vld [vmem:[%s23978_s29 + $0x270] sm:$0xff] }
 0x50f   :  { %3183 = vmatmul.mubr.f32.gmra.mxu1 %v17778_v30  ;;  %3338 = vmatprep.subr.mxu0 %v2497_v63  ;;  %v2586_v30 = vld [vmem:[%s23978_s29 + $0x2d0] sm:$0xff]  ;;  %v2569_v63 = vld [vmem:[%s23978_s29 + $0x248] sm:$0xff] }
 0x510   :  { %3339 = vmatpush1.msra.mxu0 %v2496_v61  ;;  %3187 = vmatprep.mubr.f32.mxu1 %v17819_v12  ;;  %v2596_v12 = vld [vmem:[%s23978_s29 + $0x320] sm:$0xff] }
 0x511   :  { %3340 = vmatprep.subr.mxu0 %v2590_v40  ;;  %14591 = vmatprep.subr.mxu1 %v23973_v39  ;;  %v2568_v61 = vld [vmem:[%s23978_s29 + $0x240] sm:$0xff]  ;;  %v2595_v40 = vld [vmem:[%s23978_s29 + $0x318] sm:$0xff] }
 0x512   :  { %3341 = vmatpush2.msra.mxu0 %v2589_v36  ;;  %14592 = vmatpush3.msra.mxu1 %v12496_v34  ;;  %v2565_v36 = vld [vmem:[%s23978_s29 + $0x228] sm:$0xff] }
 0x513   :  { %3188 = vmatmul.mubr.f32.gmra.mxu1 %v17805_v43  ;;  %3342 = vmatprep.subr.mxu0 %v2587_v17  ;;  %v2578_v43 = vld [vmem:[%s23978_s29 + $0x290] sm:$0xff]  ;;  %v2593_v34 = vld [vmem:[%s23978_s29 + $0x308] sm:$0xff]  ;;  %v2563_v17 = vld [vmem:[%s23978_s29 + $0x218] sm:$0xff] }
 0x514   :  { %3343 = vmatpush2.msra.mxu0 %v2586_v30  ;;  %3192 = vmatprep.mubr.f32.mxu1 %v17851_v44  ;;  %v2577_v44 = vld [vmem:[%s23978_s29 + $0x288] sm:$0xff]  ;;  %v2560_v30 = vld [vmem:[%s23978_s29 + $0x200] sm:$0xff] }
 0x515   :  { %3344 = vmatprep.subr.mxu0 %v2584_v18  ;;  %3431 = vmatprep.subr.mxu1 %v2596_v12  ;;  %v2592_v18 = vld [vmem:[%s23978_s29 + $0x300] sm:$0xff]  ;;  %v2559_v12 = vld [vmem:[%s23978_s29 + $0x1f8] sm:$0xff] }
 0x516   :  { %3345 = vmatpush2.msra.mxu0 %v2583_v55  ;;  %v2591_v55 = vld [vmem:[%s23978_s29 + $0x2f8] sm:$0xff] }
 0x517   :  { %3193 = vmatmul.mubr.f32.gmra.mxu1 %v17834_v26  ;;  %3346 = vmatprep.subr.mxu0 %v2581_v59  ;;  %v2572_v26 = vld [vmem:[%s23978_s29 + $0x260] sm:$0xff]  ;;  %v2557_v59 = vld [vmem:[%s23978_s29 + $0x1e8] sm:$0xff] }
 0x518   :  { %3347 = vmatpush2.msra.mxu0 %v2580_v6  ;;  %3197 = vmatprep.mubr.f32.mxu1 %v17891_v25  ;;  %v2571_v25 = vld [vmem:[%s23978_s29 + $0x258] sm:$0xff]  ;;  %v2554_v6 = vld [vmem:[%s23978_s29 + $0x1d0] sm:$0xff] }
 0x519   :  { %3348 = vmatprep.subr.mxu0 %v2578_v43  ;;  %v2553_v43 = vld [vmem:[%s23978_s29 + $0x1c8] sm:$0xff] }
 0x51a   :  { %3349 = vmatpush2.msra.mxu0 %v2577_v44  ;;  %v2551_v44 = vld [vmem:[%s23978_s29 + $0x1b8] sm:$0xff] }
 0x51b   :  { %3198 = vmatmul.mubr.f32.gmra.mxu1 %v17866_v27  ;;  %3350 = vmatprep.subr.mxu0 %v2575_v54  ;;  %v2566_v27 = vld [vmem:[%s23978_s29 + $0x230] sm:$0xff] }
 0x51c   :  { %3351 = vmatpush2.msra.mxu0 %v2574_v29  ;;  %14593 = vmatprep.mubr.msk.f32.mxu1 %vm15093_vm4, %v23973_v39  ;;  %v2550_v54 = vld [vmem:[%s23978_s29 + $0x1b0] sm:$0xff]  ;;  %v2547_v29 = vld [vmem:[%s23978_s29 + $0x198] sm:$0xff] }
 0x51d   :  { %3352 = vmatprep.subr.mxu0 %v2572_v26  ;;  %v2545_v26 = vld [vmem:[%s23978_s29 + $0x188] sm:$0xff] }
 0x51e   :  { %3353 = vmatpush2.msra.mxu0 %v2571_v25  ;;  %v2544_v25 = vld [vmem:[%s23978_s29 + $0x180] sm:$0xff] }
 0x51f   :  { %14594 = vmatmul.mubr.msk.f32.vlgmr.msra.gmra.mxu1 %vm2907_vm5, %v17734_v52  ;;  %3354 = vmatprep.subr.mxu0 %v2569_v63  ;;  %v2562_v52 = vld [vmem:[%s23978_s29 + $0x210] sm:$0xff]  ;;  %v2540_v63 = vld [vmem:[%s23978_s29 + $0x160] sm:$0xff] }
 0x520   :  { %3355 = vmatpush2.msra.mxu0 %v2568_v61  ;;  %14596 = vmatprep.mubr.msk.f32.mxu1 %vm15093_vm4, %v23973_v39  ;;  %v2585_v61 = vld [vmem:[%s23978_s29 + $0x2c8] sm:$0xff] }
 0x521   :  { %3356 = vmatprep.subr.mxu0 %v2566_v27  ;;  %3432 = vmatpush1.msra.mxu1 %v2595_v40  ;;  %v2537_v27 = vld [vmem:[%s23978_s29 + $0x148] sm:$0xff]  ;;  %v2582_v40 = vld [vmem:[%s23978_s29 + $0x2b0] sm:$0xff] }
 0x522   :  { %3357 = vmatpush2.msra.mxu0 %v2565_v36  ;;  %3433 = vmatprep.subr.mxu1 %v2593_v34  ;;  %v2534_v36 = vld [vmem:[%s23978_s29 + $0x130] sm:$0xff]  ;;  %v2579_v34 = vld [vmem:[%s23978_s29 + $0x298] sm:$0xff] }
 0x523   :  { %14597 = vmatmul.mubr.msk.f32.gmra.mxu1 %vm2907_vm5, %v17758_v3  ;;  %3358 = vmatprep.subr.mxu0 %v2563_v17  ;;  %v2556_v3 = vld [vmem:[%s23978_s29 + $0x1e0] sm:$0xff]  ;;  %v2531_v17 = vld [vmem:[%s23978_s29 + $0x118] sm:$0xff] }
 0x524   :  { %3359 = vmatpush2.msra.mxu0 %v2562_v52  ;;  %14599 = vmatprep.mubr.msk.f32.mxu1 %vm15093_vm4, %v23973_v39  ;;  %v2576_v52 = vld [vmem:[%s23978_s29 + $0x280] sm:$0xff] }
 0x525   :  { %3360 = vmatprep.subr.mxu0 %v2560_v30  ;;  %3434 = vmatpush1.msra.mxu1 %v2592_v18  ;;  %v2528_v30 = vld [vmem:[%s23978_s29 + $0x100] sm:$0xff]  ;;  %v2573_v18 = vld [vmem:[%s23978_s29 + $0x268] sm:$0xff] }
 0x526   :  { %3361 = vmatpush2.msra.mxu0 %v2559_v12  ;;  %13651 = vmatprep.subr.mxu1 %v2591_v55  ;;  %v2525_v12 = vld [vmem:[%s23978_s29 + $0xe8] sm:$0xff]  ;;  %v2570_v55 = vld [vmem:[%s23978_s29 + $0x250] sm:$0xff] }
 0x527   :  { %14600 = vmatmul.mubr.msk.f32.gmra.mxu1 %vm2907_vm5, %v17792_v32  ;;  %3362 = vmatprep.subr.mxu0 %v2557_v59  ;;  %v2548_v32 = vld [vmem:[%s23978_s29 + $0x1a0] sm:$0xff]  ;;  %v2522_v59 = vld [vmem:[%s23978_s29 + $0xd0] sm:$0xff] }
 0x528   :  { %3363 = vmatpush2.msra.mxu0 %v2556_v3  ;;  %14602 = vmatprep.mubr.msk.f32.mxu1 %vm15093_vm4, %v23973_v39  ;;  %v2567_v3 = vld [vmem:[%s23978_s29 + $0x238] sm:$0xff] }
 0x529   :  { %3364 = vmatprep.subr.mxu0 %v2554_v6  ;;  %v2519_v6 = vld [vmem:[%s23978_s29 + $0xb8] sm:$0xff] }
 0x52a   :  { %3365 = vmatpush2.msra.mxu0 %v2553_v43  ;;  %v2564_v43 = vld [vmem:[%s23978_s29 + $0x220] sm:$0xff] }
 0x52b   :  { %14603 = vmatmul.mubr.msk.f32.gmra.mxu1 %vm2907_vm5, %v17817_v21  ;;  %3366 = vmatprep.subr.mxu0 %v2551_v44  ;;  %v2543_v21 = vld [vmem:[%s23978_s29 + $0x178] sm:$0xff]  ;;  %v2516_v44 = vld [vmem:[%s23978_s29 + $0xa0] sm:$0xff] }
 0x52c   :  { %3367 = vmatpush2.msra.mxu0 %v2550_v54  ;;  %14605 = vmatprep.mubr.msk.f32.mxu1 %vm15093_vm4, %v23973_v39  ;;  %v18227_v54 = vld [vmem:[%s23976_s13 + $0x50] sm:$0xff] }
 0x52d   :  { %3368 = vmatprep.subr.mxu0 %v2548_v32  ;;  %v2561_v32 = vld [vmem:[%s23978_s29 + $0x208] sm:$0xff] }
 0x52e   :  { %3369 = vmatpush2.msra.mxu0 %v2547_v29  ;;  %v2513_v29 = vld [vmem:[%s23978_s29 + $0x88] sm:$0xff] }
 0x52f   :  { %14606 = vmatmul.mubr.msk.f32.gmra.mxu1 %vm2907_vm5, %v17842_v58  ;;  %3370 = vmatprep.subr.mxu0 %v2545_v26  ;;  %v2588_v58 = vld [vmem:[%s23978_s29 + $0x2e0] sm:$0xff]  ;;  %v2558_v26 = vld [vmem:[%s23978_s29 + $0x1f0] sm:$0xff] }
 0x530   :  { %3371 = vmatpush2.msra.mxu0 %v2544_v25  ;;  %3467 = vmatprep.mubr.f32.mxu1 %v23973_v39  ;;  %v18249_v25 = vld [vmem:[%s23976_s13 + $0x58] sm:$0xff] }
 0x531   :  { %3373 = vmatmul.mubr.f32.vlgmr.msra.gmra.mxu0 %v17705_v20  ;;  %12525 = vmatprep.subr.msk.mxu0 %vm160_vm1, %v17204_v60 }
 0x532   :  { %3378 = vmatprep.mubr.f32.mxu0 %v17715_v47  ;;  %12526 = vmatpush1.msk.msra.mxu0 %vm160_vm1, %v17207_v11 }
 0x533   :  { %12510 = vmatmul.mubr.msk.f32.vlgmr.msra.gmra.mxu1 %vm2907_vm5, %v17703_v41  ;;  %3715 = vmatprep.subr.mxu0 %v17220_v35 }
 0x534   :  { %13652 = vmatpush3.msra.mxu1 %v2543_v21  ;;  %3716 = vmatpush1.msra.mxu0 %v17226_v1  ;;  %v2555_v21 = vld [vmem:[%s23978_s29 + $0x1d8] sm:$0xff] }
 0x535   :  { %13653 = vmatprep.subr.mxu1 %v2588_v58  ;;  %3379 = vmatmul.mubr.f32.gmra.mxu0 %v17711_v50  ;;  %v2507_v58 = vld [vmem:[%s23978_s29 + $0x58] sm:$0xff] }
 0x536   :  { %13654 = vmatpush3.msra.mxu1 %v2540_v63  ;;  %3717 = vmatprep.subr.mxu0 %v17238_v13  ;;  %v2552_v63 = vld [vmem:[%s23978_s29 + $0x1c0] sm:$0xff] }
 0x537   :  { %3384 = vmatprep.mubr.f32.mxu0 %v17721_v0  ;;  %3473 = vmatprep.mubr.f32.mxu1 %v23973_v39 }
 0x538   :  { %13655 = vmatprep.subr.mxu1 %v2585_v61  ;;  %3718 = vmatpush1.msra.mxu0 %v17244_v7  ;;  %v2504_v61 = vld [vmem:[%s23978_s29 + $0x40] sm:$0xff] }
 0x539   :  { %12511 = vmatmul.mubr.msk.f32.gmra.mxu1 %vm2907_vm5, %v17707_v31  ;;  %3719 = vmatprep.subr.mxu0 %v17261_v14 }
 0x53a   :  { %13656 = vmatpush3.msra.mxu1 %v2537_v27  ;;  %3720 = vmatpush1.msra.mxu0 %v17269_v4  ;;  %v18269_v27 = vld [vmem:[%s23976_s13 + $0x60] sm:$0xff] }
 0x53b   :  { %13657 = vmatprep.subr.mxu1 %v2582_v40  ;;  %3385 = vmatmul.mubr.f32.gmra.mxu0 %v17717_v22  ;;  %v2549_v40 = vld [vmem:[%s23978_s29 + $0x1a8] sm:$0xff] }
 0x53c   :  { %13658 = vmatpush3.msra.mxu1 %v2534_v36  ;;  %3721 = vmatprep.subr.mxu0 %v17286_v48  ;;  %v2501_v36 = vld [vmem:[%s23978_s29 + $0x28] sm:$0xff] }
 0x53d   :  { %3390 = vmatprep.mubr.f32.mxu0 %v17727_v28  ;;  %3479 = vmatprep.mubr.f32.mxu1 %v23973_v39 }
 0x53e   :  { %13659 = vmatprep.subr.mxu1 %v2579_v34  ;;  %3722 = vmatpush1.msra.mxu0 %v17294_v53  ;;  %v2546_v34 = vld [vmem:[%s23978_s29 + $0x190] sm:$0xff] }
 0x53f   :  { %12512 = vmatmul.mubr.msk.f32.gmra.mxu1 %vm2907_vm5, %v17713_v38  ;;  %3723 = vmatprep.subr.mxu0 %v17311_v57 }
 0x540   :  { %13660 = vmatpush3.msra.mxu1 %v2531_v17  ;;  %3724 = vmatpush1.msra.mxu0 %v17319_v24  ;;  %v2498_v17 = vld [vmem:[%s23978_s29 + $0x10] sm:$0xff] }
 0x541   :  { %13661 = vmatprep.subr.mxu1 %v2576_v52  ;;  %3391 = vmatmul.mubr.f32.gmra.mxu0 %v17723_v19  ;;  %v18289_v52 = vld [vmem:[%s23976_s13 + $0x68] sm:$0xff] }
 0x542   :  { %13662 = vmatpush3.msra.mxu1 %v2528_v30  ;;  %3725 = vmatprep.subr.mxu0 %v17335_v45  ;;  %v2597_v30 = vld [vmem:[%s23978_s29 + $0x328] sm:$0xff] }
 0x543   :  { %3396 = vmatprep.mubr.f32.mxu0 %v17739_v49  ;;  %3485 = vmatprep.mubr.f32.mxu1 %v23973_v39 }
 0x544   :  { %13663 = vmatprep.subr.mxu1 %v2573_v18  ;;  %3726 = vmatpush1.msra.mxu0 %v17346_v62  ;;  %v2594_v18 = vld [vmem:[%s23978_s29 + $0x310] sm:$0xff] }
 0x545   :  { %12513 = vmatmul.mubr.msk.f32.gmra.mxu1 %vm2907_vm5, %v17719_v23  ;;  %3727 = vmatprep.subr.mxu0 %v17361_v46 }
 0x546   :  { %13664 = vmatpush3.msra.mxu1 %v2525_v12  ;;  %3728 = vmatpush1.msra.mxu0 %v17368_v51  ;;  %v18304_v12 = vld [vmem:[%s23976_s13 + $0x70] sm:$0xf] }
 0x547   :  { %13665 = vmatprep.subr.mxu1 %v2570_v55  ;;  %3397 = vmatmul.mubr.f32.gmra.mxu0 %v17729_v8  ;;  %v12569_v55 = vld [vmem:[%s23978_s29 + $0x758] sm:$0xff] }
 0x548   :  { %13666 = vmatpush3.msra.mxu1 %v2522_v59  ;;  %3729 = vmatprep.subr.mxu0 %v17374_v33  ;;  %v12566_v59 = vld [vmem:[%s23978_s29 + $0x740] sm:$0xff] }
 0x549   :  { %3491 = vmatprep.mubr.f32.mxu1 %v23973_v39  ;;  %13667 = vmatprep.subr.mxu1 %v2567_v3  ;;  %v23979_v3 = vld [vmem:[#allocation4_spill] sm:$0xff] }
 0x54a   :  { %3730 = vmatpush1.msra.mxu0 %v17380_v16  ;;  %12514 = vmatmul.mubr.msk.f32.gmra.mxu1 %vm2907_vm5, %v17725_v15 }
 0x54b   :  { %13668 = vmatpush3.msra.mxu1 %v2519_v6  ;;  %3562 = vmatprep.mubr.f32.mxu1 %v17709_v5  ;;  %v2510_v5 = vld [vmem:[%s23978_s29 + $0x70] sm:$0xff]  ;;  %v23980_v6 = vld [vmem:[#allocation15_spill] sm:$0xff] }
 0x54c   :  { %13669 = vmatprep.subr.mxu1 %v2564_v43  ;;  %3763 = vmatprep.mubr.f32.mxu0 %v23973_v39  ;;  %v12563_v43 = vld [vmem:[%s23978_s29 + $0x728] sm:$0xff] }
 0x54d   :  { %13670 = vmatpush3.msra.mxu1 %v2516_v44  ;;  %12527 = vmatmul.mubr.msk.f32.vlgmr.msra.gmra.mxu0 %vm2286_vm0, %v18227_v54  ;;  %v23981_v44 = vld [vmem:[#allocation5_spill] sm:$0xff] }
 0x54e   :  { %13671 = vmatprep.subr.mxu1 %v2561_v32  ;;  %3769 = vmatprep.mubr.f32.mxu0 %v23973_v39  ;;  %v12560_v32 = vld [vmem:[%s23978_s29 + $0x710] sm:$0xff] }
 0x54f   :  { %13672 = vmatpush3.msra.mxu1 %v2513_v29  ;;  %v12559_v29 = vld [vmem:[%s23978_s29 + $0x708] sm:$0xff] }
 0x550   :  { %13673 = vmatprep.subr.mxu1 %v2558_v26  ;;  %v12556_v26 = vld [vmem:[%s23978_s29 + $0x6f0] sm:$0xff] }
 0x551   :  { %13674 = vmatpush3.msra.mxu1 %v2510_v5  ;;  %12528 = vmatmul.mubr.msk.f32.gmra.mxu0 %vm2286_vm0, %v18249_v25  ;;  %v12554_v5 = vld [vmem:[%s23978_s29 + $0x6e0] sm:$0xff] }
 0x552   :  { %13675 = vmatprep.subr.mxu1 %v2555_v21  ;;  %3775 = vmatprep.mubr.f32.mxu0 %v23973_v39  ;;  %v12553_v21 = vld [vmem:[%s23978_s29 + $0x6d8] sm:$0xff] }
 0x553   :  { %13676 = vmatpush3.msra.mxu1 %v2507_v58  ;;  %v12550_v58 = vld [vmem:[%s23978_s29 + $0x6c0] sm:$0xff] }
 0x554   :  { %13677 = vmatprep.subr.mxu1 %v2552_v63  ;;  %v12548_v63 = vld [vmem:[%s23978_s29 + $0x6b0] sm:$0xff] }
 0x555   :  { %13678 = vmatpush3.msra.mxu1 %v2504_v61  ;;  %12529 = vmatmul.mubr.msk.f32.gmra.mxu0 %vm2286_vm0, %v18269_v27  ;;  %v12547_v61 = vld [vmem:[%s23978_s29 + $0x6a8] sm:$0xff] }
 0x556   :  { %13679 = vmatprep.subr.mxu1 %v2549_v40  ;;  %3781 = vmatprep.mubr.f32.mxu0 %v23973_v39  ;;  %v12544_v40 = vld [vmem:[%s23978_s29 + $0x690] sm:$0xff] }
 0x557   :  { %13680 = vmatpush3.msra.mxu1 %v2501_v36  ;;  %v12542_v36 = vld [vmem:[%s23978_s29 + $0x680] sm:$0xff] }
 0x558   :  { %13681 = vmatprep.subr.mxu1 %v2546_v34  ;;  %v12541_v34 = vld [vmem:[%s23978_s29 + $0x678] sm:$0xff] }
 0x559   :  { %13682 = vmatpush3.msra.mxu1 %v2498_v17  ;;  %12530 = vmatmul.mubr.msk.f32.gmra.mxu0 %vm2286_vm0, %v18289_v52  ;;  %v12538_v17 = vld [vmem:[%s23978_s29 + $0x660] sm:$0xff] }
 0x55a   :  { %3563 = vmatmul.mubr.f32.vlgmr.msra.gmra.mxu1 %v17705_v20  ;;  %14608 = vmatprep.subr.mxu1 %v23973_v39  ;;  %v12584_v20 = vld [vmem:[%s23978_s29 + $0x7d0] sm:$0xff] }
 0x55b   :  { %3567 = vmatprep.mubr.f32.mxu1 %v17715_v47  ;;  %14609 = vmatpush3.msra.mxu1 %v2597_v30  ;;  %v12581_v47 = vld [vmem:[%s23978_s29 + $0x7b8] sm:$0xff]  ;;  %v12632_v30 = vld [vmem:[%s23978_s29 + $0x950] sm:$0xff] }
 0x55c   :  { %14610 = vmatprep.subr.mxu1 %v23973_v39  ;;  %3787 = vmatprep.mubr.f32.mxu0 %v23973_v39 }
 0x55d   :  { %14611 = vmatpush3.msra.mxu1 %v2594_v18  ;;  %12531 = vmatmul.mubr.msk.f32.gmra.mxu0 %vm2286_vm0, %v18304_v12  ;;  %v12631_v18 = vld [vmem:[%s23978_s29 + $0x948] sm:$0xff] }
 0x55e   :  { %3568 = vmatmul.mubr.f32.gmra.mxu1 %v17711_v50  ;;  %14627 = vmatprep.subr.mxu1 %v23973_v39  ;;  %v12583_v50 = vld [vmem:[%s23978_s29 + $0x7c8] sm:$0xff] }
 0x55f   :  { %3572 = vmatprep.mubr.f32.mxu1 %v17721_v0  ;;  %4002 = vmatprep.subr.mxu0 %v12584_v20  ;;  %v12578_v0 = vld [vmem:[%s23978_s29 + $0x7a0] sm:$0xff]  ;;  %v12628_v20 = vld [vmem:[%s23978_s29 + $0x930] sm:$0xff] }
 0x560   :  { %4003 = vmatpush1.msra.mxu0 %v12583_v50  ;;  %v12626_v50 = vld [vmem:[%s23978_s29 + $0x920] sm:$0xff] }
 0x561   :  { %4004 = vmatprep.subr.mxu0 %v12581_v47  ;;  %v12625_v47 = vld [vmem:[%s23978_s29 + $0x918] sm:$0xff] }
 0x562   :  { %3573 = vmatmul.mubr.f32.gmra.mxu1 %v17717_v22  ;;  %v12580_v22 = vld [vmem:[%s23978_s29 + $0x7b0] sm:$0xff] }
 0x563   :  { %3577 = vmatprep.mubr.f32.mxu1 %v17727_v28  ;;  %4005 = vmatpush1.msra.mxu0 %v12580_v22  ;;  %v12575_v28 = vld [vmem:[%s23978_s29 + $0x788] sm:$0xff]  ;;  %v12622_v22 = vld [vmem:[%s23978_s29 + $0x900] sm:$0xff] }
 0x564   :  { %4006 = vmatprep.subr.mxu0 %v12578_v0  ;;  %v12620_v0 = vld [vmem:[%s23978_s29 + $0x8f0] sm:$0xff] }
 0x566   :  { %3578 = vmatmul.mubr.f32.gmra.mxu1 %v17723_v19  ;;  %v12577_v19 = vld [vmem:[%s23978_s29 + $0x798] sm:$0xff] }
 0x567   :  { %3582 = vmatprep.mubr.f32.mxu1 %v17739_v49  ;;  %4007 = vmatpush1.msra.mxu0 %v12577_v19  ;;  %v12571_v49 = vld [vmem:[%s23978_s29 + $0x768] sm:$0xff] }
 0x568   :  { %4008 = vmatprep.subr.mxu0 %v12575_v28  ;;  %v12619_v19 = vld [vmem:[%s23978_s29 + $0x8e8] sm:$0xff]  ;;  %v12617_v28 = vld [vmem:[%s23978_s29 + $0x8d8] sm:$0xff] }
 0x56a   :  { %3583 = vmatmul.mubr.f32.gmra.mxu1 %v17729_v8  ;;  %v12574_v8 = vld [vmem:[%s23978_s29 + $0x780] sm:$0xff] }
 0x56b   :  { %14612 = vmatprep.mubr.msk.f32.mxu1 %vm15093_vm4, %v23973_v39  ;;  %4009 = vmatpush1.msra.mxu0 %v12574_v8  ;;  %v12616_v8 = vld [vmem:[%s23978_s29 + $0x8d0] sm:$0xff] }
 0x56e   :  { %14613 = vmatmul.mubr.msk.f32.vlgmr.msra.gmra.mxu1 %vm2907_vm5, %v17703_v41  ;;  %v12572_v41 = vld [vmem:[%s23978_s29 + $0x770] sm:$0xff] }
 0x56f   :  { %14628 = vmatpush3.msk.msra.mxu1 %vm160_vm1, %v17197_v42  ;;  %14615 = vmatprep.mubr.msk.f32.mxu1 %vm15093_vm4, %v23973_v39 }
 0x570   :  { %14629 = vmatprep.subr.mxu1 %v23973_v39  ;;  %4010 = vmatprep.subr.mxu0 %v12572_v41  ;;  %v12614_v41 = vld [vmem:[%s23978_s29 + $0x8c0] sm:$0xff] }
 0x571   :  { %14630 = vmatpush3.msra.mxu1 %v17202_v2  ;;  %4011 = vmatpush1.msra.mxu0 %v12571_v49  ;;  %v12613_v49 = vld [vmem:[%s23978_s29 + $0x8b8] sm:$0xff] }
 0x572   :  { %14631 = vmatprep.subr.mxu1 %v23973_v39  ;;  %14616 = vmatmul.mubr.msk.f32.gmra.mxu1 %vm2907_vm5, %v17707_v31  ;;  %v12568_v31 = vld [vmem:[%s23978_s29 + $0x750] sm:$0xff] }
 0x573   :  { %14632 = vmatpush3.msra.mxu1 %v17213_v37  ;;  %14618 = vmatprep.mubr.msk.f32.mxu1 %vm15093_vm4, %v23973_v39 }
 0x574   :  { %14633 = vmatprep.subr.mxu1 %v23973_v39  ;;  %4012 = vmatprep.subr.mxu0 %v12569_v55  ;;  %v12611_v55 = vld [vmem:[%s23978_s29 + $0x8a8] sm:$0xff] }
 0x575   :  { %14634 = vmatpush3.msra.mxu1 %v17230_v56  ;;  %4013 = vmatpush1.msra.mxu0 %v12568_v31  ;;  %v12610_v31 = vld [vmem:[%s23978_s29 + $0x8a0] sm:$0xff] }
 0x576   :  { %14635 = vmatprep.subr.mxu1 %v23973_v39  ;;  %14619 = vmatmul.mubr.msk.f32.gmra.mxu1 %vm2907_vm5, %v17713_v38  ;;  %v12565_v38 = vld [vmem:[%s23978_s29 + $0x738] sm:$0xff] }
 0x577   :  { %14636 = vmatpush3.msra.mxu1 %v17251_v9  ;;  %14621 = vmatprep.mubr.msk.f32.mxu1 %vm15093_vm4, %v23973_v39 }
 0x578   :  { %14637 = vmatprep.subr.mxu1 %v23973_v39  ;;  %4014 = vmatprep.subr.mxu0 %v12566_v59  ;;  %v12608_v59 = vld [vmem:[%s23978_s29 + $0x890] sm:$0xff] }
 0x579   :  { %14638 = vmatpush3.msra.mxu1 %v17276_v10  ;;  %4015 = vmatpush1.msra.mxu0 %v12565_v38  ;;  %v12607_v38 = vld [vmem:[%s23978_s29 + $0x888] sm:$0xff] }
 0x57a   :  { %14639 = vmatprep.subr.mxu1 %v23973_v39  ;;  %14622 = vmatmul.mubr.msk.f32.gmra.mxu1 %vm2907_vm5, %v17719_v23  ;;  %v12562_v23 = vld [vmem:[%s23978_s29 + $0x720] sm:$0xff] }
 0x57b   :  { %14640 = vmatpush3.msra.mxu1 %v23979_v3  ;;  %14624 = vmatprep.mubr.msk.f32.mxu1 %vm15093_vm4, %v23973_v39 }
 0x57c   :  { %14641 = vmatprep.subr.mxu1 %v23973_v39  ;;  %4016 = vmatprep.subr.mxu0 %v12563_v43  ;;  %v12605_v43 = vld [vmem:[%s23978_s29 + $0x878] sm:$0xff] }
 0x57d   :  { %14642 = vmatpush3.msra.mxu1 %v23980_v6  ;;  %4017 = vmatpush1.msra.mxu0 %v12562_v23  ;;  %v12604_v23 = vld [vmem:[%s23978_s29 + $0x870] sm:$0xff] }
 0x57e   :  { %14643 = vmatprep.subr.mxu1 %v23973_v39  ;;  %14625 = vmatmul.mubr.msk.f32.gmra.mxu1 %vm2907_vm5, %v17725_v15  ;;  %v12557_v15 = vld [vmem:[%s23978_s29 + $0x6f8] sm:$0xff] }
 0x57f   :  { %14644 = vmatpush3.msra.mxu1 %v23981_v44  ;;  %14645 = vmatprep.mubr.msk.f32.mxu1 %vm15093_vm4, %v23973_v39 }
 0x580   :  { %4018 = vmatprep.subr.mxu0 %v12560_v32  ;;  %v12602_v32 = vld [vmem:[%s23978_s29 + $0x860] sm:$0xff] }
 0x581   :  { %4019 = vmatpush1.msra.mxu0 %v12559_v29  ;;  %v12601_v29 = vld [vmem:[%s23978_s29 + $0x858] sm:$0xff] }
 0x582   :  { %14646 = vmatmul.mubr.msk.f32.vlgmr.msra.gmra.mxu1 %vm2286_vm0, %v18227_v54  ;;  %4020 = vmatprep.subr.mxu0 %v12557_v15  ;;  %v12551_v54 = vld [vmem:[%s23978_s29 + $0x6c8] sm:$0xff] }
 0x583   :  { %14648 = vmatprep.mubr.msk.f32.mxu1 %vm15093_vm4, %v23973_v39  ;;  %4021 = vmatpush1.msra.mxu0 %v12556_v26  ;;  %v12599_v15 = vld [vmem:[%s23978_s29 + $0x848] sm:$0xff]  ;;  %v12598_v26 = vld [vmem:[%s23978_s29 + $0x840] sm:$0xff] }
 0x584   :  { %4022 = vmatprep.subr.mxu0 %v12554_v5  ;;  %v12596_v5 = vld [vmem:[%s23978_s29 + $0x830] sm:$0xff] }
 0x585   :  { %4023 = vmatpush1.msra.mxu0 %v12553_v21  ;;  %v12595_v21 = vld [vmem:[%s23978_s29 + $0x828] sm:$0xff] }
 0x586   :  { %14649 = vmatmul.mubr.msk.f32.gmra.mxu1 %vm2286_vm0, %v18249_v25  ;;  %4024 = vmatprep.subr.mxu0 %v12551_v54  ;;  %v12545_v25 = vld [vmem:[%s23978_s29 + $0x698] sm:$0xff] }
 0x587   :  { %14651 = vmatprep.mubr.msk.f32.mxu1 %vm15093_vm4, %v23973_v39  ;;  %4025 = vmatpush1.msra.mxu0 %v12550_v58 }
 0x588   :  { %4026 = vmatprep.subr.mxu0 %v12548_v63  ;;  %v12593_v63 = vld [vmem:[%s23978_s29 + $0x818] sm:$0xff] }
 0x589   :  { %4027 = vmatpush1.msra.mxu0 %v12547_v61 }
 0x58a   :  { %14652 = vmatmul.mubr.msk.f32.gmra.mxu1 %vm2286_vm0, %v18269_v27  ;;  %4028 = vmatprep.subr.mxu0 %v12545_v25  ;;  %v12539_v27 = vld [vmem:[%s23978_s29 + $0x668] sm:$0xff]  ;;  %v12592_v25 = vld [vmem:[%s23978_s29 + $0x810] sm:$0xff] }
 0x58b   :  { %14654 = vmatprep.mubr.msk.f32.mxu1 %vm15093_vm4, %v23973_v39  ;;  %4029 = vmatpush1.msra.mxu0 %v12544_v40  ;;  %v12590_v40 = vld [vmem:[%s23978_s29 + $0x800] sm:$0xff] }
 0x58c   :  { %4030 = vmatprep.subr.mxu0 %v12542_v36  ;;  %v12589_v36 = vld [vmem:[%s23978_s29 + $0x7f8] sm:$0xff] }
 0x58d   :  { %4031 = vmatpush1.msra.mxu0 %v12541_v34  ;;  %v12587_v34 = vld [vmem:[%s23978_s29 + $0x7e8] sm:$0xff] }
 0x58e   :  { %14655 = vmatmul.mubr.msk.f32.gmra.mxu1 %vm2286_vm0, %v18289_v52  ;;  %4032 = vmatprep.subr.mxu0 %v12539_v27  ;;  %v12629_v52 = vld [vmem:[%s23978_s29 + $0x938] sm:$0xff] }
 0x58f   :  { %14657 = vmatprep.mubr.msk.f32.mxu1 %vm15093_vm4, %v23973_v39  ;;  %4033 = vmatpush1.msra.mxu0 %v12538_v17 }
 0x590   :  { %4034 = vmatprep.subr.mxu0 %v12632_v30  ;;  %v12586_v30 = vld [vmem:[%s23978_s29 + $0x7e0] sm:$0xff] }
 0x591   :  { %4035 = vmatpush2.msra.mxu0 %v12631_v18 }
 0x592   :  { %14658 = vmatmul.mubr.msk.f32.gmra.mxu1 %vm2286_vm0, %v18304_v12  ;;  %4036 = vmatprep.subr.mxu0 %v12629_v52  ;;  %v12623_v12 = vld [vmem:[%s23978_s29 + $0x908] sm:$0xff] }
 0x593   :  { %4161 = vmatprep.mubr.f32.mxu1 %v23973_v39  ;;  %4037 = vmatpush2.msra.mxu0 %v12628_v20 }
 0x594   :  { %4038 = vmatprep.subr.mxu0 %v12626_v50 }
 0x595   :  { %4039 = vmatpush2.msra.mxu0 %v12625_v47 }
 0x596   :  { %4040 = vmatprep.subr.mxu0 %v12623_v12 }
 0x597   :  { %4041 = vmatpush2.msra.mxu0 %v12622_v22 }
 0x598   :  { %4042 = vmatprep.subr.mxu0 %v12620_v0 }
 0x599   :  { %4043 = vmatpush2.msra.mxu0 %v12619_v19 }
 0x59a   :  { %4044 = vmatprep.subr.mxu0 %v12617_v28 }
 0x59b   :  { %4045 = vmatpush2.msra.mxu0 %v12616_v8 }
 0x59c   :  { %4046 = vmatprep.subr.mxu0 %v12614_v41  ;;  %v12638_v41 = vld [vmem:[%s23978_s29 + $0x980] sm:$0xff] }
 0x59d   :  { %4047 = vmatpush2.msra.mxu0 %v12613_v49  ;;  %4125 = vmatprep.subr.mxu1 %v12638_v41  ;;  %v12637_v49 = vld [vmem:[%s23978_s29 + $0x978] sm:$0xff] }
 0x59e   :  { %4048 = vmatprep.subr.mxu0 %v12611_v55  ;;  %4126 = vmatpush1.msra.mxu1 %v12637_v49 }
 0x59f   :  { %4049 = vmatpush2.msra.mxu0 %v12610_v31  ;;  %v12635_v31 = vld [vmem:[%s23978_s29 + $0x968] sm:$0xff] }
 0x5a0   :  { %4050 = vmatprep.subr.mxu0 %v12608_v59  ;;  %v12634_v59 = vld [vmem:[%s23978_s29 + $0x960] sm:$0xff]  ;;  %4127 = vmatprep.subr.mxu1 %v12635_v31 }
 0x5a1   :  { %4051 = vmatpush2.msra.mxu0 %v12607_v38  ;;  %4128 = vmatpush1.msra.mxu1 %v12634_v59 }
 0x5a2   :  { %4052 = vmatprep.subr.mxu0 %v12605_v43 }
 0x5a3   :  { %4053 = vmatpush2.msra.mxu0 %v12604_v23  ;;  %v3084_v54 = vpop.f32.mrf.mxu1 }
 0x5a4   :  { %4054 = vmatprep.subr.mxu0 %v12602_v32  ;;  %v12633_v32 = vld [vmem:[%s23978_s29 + $0x958] sm:$0xff] }
 0x5a5   :  { %4055 = vmatpush2.msra.mxu0 %v12601_v29  ;;  %v18569_v27 = vpop.f32.mrf.mxu1  ;;  %13719 = vmatprep.subr.mxu1 %v12633_v32 }
 0x5a6   :  { %4056 = vmatprep.subr.mxu0 %v12599_v15  ;;  %23982 = vst [vmem:[#allocation16_spill] sm:$0xff] %v18569_v27 }
 0x5a7   :  { %4057 = vmatpush2.msra.mxu0 %v12598_v26  ;;  %v3090_v18 = vpop.f32.mrf.mxu1 }
 0x5a8   :  { %4058 = vmatprep.subr.mxu0 %v12596_v5 }
 0x5a9   :  { %v2989_v58 = vpop.f32.mrf.mxu0  ;;  %4059 = vmatpush2.msra.mxu0 %v12595_v21  ;;  %v18581_v47 = vpop.f32.mrf.mxu1 }
 0x5aa   :  { %v18555_v61 = vadd.f32 %v3084_v54, %v2989_v58  ;;  %4060 = vmatprep.subr.mxu0 %v12593_v63  ;;  %23985 = vst [vmem:[#allocation7_spill] sm:$0xff] %v18581_v47 }
 0x5ab   :  { %4061 = vmatpush2.msra.mxu0 %v12592_v25  ;;  %v18571_v17 = vpop.f32.mrf.mxu0 }
 0x5ac   :  { %23983 = vst [vmem:[#allocation6_spill] sm:$0xff] %v18571_v17  ;;  %4062 = vmatprep.subr.mxu0 %v12590_v40 }
 0x5ad   :  { %4063 = vmatpush2.msra.mxu0 %v12589_v36 }
 0x5ae   :  { %4064 = vmatprep.subr.mxu0 %v12587_v34 }
 0x5af   :  { %4065 = vmatpush2.msra.mxu0 %v12586_v30 }
 0x5b0   :  { %v2995_v52 = vpop.f32.mrf.mxu0  ;;  %14660 = vmatprep.subr.mxu0 %v23973_v39 }
 0x5b1   :  { %v18576_v20 = vadd.f32 %v3090_v18, %v2995_v52 }
 0x5b2   :  { %v18578_v50 = vpop.f32.mrf.mxu0 }
 0x5b3   :  { %23984 = vst [vmem:[#allocation17_spill] sm:$0xff] %v18578_v50 }
 0x5b5   :  { %v3001_v12 = vpop.f32.mrf.mxu0 }
 0x5b7   :  { %v18583_v0 = vpop.f32.mrf.mxu0 }
 0x5b8   :  { %23986 = vst [vmem:[#allocation18_spill] sm:$0xff] %v18583_v0 }
 0x5ba   :  { %v3096_v22 = vpop.f32.mrf.mxu1  ;;  %v3007_v8 = vpop.f32.mrf.mxu0 }
 0x5bb   :  { %v18585_v19 = vadd.f32 %v3096_v22, %v3001_v12 }
 0x5bc   :  { %v18587_v28 = vpop.f32.mrf.mxu1  ;;  %v18603_v23 = vpop.f32.mrf.mxu0 }
 0x5bd   :  { %23987 = vst [vmem:[#allocation8_spill] sm:$0xff] %v18587_v28  ;;  %23989 = vst [vmem:[#allocation9_spill] sm:$0xff] %v18603_v23 }
 0x5c0   :  { %v3102_v55 = vpop.f32.mrf.mxu1  ;;  %v3013_v15 = vpop.f32.mrf.mxu0 }
 0x5c1   :  { %v3103_v38 = vadd.f32 %v3102_v55, %v3007_v8 }
 0x5c2   :  { %v18601_v43 = vpop.f32.mrf.mxu1 }
 0x5c3   :  { %23988 = vst [vmem:[#allocation19_spill] sm:$0xff] %v18601_v43 }
 0x5c6   :  { %v3108_v29 = vpop.f32.mrf.mxu1 }
 0x5c7   :  { %v3109_v26 = vadd.f32 %v3108_v29, %v3013_v15 }
 0x5c8   :  { %v18608_v5 = vpop.f32.mrf.mxu1 }
 0x5c9   :  { %23990 = vst [vmem:[#allocation20_spill] sm:$0xff] %v18608_v5 }
 0x5cb   :  { %v13629_v21 = vpop.f32.mrf.mxu1 }
 0x5cd   :  { %v13630_v54 = vpop.f32.mrf.mxu1 }
 0x5ce   :  { %v13631_v52 = vadd.f32 %v13630_v54, %v13629_v21  ;;  %v18618_v54 = vpop.f32.mrf.mxu0 }
 0x5cf   :  { %v13632_v58 = vpop.f32.mrf.mxu1  ;;  %23991 = vst [vmem:[#allocation10_spill] sm:$0xff] %v18618_v54 }
 0x5d1   :  { %v13633_v63 = vpop.f32.mrf.mxu1 }
 0x5d2   :  { %v13634_v41 = vadd.f32 %v13633_v63, %v13632_v58 }
 0x5d3   :  { %v13635_v25 = vpop.f32.mrf.mxu1 }
 0x5d5   :  { %v13636_v40 = vpop.f32.mrf.mxu1 }
 0x5d6   :  { %v13637_v59 = vadd.f32 %v13636_v40, %v13635_v25 }
 0x5d7   :  { %v13638_v36 = vpop.f32.mrf.mxu1 }
 0x5d9   :  { %v13639_v34 = vpop.f32.mrf.mxu1 }
 0x5da   :  { %v13640_v5 = vadd.f32 %v13639_v34, %v13638_v36 }
 0x5db   :  { %v13641_v30 = vpop.f32.mrf.mxu1 }
 0x5dd   :  { %v13642_v18 = vpop.f32.mrf.mxu1 }
 0x5de   :  { %v13643_v21 = vadd.f32 %v13642_v18, %v13641_v30 }
 0x5df   :  { %v3269_v12 = vpop.f32.mrf.mxu1 }
 0x5e0   :  { %v18610_v22 = vadd.f32 %v13631_v52, %v3269_v12 }
 0x5e1   :  { %v14595_v8 = vpop.f32.mrf.mxu1 }
 0x5e3   :  { %v3274_v49 = vpop.f32.mrf.mxu1 }
 0x5e4   :  { %v18612_v55 = vadd.f32 %v13634_v41, %v3274_v49 }
 0x5e5   :  { %v14598_v31 = vpop.f32.mrf.mxu1 }
 0x5e7   :  { %v3279_v32 = vpop.f32.mrf.mxu1 }
 0x5e8   :  { %v18614_v29 = vadd.f32 %v13637_v59, %v3279_v32 }
 0x5e9   :  { %v14601_v15 = vpop.f32.mrf.mxu1 }
 0x5eb   :  { %v3284_v43 = vpop.f32.mrf.mxu1 }
 0x5ec   :  { %v18616_v23 = vadd.f32 %v13640_v5, %v3284_v43 }
 0x5ed   :  { %v14604_v28 = vpop.f32.mrf.mxu1 }
 0x5ef   :  { %v3289_v52 = vpop.f32.mrf.mxu1 }
 0x5f0   :  { %v18620_v12 = vadd.f32 %v13643_v21, %v3289_v52 }
 0x5f1   :  { %v14607_v58 = vpop.f32.mrf.mxu1  ;;  %v3374_v63 = vpop.f32.mrf.mxu0 }
 0x5f2   :  { %v3375_v8 = vadd.f32 %v3374_v63, %v18555_v61 }
 0x5f3   :  { %v18623_v25 = vpop.f32.mrf.mxu0  ;;  %v3469_v40 = vpop.f32.mrf.mxu1 }
 0x5f4   :  { %23992 = vst [vmem:[#allocation11_spill] sm:$0xff] %v18623_v25  ;;  %v18625_v41 = vadd.f32 %v3469_v40, %v3375_v8 }
 0x5f5   :  { %v3380_v36 = vpop.f32.mrf.mxu0  ;;  %v18627_v34 = vpop.f32.mrf.mxu1 }
 0x5f6   :  { %23993 = vst [vmem:[#allocation12_spill] sm:$0xff] %v18627_v34  ;;  %v3381_v28 = vadd.f32 %v3380_v36, %v18576_v20 }
 0x5f7   :  { %v18630_v43 = vpop.f32.mrf.mxu0 }
 0x5f8   :  { %23994 = vst [vmem:[#allocation21_spill] sm:$0xff] %v18630_v43 }
 0x5f9   :  { %v3475_v5 = vpop.f32.mrf.mxu1 }
 0x5fa   :  { %v18632_v30 = vadd.f32 %v3475_v5, %v3381_v28 }
 0x5fb   :  { %v3386_v18 = vpop.f32.mrf.mxu0  ;;  %v18634_v49 = vpop.f32.mrf.mxu1 }
 0x5fc   :  { %23995 = vst [vmem:[#allocation13_spill] sm:$0xff] %v18634_v49  ;;  %v3387_v61 = vadd.f32 %v3386_v18, %v18585_v19 }
 0x5fd   :  { %v18637_v31 = vpop.f32.mrf.mxu0 }
 0x5fe   :  { %23996 = vst [vmem:[#allocation3_spill] sm:$0xff] %v18637_v31 }
 0x5ff   :  { %v3481_v59 = vpop.f32.mrf.mxu1 }
 0x600   :  { %v18639_v32 = vadd.f32 %v3481_v59, %v3387_v61 }
 0x601   :  { %v3392_v15 = vpop.f32.mrf.mxu0  ;;  %v18641_v21 = vpop.f32.mrf.mxu1 }
 0x602   :  { %23997 = vst [vmem:[#allocation14_spill] sm:$0xff] %v18641_v21  ;;  %v3393_v52 = vadd.f32 %v3392_v15, %v3103_v38  ;;  %v12639_v38 = vld [vmem:[%s23978_s29 + $0x988] sm:$0xff] }
 0x603   :  { %v18643_v20 = vpop.f32.mrf.mxu0 }
 0x604   :  { %23998 = vst [vmem:[#allocation2_spill] sm:$0xff] %v18643_v20 }
 0x605   :  { %v3487_v58 = vpop.f32.mrf.mxu1 }
 0x606   :  { %v18645_v63 = vadd.f32 %v3487_v58, %v3393_v52 }
 0x607   :  { %v3398_v8 = vpop.f32.mrf.mxu0  ;;  %v18647_v40 = vpop.f32.mrf.mxu1 }
 0x608   :  { %23999 = vst [vmem:[#allocation4_spill] sm:$0xff] %v18645_v63  ;;  %24000 = vst [vmem:[#allocation15_spill] sm:$0xff] %v18647_v40  ;;  %v3399_v36 = vadd.f32 %v3398_v8, %v3109_v26  ;;  %v12636_v26 = vld [vmem:[%s23978_s29 + $0x970] sm:$0xff] }
 0x609   :  { %v18649_v19 = vpop.f32.mrf.mxu0 }
 0x60a   :  { %v3493_v28 = vpop.f32.mrf.mxu1  ;;  %24001 = vst [vmem:[#allocation5_spill] sm:$0xff] %v18649_v19 }
 0x60b   :  { %v18651_v5 = vadd.f32 %v3493_v28, %v3399_v36 }
 0x60c   :  { %v18677_v8 = vpop.f32.mrf.mxu1 }
 0x60d   :  { %24002 = vst [vmem:[#allocation22_spill] sm:$0xff] %v18651_v5  ;;  %v18653_v18 = vpop.f32.mrf.mxu0  ;;  %24003 = vst [vmem:[#allocation23_spill] sm:$0xff] %v18677_v8 }
 0x60f   :  { %v18655_v61 = vpop.f32.mrf.mxu0 }
 0x610   :  { %4066 = vmatprep.mubr.f32.mxu0 %v18655_v61 }
 0x611   :  { %v18661_v59 = vpop.f32.mrf.mxu0  ;;  %4067 = vmatmul.mubr.f32.vlgmr.msra.gmra.mxu0 %v18653_v18 }
 0x612   :  { %14661 = vmatpush3.msra.mxu0 %v12639_v38 }
 0x613   :  { %v18667_v15 = vpop.f32.mrf.mxu0  ;;  %14662 = vmatprep.subr.mxu0 %v23973_v39 }
 0x614   :  { %4072 = vmatprep.mubr.f32.mxu0 %v18667_v15  ;;  %14663 = vmatpush3.msra.mxu0 %v12636_v26 }
 0x615   :  { %v18671_v52 = vpop.f32.mrf.mxu0  ;;  %4073 = vmatmul.mubr.f32.gmra.mxu0 %v18661_v59  ;;  %14679 = vmatprep.subr.mxu0 %v23973_v39 }
 0x617   :  { %v18675_v58 = vpop.f32.mrf.mxu0 }
 0x618   :  { %4078 = vmatprep.mubr.f32.mxu0 %v18675_v58 }
 0x619   :  { %v18680_v36 = vpop.f32.mrf.mxu0  ;;  %4079 = vmatmul.mubr.f32.gmra.mxu0 %v18671_v52 }
 0x61a   :  { %v13683_v28 = vpop.f32.mrf.mxu1 }
 0x61b   :  { %v18683_v38 = vpop.f32.mrf.mxu0 }
 0x61c   :  { %v13684_v26 = vpop.f32.mrf.mxu1  ;;  %4084 = vmatprep.mubr.f32.mxu0 %v18683_v38 }
 0x61d   :  { %v13685_v19 = vadd.f32 %v13684_v26, %v13683_v28  ;;  %v18686_v40 = vpop.f32.mrf.mxu0  ;;  %4085 = vmatmul.mubr.f32.gmra.mxu0 %v18680_v36 }
 0x61e   :  { %v13686_v54 = vpop.f32.mrf.mxu1 }
 0x61f   :  { %v3565_v8 = vadd.f32 %v13685_v19, %v18610_v22  ;;  %v18690_v20 = vpop.f32.mrf.mxu0 }
 0x620   :  { %v13687_v21 = vpop.f32.mrf.mxu1  ;;  %4090 = vmatprep.mubr.f32.mxu0 %v18690_v20 }
 0x621   :  { %v13688_v31 = vadd.f32 %v13687_v21, %v13686_v54  ;;  %4091 = vmatmul.mubr.f32.gmra.mxu0 %v18686_v40 }
 0x622   :  { %v13689_v49 = vpop.f32.mrf.mxu1  ;;  %14664 = vmatprep.mubr.msk.f32.mxu0 %vm15093_vm4, %v23973_v39 }
 0x623   :  { %v3570_v28 = vadd.f32 %v13688_v31, %v18612_v55 }
 0x624   :  { %v13690_v26 = vpop.f32.mrf.mxu1 }
 0x625   :  { %v13691_v0 = vadd.f32 %v13690_v26, %v13689_v49 }
 0x626   :  { %v13692_v43 = vpop.f32.mrf.mxu1 }
 0x627   :  { %v3575_v34 = vadd.f32 %v13691_v0, %v18614_v29 }
 0x628   :  { %v13693_v22 = vpop.f32.mrf.mxu1 }
 0x629   :  { %v13694_v19 = vadd.f32 %v13693_v22, %v13692_v43 }
 0x62a   :  { %v13695_v47 = vpop.f32.mrf.mxu1 }
 0x62b   :  { %v3580_v50 = vadd.f32 %v13694_v19, %v18616_v23 }
 0x62c   :  { %v13696_v25 = vpop.f32.mrf.mxu1 }
 0x62d   :  { %v13697_v54 = vadd.f32 %v13696_v25, %v13695_v47 }
 0x62e   :  { %v3654_v21 = vpop.f32.mrf.mxu1 }
 0x62f   :  { %v18699_v27 = vadd.f32 %v3654_v21, %v3565_v8  ;;  %v3585_v17 = vadd.f32 %v13697_v54, %v18620_v12  ;;  %v12585_v12 = vld [vmem:[%s23978_s29 + $0x7d8] sm:$0xff] }
 0x630   :  { %v14614_v5 = vpop.f32.mrf.mxu1  ;;  %v12621_v54 = vld [vmem:[%s23978_s29 + $0x8f8] sm:$0xff] }
 0x632   :  { %v3659_v63 = vpop.f32.mrf.mxu1 }
 0x633   :  { %v18702_v55 = vadd.f32 %v3659_v63, %v3570_v28  ;;  %v12630_v63 = vld [vmem:[%s23978_s29 + $0x940] sm:$0xff]  ;;  %v12579_v28 = vld [vmem:[%s23978_s29 + $0x7a8] sm:$0xff] }
 0x634   :  { %v14617_v49 = vpop.f32.mrf.mxu1 }
 0x635   :  { %v12573_v49 = vld [vmem:[%s23978_s29 + $0x778] sm:$0xff] }
 0x636   :  { %v3664_v31 = vpop.f32.mrf.mxu1 }
 0x637   :  { %v18704_v26 = vadd.f32 %v3664_v31, %v3575_v34  ;;  %v12627_v34 = vld [vmem:[%s23978_s29 + $0x928] sm:$0xff] }
 0x638   :  { %v14620_v0 = vpop.f32.mrf.mxu1 }
 0x63a   :  { %v3669_v29 = vpop.f32.mrf.mxu1 }
 0x63b   :  { %v18706_v43 = vadd.f32 %v3669_v29, %v3580_v50  ;;  %v12582_v50 = vld [vmem:[%s23978_s29 + $0x7c0] sm:$0xff]  ;;  %v12615_v29 = vld [vmem:[%s23978_s29 + $0x8c8] sm:$0xff] }
 0x63c   :  { %v14623_v23 = vpop.f32.mrf.mxu1 }
 0x63d   :  { %v12567_v23 = vld [vmem:[%s23978_s29 + $0x748] sm:$0xff] }
 0x63e   :  { %v3674_v22 = vpop.f32.mrf.mxu1 }
 0x63f   :  { %v18708_v47 = vadd.f32 %v3674_v22, %v3585_v17 }
 0x640   :  { %v14626_v25 = vpop.f32.mrf.mxu1 }
 0x642   :  { %v3860_v5 = vpop.f32.mrf.mxu1 }
 0x643   :  { %12640 = vmatmul.mubr.msk.f32.vlgmr.msra.gmra.mxu1 %vm2907_vm5, %v3860_v5  ;;  %14665 = vmatmul.mubr.msk.f32.vlgmr.msra.gmra.mxu0 %vm2907_vm5, %v3860_v5 }
 0x644   :  { %13720 = vmatpush3.msra.mxu1 %v12585_v12  ;;  %14680 = vmatpush3.msk.msra.mxu0 %vm160_vm1, %v17197_v42  ;;  %v14647_v17 = vpop.f32.mrf.mxu1  ;;  %v12624_v42 = vld [vmem:[%s23978_s29 + $0x910] sm:$0xff]  ;;  %v12609_v12 = vld [vmem:[%s23978_s29 + $0x898] sm:$0xff] }
 0x645   :  { %13721 = vmatprep.subr.mxu1 %v12630_v63  ;;  %14681 = vmatprep.subr.mxu0 %v23973_v39  ;;  %v12561_v63 = vld [vmem:[%s23978_s29 + $0x718] sm:$0xff]  ;;  %v12555_v17 = vld [vmem:[%s23978_s29 + $0x6e8] sm:$0xff] }
 0x646   :  { %13722 = vmatpush3.msra.mxu1 %v12582_v50  ;;  %14682 = vmatpush3.msra.mxu0 %v17202_v2  ;;  %v18728_v8 = vpop.f32.mrf.mxu1  ;;  %v12576_v2 = vld [vmem:[%s23978_s29 + $0x790] sm:$0xff]  ;;  %v12558_v50 = vld [vmem:[%s23978_s29 + $0x700] sm:$0xff] }
 0x647   :  { %4167 = vmatprep.mubr.f32.mxu1 %v23973_v39  ;;  %13723 = vmatprep.subr.mxu1 %v12627_v34  ;;  %v12600_v34 = vld [vmem:[%s23978_s29 + $0x850] sm:$0xff] }
 0x648   :  { %14683 = vmatprep.subr.mxu0 %v23973_v39  ;;  %12641 = vmatmul.mubr.msk.f32.gmra.mxu1 %vm2907_vm5, %v18728_v8  ;;  %v14650_v19 = vpop.f32.mrf.mxu1 }
 0x649   :  { %13724 = vmatpush3.msra.mxu1 %v12579_v28  ;;  %14684 = vmatpush3.msra.mxu0 %v17213_v37  ;;  %v12618_v37 = vld [vmem:[%s23978_s29 + $0x8e0] sm:$0xff]  ;;  %v12549_v28 = vld [vmem:[%s23978_s29 + $0x6b8] sm:$0xff]  ;;  %v12591_v19 = vld [vmem:[%s23978_s29 + $0x808] sm:$0xff] }
 0x64a   :  { %13725 = vmatprep.subr.mxu1 %v12624_v42  ;;  %14685 = vmatprep.subr.mxu0 %v23973_v39  ;;  %v3870_v21 = vpop.f32.mrf.mxu1  ;;  %v12546_v42 = vld [vmem:[%s23978_s29 + $0x6a0] sm:$0xff] }
 0x64b   :  { %13726 = vmatpush3.msra.mxu1 %v12576_v2  ;;  %14686 = vmatpush3.msra.mxu0 %v17230_v56  ;;  %v12570_v56 = vld [vmem:[%s23978_s29 + $0x760] sm:$0xff]  ;;  %v12543_v2 = vld [vmem:[%s23978_s29 + $0x688] sm:$0xff] }
 0x64c   :  { %4173 = vmatprep.mubr.f32.mxu1 %v23973_v39  ;;  %13727 = vmatprep.subr.mxu1 %v12621_v54  ;;  %v14653_v31 = vpop.f32.mrf.mxu1  ;;  %v12588_v54 = vld [vmem:[%s23978_s29 + $0x7f0] sm:$0xff] }
 0x64d   :  { %14687 = vmatprep.subr.mxu0 %v23973_v39  ;;  %12642 = vmatmul.mubr.msk.f32.gmra.mxu1 %vm2907_vm5, %v3870_v21  ;;  %v12680_v31 = vld [vmem:[%s23978_s29 + $0x9f0] sm:$0xff] }
 0x64e   :  { %13728 = vmatpush3.msra.mxu1 %v12573_v49  ;;  %14688 = vmatpush3.msra.mxu0 %v17251_v9  ;;  %v3875_v0 = vpop.f32.mrf.mxu1  ;;  %v12612_v9 = vld [vmem:[%s23978_s29 + $0x8b0] sm:$0xff]  ;;  %v12650_v49 = vld [vmem:[%s23976_s13 + $0x78] sm:$0xff] }
 0x64f   :  { %13729 = vmatprep.subr.mxu1 %v12618_v37  ;;  %14689 = vmatprep.subr.mxu0 %v23973_v39  ;;  %v12678_v37 = vld [vmem:[%s23978_s29 + $0x9e0] sm:$0xff] }
 0x650   :  { %13730 = vmatpush3.msra.mxu1 %v12570_v56  ;;  %14690 = vmatpush3.msra.mxu0 %v17276_v10  ;;  %v14656_v22 = vpop.f32.mrf.mxu1  ;;  %v12564_v10 = vld [vmem:[%s23978_s29 + $0x730] sm:$0xff]  ;;  %v12677_v56 = vld [vmem:[%s23978_s29 + $0x9d8] sm:$0xff] }
 0x651   :  { %4179 = vmatprep.mubr.f32.mxu1 %v23973_v39  ;;  %13731 = vmatprep.subr.mxu1 %v12615_v29  ;;  %v12674_v29 = vld [vmem:[%s23978_s29 + $0x9c0] sm:$0xff]  ;;  %v12671_v22 = vld [vmem:[%s23978_s29 + $0x9a8] sm:$0xff] }
 0x652   :  { %14691 = vmatprep.subr.mxu0 %v23973_v39  ;;  %12643 = vmatmul.mubr.msk.f32.gmra.mxu1 %vm2907_vm5, %v3875_v0  ;;  %v3880_v25 = vpop.f32.mrf.mxu1 }
 0x653   :  { %13732 = vmatpush3.msra.mxu1 %v12567_v23  ;;  %14692 = vmatpush3.msra.mxu0 %v23979_v3  ;;  %v12606_v3 = vld [vmem:[%s23978_s29 + $0x880] sm:$0xff]  ;;  %v12672_v23 = vld [vmem:[%s23978_s29 + $0x9b0] sm:$0xff] }
 0x654   :  { %13733 = vmatprep.subr.mxu1 %v12612_v9  ;;  %14693 = vmatprep.subr.mxu0 %v23973_v39  ;;  %v14659_v5 = vpop.f32.mrf.mxu1  ;;  %v12669_v9 = vld [vmem:[%s23978_s29 + $0x998] sm:$0xff] }
 0x655   :  { %13734 = vmatpush3.msra.mxu1 %v12564_v10  ;;  %14694 = vmatpush3.msra.mxu0 %v23980_v6  ;;  %v12603_v6 = vld [vmem:[%s23978_s29 + $0x868] sm:$0xff]  ;;  %v12668_v10 = vld [vmem:[%s23978_s29 + $0x990] sm:$0xff] }
 0x656   :  { %4185 = vmatprep.mubr.f32.mxu1 %v23973_v39  ;;  %13735 = vmatprep.subr.mxu1 %v12609_v12  ;;  %v12761_v12 = vld [vmem:[%s23978_s29 + $0xc78] sm:$0xff]  ;;  %v12759_v5 = vld [vmem:[%s23978_s29 + $0xc68] sm:$0xff] }
 0x657   :  { %14695 = vmatprep.subr.mxu0 %v23973_v39  ;;  %12644 = vmatmul.mubr.msk.f32.gmra.mxu1 %vm2907_vm5, %v3880_v25 }
 0x658   :  { %13736 = vmatpush3.msra.mxu1 %v12561_v63  ;;  %14696 = vmatpush3.msra.mxu0 %v23981_v44  ;;  %v12552_v44 = vld [vmem:[%s23978_s29 + $0x6d0] sm:$0xff]  ;;  %v12758_v63 = vld [vmem:[%s23978_s29 + $0xc60] sm:$0xff] }
 0x659   :  { %13737 = vmatprep.subr.mxu1 %v12606_v3  ;;  %4256 = vmatprep.mubr.f32.mxu1 %v18655_v61  ;;  %v12597_v61 = vld [vmem:[%s23978_s29 + $0x838] sm:$0xff]  ;;  %v12756_v3 = vld [vmem:[%s23978_s29 + $0xc50] sm:$0xff] }
 0x65a   :  { %14667 = vmatprep.mubr.msk.f32.mxu0 %vm15093_vm4, %v23973_v39  ;;  %13738 = vmatpush3.msra.mxu1 %v12558_v50  ;;  %v12755_v50 = vld [vmem:[%s23978_s29 + $0xc48] sm:$0xff] }
 0x65b   :  { %14668 = vmatmul.mubr.msk.f32.gmra.mxu0 %vm2907_vm5, %v18728_v8  ;;  %13739 = vmatprep.subr.mxu1 %v12603_v6  ;;  %v12594_v8 = vld [vmem:[%s23978_s29 + $0x820] sm:$0xff]  ;;  %v12753_v6 = vld [vmem:[%s23978_s29 + $0xc38] sm:$0xff] }
 0x65c   :  { %13740 = vmatpush3.msra.mxu1 %v12555_v17  ;;  %14670 = vmatprep.mubr.msk.f32.mxu0 %vm15093_vm4, %v23973_v39  ;;  %v12768_v17 = vld [vmem:[%s23978_s29 + $0xcb0] sm:$0xff] }
 0x65d   :  { %13741 = vmatprep.subr.mxu1 %v12600_v34  ;;  %v12752_v34 = vld [vmem:[%s23978_s29 + $0xc30] sm:$0xff]  ;;  %4834 = vmatprep.subr.mxu0 %v12768_v17 }
 0x65e   :  { %13742 = vmatpush3.msra.mxu1 %v12552_v44  ;;  %v12750_v44 = vld [vmem:[%s23978_s29 + $0xc20] sm:$0xff] }
 0x65f   :  { %14671 = vmatmul.mubr.msk.f32.gmra.mxu0 %vm2907_vm5, %v3870_v21  ;;  %13743 = vmatprep.subr.mxu1 %v12597_v61  ;;  %v12540_v21 = vld [vmem:[%s23978_s29 + $0x670] sm:$0xff]  ;;  %v12767_v61 = vld [vmem:[%s23978_s29 + $0xca8] sm:$0xff] }
 0x660   :  { %13744 = vmatpush3.msra.mxu1 %v12549_v28  ;;  %14673 = vmatprep.mubr.msk.f32.mxu0 %vm15093_vm4, %v23973_v39  ;;  %v12765_v28 = vld [vmem:[%s23978_s29 + $0xc98] sm:$0xff] }
 0x661   :  { %13745 = vmatprep.subr.mxu1 %v12594_v8  ;;  %v12749_v8 = vld [vmem:[%s23978_s29 + $0xc18] sm:$0xff] }
 0x662   :  { %13746 = vmatpush3.msra.mxu1 %v12546_v42  ;;  %v12764_v42 = vld [vmem:[%s23978_s29 + $0xc90] sm:$0xff] }
 0x663   :  { %14674 = vmatmul.mubr.msk.f32.gmra.mxu0 %vm2907_vm5, %v3875_v0  ;;  %13747 = vmatprep.subr.mxu1 %v12591_v19  ;;  %v12675_v0 = vld [vmem:[%s23978_s29 + $0x9c8] sm:$0xff] }
 0x664   :  { %13748 = vmatpush3.msra.mxu1 %v12543_v2  ;;  %14676 = vmatprep.mubr.msk.f32.mxu0 %vm15093_vm4, %v23973_v39  ;;  %v12763_v19 = vld [vmem:[%s23978_s29 + $0xc88] sm:$0xff] }
 0x665   :  { %13749 = vmatprep.subr.mxu1 %v12588_v54  ;;  %v12747_v2 = vld [vmem:[%s23978_s29 + $0xc08] sm:$0xff]  ;;  %v12746_v54 = vld [vmem:[%s23978_s29 + $0xc00] sm:$0xff] }
 0x666   :  { %13750 = vmatpush3.msra.mxu1 %v12540_v21  ;;  %v12744_v21 = vld [vmem:[%s23978_s29 + $0xbf0] sm:$0xff] }
 0x667   :  { %14677 = vmatmul.mubr.msk.f32.gmra.mxu0 %vm2907_vm5, %v3880_v25  ;;  %4257 = vmatmul.mubr.f32.vlgmr.msra.gmra.mxu1 %v18653_v18  ;;  %v12690_v18 = vld [vmem:[%s23978_s29 + $0xa40] sm:$0xff] }
 0x668   :  { %12655 = vmatprep.subr.msk.mxu1 %vm160_vm1, %v17204_v60  ;;  %4261 = vmatprep.mubr.f32.mxu1 %v18667_v15  ;;  %v12651_v60 = vld [vmem:[%s23976_s13 + $0x80] sm:$0xff]  ;;  %v12687_v15 = vld [vmem:[%s23978_s29 + $0xa28] sm:$0xff] }
 0x669   :  { %12656 = vmatpush1.msk.msra.mxu1 %vm160_vm1, %v17207_v11  ;;  %14697 = vmatprep.mubr.msk.f32.mxu0 %vm15093_vm4, %v23973_v39  ;;  %v12652_v11 = vld [vmem:[%s23976_s13 + $0x88] sm:$0xff]  ;;  %v12762_v25 = vld [vmem:[%s23978_s29 + $0xc80] sm:$0xff] }
 0x66a   :  { %4424 = vmatprep.subr.mxu1 %v17220_v35  ;;  %v12653_v35 = vld [vmem:[%s23976_s13 + $0x90] sm:$0xff] }
 0x66b   :  { %4425 = vmatpush1.msra.mxu1 %v17226_v1  ;;  %14698 = vmatmul.mubr.msk.f32.vlgmr.msra.gmra.mxu0 %vm2286_vm0, %v12650_v49  ;;  %v12714_v1 = vld [vmem:[%s23978_s29 + $0xb00] sm:$0xff] }
 0x66c   :  { %4262 = vmatmul.mubr.f32.gmra.mxu1 %v18661_v59  ;;  %4426 = vmatprep.subr.mxu1 %v17238_v13  ;;  %v12654_v13 = vld [vmem:[%s23976_s13 + $0x98] sm:$0xf]  ;;  %s24069_s13 = sld [smem:[#allocation49_spill]] }
 0x66d   :  { %4266 = vmatprep.mubr.f32.mxu1 %v18675_v58  ;;  %4427 = vmatpush1.msra.mxu1 %v17244_v7  ;;  %v12713_v7 = vld [vmem:[%s23978_s29 + $0xaf8] sm:$0xff]  ;;  %v12684_v58 = vld [vmem:[%s23978_s29 + $0xa10] sm:$0xff] }
 0x66e   :  { %4428 = vmatprep.subr.mxu1 %v17261_v14  ;;  %14700 = vmatprep.mubr.msk.f32.mxu0 %vm15093_vm4, %v23973_v39  ;;  %v12711_v14 = vld [vmem:[%s23978_s29 + $0xae8] sm:$0xff]  ;;  %v12689_v59 = vld [vmem:[%s23978_s29 + $0xa38] sm:$0xff] }
 0x66f   :  { %4429 = vmatpush1.msra.mxu1 %v17269_v4  ;;  %14701 = vmatmul.mubr.msk.f32.gmra.mxu0 %vm2286_vm0, %v12651_v60  ;;  %v12710_v4 = vld [vmem:[%s23978_s29 + $0xae0] sm:$0xff] }
 0x670   :  { %4267 = vmatmul.mubr.f32.gmra.mxu1 %v18671_v52  ;;  %4430 = vmatprep.subr.mxu1 %v17286_v48  ;;  %v12708_v48 = vld [vmem:[%s23978_s29 + $0xad0] sm:$0xff]  ;;  %v12686_v52 = vld [vmem:[%s23978_s29 + $0xa20] sm:$0xff] }
 0x671   :  { %4271 = vmatprep.mubr.f32.mxu1 %v18683_v38  ;;  %4431 = vmatpush1.msra.mxu1 %v17294_v53  ;;  %v12707_v53 = vld [vmem:[%s23978_s29 + $0xac8] sm:$0xff]  ;;  %v12681_v38 = vld [vmem:[%s23978_s29 + $0x9f8] sm:$0xff] }
 0x672   :  { %4432 = vmatprep.subr.mxu1 %v17311_v57  ;;  %14703 = vmatprep.mubr.msk.f32.mxu0 %vm15093_vm4, %v23973_v39  ;;  %v12705_v57 = vld [vmem:[%s23978_s29 + $0xab8] sm:$0xff] }
 0x673   :  { %4433 = vmatpush1.msra.mxu1 %v17319_v24  ;;  %14704 = vmatmul.mubr.msk.f32.gmra.mxu0 %vm2286_vm0, %v12652_v11  ;;  %v12704_v24 = vld [vmem:[%s23978_s29 + $0xab0] sm:$0xff] }
 0x674   :  { %4272 = vmatmul.mubr.f32.gmra.mxu1 %v18680_v36  ;;  %4434 = vmatprep.subr.mxu1 %v17335_v45  ;;  %v12702_v45 = vld [vmem:[%s23978_s29 + $0xaa0] sm:$0xff]  ;;  %v12683_v36 = vld [vmem:[%s23978_s29 + $0xa08] sm:$0xff] }
 0x675   :  { %4276 = vmatprep.mubr.f32.mxu1 %v18690_v20  ;;  %4435 = vmatpush1.msra.mxu1 %v17346_v62  ;;  %v12701_v62 = vld [vmem:[%s23978_s29 + $0xa98] sm:$0xff] }
 0x676   :  { %4436 = vmatprep.subr.mxu1 %v17361_v46  ;;  %14706 = vmatprep.mubr.msk.f32.mxu0 %vm15093_vm4, %v23973_v39  ;;  %v12699_v46 = vld [vmem:[%s23978_s29 + $0xa88] sm:$0xff]  ;;  %v12693_v20 = vld [vmem:[%s23978_s29 + $0xa58] sm:$0xff] }
 0x677   :  { %4437 = vmatpush1.msra.mxu1 %v17368_v51  ;;  %14707 = vmatmul.mubr.msk.f32.gmra.mxu0 %vm2286_vm0, %v12653_v35  ;;  %v12698_v51 = vld [vmem:[%s23978_s29 + $0xa80] sm:$0xff] }
 0x678   :  { %4277 = vmatmul.mubr.f32.gmra.mxu1 %v18686_v40  ;;  %4438 = vmatprep.subr.mxu1 %v17374_v33  ;;  %v12696_v33 = vld [vmem:[%s23978_s29 + $0xa70] sm:$0xff] }
 0x679   :  { %4439 = vmatpush1.msra.mxu1 %v17380_v16  ;;  %4472 = vmatprep.mubr.f32.mxu1 %v23973_v39  ;;  %v12695_v16 = vld [vmem:[%s23978_s29 + $0xa68] sm:$0xff]  ;;  %v12692_v40 = vld [vmem:[%s23978_s29 + $0xa50] sm:$0xff] }
 0x67a   :  { %14709 = vmatprep.mubr.msk.f32.mxu0 %vm15093_vm4, %v23973_v39  ;;  %4711 = vmatprep.subr.mxu1 %v12714_v1  ;;  %v12737_v1 = vld [vmem:[%s23978_s29 + $0xbb8] sm:$0xff] }
 0x67b   :  { %14710 = vmatmul.mubr.msk.f32.gmra.mxu0 %vm2286_vm0, %v12654_v13 }
 0x67c   :  { %12657 = vmatmul.mubr.msk.f32.vlgmr.msra.gmra.mxu1 %vm2286_vm0, %v12650_v49  ;;  %4870 = vmatprep.mubr.f32.mxu0 %v23973_v39  ;;  %v12743_v49 = vld [vmem:[%s23978_s29 + $0xbe8] sm:$0xff] }
 0x67d   :  { %4478 = vmatprep.mubr.f32.mxu1 %v23973_v39  ;;  %4712 = vmatpush1.msra.mxu1 %v12713_v7  ;;  %v12734_v7 = vld [vmem:[%s23978_s29 + $0xba0] sm:$0xff] }
 0x67e   :  { %4713 = vmatprep.subr.mxu1 %v12711_v14  ;;  %4835 = vmatpush1.msra.mxu0 %v12767_v61  ;;  %v12732_v14 = vld [vmem:[%s23978_s29 + $0xb90] sm:$0xff] }
 0x67f   :  { %4714 = vmatpush1.msra.mxu1 %v12710_v4  ;;  %4836 = vmatprep.subr.mxu0 %v12765_v28  ;;  %v12731_v4 = vld [vmem:[%s23978_s29 + $0xb88] sm:$0xff] }
 0x680   :  { %12658 = vmatmul.mubr.msk.f32.gmra.mxu1 %vm2286_vm0, %v12651_v60  ;;  %4715 = vmatprep.subr.mxu1 %v12708_v48  ;;  %v12741_v60 = vld [vmem:[%s23978_s29 + $0xbd8] sm:$0xff] }
 0x681   :  { %4484 = vmatprep.mubr.f32.mxu1 %v23973_v39  ;;  %4716 = vmatpush1.msra.mxu1 %v12707_v53  ;;  %v12729_v48 = vld [vmem:[%s23978_s29 + $0xb78] sm:$0xff]  ;;  %v12728_v53 = vld [vmem:[%s23978_s29 + $0xb70] sm:$0xff] }
 0x682   :  { %4717 = vmatprep.subr.mxu1 %v12705_v57  ;;  %4837 = vmatpush1.msra.mxu0 %v12764_v42  ;;  %v12726_v57 = vld [vmem:[%s23978_s29 + $0xb60] sm:$0xff] }
 0x683   :  { %4718 = vmatpush1.msra.mxu1 %v12704_v24  ;;  %13787 = vmatprep.subr.mxu0 %v12763_v19  ;;  %v12725_v24 = vld [vmem:[%s23978_s29 + $0xb58] sm:$0xff] }
 0x684   :  { %12659 = vmatmul.mubr.msk.f32.gmra.mxu1 %vm2286_vm0, %v12652_v11  ;;  %4719 = vmatprep.subr.mxu1 %v12702_v45  ;;  %v12740_v11 = vld [vmem:[%s23978_s29 + $0xbd0] sm:$0xff]  ;;  %v12723_v45 = vld [vmem:[%s23978_s29 + $0xb48] sm:$0xff] }
 0x685   :  { %4490 = vmatprep.mubr.f32.mxu1 %v23973_v39  ;;  %4720 = vmatpush1.msra.mxu1 %v12701_v62  ;;  %v12722_v62 = vld [vmem:[%s23978_s29 + $0xb40] sm:$0xff] }
 0x686   :  { %4721 = vmatprep.subr.mxu1 %v12699_v46  ;;  %v12720_v46 = vld [vmem:[%s23978_s29 + $0xb30] sm:$0xff] }
 0x687   :  { %4722 = vmatpush1.msra.mxu1 %v12698_v51  ;;  %v12719_v51 = vld [vmem:[%s23978_s29 + $0xb28] sm:$0xff] }
 0x688   :  { %12660 = vmatmul.mubr.msk.f32.gmra.mxu1 %vm2286_vm0, %v12653_v35  ;;  %4723 = vmatprep.subr.mxu1 %v12696_v33  ;;  %v12738_v35 = vld [vmem:[%s23978_s29 + $0xbc0] sm:$0xff]  ;;  %v12717_v33 = vld [vmem:[%s23978_s29 + $0xb18] sm:$0xff] }
 0x689   :  { %4496 = vmatprep.mubr.f32.mxu1 %v23973_v39  ;;  %4724 = vmatpush1.msra.mxu1 %v12695_v16  ;;  %v12716_v16 = vld [vmem:[%s23978_s29 + $0xb10] sm:$0xff] }
 0x68a   :  { %4725 = vmatprep.subr.mxu1 %v12693_v20 }
 0x68b   :  { %4726 = vmatpush1.msra.mxu1 %v12692_v40 }
 0x68c   :  { %12661 = vmatmul.mubr.msk.f32.gmra.mxu1 %vm2286_vm0, %v12654_v13  ;;  %4727 = vmatprep.subr.mxu1 %v12690_v18  ;;  %v12735_v13 = vld [vmem:[%s23978_s29 + $0xba8] sm:$0xff] }
 0x68d   :  { %4728 = vmatpush1.msra.mxu1 %v12689_v59 }
 0x68e   :  { %4729 = vmatprep.subr.mxu1 %v12687_v15 }
 0x68f   :  { %4730 = vmatpush1.msra.mxu1 %v12686_v52 }
 0x690   :  { %4731 = vmatprep.subr.mxu1 %v12684_v58 }
 0x691   :  { %4732 = vmatpush1.msra.mxu1 %v12683_v36 }
 0x692   :  { %4733 = vmatprep.subr.mxu1 %v12681_v38 }
 0x693   :  { %4734 = vmatpush1.msra.mxu1 %v12680_v31 }
 0x694   :  { %4735 = vmatprep.subr.mxu1 %v12678_v37 }
 0x695   :  { %4736 = vmatpush1.msra.mxu1 %v12677_v56 }
 0x696   :  { %4737 = vmatprep.subr.mxu1 %v12675_v0 }
 0x697   :  { %4738 = vmatpush1.msra.mxu1 %v12674_v29 }
 0x698   :  { %4739 = vmatprep.subr.mxu1 %v12672_v23 }
 0x699   :  { %4740 = vmatpush1.msra.mxu1 %v12671_v22 }
 0x69a   :  { %4741 = vmatprep.subr.mxu1 %v12669_v9 }
 0x69b   :  { %4742 = vmatpush1.msra.mxu1 %v12668_v10 }
 0x69c   :  { %4743 = vmatprep.subr.mxu1 %v12762_v25 }
 0x69d   :  { %4744 = vmatpush2.msra.mxu1 %v12761_v12 }
 0x69e   :  { %4745 = vmatprep.subr.mxu1 %v12759_v5 }
 0x69f   :  { %4746 = vmatpush2.msra.mxu1 %v12758_v63 }
 0x6a0   :  { %4747 = vmatprep.subr.mxu1 %v12756_v3 }
 0x6a1   :  { %4748 = vmatpush2.msra.mxu1 %v12755_v50 }
 0x6a2   :  { %4749 = vmatprep.subr.mxu1 %v12753_v6 }
 0x6a3   :  { %4750 = vmatpush2.msra.mxu1 %v12752_v34 }
 0x6a4   :  { %4751 = vmatprep.subr.mxu1 %v12750_v44 }
 0x6a5   :  { %4752 = vmatpush2.msra.mxu1 %v12749_v8  ;;  %v24005_v8 = vld [vmem:[#allocation22_spill] sm:$0xff] }
 0x6a6   :  { %4753 = vmatprep.subr.mxu1 %v12747_v2 }
 0x6a7   :  { %4754 = vmatpush2.msra.mxu1 %v12746_v54 }
 0x6a8   :  { %4755 = vmatprep.subr.mxu1 %v12744_v21 }
 0x6a9   :  { %4756 = vmatpush2.msra.mxu1 %v12743_v49 }
 0x6aa   :  { %4757 = vmatprep.subr.mxu1 %v12741_v60 }
 0x6ab   :  { %4758 = vmatpush2.msra.mxu1 %v12740_v11 }
 0x6ac   :  { %4759 = vmatprep.subr.mxu1 %v12738_v35 }
 0x6ad   :  { %4760 = vmatpush2.msra.mxu1 %v12737_v1 }
 0x6ae   :  { %4761 = vmatprep.subr.mxu1 %v12735_v13 }
 0x6af   :  { %4762 = vmatpush2.msra.mxu1 %v12734_v7  ;;  %v12715_v7 = vld [vmem:[%s23978_s29 + $0xb08] sm:$0xff] }
 0x6b0   :  { %4763 = vmatprep.subr.mxu1 %v12732_v14 }
 0x6b1   :  { %4764 = vmatpush2.msra.mxu1 %v12731_v4  ;;  %v12760_v4 = vld [vmem:[%s23978_s29 + $0xc70] sm:$0xff] }
 0x6b2   :  { %4765 = vmatprep.subr.mxu1 %v12729_v48 }
 0x6b3   :  { %4766 = vmatpush2.msra.mxu1 %v12728_v53 }
 0x6b4   :  { %4767 = vmatprep.subr.mxu1 %v12726_v57  ;;  %v12712_v57 = vld [vmem:[%s23978_s29 + $0xaf0] sm:$0xff] }
 0x6b5   :  { %4768 = vmatpush2.msra.mxu1 %v12725_v24  ;;  %v12757_v24 = vld [vmem:[%s23978_s29 + $0xc58] sm:$0xff] }
 0x6b6   :  { %4769 = vmatprep.subr.mxu1 %v12723_v45 }
 0x6b7   :  { %4770 = vmatpush2.msra.mxu1 %v12722_v62 }
 0x6b8   :  { %4771 = vmatprep.subr.mxu1 %v12720_v46  ;;  %v12709_v46 = vld [vmem:[%s23978_s29 + $0xad8] sm:$0xff] }
 0x6b9   :  { %4772 = vmatpush2.msra.mxu1 %v12719_v51 }
 0x6ba   :  { %4773 = vmatprep.subr.mxu1 %v12717_v33 }
 0x6bb   :  { %4774 = vmatpush2.msra.mxu1 %v12716_v16  ;;  %v12754_v16 = vld [vmem:[%s23978_s29 + $0xc40] sm:$0xff] }
 0x6bc   :  { %14712 = vmatprep.subr.mxu1 %v23973_v39 }
 0x6d1   :  { %v4068_v20 = vpop.f32.mrf.mxu0 }
 0x6d3   :  { %v19126_v40 = vpop.f32.mrf.mxu0 }
 0x6d5   :  { %v4074_v18 = vpop.f32.mrf.mxu0 }
 0x6d7   :  { %v19128_v59 = vpop.f32.mrf.mxu0 }
 0x6d9   :  { %v4080_v15 = vpop.f32.mrf.mxu0 }
 0x6db   :  { %v19130_v52 = vpop.f32.mrf.mxu0 }
 0x6dd   :  { %v4086_v58 = vpop.f32.mrf.mxu0 }
 0x6df   :  { %v19132_v36 = vpop.f32.mrf.mxu0 }
 0x6e1   :  { %v4092_v38 = vpop.f32.mrf.mxu0 }
 0x6e3   :  { %v19134_v31 = vpop.f32.mrf.mxu0 }
 0x703   :  { %v4163_v37 = vpop.f32.mrf.mxu1  ;;  %v4348_v56 = vpop.f32.mrf.mxu0 }
 0x704   :  { %v4164_v0 = vadd.f32 %v4163_v37, %v4068_v20 }
 0x705   :  { %v19136_v29 = vpop.f32.mrf.mxu1  ;;  %v14666_v23 = vpop.f32.mrf.mxu0 }
 0x706   :  { %v19139_v22 = vadd.f32 %v4164_v0, %v18625_v41  ;;  %v24004_v41 = vld [vmem:[#allocation4_spill] sm:$0xff] }
 0x707   :  { %v12748_v23 = vld [vmem:[%s23978_s29 + $0xc10] sm:$0xff] }
 0x708   :  { %v4169_v9 = vpop.f32.mrf.mxu1 }
 0x709   :  { %v4170_v10 = vadd.f32 %v4169_v9, %v4074_v18 }
 0x70a   :  { %v19141_v25 = vpop.f32.mrf.mxu1 }
 0x70b   :  { %v19144_v12 = vadd.f32 %v4170_v10, %v18632_v30 }
 0x70d   :  { %v4175_v5 = vpop.f32.mrf.mxu1 }
 0x70e   :  { %v4176_v63 = vadd.f32 %v4175_v5, %v4080_v15  ;;  %v12706_v15 = vld [vmem:[%s23978_s29 + $0xac0] sm:$0xff] }
 0x70f   :  { %v19146_v3 = vpop.f32.mrf.mxu1 }
 0x710   :  { %v19149_v50 = vadd.f32 %v4176_v63, %v18639_v32  ;;  %v12700_v63 = vld [vmem:[%s23978_s29 + $0xa90] sm:$0xff] }
 0x712   :  { %v4181_v6 = vpop.f32.mrf.mxu1 }
 0x713   :  { %v4182_v17 = vadd.f32 %v4181_v6, %v4086_v58 }
 0x714   :  { %v19151_v34 = vpop.f32.mrf.mxu1 }
 0x715   :  { %v19154_v44 = vadd.f32 %v4182_v17, %v24004_v41  ;;  %v12745_v17 = vld [vmem:[%s23978_s29 + $0xbf8] sm:$0xff] }
 0x717   :  { %v4187_v61 = vpop.f32.mrf.mxu1 }
 0x718   :  { %v4188_v28 = vadd.f32 %v4187_v61, %v4092_v38  ;;  %v12697_v61 = vld [vmem:[%s23978_s29 + $0xa78] sm:$0xff] }
 0x719   :  { %v19161_v32 = vpop.f32.mrf.mxu1 }
 0x71a   :  { %v19157_v42 = vadd.f32 %v4188_v28, %v24005_v8  ;;  %v12742_v8 = vld [vmem:[%s23978_s29 + $0xbe0] sm:$0xff] }
 0x71b   :  { %v4353_v30 = vpop.f32.mrf.mxu0 }
 0x71d   :  { %v14669_v19 = vpop.f32.mrf.mxu0 }
 0x71f   :  { %v4358_v2 = vpop.f32.mrf.mxu0 }
 0x721   :  { %v14672_v54 = vpop.f32.mrf.mxu0 }
 0x722   :  { %v12694_v54 = vld [vmem:[%s23978_s29 + $0xa60] sm:$0xff] }
 0x723   :  { %v19159_v21 = vpop.f32.mrf.mxu0 }
 0x725   :  { %v14675_v49 = vpop.f32.mrf.mxu0 }
 0x727   :  { %v19163_v60 = vpop.f32.mrf.mxu0  ;;  %v13751_v11 = vpop.f32.mrf.mxu1 }
 0x729   :  { %v14678_v35 = vpop.f32.mrf.mxu0  ;;  %v13752_v1 = vpop.f32.mrf.mxu1 }
 0x72a   :  { %v13753_v13 = vadd.f32 %v13752_v1, %v13751_v11  ;;  %v12739_v11 = vld [vmem:[%s23978_s29 + $0xbc8] sm:$0xff] }
 0x72b   :  { %v19168_v14 = vpop.f32.mrf.mxu0  ;;  %v12691_v1 = vld [vmem:[%s23978_s29 + $0xa48] sm:$0xff] }
 0x72c   :  { %v4349_v48 = vadd.f32 %v13753_v13, %v4348_v56  ;;  %v13754_v53 = vpop.f32.mrf.mxu1  ;;  %12770 = vmatmul.mubr.msk.f32.vlgmr.msra.gmra.mxu0 %vm2907_vm5, %v19168_v14  ;;  %v12703_v56 = vld [vmem:[%s23978_s29 + $0xaa8] sm:$0xff] }
 0x72d   :  { %13788 = vmatpush3.msra.mxu0 %v12715_v7  ;;  %v14699_v45 = vpop.f32.mrf.mxu0  ;;  %4876 = vmatprep.mubr.f32.mxu0 %v23973_v39 }
 0x72e   :  { %13789 = vmatprep.subr.mxu0 %v12760_v4  ;;  %v13755_v62 = vpop.f32.mrf.mxu1  ;;  %v19186_v51 = vadd.f32 %v4349_v48, %v18699_v27  ;;  %v12751_v27 = vld [vmem:[%s23978_s29 + $0xc28] sm:$0xff] }
 0x72f   :  { %v13756_v33 = vadd.f32 %v13755_v62, %v13754_v53  ;;  %13790 = vmatpush3.msra.mxu0 %v12712_v57  ;;  %v19191_v20 = vpop.f32.mrf.mxu0  ;;  %v12688_v53 = vld [vmem:[%s23978_s29 + $0xa30] sm:$0xff]  ;;  %v12685_v62 = vld [vmem:[%s23978_s29 + $0xa18] sm:$0xff] }
 0x730   :  { %13791 = vmatprep.subr.mxu0 %v12757_v24  ;;  %v13757_v18 = vpop.f32.mrf.mxu1  ;;  %12771 = vmatmul.mubr.msk.f32.gmra.mxu0 %vm2907_vm5, %v19191_v20  ;;  %v12733_v24 = vld [vmem:[%s23978_s29 + $0xb98] sm:$0xff] }
 0x731   :  { %v4354_v58 = vadd.f32 %v13756_v33, %v4353_v30  ;;  %13792 = vmatpush3.msra.mxu0 %v12709_v46  ;;  %v14702_v38 = vpop.f32.mrf.mxu0  ;;  %4882 = vmatprep.mubr.f32.mxu0 %v23973_v39  ;;  %v12730_v46 = vld [vmem:[%s23978_s29 + $0xb80] sm:$0xff] }
 0x732   :  { %13793 = vmatprep.subr.mxu0 %v12754_v16  ;;  %v13758_v37 = vpop.f32.mrf.mxu1  ;;  %v12766_v38 = vld [vmem:[%s23978_s29 + $0xca0] sm:$0xff] }
 0x733   :  { %v13759_v0 = vadd.f32 %v13758_v37, %v13757_v18  ;;  %13794 = vmatpush3.msra.mxu0 %v12706_v15  ;;  %v19208_v9 = vpop.f32.mrf.mxu0  ;;  %v19211_v10 = vadd.f32 %v4354_v58, %v18702_v55  ;;  %v12682_v18 = vld [vmem:[%s23978_s29 + $0xa00] sm:$0xff]  ;;  %v12727_v15 = vld [vmem:[%s23978_s29 + $0xb68] sm:$0xff] }
 0x734   :  { %13795 = vmatprep.subr.mxu0 %v12751_v27  ;;  %v13760_v5 = vpop.f32.mrf.mxu1  ;;  %12772 = vmatmul.mubr.msk.f32.gmra.mxu0 %vm2907_vm5, %v19208_v9  ;;  %v12724_v27 = vld [vmem:[%s23978_s29 + $0xb50] sm:$0xff] }
 0x735   :  { %v4359_v6 = vadd.f32 %v13759_v0, %v4358_v2  ;;  %13796 = vmatpush3.msra.mxu0 %v12703_v56  ;;  %v14705_v41 = vpop.f32.mrf.mxu0  ;;  %4888 = vmatprep.mubr.f32.mxu0 %v23973_v39  ;;  %v12676_v56 = vld [vmem:[%s23978_s29 + $0x9d0] sm:$0xff]  ;;  %v12721_v0 = vld [vmem:[%s23978_s29 + $0xb38] sm:$0xff] }
 0x736   :  { %13797 = vmatprep.subr.mxu0 %v12748_v23  ;;  %v13761_v55 = vpop.f32.mrf.mxu1 }
 0x737   :  { %v13762_v28 = vadd.f32 %v13761_v55, %v13760_v5  ;;  %13798 = vmatpush3.msra.mxu0 %v12700_v63  ;;  %v19228_v30 = vpop.f32.mrf.mxu0  ;;  %v19231_v19 = vadd.f32 %v4359_v6, %v18704_v26  ;;  %v12673_v5 = vld [vmem:[%s23978_s29 + $0x9b8] sm:$0xff]  ;;  %v12718_v63 = vld [vmem:[%s23978_s29 + $0xb20] sm:$0xff] }
 0x738   :  { %13799 = vmatprep.subr.mxu0 %v12745_v17  ;;  %v13763_v2 = vpop.f32.mrf.mxu1  ;;  %12773 = vmatmul.mubr.msk.f32.gmra.mxu0 %vm2907_vm5, %v19228_v30  ;;  %v12670_v17 = vld [vmem:[%s23978_s29 + $0x9a0] sm:$0xff]  ;;  %v19310_v55 = vld [vmem:[%s24009_s12 + $0xf8] sm:$0xff] }
 0x739   :  { %24006 = vst [vmem:[#allocation4_spill] sm:$0xff] %v19231_v19  ;;  %v4364_v49 = vadd.f32 %v13762_v28, %v19159_v21  ;;  %13800 = vmatpush3.msra.mxu0 %v12697_v61  ;;  %v14708_v35 = vpop.f32.mrf.mxu0  ;;  %4894 = vmatprep.mubr.f32.mxu0 %v23973_v39  ;;  %v12736_v21 = vld [vmem:[%s23978_s29 + $0xbb0] sm:$0xff]  ;;  %v19315_v61 = vld [vmem:[%s24009_s12 + $0x78] sm:$0xff] }
 0x73a   :  { %13801 = vmatprep.subr.mxu0 %v12742_v8  ;;  %v13764_v26 = vpop.f32.mrf.mxu1  ;;  %v19320_v8 = vld [vmem:[%s24009_s12 + $0xf0] sm:$0xff]  ;;  %v19349_v35 = vld [vmem:[%s24009_s12 + $0xe0] sm:$0xff] }
 0x73b   :  { %v13765_v13 = vadd.f32 %v13764_v26, %v13763_v2  ;;  %13802 = vmatpush3.msra.mxu0 %v12694_v54  ;;  %v19249_v7 = vpop.f32.mrf.mxu0  ;;  %v19252_v4 = vadd.f32 %v4364_v49, %v18706_v43  ;;  %v19328_v54 = vld [vmem:[%s24009_s12 + $0x70] sm:$0xff]  ;;  %v19333_v49 = vld [vmem:[%s24009_s12 + $0xe8] sm:$0xff]  ;;  %v19358_v26 = vld [vmem:[%s24009_s12 + $0x60] sm:$0xff] }
 0x73c   :  { %13803 = vmatprep.subr.mxu0 %v12739_v11  ;;  %v4474_v48 = vpop.f32.mrf.mxu1  ;;  %12774 = vmatmul.mubr.msk.f32.gmra.mxu0 %vm2907_vm5, %v19249_v7  ;;  %v19342_v11 = vld [vmem:[%s24009_s12 + $0x68] sm:$0xff] }
 0x73d   :  { %24007 = vst [vmem:[#allocation22_spill] sm:$0xff] %v19252_v4  ;;  %v4369_v57 = vadd.f32 %v13765_v13, %v19163_v60  ;;  %13804 = vmatpush3.msra.mxu0 %v12691_v1  ;;  %v14711_v45 = vpop.f32.mrf.mxu0  ;;  %v12769_v60 = vld [vmem:[%s23978_s29 + $0xcb8] sm:$0xff]  ;;  %v19386_v13 = vld [vmem:[%s24009_s12 + $0x50] sm:$0xff] }
 0x73e   :  { %13805 = vmatprep.subr.mxu0 %v12736_v21  ;;  %v4476_v43 = vpop.f32.mrf.mxu1  ;;  %v19373_v1 = vld [vmem:[%s24009_s12 + $0x58] sm:$0xff]  ;;  %v19394_v21 = vld [vmem:[%s24009_s12 + $0xc8] sm:$0xff] }
 0x73f   :  { %13806 = vmatpush3.msra.mxu0 %v12688_v53  ;;  %4775 = vmatprep.mubr.f32.mxu1 %v4476_v43  ;;  %v19273_v33 = vadd.f32 %v4369_v57, %v18708_v47  ;;  %v12679_v47 = vld [vmem:[%s23978_s29 + $0x9e8] sm:$0xff]  ;;  %v19414_v53 = vld [vmem:[%s24009_s12 + $0x40] sm:$0xff]  ;;  %v19433_v57 = vld [vmem:[%s24009_s12 + $0x38] sm:$0xff] }
 0x740   :  { %13807 = vmatprep.subr.mxu0 %v12733_v24  ;;  %v4480_v16 = vpop.f32.mrf.mxu1  ;;  %4776 = vmatmul.mubr.f32.vlgmr.msra.gmra.mxu1 %v4474_v48  ;;  %v19445_v24 = vld [vmem:[%s24009_s12 + $0x30] sm:$0xff]  ;;  %v19452_v45 = vld [vmem:[%s24009_s12 + $0xa8] sm:$0xff] }
 0x741   :  { %24008 = vst [vmem:[#allocation24_spill] sm:$0xff] %v19273_v33  ;;  %13808 = vmatpush3.msra.mxu0 %v12685_v62  ;;  %4965 = vmatprep.mubr.f32.mxu0 %v4476_v43  ;;  %24010 = vst [vmem:[#allocation25_spill] sm:$0xff] %v19445_v24  ;;  %v19457_v43 = vld [vmem:[%s24009_s12 + $0x28] sm:$0xff]  ;;  %v19464_v62 = vld [vmem:[%s24009_s12 + $0xa0] sm:$0xff] }
 0x742   :  { %13809 = vmatprep.subr.mxu0 %v12730_v46  ;;  %v4482_v58 = vpop.f32.mrf.mxu1  ;;  %14713 = vmatpush3.msra.mxu1 %v12769_v60  ;;  %24011 = vst [vmem:[#allocation26_spill] sm:$0xff] %v19452_v45  ;;  %24012 = vst [vmem:[#allocation27_spill] sm:$0xff] %v19457_v43  ;;  %v19469_v46 = vld [vmem:[%s24009_s12 + $0x20] sm:$0xff]  ;;  %v19476_v60 = vld [vmem:[%s24009_s12 + $0x98] sm:$0xff] }
 0x743   :  { %13810 = vmatpush3.msra.mxu0 %v12682_v18  ;;  %4781 = vmatprep.mubr.f32.mxu1 %v4482_v58  ;;  %24013 = vst [vmem:[#allocation28_spill] sm:$0xff] %v19464_v62  ;;  %24014 = vst [vmem:[#allocation29_spill] sm:$0xff] %v19469_v46  ;;  %v19487_v18 = vld [vmem:[%s24009_s12 + $0x90] sm:$0xff] }
 0x744   :  { %13811 = vmatprep.subr.mxu0 %v12727_v15  ;;  %v4486_v37 = vpop.f32.mrf.mxu1  ;;  %4782 = vmatmul.mubr.f32.gmra.mxu1 %v4480_v16  ;;  %24015 = vst [vmem:[#allocation30_spill] sm:$0xff] %v19476_v60  ;;  %24017 = vst [vmem:[#allocation32_spill] sm:$0xff] %v19487_v18  ;;  %v19492_v15 = vld [vmem:[%s24009_s12 + $0x10] sm:$0xff] }
 0x745   :  { %13812 = vmatpush3.msra.mxu0 %v12679_v47  ;;  %14714 = vmatprep.subr.mxu1 %v23973_v39  ;;  %24018 = vst [vmem:[#allocation33_spill] sm:$0xff] %v19492_v15  ;;  %v19506_v47 = vld [vmem:[%s24009_s12 + $0x8] sm:$0xff] }
 0x746   :  { %13813 = vmatprep.subr.mxu0 %v12724_v27  ;;  %v4488_v23 = vpop.f32.mrf.mxu1  ;;  %14715 = vmatpush3.msra.mxu1 %v12766_v38  ;;  %24020 = vst [vmem:[#allocation35_spill] sm:$0xff] %v19506_v47  ;;  %v19511_v27 = vld [vmem:[%s24009_s12 + $0x80] sm:$0xff] }
 0x747   :  { %13814 = vmatpush3.msra.mxu0 %v12676_v56  ;;  %4787 = vmatprep.mubr.f32.mxu1 %v4488_v23  ;;  %24021 = vst [vmem:[#allocation36_spill] sm:$0xff] %v19511_v27  ;;  %v19516_v38 = vld [vmem:[%s24009_s12] sm:$0xff]  ;;  %v19532_v56 = vld [vmem:[%s24009_s12 + $0x110] sm:$0xff] }
 0x748   :  { %13815 = vmatprep.subr.mxu0 %v12721_v0  ;;  %v4492_v6 = vpop.f32.mrf.mxu1  ;;  %4788 = vmatmul.mubr.f32.gmra.mxu1 %v4486_v37  ;;  %24022 = vst [vmem:[#allocation37_spill] sm:$0xff] %v19516_v38  ;;  %24024 = vst [vmem:[#allocation39_spill] sm:$0xff] %v19532_v56  ;;  %v19537_v0 = vld [vmem:[%s24009_s12 + $0x108] sm:$0xff] }
 0x749   :  { %13816 = vmatpush3.msra.mxu0 %v12673_v5  ;;  %14731 = vmatprep.subr.mxu1 %v23973_v39  ;;  %24025 = vst [vmem:[#allocation40_spill] sm:$0xff] %v19537_v0 }
 0x74a   :  { %13817 = vmatprep.subr.mxu0 %v12718_v63  ;;  %v4494_v41 = vpop.f32.mrf.mxu1 }
 0x74b   :  { %13818 = vmatpush3.msra.mxu0 %v12670_v17  ;;  %4793 = vmatprep.mubr.f32.mxu1 %v4494_v41 }
 0x74c   :  { %4966 = vmatmul.mubr.f32.vlgmr.msra.gmra.mxu0 %v4474_v48  ;;  %v4498_v28 = vpop.f32.mrf.mxu1  ;;  %4794 = vmatmul.mubr.f32.gmra.mxu1 %v4492_v6  ;;  %v19406_v48 = vld [vmem:[%s24009_s12 + $0xc0] sm:$0xff] }
 0x74d   :  { %4970 = vmatprep.mubr.f32.mxu0 %v4482_v58  ;;  %13841 = vmatprep.subr.mxu0 %v19310_v55  ;;  %v19498_v58 = vld [vmem:[%s24009_s12 + $0x88] sm:$0xff] }
 0x74e   :  { %v4500_v2 = vpop.f32.mrf.mxu1  ;;  %13842 = vmatpush3.msra.mxu0 %v19315_v61  ;;  %24019 = vst [vmem:[#allocation34_spill] sm:$0xff] %v19498_v58 }
 0x74f   :  { %4799 = vmatprep.mubr.f32.mxu1 %v4500_v2  ;;  %13843 = vmatprep.subr.mxu0 %v19320_v8 }
 0x750   :  { %4971 = vmatmul.mubr.f32.gmra.mxu0 %v4480_v16  ;;  %4800 = vmatmul.mubr.f32.gmra.mxu1 %v4498_v28  ;;  %v19482_v16 = vld [vmem:[%s24009_s12 + $0x18] sm:$0xff] }
 0x751   :  { %4975 = vmatprep.mubr.f32.mxu0 %v4488_v23  ;;  %14716 = vmatprep.mubr.msk.f32.mxu1 %vm15093_vm4, %v23973_v39  ;;  %24016 = vst [vmem:[#allocation31_spill] sm:$0xff] %v19482_v16  ;;  %v19546_v23 = vld [vmem:[%s24009_s12 + $0x100] sm:$0xff] }
 0x752   :  { %13844 = vmatpush3.msra.mxu0 %v19328_v54  ;;  %24026 = vst [vmem:[#allocation41_spill] sm:$0xff] %v19546_v23 }
 0x753   :  { %13845 = vmatprep.subr.mxu0 %v19333_v49 }
 0x754   :  { %4976 = vmatmul.mubr.f32.gmra.mxu0 %v4486_v37  ;;  %14717 = vmatmul.mubr.msk.f32.vlgmr.msra.gmra.mxu1 %vm2907_vm5, %v19168_v14  ;;  %v19365_v14 = vld [vmem:[%s24009_s12 + $0xd8] sm:$0xff] }
 0x755   :  { %4980 = vmatprep.mubr.f32.mxu0 %v4494_v41  ;;  %14719 = vmatprep.mubr.msk.f32.mxu1 %vm15093_vm4, %v23973_v39  ;;  %v19525_v37 = vld [vmem:[%s24009_s12 + $0x118] sm:$0xff] }
 0x756   :  { %13846 = vmatpush3.msra.mxu0 %v19342_v11  ;;  %24023 = vst [vmem:[#allocation38_spill] sm:$0xff] %v19525_v37  ;;  %14732 = vmatpush3.msra.mxu1 %v19525_v37  ;;  %v24035_v37 = vld [vmem:[#allocation8_spill] sm:$0xff] }
 0x757   :  { %13847 = vmatprep.subr.mxu0 %v19349_v35  ;;  %14733 = vmatprep.subr.mxu1 %v23973_v39 }
 0x758   :  { %4981 = vmatmul.mubr.f32.gmra.mxu0 %v4492_v6  ;;  %14720 = vmatmul.mubr.msk.f32.gmra.mxu1 %vm2907_vm5, %v19191_v20  ;;  %v19379_v20 = vld [vmem:[%s24009_s12 + $0xd0] sm:$0xff] }
 0x759   :  { %4985 = vmatprep.mubr.f32.mxu0 %v4500_v2  ;;  %14722 = vmatprep.mubr.msk.f32.mxu1 %vm15093_vm4, %v23973_v39  ;;  %v24028_v2 = vld [vmem:[#allocation16_spill] sm:$0xff] }
 0x75a   :  { %13848 = vmatpush3.msra.mxu0 %v19358_v26  ;;  %14734 = vmatpush3.msra.mxu1 %v19532_v56 }
 0x75b   :  { %13849 = vmatprep.subr.mxu0 %v19365_v14  ;;  %14735 = vmatprep.subr.mxu1 %v23973_v39 }
 0x75c   :  { %4986 = vmatmul.mubr.f32.gmra.mxu0 %v4498_v28  ;;  %14723 = vmatmul.mubr.msk.f32.gmra.mxu1 %vm2907_vm5, %v19208_v9  ;;  %v19400_v9 = vld [vmem:[%s24009_s12 + $0x48] sm:$0xff]  ;;  %v24027_v28 = vld [vmem:[#allocation6_spill] sm:$0xff] }
 0x75d   :  { %14725 = vmatprep.mubr.msk.f32.mxu1 %vm15093_vm4, %v23973_v39  ;;  %13850 = vmatpush3.msra.mxu0 %v19373_v1 }
 0x75e   :  { %13851 = vmatprep.subr.mxu0 %v19379_v20  ;;  %14736 = vmatpush3.msra.mxu1 %v19537_v0  ;;  %v24030_v0 = vld [vmem:[#allocation17_spill] sm:$0xff] }
 0x75f   :  { %13852 = vmatpush3.msra.mxu0 %v19386_v13  ;;  %14737 = vmatprep.subr.mxu1 %v23973_v39 }
 0x760   :  { %14726 = vmatmul.mubr.msk.f32.gmra.mxu1 %vm2907_vm5, %v19228_v30  ;;  %13853 = vmatprep.subr.mxu0 %v19394_v21  ;;  %v19428_v30 = vld [vmem:[%s24009_s12 + $0xb8] sm:$0xff] }
 0x761   :  { %14728 = vmatprep.mubr.msk.f32.mxu1 %vm15093_vm4, %v23973_v39  ;;  %13854 = vmatpush3.msra.mxu0 %v19400_v9 }
 0x762   :  { %13855 = vmatprep.subr.mxu0 %v19406_v48  ;;  %14738 = vmatpush3.msra.mxu1 %v19546_v23  ;;  %v4166_v23 = vadd.f32 %v19136_v29, %v19126_v40  ;;  %v24037_v29 = vld [vmem:[#allocation3_spill] sm:$0xff] }
 0x763   :  { %13856 = vmatpush3.msra.mxu0 %v19414_v53  ;;  %14754 = vmatprep.subr.mxu1 %v23973_v39 }
 0x764   :  { %14729 = vmatmul.mubr.msk.f32.gmra.mxu1 %vm2907_vm5, %v19249_v7  ;;  %13857 = vmatprep.subr.mxu0 %v19428_v30  ;;  %v19440_v7 = vld [vmem:[%s24009_s12 + $0xb0] sm:$0xff]  ;;  %s24071_s12 = sld [smem:[#allocation51_spill]] }
 0x765   :  { %14739 = vmatprep.mubr.msk.f32.mxu1 %vm15093_vm4, %v23973_v39  ;;  %13858 = vmatpush3.msra.mxu0 %v19433_v57 }
 0x766   :  { %13859 = vmatprep.subr.mxu0 %v19440_v7 }
 0x767   :  { %13860 = vmatpush3.msra.mxu0 %v19445_v24 }
 0x768   :  { %13861 = vmatprep.subr.mxu0 %v19452_v45  ;;  %v24036_v45 = vld [vmem:[#allocation13_spill] sm:$0xff] }
 0x769   :  { %13862 = vmatpush3.msra.mxu0 %v19457_v43  ;;  %v24034_v43 = vld [vmem:[#allocation18_spill] sm:$0xff] }
 0x76a   :  { %13863 = vmatprep.subr.mxu0 %v19464_v62 }
 0x76b   :  { %13864 = vmatpush3.msra.mxu0 %v19469_v46 }
 0x76c   :  { %13865 = vmatprep.subr.mxu0 %v19476_v60  ;;  %v24033_v60 = vld [vmem:[#allocation21_spill] sm:$0xff] }
 0x76d   :  { %13866 = vmatpush3.msra.mxu0 %v19482_v16  ;;  %v24032_v16 = vld [vmem:[#allocation12_spill] sm:$0xff] }
 0x76e   :  { %13867 = vmatprep.subr.mxu0 %v19487_v18 }
 0x76f   :  { %13868 = vmatpush3.msra.mxu0 %v19492_v15 }
 0x770   :  { %13869 = vmatprep.subr.mxu0 %v19498_v58  ;;  %v24031_v58 = vld [vmem:[#allocation7_spill] sm:$0xff] }
 0x771   :  { %13870 = vmatpush3.msra.mxu0 %v19506_v47  ;;  %v3093_v15 = vadd.f32 %v24031_v58, %v24030_v0 }
 0x772   :  { %13871 = vmatprep.subr.mxu0 %v19511_v27  ;;  %v24029_v27 = vld [vmem:[#allocation11_spill] sm:$0xff] }
 0x773   :  { %13872 = vmatpush3.msra.mxu0 %v19516_v38  ;;  %v3087_v38 = vadd.f32 %v24028_v2, %v24027_v28  ;;  %v3383_v46 = vadd.f32 %v24033_v60, %v3093_v15  ;;  %v3099_v28 = vadd.f32 %v24035_v37, %v24034_v43  ;;  %v24038_v15 = vld [vmem:[#allocation9_spill] sm:$0xff]  ;;  %v24039_v43 = vld [vmem:[#allocation19_spill] sm:$0xff] }
 0x774   :  { %13897 = vmatprep.subr.mxu0 %v19310_v55 }
 0x775   :  { %v3377_v47 = vadd.f32 %v24029_v27, %v3087_v38  ;;  %v4172_v27 = vadd.f32 %v19141_v25, %v19128_v59  ;;  %v3478_v40 = vadd.f32 %v24036_v45, %v3383_v46  ;;  %v3389_v39 = vadd.f32 %v24037_v29, %v3099_v28  ;;  %v24040_v46 = vld [vmem:[#allocation14_spill] sm:$0xff] }
 0x776   :  { %v4178_v59 = vadd.f32 %v19146_v3, %v19130_v52 }
 0x777   :  { %v3472_v56 = vadd.f32 %v24032_v16, %v3377_v47  ;;  %v3105_v47 = vadd.f32 %v24039_v43, %v24038_v15  ;;  %v4376_v37 = vadd.f32 %v4172_v27, %v3478_v40  ;;  %v4190_v40 = vadd.f32 %v19161_v32, %v19134_v31 }
 0x779   :  { %v4373_v2 = vadd.f32 %v4166_v23, %v3472_v56  ;;  %v3484_v56 = vadd.f32 %v24040_v46, %v3389_v39  ;;  %v4184_v39 = vadd.f32 %v19151_v34, %v19132_v36 }
 0x77b   :  { %v4379_v28 = vadd.f32 %v4178_v59, %v3484_v56  ;;  %v24049_v56 = vld [vmem:[#allocation26_spill] sm:$0xff] }
 0x7ec   :  { %v4872_v5 = vpop.f32.mrf.mxu0 }
 0x7ee   :  { %v4874_v63 = vpop.f32.mrf.mxu0 }
 0x7f0   :  { %v4878_v6 = vpop.f32.mrf.mxu0 }
 0x7f2   :  { %v4880_v17 = vpop.f32.mrf.mxu0 }
 0x7f4   :  { %v4884_v41 = vpop.f32.mrf.mxu0 }
 0x7f6   :  { %v4886_v55 = vpop.f32.mrf.mxu0 }
 0x7f8   :  { %v4890_v33 = vpop.f32.mrf.mxu0 }
 0x7fa   :  { %v4892_v18 = vpop.f32.mrf.mxu0 }
 0x7fc   :  { %v4896_v0 = vpop.f32.mrf.mxu0 }
 0x800   :  { %v4777_v4 = vpop.f32.mrf.mxu1 }
 0x801   :  { %v4873_v19 = vadd.f32 %v4872_v5, %v4777_v4  ;;  %v24042_v5 = vld [vmem:[#allocation10_spill] sm:$0xff] }
 0x802   :  { %v4779_v62 = vpop.f32.mrf.mxu1 }
 0x803   :  { %v4875_v38 = vadd.f32 %v4874_v63, %v4779_v62  ;;  %v19568_v60 = vadd.f32 %v4873_v19, %v19139_v22  ;;  %v4898_v62 = vpop.f32.mrf.mxu0  ;;  %v24041_v22 = vld [vmem:[#allocation2_spill] sm:$0xff]  ;;  %v24043_v63 = vld [vmem:[#allocation20_spill] sm:$0xff] }
 0x804   :  { %v4783_v58 = vpop.f32.mrf.mxu1  ;;  %v3395_v19 = vadd.f32 %v24041_v22, %v3105_v47  ;;  %v24050_v22 = vld [vmem:[#allocation38_spill] sm:$0xff] }
 0x805   :  { %v19565_v24 = vadd.f32 %v4875_v38, %v4373_v2  ;;  %v4879_v4 = vadd.f32 %v4878_v6, %v4783_v58  ;;  %v3111_v6 = vadd.f32 %v24043_v63, %v24042_v5  ;;  %v24045_v38 = vld [vmem:[#allocation5_spill] sm:$0xff]  ;;  %v24051_v5 = vld [vmem:[#allocation27_spill] sm:$0xff] }
 0x806   :  { %v4785_v16 = vpop.f32.mrf.mxu1 }
 0x807   :  { %v4881_v25 = vadd.f32 %v4880_v17, %v4785_v16  ;;  %5212 = vmatprep.mubr.f32.mxu0 %v19565_v24  ;;  %v19584_v52 = vadd.f32 %v4879_v4, %v19144_v12  ;;  %v24044_v12 = vld [vmem:[#allocation15_spill] sm:$0xff] }
 0x808   :  { %v4789_v45 = vpop.f32.mrf.mxu1  ;;  %5213 = vmatmul.mubr.f32.vlgmr.msra.gmra.mxu0 %v19568_v60 }
 0x809   :  { %v19578_v23 = vadd.f32 %v4881_v25, %v4376_v37  ;;  %13898 = vmatpush3.msra.mxu0 %v19315_v61  ;;  %v4885_v3 = vadd.f32 %v4884_v41, %v4789_v45  ;;  %v3490_v41 = vadd.f32 %v24044_v12, %v3395_v19  ;;  %v24047_v45 = vld [vmem:[#allocation25_spill] sm:$0xff]  ;;  %v24057_v12 = vld [vmem:[#allocation31_spill] sm:$0xff] }
 0x80a   :  { %13899 = vmatprep.subr.mxu0 %v19320_v8  ;;  %v4791_v17 = vpop.f32.mrf.mxu1  ;;  %v3401_v8 = vadd.f32 %v24045_v38, %v3111_v6  ;;  %v24053_v6 = vld [vmem:[#allocation4_spill] sm:$0xff] }
 0x80b   :  { %v4887_v2 = vadd.f32 %v4886_v55, %v4791_v17  ;;  %13900 = vmatpush3.msra.mxu0 %v19328_v54  ;;  %5217 = vmatprep.mubr.f32.mxu0 %v19578_v23  ;;  %v19599_v36 = vadd.f32 %v4885_v3, %v19149_v50  ;;  %v24046_v50 = vld [vmem:[#allocation23_spill] sm:$0xff]  ;;  %v24054_v17 = vld [vmem:[#allocation29_spill] sm:$0xff] }
 0x80c   :  { %v13819_v61 = vpop.f32.mrf.mxu0  ;;  %13901 = vmatprep.subr.mxu0 %v19333_v49  ;;  %v4795_v27 = vpop.f32.mrf.mxu1  ;;  %5218 = vmatmul.mubr.f32.gmra.mxu0 %v19584_v52  ;;  %v4382_v49 = vadd.f32 %v4184_v39, %v3490_v41  ;;  %v24055_v39 = vld [vmem:[#allocation30_spill] sm:$0xff]  ;;  %v24058_v41 = vld [vmem:[#allocation32_spill] sm:$0xff] }
 0x80d   :  { %v19595_v58 = vadd.f32 %v4887_v2, %v4379_v28  ;;  %13902 = vmatpush3.msra.mxu0 %v19342_v11  ;;  %v4891_v34 = vadd.f32 %v4890_v33, %v4795_v27  ;;  %v3496_v33 = vadd.f32 %v24046_v50, %v3401_v8  ;;  %v5344_v50 = vmul.f32 %v19568_v60, %v19568_v60 }
 0x80e   :  { %v13820_v54 = vpop.f32.mrf.mxu0  ;;  %13903 = vmatprep.subr.mxu0 %v19349_v35  ;;  %v4797_v55 = vpop.f32.mrf.mxu1 }
 0x80f   :  { %v4893_v29 = vadd.f32 %v4892_v18, %v4797_v55  ;;  %13904 = vmatpush3.msra.mxu0 %v19358_v26  ;;  %5222 = vmatprep.mubr.f32.mxu0 %v19595_v58  ;;  %v19613_v35 = vadd.f32 %v4891_v34, %v19154_v44  ;;  %v4385_v18 = vadd.f32 %v4190_v40, %v3496_v33  ;;  %v24059_v34 = vld [vmem:[#allocation22_spill] sm:$0xff]  ;;  %v24060_v55 = vld [vmem:[#allocation33_spill] sm:$0xff]  ;;  %v24064_v33 = vld [vmem:[#allocation36_spill] sm:$0xff] }
 0x810   :  { %v13822_v4 = vpop.f32.mrf.mxu0  ;;  %13905 = vmatprep.subr.mxu0 %v19365_v14  ;;  %v4801_v11 = vpop.f32.mrf.mxu1  ;;  %5223 = vmatmul.mubr.f32.gmra.mxu0 %v19599_v36  ;;  %v13821_v15 = vadd.f32 %v13820_v54, %v13819_v61  ;;  %v24056_v61 = vld [vmem:[#allocation39_spill] sm:$0xff] }
 0x811   :  { %v19609_v16 = vadd.f32 %v4893_v29, %v4382_v49  ;;  %13906 = vmatpush3.msra.mxu0 %v19373_v1  ;;  %v4897_v31 = vadd.f32 %v4896_v0, %v4801_v11  ;;  %v24061_v49 = vld [vmem:[#allocation34_spill] sm:$0xff]  ;;  %v24062_v29 = vld [vmem:[#allocation40_spill] sm:$0xff]  ;;  %v24063_v11 = vld [vmem:[#allocation35_spill] sm:$0xff] }
 0x812   :  { %v13823_v32 = vpop.f32.mrf.mxu0  ;;  %13907 = vmatprep.subr.mxu0 %v19379_v20  ;;  %v4803_v26 = vpop.f32.mrf.mxu1 }
 0x813   :  { %v4899_v14 = vadd.f32 %v4898_v62, %v4803_v26  ;;  %13908 = vmatpush3.msra.mxu0 %v19386_v13  ;;  %5227 = vmatprep.mubr.f32.mxu0 %v19609_v16  ;;  %v19624_v20 = vadd.f32 %v4897_v31, %v19157_v42  ;;  %v13824_v37 = vadd.f32 %v13823_v32, %v13822_v4  ;;  %v24048_v62 = vmov 0.0   ;;  %v24065_v32 = vld [vmem:[#allocation24_spill] sm:$0xff] }
 0x814   :  { %v13825_v43 = vpop.f32.mrf.mxu0  ;;  %13909 = vmatprep.subr.mxu0 %v19394_v21  ;;  %v5057_v47 = vpop.f32.mrf.mxu1  ;;  %5228 = vmatmul.mubr.f32.gmra.mxu0 %v19613_v35  ;;  %v5345_v42 = vmul.f32 %v19565_v24, %v19565_v24 }
 0x815   :  { %v19620_v44 = vadd.f32 %v4899_v14, %v4385_v18  ;;  %v5058_v1 = vadd.f32 %v13821_v15, %v5057_v47  ;;  %13910 = vmatpush3.msra.mxu0 %v19400_v9  ;;  %v24066_v18 = vld [vmem:[#allocation37_spill] sm:$0xff]  ;;  %v5348_v15 = vmul.f32 %v19578_v23, %v19578_v23 }
 0x816   :  { %v13826_v0 = vpop.f32.mrf.mxu0  ;;  %13911 = vmatprep.subr.mxu0 %v19406_v48  ;;  %v14718_v13 = vpop.f32.mrf.mxu1  ;;  %v24067_v14 = vld [vmem:[#allocation41_spill] sm:$0xff] }
 0x817   :  { %v19628_v59 = vadd.f32 %v5058_v1, %v19186_v51  ;;  %13912 = vmatpush3.msra.mxu0 %v19414_v53  ;;  %5232 = vmatprep.mubr.f32.mxu0 %v19620_v44  ;;  %v13827_v25 = vadd.f32 %v13826_v0, %v13825_v43  ;;  %v5347_v43 = vmul.f32 %v19584_v52, %v19584_v52 }
 0x818   :  { %v13828_v21 = vpop.f32.mrf.mxu0  ;;  %13913 = vmatprep.subr.mxu0 %v19428_v30  ;;  %v5062_v9 = vpop.f32.mrf.mxu1  ;;  %5233 = vmatmul.mubr.f32.gmra.mxu0 %v19624_v20  ;;  %v5351_v1 = vmul.f32 %v19595_v58, %v19595_v58  ;;  %v5350_v0 = vmul.f32 %v19599_v36, %v19599_v36 }
 0x819   :  { %v5063_v48 = vadd.f32 %v13824_v37, %v5062_v9  ;;  %13914 = vmatpush3.msra.mxu0 %v19433_v57  ;;  %14740 = vmatmul.mubr.msk.f32.vlgmr.msra.gmra.mxu1 %vm5132_vm6, %v19628_v59  ;;  %v5346_v47 = vmul.f32 %v19628_v59, %v19628_v59  ;;  %v5354_v37 = vmul.f32 %v19609_v16, %v19609_v16 }
 0x81a   :  { %v13829_v51 = vpop.f32.mrf.mxu0  ;;  %13915 = vmatprep.subr.mxu0 %v19440_v7  ;;  %5438 = vmatprep.mubr.f32.mxu0 %v5345_v42  ;;  %v14721_v53 = vpop.f32.mrf.mxu1  ;;  %v24052_v7 = vld [vmem:[#allocation28_spill] sm:$0xff]  ;;  %v5357_v42 = vmul.f32 %v19620_v44, %v19620_v44 }
 0x81b   :  { %v19641_v30 = vadd.f32 %v5063_v48, %v19211_v10  ;;  %13916 = vmatpush3.msra.mxu0 %v24047_v45  ;;  %14742 = vmatprep.mubr.msk.f32.mxu1 %vm15093_vm4, %v24048_v62  ;;  %v13830_v63 = vadd.f32 %v13829_v51, %v13828_v21  ;;  %v5353_v21 = vmul.f32 %v19613_v35, %v19613_v35  ;;  %v5583_v45 = vld [vmem:[%s24068_s3 + $0x18] sm:$0xff] }
 0x81c   :  { %v13831_v46 = vpop.f32.mrf.mxu0  ;;  %13917 = vmatprep.subr.mxu0 %v24049_v56  ;;  %v5067_v57 = vpop.f32.mrf.mxu1  ;;  %14755 = vmatpush3.msra.mxu1 %v24050_v22  ;;  %v5356_v48 = vmul.f32 %v19624_v20, %v19624_v20  ;;  %v5580_v56 = vld [vmem:[%s24068_s3] sm:$0xff] }
 0x81d   :  { %v5068_v19 = vadd.f32 %v13827_v25, %v5067_v57  ;;  %13918 = vmatpush3.msra.mxu0 %v24051_v5  ;;  %14743 = vmatmul.mubr.msk.f32.gmra.mxu1 %vm5132_vm6, %v19641_v30  ;;  %v5349_v13 = vmul.f32 %v19641_v30, %v19641_v30  ;;  %v5584_v25 = vld [vmem:[%s24068_s3 + $0x20] sm:$0xff]  ;;  %v15094_v57 = vmov 0   ;;  %v5976_v5 = vld [vmem:[%s24069_s13 + $0x18] sm:$0xff] }
 0x81e   :  { %13919 = vmatprep.subr.mxu0 %v24052_v7  ;;  %v14724_v10 = vpop.f32.mrf.mxu1  ;;  %14745 = vmatprep.mubr.msk.f32.mxu1 %vm15093_vm4, %v24048_v62  ;;  %v13832_v28 = vpop.f32.mrf.mxu0  ;;  %v5977_v22 = vld [vmem:[%s24069_s13 + $0x20] sm:$0xf]  ;;  %v5974_v7 = vld [vmem:[%s24069_s13 + $0x8] sm:$0xff] }
 0x81f   :  { %v19655_v3 = vadd.f32 %v5068_v19, %v24053_v6  ;;  %13920 = vmatpush3.msra.mxu0 %v24054_v17  ;;  %14756 = vmatprep.subr.mxu1 %v24048_v62  ;;  %v13833_v8 = vadd.f32 %v13832_v28, %v13831_v46  ;;  %v5581_v46 = vld [vmem:[%s24068_s3 + $0x8] sm:$0xff]  ;;  %v5975_v19 = vld [vmem:[%s24069_s13 + $0x10] sm:$0xff]  ;;  %v5973_v10 = vld [vmem:[%s24069_s13] sm:$0xff] }
 0x820   :  { %13921 = vmatprep.subr.mxu0 %v24055_v39  ;;  %v5072_v2 = vpop.f32.mrf.mxu1  ;;  %14757 = vmatpush3.msra.mxu1 %v24056_v61  ;;  %v9316_v6 = vld [vmem:[%s24070_s30 + $0x8] sm:$0xff]  ;;  %v9315_v17 = vld [vmem:[%s24070_s30] sm:$0xff] }
 0x821   :  { %v5073_v27 = vadd.f32 %v13830_v63, %v5072_v2  ;;  %13922 = vmatpush3.msra.mxu0 %v24057_v12  ;;  %14746 = vmatmul.mubr.msk.f32.gmra.mxu1 %vm5132_vm6, %v19655_v3  ;;  %v5352_v9 = vmul.f32 %v19655_v3, %v19655_v3  ;;  %v9317_v63 = vld [vmem:[%s24070_s30 + $0x10] sm:$0xf] }
 0x822   :  { %13923 = vmatprep.subr.mxu0 %v24058_v41  ;;  %v14727_v38 = vpop.f32.mrf.mxu1  ;;  %14748 = vmatprep.mubr.msk.f32.mxu1 %vm15093_vm4, %v24048_v62 }
 0x823   :  { %v19668_v54 = vadd.f32 %v5073_v27, %v24059_v34  ;;  %13924 = vmatpush3.msra.mxu0 %v24060_v55  ;;  %14758 = vmatprep.subr.mxu1 %v24048_v62 }
 0x824   :  { %13925 = vmatprep.subr.mxu0 %v24061_v49  ;;  %v5077_v40 = vpop.f32.mrf.mxu1  ;;  %14759 = vmatpush3.msra.mxu1 %v24062_v29 }
 0x825   :  { %v5078_v4 = vadd.f32 %v13833_v8, %v5077_v40  ;;  %13926 = vmatpush3.msra.mxu0 %v24063_v11  ;;  %14749 = vmatmul.mubr.msk.f32.gmra.mxu1 %vm5132_vm6, %v19668_v54  ;;  %v5355_v51 = vmul.f32 %v19668_v54, %v19668_v54 }
 0x826   :  { %13927 = vmatprep.subr.mxu0 %v24064_v33  ;;  %v14730_v31 = vpop.f32.mrf.mxu1  ;;  %14751 = vmatprep.mubr.msk.f32.mxu1 %vm15093_vm4, %v24048_v62 }
 0x827   :  { %v19683_v26 = vadd.f32 %v5078_v4, %v24065_v32  ;;  %13928 = vmatpush3.msra.mxu0 %v24066_v18  ;;  %14760 = vmatprep.subr.mxu1 %v24048_v62 }
 0x828   :  { %5439 = vmatmul.mubr.f32.vlgmr.msra.gmra.mxu0 %v5344_v50  ;;  %14761 = vmatpush3.msra.mxu1 %v24067_v14 }
 0x829   :  { %5443 = vmatprep.mubr.f32.mxu0 %v5348_v15  ;;  %14752 = vmatmul.mubr.msk.f32.gmra.mxu1 %vm5132_vm6, %v19683_v26  ;;  %v5358_v53 = vmul.f32 %v19683_v26, %v19683_v26 }
 0x82a   :  { %14762 = vmatprep.mubr.msk.f32.mxu1 %vm15093_vm4, %v24048_v62  ;;  %5617 = vmatprep.subr.mxu1 %v5584_v25 }
 0x82b   :  { %5761 = vmatprep.subr.mxu0 %v5584_v25  ;;  %15046 = vset.pattern.permute.xlu0 %v15094_v57 }
 0x82c   :  { %5444 = vmatmul.mubr.f32.gmra.mxu0 %v5347_v43  ;;  %15047 = vset.pattern.permute.xlu1 %v15094_v57 }
 0x82d   :  { %5448 = vmatprep.mubr.f32.mxu0 %v5351_v1  ;;  %14763 = vmatmul.mubr.msk.f32.vlgmr.msra.gmra.mxu1 %vm5132_vm6, %v5346_v47 }
 0x82e   :  { %14765 = vmatprep.mubr.msk.f32.mxu1 %vm15093_vm4, %v24048_v62  ;;  %5618 = vmatpush1.msra.mxu1 %v5583_v45 }
 0x82f   :  { %5762 = vmatpush1.msra.mxu0 %v5583_v45  ;;  %5619 = vmatprep.subr.mxu1 %v5581_v46 }
 0x830   :  { %5449 = vmatmul.mubr.f32.gmra.mxu0 %v5350_v0  ;;  %5763 = vmatprep.subr.mxu0 %v5581_v46 }
 0x831   :  { %5453 = vmatprep.mubr.f32.mxu0 %v5354_v37  ;;  %14766 = vmatmul.mubr.msk.f32.gmra.mxu1 %vm5132_vm6, %v5349_v13 }
 0x832   :  { %14768 = vmatprep.mubr.msk.f32.mxu1 %vm15093_vm4, %v24048_v62  ;;  %5620 = vmatpush1.msra.mxu1 %v5580_v56 }
 0x833   :  { %5764 = vmatpush1.msra.mxu0 %v5580_v56  ;;  %14777 = vmatprep.subr.mxu1 %v24048_v62 }
 0x834   :  { %5454 = vmatmul.mubr.f32.gmra.mxu0 %v5353_v21  ;;  %6000 = vperm.xlu0 %15046, %v5977_v22  }
 0x835   :  { %5458 = vmatprep.mubr.f32.mxu0 %v5357_v42  ;;  %14769 = vmatmul.mubr.msk.f32.gmra.mxu1 %vm5132_vm6, %v5352_v9 }
 0x836   :  { %14771 = vmatprep.mubr.msk.f32.mxu1 %vm15093_vm4, %v24048_v62  ;;  %5990 = vperm.xlu1 %15047, %v5975_v19  }
 0x838   :  { %5459 = vmatmul.mubr.f32.gmra.mxu0 %v5356_v48  ;;  %5995 = vperm.xlu0 %15046, %v5976_v5  }
 0x839   :  { %14772 = vmatmul.mubr.msk.f32.gmra.mxu1 %vm5132_vm6, %v5355_v51  ;;  %5797 = vmatprep.mubr.f32.mxu0 %v24048_v62 }
 0x83a   :  { %14774 = vmatprep.mubr.msk.f32.mxu1 %vm15093_vm4, %v24048_v62  ;;  %5985 = vperm.xlu1 %15047, %v5974_v7  }
 0x83c   :  { %5980 = vperm.xlu0 %15046, %v5973_v10  }
 0x83d   :  { %14775 = vmatmul.mubr.msk.f32.gmra.mxu1 %vm5132_vm6, %v5358_v53 }
 0x83e   :  { %5653 = vmatprep.mubr.f32.mxu1 %v24048_v62  ;;  %9330 = vperm.xlu1 %15047, %v9317_v63  }
 0x840   :  { %9325 = vperm.xlu0 %15046, %v9316_v6  }
 0x842   :  { %9320 = vperm.xlu1 %15047, %v9315_v17  }
 0x8c8   :  { %v13873_v28 = vpop.f32.mrf.mxu0 }
 0x8ca   :  { %v13874_v39 = vpop.f32.mrf.mxu0 }
 0x8cb   :  { %v13875_v11 = vadd.f32 %v13874_v39, %v13873_v28 }
 0x8cc   :  { %v13876_v2 = vpop.f32.mrf.mxu0 }
 0x8ce   :  { %v13877_v61 = vpop.f32.mrf.mxu0 }
 0x8cf   :  { %v13878_v40 = vadd.f32 %v13877_v61, %v13876_v2 }
 0x8d0   :  { %v13879_v27 = vpop.f32.mrf.mxu0 }
 0x8d2   :  { %v13880_v12 = vpop.f32.mrf.mxu0 }
 0x8d3   :  { %v13881_v50 = vadd.f32 %v13880_v12, %v13879_v27 }
 0x8d4   :  { %v13882_v41 = vpop.f32.mrf.mxu0 }
 0x8d6   :  { %v13883_v34 = vpop.f32.mrf.mxu0 }
 0x8d7   :  { %v13884_v32 = vadd.f32 %v13883_v34, %v13882_v41 }
 0x8d8   :  { %v13885_v29 = vpop.f32.mrf.mxu0 }
 0x8d9   :  { %v5304_v38 = vpop.f32.mrf.mxu1 }
 0x8da   :  { %v5305_v18 = vadd.f32 %v13875_v11, %v5304_v38  ;;  %v13886_v14 = vpop.f32.mrf.mxu0 }
 0x8db   :  { %v14741_v8 = vpop.f32.mrf.mxu1  ;;  %v13887_v37 = vadd.f32 %v13886_v14, %v13885_v29 }
 0x8dc   :  { %v5328_v13 = vsel %vm2907_vm5, %v5305_v18, 0.0 }
 0x8dd   :  { %v5309_v55 = vpop.f32.mrf.mxu1 }
 0x8de   :  { %v5310_v33 = vadd.f32 %v13878_v40, %v5309_v55 }
 0x8df   :  { %v14744_v49 = vpop.f32.mrf.mxu1 }
 0x8e0   :  { %v5329_v47 = vsel %vm2907_vm5, %v5310_v33, 0.0 }
 0x8e1   :  { %v5314_v4 = vpop.f32.mrf.mxu1  ;;  %v5330_v42 = vadd.f32 %v5329_v47, %v5328_v13 }
 0x8e2   :  { %v5315_v15 = vadd.f32 %v13881_v50, %v5314_v4 }
 0x8e3   :  { %v14747_v31 = vpop.f32.mrf.mxu1 }
 0x8e4   :  { %v5331_v21 = vsel %vm2907_vm5, %v5315_v15, 0.0 }
 0x8e5   :  { %v5319_v43 = vpop.f32.mrf.mxu1  ;;  %v5332_v45 = vadd.f32 %v5331_v21, %v5330_v42 }
 0x8e6   :  { %v5320_v1 = vadd.f32 %v13884_v32, %v5319_v43 }
 0x8e7   :  { %v14750_v0 = vpop.f32.mrf.mxu1 }
 0x8e8   :  { %v13929_v9 = vpop.f32.mrf.mxu0  ;;  %v5333_v51 = vsel %vm2907_vm5, %v5320_v1, 0.0 }
 0x8e9   :  { %v5324_v48 = vpop.f32.mrf.mxu1  ;;  %v5334_v22 = vadd.f32 %v5333_v51, %v5332_v45 }
 0x8ea   :  { %v5325_v53 = vadd.f32 %v13887_v37, %v5324_v48  ;;  %v13930_v25 = vpop.f32.mrf.mxu0 }
 0x8eb   :  { %v14753_v46 = vpop.f32.mrf.mxu1  ;;  %v13931_v61 = vadd.f32 %v13930_v25, %v13929_v9 }
 0x8ec   :  { %v5336_v56 = vsel %vm5335_vm7, %v5325_v53, 0.0  ;;  %v13932_v57 = vpop.f32.mrf.mxu0 }
 0x8ed   :  { %v5530_v19 = vpop.f32.mrf.mxu1  ;;  %v5337_v7 = vadd.f32 %v5336_v56, %v5334_v22 }
 0x8ee   :  { %v13933_v5 = vpop.f32.mrf.mxu0  ;;  %v5531_v8 = vadd.f32 %v13931_v61, %v5530_v19  ;;  %v5577_v61 = vld [vmem:[%s23850_s14] sm:$0x1] }
 0x8ef   :  { %v14764_v10 = vpop.f32.mrf.mxu1  ;;  %v13934_v17 = vadd.f32 %v13933_v5, %v13932_v57  ;;  %v5338_v39 = vrot.slane %v5337_v7, 4 }
 0x8f0   :  { %v13935_v63 = vpop.f32.mrf.mxu0  ;;  %v5554_v33 = vsel %vm2907_vm5, %v5531_v8, 0.0 }
 0x8f1   :  { %v5535_v6 = vpop.f32.mrf.mxu1  ;;  %v5339_v49 = vadd.f32 %v5338_v39, %v5337_v7 }
 0x8f2   :  { %v13936_v28 = vpop.f32.mrf.mxu0  ;;  %v5536_v12 = vadd.f32 %v13934_v17, %v5535_v6  ;;  %v5573_v17 = vld [vmem:[%s24071_s12] sm:$0x1] }
 0x8f3   :  { %v14767_v2 = vpop.f32.mrf.mxu1  ;;  %v13937_v27 = vadd.f32 %v13936_v28, %v13935_v63  ;;  %v5340_v15 = vrot.slane %v5339_v49, 2 }
 0x8f4   :  { %v13938_v41 = vpop.f32.mrf.mxu0  ;;  %v5555_v29 = vsel %vm2907_vm5, %v5536_v12, 0.0  ;;  %v5585_v2 = vld [vmem:[%s24068_s3 + $0x28] sm:$0xff] }
 0x8f5   :  { %v5540_v38 = vpop.f32.mrf.mxu1  ;;  %v5556_v14 = vadd.f32 %v5555_v29, %v5554_v33  ;;  %v5341_v21 = vadd.f32 %v5340_v15, %v5339_v49 }
 0x8f6   :  { %v13939_v34 = vpop.f32.mrf.mxu0  ;;  %v5541_v55 = vadd.f32 %v13937_v27, %v5540_v38  ;;  %v5582_v27 = vld [vmem:[%s24068_s3 + $0x10] sm:$0xff]  ;;  %v5874_v38 = vlaneseq }
 0x8f7   :  { %v14770_v40 = vpop.f32.mrf.mxu1  ;;  %v13940_v4 = vadd.f32 %v13939_v34, %v13938_v41  ;;  %v5342_v53 = vrot.slane %v5341_v21, 1 }
 0x8f8   :  { %v13941_v11 = vpop.f32.mrf.mxu0  ;;  %v5557_v31 = vsel %vm2907_vm5, %v5541_v55, 0.0  ;;  %v5875_v8 = vshrl.u32 %v5874_v38, 7 }
 0x8f9   :  { %v5545_v50 = vpop.f32.mrf.mxu1  ;;  %v5558_v0 = vadd.f32 %v5557_v31, %v5556_v14  ;;  %v5343_v46 = vadd.f32 %v5342_v53, %v5341_v21 }
 0x8fa   :  { %v13942_v32 = vpop.f32.mrf.mxu0  ;;  %v5546_v18 = vadd.f32 %v13940_v4, %v5545_v50  ;;  %v19807_v34 = vsub.s32 0, %v5875_v8 }
 0x8fb   :  { %v14773_v43 = vpop.f32.mrf.mxu1  ;;  %v13943_v47 = vadd.f32 %v13942_v32, %v13941_v11  ;;  %v5569_v22 = vmul.f32 0.001953125, %v5343_v46 }
 0x8fc   :  { %v5559_v1 = vsel %vm2907_vm5, %v5546_v18, 0.0  ;;  %24072 = vst [vmem:[#allocation6_spill] sm:$0xff] %v19807_v34 }
 0x8fd   :  { %v5550_v13 = vpop.f32.mrf.mxu1  ;;  %v5560_v9 = vadd.f32 %v5559_v1, %v5558_v0  ;;  %v5571_v7 = vmul.f32 %v5569_v22, %v5569_v22 }
 0x8fe   :  { %v5551_v37 = vadd.f32 %v13943_v47, %v5550_v13 }
 0x8ff   :  { %v14776_v42 = vpop.f32.mrf.mxu1 }
 0x900   :  { %v5561_v48 = vsel %vm5335_vm7, %v5551_v37, 0.0  ;;  %v6001_v42 = vpop.permute.xlu0 %6000 }
 0x901   :  { %v5562_v51 = vadd.f32 %v5561_v48, %v5560_v9 }
 0x903   :  { %v5563_v25 = vrot.slane %v5562_v51, 4 }
 0x905   :  { %v5564_v45 = vadd.f32 %v5563_v25, %v5562_v51 }
 0x907   :  { %v5565_v56 = vrot.slane %v5564_v45, 2 }
 0x909   :  { %v5566_v57 = vadd.f32 %v5565_v56, %v5564_v45 }
 0x90b   :  { %v5567_v19 = vrot.slane %v5566_v57, 1 }
 0x90d   :  { %v5568_v5 = vadd.f32 %v5567_v19, %v5566_v57 }
 0x90f   :  { %v5570_v10 = vmul.f32 0.001953125, %v5568_v5 }
 0x911   :  { %v5572_v63 = vsub.f32 %v5570_v10, %v5571_v7  ;;  %v5996_v10 = vpop.permute.xlu0 %5995 }
 0x913   :  { %v5574_v6 = vadd.f32 1e-05, %v5572_v63 }
 0x915   :  { %15048 = vrsqrt.f32 %v5574_v6 }
 0x922   :  { %v15049_v28 = vpop.eup %15048 }
 0x923   :  { %v5576_v39 = vmul.f32 %v15049_v28, %v5573_v17 }
 0x925   :  { %12790 = vmatmul.mubr.msk.f32.vlgmr.msra.gmra.mxu1 %vm2907_vm5, %v5576_v39  ;;  %v5578_v12 = vmul.f32 %v5576_v39, %v5569_v22 }
 0x926   :  { %14778 = vmatpush3.msra.mxu1 %v5585_v2  ;;  %14781 = vmatprep.mubr.msk.f32.mxu1 %vm15093_vm4, %v24048_v62 }
 0x927   :  { %14779 = vmatprep.subr.mxu1 %v24048_v62  ;;  %v5579_v41 = vsub.f32 %v5577_v61, %v5578_v12  ;;  %v5991_v61 = vpop.permute.xlu1 %5990 }
 0x928   :  { %14780 = vmatpush3.msra.mxu1 %v5582_v27 }
 0x929   :  { %14782 = vmatmul.mubr.msk.f32.vlgmr.msra.gmra.mxu1 %vm2907_vm5, %v5576_v39  ;;  %12792 = vmatmul.mubr.msk.f32.vlgmr.msra.gmra.mxu0 %vm2907_vm5, %v5579_v41 }
 0x92a   :  { %14784 = vmatprep.subr.mxu1 %v24048_v62  ;;  %14788 = vmatprep.mubr.msk.f32.mxu1 %vm15093_vm4, %v24048_v62 }
 0x92b   :  { %14785 = vmatpush3.msra.mxu1 %v5585_v2  ;;  %6104 = vmatprep.mubr.f32.mxu0 %v24048_v62 }
 0x92c   :  { %14786 = vmatprep.subr.mxu1 %v24048_v62 }
 0x92d   :  { %14787 = vmatpush3.msra.mxu1 %v5582_v27 }
 0x92e   :  { %14789 = vmatmul.mubr.msk.f32.vlgmr.msra.gmra.mxu1 %vm2907_vm5, %v5579_v41  ;;  %14791 = vmatprep.subr.mxu1 %v24048_v62 }
 0x92f   :  { %14801 = vmatprep.mubr.msk.f32.mxu1 %vm15093_vm4, %v24048_v62 }
 0x9e5   :  { %v5655_v55 = vpop.f32.mrf.mxu1 }
 0x9e6   :  { %v5877_v49 = vrot.slane %v5655_v55, %v19807_v34 }
 0x9e7   :  { %v5657_v40 = vpop.f32.mrf.mxu1 }
 0x9e8   :  { %v5881_v29 = vrot.slane %v5657_v40, %v19807_v34  ;;  %v5895_v32 = vmul.f32 %v5877_v49, %v19613_v35  ;;  %v5892_v43 = vmul.f32 %v5877_v49, %v19599_v36  ;;  %v5898_v9 = vmul.f32 %v5877_v49, %v19624_v20 }
 0x9e9   :  { %v5726_v4 = vpop.f32.mrf.mxu1  ;;  %v5799_v11 = vpop.f32.mrf.mxu0  ;;  %v5889_v51 = vmul.f32 %v5877_v49, %v19584_v52  ;;  %v5886_v36 = vmul.f32 %v5877_v49, %v19568_v60 }
 0x9ea   :  { %v5904_v50 = vrot.slane %v5799_v11, %v19807_v34  ;;  %v5896_v15 = vmul.f32 %v5881_v29, %v19609_v16  ;;  %v5893_v0 = vmul.f32 %v5881_v29, %v19595_v58  ;;  %v5885_v13 = vrot.slane %v5726_v4, %v19807_v34 }
 0x9eb   :  { %v14783_v33 = vpop.f32.mrf.mxu1  ;;  %v5801_v31 = vpop.f32.mrf.mxu0  ;;  %v5899_v25 = vmul.f32 %v5881_v29, %v19620_v44  ;;  %v5890_v58 = vmul.f32 %v5881_v29, %v19578_v23  ;;  %v5887_v45 = vmul.f32 %v5881_v29, %v19565_v24 }
 0x9ec   :  { %v5908_v18 = vrot.slane %v5801_v31, %v19807_v34  ;;  %v5922_v14 = vadd.f32 %v5904_v50, %v5895_v32  ;;  %v5919_v37 = vadd.f32 %v5904_v50, %v5892_v43  ;;  %v5900_v20 = vmul.f32 %v5885_v13, %v19683_v26 }
 0x9ed   :  { %v5925_v46 = vadd.f32 %v5904_v50, %v5898_v9  ;;  %v5891_v57 = vmul.f32 %v5885_v13, %v19641_v30  ;;  %v5916_v19 = vadd.f32 %v5904_v50, %v5889_v51  ;;  %v5894_v44 = vmul.f32 %v5885_v13, %v19655_v3 }
 0x9ee   :  { %v5870_v47 = vpop.f32.mrf.mxu1  ;;  %v5923_v1 = vadd.f32 %v5908_v18, %v5896_v15  ;;  %v5952_v48 = vmul.f32 0.2, %v5922_v14  ;;  %v5920_v35 = vadd.f32 %v5908_v18, %v5893_v0  ;;  %vm5937_vm8 = vcmp.ge.f32.partialorder %v5922_v14, 0.0 }
 0x9ef   :  { %v5912_v53 = vrot.slane %v5870_v47, %v19807_v34  ;;  %v5949_v56 = vmul.f32 0.2, %v5919_v37  ;;  %vm5934_vm10 = vcmp.ge.f32.partialorder %v5919_v37, 0.0  ;;  %v5917_v7 = vadd.f32 %v5908_v18, %v5890_v58 }
 0x9f0   :  { %v14790_v21 = vpop.f32.mrf.mxu1  ;;  %v5953_v16 = vmul.f32 0.2, %v5923_v1  ;;  %vm5938_vm9 = vcmp.ge.f32.partialorder %v5923_v1, 0.0  ;;  %v5967_v52 = vsel %vm5937_vm8, %v5922_v14, %v5952_v48  ;;  %v5950_v22 = vmul.f32 0.2, %v5920_v35 }
 0x9f1   :  { %vm5935_vm11 = vcmp.ge.f32.partialorder %v5920_v35, 0.0  ;;  %v5927_v60 = vadd.f32 %v5912_v53, %v5900_v20  ;;  %v5897_v23 = vmul.f32 %v5885_v13, %v19668_v54  ;;  %v5888_v24 = vmul.f32 %v5885_v13, %v19628_v59  ;;  %v5986_v21 = vpop.permute.xlu1 %5985  ;;  %v6018_v20 = vld [vmem:[%s23851_s6] sm:$0xff] }
 0x9f2   :  { %v5968_v5 = vsel %vm5938_vm9, %v5923_v1, %v5953_v16  ;;  %v5913_v26 = vadd.f32 %v5904_v50, %v5886_v36  ;;  %v19830_v63 = vmul.f32 %v5996_v10, %v5967_v52  ;;  %v5964_v6 = vsel %vm5934_vm10, %v5919_v37, %v5949_v56  ;;  %v6019_v56 = vld [vmem:[%s23851_s6 + $0x8] sm:$0xff]  ;;  %v12803_v52 = vld [vmem:[%s23851_s6 + $0x18] sm:$0xff] }
 0x9f3   :  { %v5918_v30 = vadd.f32 %v5912_v53, %v5891_v57  ;;  %vm5940_vm12 = vcmp.ge.f32.partialorder %v5925_v46, 0.0  ;;  %v19832_v17 = vmul.f32 %v5996_v10, %v5968_v5  ;;  %v5965_v28 = vsel %vm5935_vm11, %v5920_v35, %v5950_v22  ;;  %v6020_v57 = vld [vmem:[%s23851_s6 + $0x10] sm:$0xf]  ;;  %v12858_v5 = vld [vmem:[%s23852_s5 + $0x4b8] sm:$0xff] }
 0x9f4   :  { %vm5931_vm13 = vcmp.ge.f32.partialorder %v5916_v19, 0.0  ;;  %v5926_v39 = vadd.f32 %v5908_v18, %v5899_v25  ;;  %vm5932_vm14 = vcmp.ge.f32.partialorder %v5917_v7, 0.0  ;;  %v5955_v2 = vmul.f32 0.2, %v5925_v46  ;;  %v12861_v22 = vld [vmem:[%s23852_s5 + $0x4d0] sm:$0xff] }
 0x9f5   :  { %vm5942_vm15 = vcmp.ge.f32.partialorder %v5927_v60, 0.0  ;;  %v5957_v3 = vmul.f32 0.2, %v5927_v60  ;;  %v5946_v54 = vmul.f32 0.2, %v5916_v19  ;;  %v5914_v27 = vadd.f32 %v5908_v18, %v5887_v45 }
 0x9f6   :  { %vm5941_vm0 = vcmp.ge.f32.partialorder %v5926_v39, 0.0  ;;  %v5956_v59 = vmul.f32 0.2, %v5926_v39  ;;  %v19834_v12 = vmul.f32 %v5991_v61, %v5965_v28  ;;  %v5947_v41 = vmul.f32 0.2, %v5917_v7  ;;  %v12846_v28 = vld [vmem:[%s23852_s5 + $0x458] sm:$0xff] }
 0x9f7   :  { %v5970_v38 = vsel %vm5940_vm12, %v5925_v46, %v5955_v2  ;;  %v5972_v8 = vsel %vm5942_vm15, %v5927_v60, %v5957_v3  ;;  %v5915_v55 = vadd.f32 %v5912_v53, %v5888_v24  ;;  %v5924_v29 = vadd.f32 %v5912_v53, %v5897_v23  ;;  %v12804_v60 = vld [vmem:[%s23851_s6 + $0x20] sm:$0xff]  ;;  %v12854_v23 = vld [vmem:[%s23852_s5 + $0x498] sm:$0xff]  ;;  %v12852_v24 = vld [vmem:[%s23852_s5 + $0x488] sm:$0xff] }
 0x9f8   :  { %v5971_v49 = vsel %vm5941_vm0, %v5926_v39, %v5956_v59  ;;  %v19837_v40 = vmul.f32 %v6001_v42, %v5972_v8  ;;  %vm5933_vm2 = vcmp.ge.f32.partialorder %v5918_v30, 0.0  ;;  %v5948_v4 = vmul.f32 0.2, %v5918_v30  ;;  %v12845_v39 = vld [vmem:[%s23852_s5 + $0x450] sm:$0xff]  ;;  %v12843_v2 = vld [vmem:[%s23852_s5 + $0x440] sm:$0xff]  ;;  %v12842_v3 = vld [vmem:[%s23852_s5 + $0x438] sm:$0xff] }
 0x9f9   :  { %v19839_v11 = vmul.f32 %v6001_v42, %v5971_v49  ;;  %v5921_v50 = vadd.f32 %v5912_v53, %v5894_v44  ;;  %v5944_v33 = vmul.f32 0.2, %v5914_v27  ;;  %v19841_v31 = vmul.f32 %v6001_v42, %v5970_v38  ;;  %v5981_v53 = vpop.permute.xlu0 %5980  ;;  %v12855_v44 = vld [vmem:[%s23852_s5 + $0x4a0] sm:$0xff]  ;;  %v12836_v59 = vld [vmem:[%s23852_s5 + $0x408] sm:$0xff]  ;;  %v12833_v38 = vld [vmem:[%s23852_s5 + $0x3f0] sm:$0xff] }
 0x9fa   :  { %14792 = vmatpush3.msk.msra.mxu1 %vm160_vm1, %v19837_v40  ;;  %vm5939_vm3 = vcmp.ge.f32.partialorder %v5924_v29, 0.0  ;;  %v5954_v32 = vmul.f32 0.2, %v5924_v29  ;;  %vm5929_vm5 = vcmp.ge.f32.partialorder %v5914_v27, 0.0  ;;  %v5943_v18 = vmul.f32 0.2, %v5913_v26 }
 0x9fb   :  { %12794 = vmatprep.subr.msk.mxu0 %vm160_vm1, %v19839_v11  ;;  %14793 = vmatprep.subr.mxu1 %v24048_v62  ;;  %vm5936_vm7 = vcmp.ge.f32.partialorder %v5921_v50, 0.0  ;;  %v5951_v15 = vmul.f32 0.2, %v5921_v50  ;;  %v5962_v14 = vsel %vm5932_vm14, %v5917_v7, %v5947_v41  ;;  %vm5928_vm8 = vcmp.ge.f32.partialorder %v5913_v26, 0.0  ;;  %v12857_v7 = vld [vmem:[%s23852_s5 + $0x4b0] sm:$0xff]  ;;  %v12834_v41 = vld [vmem:[%s23852_s5 + $0x3f8] sm:$0xff] }
 0x9fc   :  { %v5945_v43 = vmul.f32 0.2, %v5915_v55  ;;  %12795 = vmatpush1.msk.msra.mxu0 %vm160_vm1, %v19841_v31  ;;  %v5969_v47 = vsel %vm5939_vm3, %v5924_v29, %v5954_v32  ;;  %v5961_v1 = vsel %vm5931_vm13, %v5916_v19, %v5946_v54  ;;  %vm5930_vm9 = vcmp.ge.f32.partialorder %v5915_v55, 0.0  ;;  %v12860_v19 = vld [vmem:[%s23852_s5 + $0x4c8] sm:$0xff]  ;;  %v12839_v54 = vld [vmem:[%s23852_s5 + $0x420] sm:$0xff]  ;;  %v12821_v32 = vld [vmem:[%s23852_s5 + $0x390] sm:$0xff] }
 0x9fd   :  { %6064 = vmatprep.subr.mxu0 %v19832_v17  ;;  %v19853_v0 = vmul.f32 %v5996_v10, %v5969_v47  ;;  %v5966_v13 = vsel %vm5936_vm7, %v5921_v50, %v5951_v15  ;;  %v19855_v37 = vmul.f32 %v5991_v61, %v5964_v6  ;;  %v5963_v9 = vsel %vm5933_vm2, %v5918_v30, %v5948_v4  ;;  %v12805_v10 = vld [vmem:[%s23851_s6 + $0x28] sm:$0xf]  ;;  %v12849_v6 = vld [vmem:[%s23852_s5 + $0x470] sm:$0xff]  ;;  %v12831_v8 = vld [vmem:[%s23852_s5 + $0x3e0] sm:$0xff] }
 0x9fe   :  { %v5959_v42 = vsel %vm5929_vm5, %v5914_v27, %v5944_v33  ;;  %6065 = vmatpush1.msra.mxu0 %v19830_v63  ;;  %v19860_v48 = vmul.f32 %v5986_v21, %v5962_v14  ;;  %v5958_v35 = vsel %vm5928_vm8, %v5913_v26, %v5943_v18  ;;  %v19864_v51 = vmul.f32 %v5991_v61, %v5966_v13  ;;  %v12851_v26 = vld [vmem:[%s23852_s5 + $0x480] sm:$0xff]  ;;  %v12848_v30 = vld [vmem:[%s23852_s5 + $0x468] sm:$0xff]  ;;  %v12837_v27 = vld [vmem:[%s23852_s5 + $0x410] sm:$0xff] }
 0x9ff   :  { %6066 = vmatprep.subr.mxu0 %v19834_v12  ;;  %14794 = vmatpush3.msra.mxu1 %v19853_v0  ;;  %v19866_v16 = vmul.f32 %v5986_v21, %v5961_v1  ;;  %v5960_v36 = vsel %vm5930_vm9, %v5915_v55, %v5945_v43  ;;  %v19871_v25 = vmul.f32 %v5986_v21, %v5963_v9  ;;  %vm6021_vm10 = vcmask 293888   ;;  %v12840_v61 = vld [vmem:[%s23852_s5 + $0x428] sm:$0xff]  ;;  %v12830_v55 = vld [vmem:[%s23852_s5 + $0x3d8] sm:$0xff]  ;;  %v12827_v29 = vld [vmem:[%s23852_s5 + $0x3c0] sm:$0xff] }
 0xa00   :  { %6067 = vmatpush1.msra.mxu0 %v19855_v37  ;;  %14795 = vmatprep.subr.mxu1 %v24048_v62  ;;  %v19873_v58 = vmul.f32 %v5981_v53, %v5959_v42  ;;  %v19877_v45 = vmul.f32 %v5981_v53, %v5958_v35  ;;  %v19884_v46 = vmul.f32 %v5981_v53, %v5960_v36  ;;  %v12828_v49 = vld [vmem:[%s23852_s5 + $0x3c8] sm:$0xff]  ;;  %v12825_v4 = vld [vmem:[%s23852_s5 + $0x3b0] sm:$0xff]  ;;  %v12822_v33 = vld [vmem:[%s23852_s5 + $0x398] sm:$0xff]  ;;  %vm8564_vm11 = vcmask 523264  }
 0xa01   :  { %6068 = vmatprep.subr.mxu0 %v19860_v48  ;;  %14796 = vmatpush3.msra.mxu1 %v19864_v51  ;;  %v12824_v50 = vld [vmem:[%s23852_s5 + $0x3a8] sm:$0xff]  ;;  %v12819_v18 = vld [vmem:[%s23852_s5 + $0x380] sm:$0xff]  ;;  %v12818_v15 = vld [vmem:[%s23852_s5 + $0x378] sm:$0xff]  ;;  %vm8737_vm12 = vcmask 257024   ;;  %vm9343_vm8 = vcmask 162816   ;;  %vm11232_vm9 = vcmask 64512  }
 0xa02   :  { %6069 = vmatpush1.msra.mxu0 %v19866_v16  ;;  %14797 = vmatprep.subr.mxu1 %v24048_v62  ;;  %v12816_v14 = vld [vmem:[%s23852_s5 + $0x368] sm:$0xff]  ;;  %v12815_v43 = vld [vmem:[%s23852_s5 + $0x360] sm:$0xff]  ;;  %v12909_v47 = vld [vmem:[%s23852_s5 + $0x650] sm:$0xff] }
 0xa03   :  { %6070 = vmatprep.subr.mxu0 %v19873_v58  ;;  %14798 = vmatpush3.msra.mxu1 %v19871_v25  ;;  %v12908_v1 = vld [vmem:[%s23852_s5 + $0x648] sm:$0xff]  ;;  %v12906_v13 = vld [vmem:[%s23852_s5 + $0x638] sm:$0xff]  ;;  %v12905_v21 = vld [vmem:[%s23852_s5 + $0x630] sm:$0xff] }
 0xa04   :  { %6071 = vmatpush1.msra.mxu0 %v19877_v45  ;;  %14799 = vmatprep.subr.mxu1 %v24048_v62  ;;  %v12903_v9 = vld [vmem:[%s23852_s5 + $0x620] sm:$0xff]  ;;  %v12902_v42 = vld [vmem:[%s23852_s5 + $0x618] sm:$0xff]  ;;  %v12900_v35 = vld [vmem:[%s23852_s5 + $0x608] sm:$0xff] }
 0xa05   :  { %12796 = vmatmul.mubr.msk.f32.vlgmr.msra.gmra.mxu0 %vm6021_vm10, %v6018_v20  ;;  %14800 = vmatpush3.msra.mxu1 %v19884_v46  ;;  %v12899_v53 = vld [vmem:[%s23852_s5 + $0x600] sm:$0xff]  ;;  %v12897_v36 = vld [vmem:[%s23852_s5 + $0x5f0] sm:$0xff] }
 0xa06   :  { %12806 = vmatprep.subr.msk.mxu0 %vm160_vm1, %v19839_v11  ;;  %14802 = vmatmul.mubr.msk.f32.vlgmr.msra.gmra.mxu1 %vm6021_vm10, %v6018_v20  ;;  %v12896_v20 = vld [vmem:[%s23852_s5 + $0x5e8] sm:$0xff] }
 0xa07   :  { %12807 = vmatpush1.msk.msra.mxu0 %vm160_vm1, %v19841_v31  ;;  %14810 = vmatprep.subr.mxu1 %v24048_v62 }
 0xa08   :  { %6348 = vmatprep.subr.mxu0 %v19832_v17  ;;  %14811 = vmatpush3.msk.msra.mxu1 %vm160_vm1, %v19837_v40 }
 0xa09   :  { %6110 = vmatprep.mubr.f32.mxu0 %v24048_v62  ;;  %6349 = vmatpush1.msra.mxu0 %v19830_v63 }
 0xa0a   :  { %14812 = vmatprep.subr.mxu1 %v24048_v62  ;;  %12797 = vmatmul.mubr.msk.f32.gmra.mxu0 %vm6021_vm10, %v6019_v56 }
 0xa0b   :  { %14804 = vmatprep.mubr.msk.f32.mxu1 %vm15093_vm4, %v24048_v62  ;;  %6350 = vmatprep.subr.mxu0 %v19834_v12 }
 0xa0c   :  { %14813 = vmatpush3.msra.mxu1 %v19853_v0  ;;  %6351 = vmatpush1.msra.mxu0 %v19855_v37 }
 0xa0d   :  { %14805 = vmatmul.mubr.msk.f32.gmra.mxu1 %vm6021_vm10, %v6019_v56  ;;  %14814 = vmatprep.subr.mxu1 %v24048_v62  ;;  %v12894_v56 = vld [vmem:[%s23852_s5 + $0x5d8] sm:$0xff] }
 0xa0e   :  { %6352 = vmatprep.subr.mxu0 %v19860_v48  ;;  %14815 = vmatpush3.msra.mxu1 %v19864_v51 }
 0xa0f   :  { %6116 = vmatprep.mubr.f32.mxu0 %v24048_v62  ;;  %6353 = vmatpush1.msra.mxu0 %v19866_v16 }
 0xa10   :  { %14816 = vmatprep.subr.mxu1 %v24048_v62  ;;  %12798 = vmatmul.mubr.msk.f32.gmra.mxu0 %vm6021_vm10, %v6020_v57 }
 0xa11   :  { %14807 = vmatprep.mubr.msk.f32.mxu1 %vm15093_vm4, %v24048_v62  ;;  %6354 = vmatprep.subr.mxu0 %v19873_v58 }
 0xa12   :  { %14817 = vmatpush3.msra.mxu1 %v19871_v25  ;;  %6355 = vmatpush1.msra.mxu0 %v19877_v45 }
 0xa13   :  { %14808 = vmatmul.mubr.msk.f32.gmra.mxu1 %vm6021_vm10, %v6020_v57  ;;  %14818 = vmatprep.subr.mxu1 %v24048_v62  ;;  %v12893_v57 = vld [vmem:[%s23852_s5 + $0x5d0] sm:$0xff] }
 0xa14   :  { %14819 = vmatpush3.msra.mxu1 %v19884_v46  ;;  %6388 = vmatprep.mubr.f32.mxu0 %v24048_v62 }
 0xa15   :  { %12808 = vmatmul.mubr.msk.f32.vlgmr.msra.gmra.mxu0 %vm6021_vm10, %v12803_v52  ;;  %14820 = vmatprep.mubr.msk.f32.mxu1 %vm15093_vm4, %v24048_v62 }
 0xa16   :  { %6394 = vmatprep.mubr.f32.mxu0 %v24048_v62  ;;  %6605 = vmatprep.subr.mxu0 %v12861_v22  ;;  %v12890_v22 = vld [vmem:[%s23852_s5 + $0x5b8] sm:$0xff] }
 0xa17   :  { %14821 = vmatmul.mubr.msk.f32.vlgmr.msra.gmra.mxu1 %vm6021_vm10, %v12803_v52  ;;  %6606 = vmatpush1.msra.mxu0 %v12860_v19  ;;  %v12891_v52 = vld [vmem:[%s23852_s5 + $0x5c0] sm:$0xff]  ;;  %v12888_v19 = vld [vmem:[%s23852_s5 + $0x5a8] sm:$0xff] }
 0xa18   :  { %14823 = vmatprep.mubr.msk.f32.mxu1 %vm15093_vm4, %v24048_v62  ;;  %6607 = vmatprep.subr.mxu0 %v12858_v5  ;;  %v12887_v5 = vld [vmem:[%s23852_s5 + $0x5a0] sm:$0xff] }
 0xa19   :  { %12809 = vmatmul.mubr.msk.f32.gmra.mxu0 %vm6021_vm10, %v12804_v60 }
 0xa1a   :  { %6400 = vmatprep.mubr.f32.mxu0 %v24048_v62  ;;  %6608 = vmatpush1.msra.mxu0 %v12857_v7  ;;  %v12884_v7 = vld [vmem:[%s23852_s5 + $0x588] sm:$0xff] }
 0xa1b   :  { %14824 = vmatmul.mubr.msk.f32.gmra.mxu1 %vm6021_vm10, %v12804_v60  ;;  %6609 = vmatprep.subr.mxu0 %v12855_v44  ;;  %v12885_v60 = vld [vmem:[%s23852_s5 + $0x590] sm:$0xff]  ;;  %v12882_v44 = vld [vmem:[%s23852_s5 + $0x578] sm:$0xff] }
 0xa1c   :  { %14826 = vmatprep.mubr.msk.f32.mxu1 %vm15093_vm4, %v24048_v62  ;;  %6610 = vmatpush1.msra.mxu0 %v12854_v23  ;;  %v12881_v23 = vld [vmem:[%s23852_s5 + $0x570] sm:$0xff] }
 0xa1d   :  { %12810 = vmatmul.mubr.msk.f32.gmra.mxu0 %vm6021_vm10, %v12805_v10  ;;  %6611 = vmatprep.subr.mxu0 %v12852_v24  ;;  %v12878_v24 = vld [vmem:[%s23852_s5 + $0x558] sm:$0xff] }
 0xa1e   :  { %6612 = vmatpush1.msra.mxu0 %v12851_v26  ;;  %v12921_v26 = vld [vmem:[%s23852_s5 + $0x6b0] sm:$0xff] }
 0xa1f   :  { %14827 = vmatmul.mubr.msk.f32.gmra.mxu1 %vm6021_vm10, %v12805_v10  ;;  %6613 = vmatprep.subr.mxu0 %v12849_v6  ;;  %v12879_v10 = vld [vmem:[%s23852_s5 + $0x560] sm:$0xff]  ;;  %v12876_v6 = vld [vmem:[%s23852_s5 + $0x548] sm:$0xff] }
 0xa20   :  { %6614 = vmatpush1.msra.mxu0 %v12848_v30  ;;  %6752 = vmatprep.mubr.f32.mxu1 %v24048_v62  ;;  %v12920_v30 = vld [vmem:[%s23852_s5 + $0x6a8] sm:$0xff] }
 0xa21   :  { %6615 = vmatprep.subr.mxu0 %v12846_v28  ;;  %6712 = vmatprep.subr.mxu1 %v12921_v26  ;;  %v12875_v28 = vld [vmem:[%s23852_s5 + $0x540] sm:$0xff] }
 0xa22   :  { %6616 = vmatpush1.msra.mxu0 %v12845_v39  ;;  %6713 = vmatpush1.msra.mxu1 %v12920_v30  ;;  %v12918_v39 = vld [vmem:[%s23852_s5 + $0x698] sm:$0xff]  ;;  %v6303_v30 = vld [vmem:[%s23852_s5 + $0x320] sm:$0xff] }
 0xa23   :  { %6617 = vmatprep.subr.mxu0 %v12843_v2  ;;  %6714 = vmatprep.subr.mxu1 %v12918_v39  ;;  %v12873_v2 = vld [vmem:[%s23852_s5 + $0x530] sm:$0xff]  ;;  %v12898_v39 = vld [vmem:[%s23852_s5 + $0x5f8] sm:$0xff] }
 0xa24   :  { %6618 = vmatpush1.msra.mxu0 %v12842_v3  ;;  %v12917_v3 = vld [vmem:[%s23852_s5 + $0x690] sm:$0xff] }
 0xa25   :  { %6619 = vmatprep.subr.mxu0 %v12840_v61  ;;  %6715 = vmatpush1.msra.mxu1 %v12917_v3  ;;  %v12872_v61 = vld [vmem:[%s23852_s5 + $0x528] sm:$0xff]  ;;  %v12850_v3 = vld [vmem:[%s23852_s5 + $0x478] sm:$0xff] }
 0xa26   :  { %6620 = vmatpush1.msra.mxu0 %v12839_v54  ;;  %v12915_v54 = vld [vmem:[%s23852_s5 + $0x680] sm:$0xff] }
 0xa27   :  { %6621 = vmatprep.subr.mxu0 %v12837_v27  ;;  %6716 = vmatprep.subr.mxu1 %v12915_v54  ;;  %v12870_v27 = vld [vmem:[%s23852_s5 + $0x518] sm:$0xff]  ;;  %v12895_v54 = vld [vmem:[%s23852_s5 + $0x5e0] sm:$0xff] }
 0xa28   :  { %6622 = vmatpush1.msra.mxu0 %v12836_v59  ;;  %v12914_v59 = vld [vmem:[%s23852_s5 + $0x678] sm:$0xff] }
 0xa29   :  { %6623 = vmatprep.subr.mxu0 %v12834_v41  ;;  %6717 = vmatpush1.msra.mxu1 %v12914_v59  ;;  %v12869_v41 = vld [vmem:[%s23852_s5 + $0x510] sm:$0xff] }
 0xa2a   :  { %6624 = vmatpush1.msra.mxu0 %v12833_v38  ;;  %v12912_v38 = vld [vmem:[%s23852_s5 + $0x668] sm:$0xff] }
 0xa2b   :  { %6625 = vmatprep.subr.mxu0 %v12831_v8  ;;  %6718 = vmatprep.subr.mxu1 %v12912_v38  ;;  %v12867_v8 = vld [vmem:[%s23852_s5 + $0x500] sm:$0xff]  ;;  %v6300_v38 = vld [vmem:[%s23852_s5 + $0x308] sm:$0xff] }
 0xa2c   :  { %6626 = vmatpush1.msra.mxu0 %v12830_v55  ;;  %v12911_v55 = vld [vmem:[%s23852_s5 + $0x660] sm:$0xff] }
 0xa2d   :  { %6627 = vmatprep.subr.mxu0 %v12828_v49  ;;  %6719 = vmatpush1.msra.mxu1 %v12911_v55  ;;  %v12866_v49 = vld [vmem:[%s23852_s5 + $0x4f8] sm:$0xff]  ;;  %v6299_v55 = vld [vmem:[%s23852_s5 + $0x300] sm:$0xff] }
 0xa2e   :  { %6628 = vmatpush1.msra.mxu0 %v12827_v29  ;;  %v12910_v29 = vld [vmem:[%s23852_s5 + $0x658] sm:$0xff] }
 0xa2f   :  { %6629 = vmatprep.subr.mxu0 %v12825_v4  ;;  %13975 = vmatprep.subr.mxu1 %v12910_v29  ;;  %v12864_v4 = vld [vmem:[%s23852_s5 + $0x4e8] sm:$0xff] }
 0xa30   :  { %6630 = vmatpush1.msra.mxu0 %v12824_v50  ;;  %v12863_v50 = vld [vmem:[%s23852_s5 + $0x4e0] sm:$0xff]  ;;  %v12844_v29 = vld [vmem:[%s23852_s5 + $0x448] sm:$0xff] }
 0xa31   :  { %6631 = vmatprep.subr.mxu0 %v12822_v33  ;;  %v6309_v33 = vld [vmem:[%s23852_s5 + $0x350] sm:$0xff] }
 0xa32   :  { %6632 = vmatpush1.msra.mxu0 %v12821_v32 }
 0xa33   :  { %6633 = vmatprep.subr.mxu0 %v12819_v18 }
 0xa34   :  { %6634 = vmatpush1.msra.mxu0 %v12818_v15 }
 0xa35   :  { %6635 = vmatprep.subr.mxu0 %v12816_v14 }
 0xa36   :  { %6636 = vmatpush1.msra.mxu0 %v12815_v43 }
 0xa37   :  { %6637 = vmatprep.subr.mxu0 %v12909_v47 }
 0xa38   :  { %6638 = vmatpush2.msra.mxu0 %v12908_v1 }
 0xa39   :  { %6639 = vmatprep.subr.mxu0 %v12906_v13 }
 0xa3a   :  { %6640 = vmatpush2.msra.mxu0 %v12905_v21 }
 0xa3b   :  { %6641 = vmatprep.subr.mxu0 %v12903_v9 }
 0xa3c   :  { %6642 = vmatpush2.msra.mxu0 %v12902_v42 }
 0xa3d   :  { %6643 = vmatprep.subr.mxu0 %v12900_v35 }
 0xa3e   :  { %6644 = vmatpush2.msra.mxu0 %v12899_v53 }
 0xa3f   :  { %6645 = vmatprep.subr.mxu0 %v12897_v36  ;;  %v12862_v36 = vld [vmem:[%s23852_s5 + $0x4d8] sm:$0xff] }
 0xa40   :  { %6646 = vmatpush2.msra.mxu0 %v12896_v20 }
 0xa41   :  { %6647 = vmatprep.subr.mxu0 %v12894_v56 }
 0xa42   :  { %6648 = vmatpush2.msra.mxu0 %v12893_v57  ;;  %v12907_v57 = vld [vmem:[%s23852_s5 + $0x640] sm:$0xff] }
 0xa43   :  { %6649 = vmatprep.subr.mxu0 %v12891_v52  ;;  %v6308_v52 = vld [vmem:[%s23852_s5 + $0x348] sm:$0xff] }
 0xa44   :  { %6650 = vmatpush2.msra.mxu0 %v12890_v22  ;;  %v12859_v22 = vld [vmem:[%s23852_s5 + $0x4c0] sm:$0xff] }
 0xa45   :  { %6651 = vmatprep.subr.mxu0 %v12888_v19  ;;  %v6306_v19 = vld [vmem:[%s23852_s5 + $0x338] sm:$0xff] }
 0xa46   :  { %6652 = vmatpush2.msra.mxu0 %v12887_v5 }
 0xa47   :  { %6653 = vmatprep.subr.mxu0 %v12885_v60  ;;  %v12904_v60 = vld [vmem:[%s23852_s5 + $0x628] sm:$0xff] }
 0xa48   :  { %6654 = vmatpush2.msra.mxu0 %v12884_v7 }
 0xa49   :  { %6655 = vmatprep.subr.mxu0 %v12882_v44  ;;  %v12856_v44 = vld [vmem:[%s23852_s5 + $0x4a8] sm:$0xff] }
 0xa4a   :  { %6656 = vmatpush2.msra.mxu0 %v12881_v23 }
 0xa4b   :  { %6657 = vmatprep.subr.mxu0 %v12879_v10  ;;  %v12901_v10 = vld [vmem:[%s23852_s5 + $0x610] sm:$0xff] }
 0xa4c   :  { %6658 = vmatpush2.msra.mxu0 %v12878_v24  ;;  %v6305_v24 = vld [vmem:[%s23852_s5 + $0x330] sm:$0xff] }
 0xa4d   :  { %6659 = vmatprep.subr.mxu0 %v12876_v6  ;;  %v12853_v6 = vld [vmem:[%s23852_s5 + $0x490] sm:$0xff] }
 0xa4e   :  { %6660 = vmatpush2.msra.mxu0 %v12875_v28 }
 0xa4f   :  { %6661 = vmatprep.subr.mxu0 %v12873_v2 }
 0xa50   :  { %6662 = vmatpush2.msra.mxu0 %v12872_v61 }
 0xa51   :  { %6663 = vmatprep.subr.mxu0 %v12870_v27  ;;  %v6302_v27 = vld [vmem:[%s23852_s5 + $0x318] sm:$0xff] }
 0xa52   :  { %6664 = vmatpush2.msra.mxu0 %v12869_v41  ;;  %v12847_v41 = vld [vmem:[%s23852_s5 + $0x460] sm:$0xff] }
 0xa53   :  { %6665 = vmatprep.subr.mxu0 %v12867_v8  ;;  %v12892_v8 = vld [vmem:[%s23852_s5 + $0x5c8] sm:$0xff] }
 0xa54   :  { %6666 = vmatpush2.msra.mxu0 %v12866_v49 }
 0xa55   :  { %6667 = vmatprep.subr.mxu0 %v12864_v4  ;;  %v12889_v4 = vld [vmem:[%s23852_s5 + $0x5b0] sm:$0xff] }
 0xa56   :  { %6668 = vmatpush2.msra.mxu0 %v12863_v50  ;;  %v6298_v50 = vld [vmem:[%s23852_s5 + $0x2f8] sm:$0xff] }
 0xa57   :  { %7047 = vmatprep.subr.mxu0 %v6309_v33  ;;  %v12841_v33 = vld [vmem:[%s23852_s5 + $0x430] sm:$0xff] }
 0xac5   :  { %v20179_v32 = vpop.f32.mrf.mxu0 }
 0xac6   :  { %v20181_v18 = vpop.f32.mrf.mxu1 }
 0xac7   :  { %v20183_v15 = vpop.f32.mrf.mxu0 }
 0xac8   :  { %v14803_v14 = vpop.f32.mrf.mxu1 }
 0xac9   :  { %v6250_v14 = vld [vmem:[%s23852_s5 + $0x178] sm:$0xff] }
 0xaca   :  { %v20185_v43 = vpop.f32.mrf.mxu0 }
 0xacc   :  { %v20187_v47 = vpop.f32.mrf.mxu0 }
 0xacd   :  { %v20189_v1 = vpop.f32.mrf.mxu1 }
 0xacf   :  { %v14806_v13 = vpop.f32.mrf.mxu1 }
 0xad0   :  { %v20191_v21 = vpop.f32.mrf.mxu0  ;;  %v12886_v13 = vld [vmem:[%s23852_s5 + $0x598] sm:$0xff] }
 0xad2   :  { %v20193_v9 = vpop.f32.mrf.mxu0 }
 0xad3   :  { %v20195_v42 = vpop.f32.mrf.mxu1 }
 0xad5   :  { %v14809_v35 = vpop.f32.mrf.mxu1  ;;  %v20197_v53 = vpop.f32.mrf.mxu0 }
 0xad6   :  { %v6295_v35 = vld [vmem:[%s23852_s5 + $0x2e0] sm:$0xff] }
 0xad7   :  { %v20202_v20 = vpop.f32.mrf.mxu1  ;;  %v20204_v56 = vpop.f32.mrf.mxu0 }
 0xad8   :  { %12923 = vmatmul.mubr.msk.f32.vlgmr.msra.gmra.mxu1 %vm5132_vm6, %v20202_v20  ;;  %6669 = vmatprep.mubr.f32.mxu0 %v20204_v56 }
 0xad9   :  { %13976 = vmatpush3.msra.mxu1 %v12862_v36  ;;  %v20221_v5 = vpop.f32.mrf.mxu0  ;;  %6670 = vmatmul.mubr.f32.vlgmr.msra.gmra.mxu0 %v20197_v53  ;;  %v14822_v7 = vpop.f32.mrf.mxu1  ;;  %v12838_v36 = vld [vmem:[%s23852_s5 + $0x418] sm:$0xff] }
 0xada   :  { %13977 = vmatprep.subr.mxu1 %v12907_v57  ;;  %7048 = vmatpush1.msra.mxu0 %v6308_v52  ;;  %v6247_v57 = vld [vmem:[%s23852_s5 + $0x160] sm:$0xff]  ;;  %v12880_v7 = vld [vmem:[%s23852_s5 + $0x568] sm:$0xff] }
 0xadb   :  { %13978 = vmatpush3.msra.mxu1 %v12859_v22  ;;  %v20230_v23 = vpop.f32.mrf.mxu0  ;;  %7049 = vmatprep.subr.mxu0 %v6306_v19  ;;  %v20238_v26 = vpop.f32.mrf.mxu1  ;;  %v12883_v52 = vld [vmem:[%s23852_s5 + $0x580] sm:$0xff]  ;;  %v6292_v22 = vld [vmem:[%s23852_s5 + $0x2c8] sm:$0xff] }
 0xadc   :  { %13979 = vmatprep.subr.mxu1 %v12904_v60  ;;  %6675 = vmatprep.mubr.f32.mxu0 %v20230_v23  ;;  %v12835_v19 = vld [vmem:[%s23852_s5 + $0x400] sm:$0xff]  ;;  %v6244_v60 = vld [vmem:[%s23852_s5 + $0x148] sm:$0xff] }
 0xadd   :  { %13980 = vmatpush3.msra.mxu1 %v12856_v44  ;;  %v20247_v28 = vpop.f32.mrf.mxu0  ;;  %6676 = vmatmul.mubr.f32.gmra.mxu0 %v20221_v5  ;;  %v14825_v2 = vpop.f32.mrf.mxu1  ;;  %v6289_v44 = vld [vmem:[%s23852_s5 + $0x2b0] sm:$0xff] }
 0xade   :  { %13981 = vmatprep.subr.mxu1 %v12901_v10  ;;  %7050 = vmatpush1.msra.mxu0 %v6305_v24  ;;  %v12832_v10 = vld [vmem:[%s23852_s5 + $0x3e8] sm:$0xff]  ;;  %v6241_v24 = vld [vmem:[%s23852_s5 + $0x130] sm:$0xff]  ;;  %v6238_v2 = vld [vmem:[%s23852_s5 + $0x118] sm:$0xff] }
 0xadf   :  { %13982 = vmatpush3.msra.mxu1 %v12853_v6  ;;  %v20256_v61 = vpop.f32.mrf.mxu0  ;;  %7051 = vmatprep.subr.mxu0 %v6303_v30  ;;  %v20264_v59 = vpop.f32.mrf.mxu1  ;;  %v12877_v6 = vld [vmem:[%s23852_s5 + $0x550] sm:$0xff]  ;;  %v6286_v30 = vld [vmem:[%s23852_s5 + $0x298] sm:$0xff] }
 0xae0   :  { %13983 = vmatprep.subr.mxu1 %v12898_v39  ;;  %6681 = vmatprep.mubr.f32.mxu0 %v20256_v61  ;;  %v12829_v39 = vld [vmem:[%s23852_s5 + $0x3d0] sm:$0xff] }
 0xae1   :  { %13984 = vmatpush3.msra.mxu1 %v12850_v3  ;;  %6682 = vmatmul.mubr.f32.gmra.mxu0 %v20247_v28  ;;  %v14828_v49 = vpop.f32.mrf.mxu1  ;;  %v12874_v3 = vld [vmem:[%s23852_s5 + $0x538] sm:$0xff] }
 0xae2   :  { %13985 = vmatprep.subr.mxu1 %v12895_v54  ;;  %7052 = vmatpush1.msra.mxu0 %v6302_v27  ;;  %v6283_v54 = vld [vmem:[%s23852_s5 + $0x280] sm:$0xff]  ;;  %v12826_v27 = vld [vmem:[%s23852_s5 + $0x3b8] sm:$0xff]  ;;  %v6232_v49 = vld [vmem:[%s23852_s5 + $0xe8] sm:$0xff] }
 0xae3   :  { %13986 = vmatpush3.msra.mxu1 %v12847_v41  ;;  %7053 = vmatprep.subr.mxu0 %v6300_v38  ;;  %v6235_v41 = vld [vmem:[%s23852_s5 + $0x100] sm:$0xff] }
 0xae4   :  { %13987 = vmatprep.subr.mxu1 %v12892_v8  ;;  %7054 = vmatpush1.msra.mxu0 %v6299_v55  ;;  %v12871_v38 = vld [vmem:[%s23852_s5 + $0x520] sm:$0xff]  ;;  %v6280_v8 = vld [vmem:[%s23852_s5 + $0x268] sm:$0xff] }
 0xae5   :  { %13988 = vmatpush3.msra.mxu1 %v12844_v29  ;;  %7087 = vmatprep.mubr.f32.mxu0 %v24048_v62  ;;  %v12823_v55 = vld [vmem:[%s23852_s5 + $0x3a0] sm:$0xff]  ;;  %v12868_v29 = vld [vmem:[%s23852_s5 + $0x508] sm:$0xff] }
 0xae6   :  { %13989 = vmatprep.subr.mxu1 %v12889_v4  ;;  %14023 = vmatprep.subr.mxu0 %v6298_v50  ;;  %v6277_v4 = vld [vmem:[%s23852_s5 + $0x250] sm:$0xff]  ;;  %v12820_v50 = vld [vmem:[%s23852_s5 + $0x388] sm:$0xff] }
 0xae7   :  { %13990 = vmatpush3.msra.mxu1 %v12841_v33  ;;  %12929 = vmatmul.mubr.msk.f32.vlgmr.msra.gmra.mxu0 %vm5132_vm6, %v20181_v18  ;;  %v6229_v33 = vld [vmem:[%s23852_s5 + $0xd0] sm:$0xff] }
 0xae8   :  { %14024 = vmatpush3.msra.mxu0 %v6250_v14  ;;  %13991 = vmatprep.subr.mxu1 %v12886_v13  ;;  %v12865_v14 = vld [vmem:[%s23852_s5 + $0x4f0] sm:$0xff]  ;;  %v6274_v13 = vld [vmem:[%s23852_s5 + $0x238] sm:$0xff] }
 0xae9   :  { %14025 = vmatprep.subr.mxu0 %v6295_v35  ;;  %13992 = vmatpush3.msra.mxu1 %v12838_v36  ;;  %v12817_v35 = vld [vmem:[%s23852_s5 + $0x370] sm:$0xff]  ;;  %v6226_v36 = vld [vmem:[%s23852_s5 + $0xb8] sm:$0xff] }
 0xaea   :  { %14026 = vmatpush3.msra.mxu0 %v6247_v57  ;;  %13993 = vmatprep.subr.mxu1 %v12883_v52  ;;  %v6271_v57 = vld [vmem:[%s23852_s5 + $0x220] sm:$0xff] }
 0xaeb   :  { %7093 = vmatprep.mubr.f32.mxu0 %v24048_v62  ;;  %14027 = vmatprep.subr.mxu0 %v6292_v22  ;;  %v6223_v52 = vld [vmem:[%s23852_s5 + $0xa0] sm:$0xff]  ;;  %v6268_v22 = vld [vmem:[%s23852_s5 + $0x208] sm:$0xff] }
 0xaec   :  { %13994 = vmatpush3.msra.mxu1 %v12835_v19  ;;  %12930 = vmatmul.mubr.msk.f32.gmra.mxu0 %vm5132_vm6, %v20189_v1  ;;  %v6220_v19 = vld [vmem:[%s23852_s5 + $0x88] sm:$0xff] }
 0xaed   :  { %14028 = vmatpush3.msra.mxu0 %v6244_v60  ;;  %13995 = vmatprep.subr.mxu1 %v12880_v7  ;;  %v6265_v60 = vld [vmem:[%s23852_s5 + $0x1f0] sm:$0xff]  ;;  %v6262_v7 = vld [vmem:[%s23852_s5 + $0x1d8] sm:$0xff] }
 0xaee   :  { %14029 = vmatprep.subr.mxu0 %v6289_v44  ;;  %13996 = vmatpush3.msra.mxu1 %v12832_v10  ;;  %v6214_v44 = vld [vmem:[%s23852_s5 + $0x58] sm:$0xff]  ;;  %v6259_v10 = vld [vmem:[%s23852_s5 + $0x1c0] sm:$0xff] }
 0xaef   :  { %14030 = vmatpush3.msra.mxu0 %v6241_v24  ;;  %13997 = vmatprep.subr.mxu1 %v12877_v6  ;;  %v6211_v24 = vld [vmem:[%s23852_s5 + $0x40] sm:$0xff]  ;;  %v6256_v6 = vld [vmem:[%s23852_s5 + $0x1a8] sm:$0xff] }
 0xaf0   :  { %7099 = vmatprep.mubr.f32.mxu0 %v24048_v62  ;;  %14031 = vmatprep.subr.mxu0 %v6286_v30  ;;  %v6249_v30 = vld [vmem:[%s23852_s5 + $0x170] sm:$0xff] }
 0xaf1   :  { %6758 = vmatprep.mubr.f32.mxu1 %v24048_v62  ;;  %13998 = vmatpush3.msra.mxu1 %v12829_v39  ;;  %v6208_v39 = vld [vmem:[%s23852_s5 + $0x28] sm:$0xff] }
 0xaf2   :  { %12931 = vmatmul.mubr.msk.f32.gmra.mxu0 %vm5132_vm6, %v20195_v42  ;;  %12924 = vmatmul.mubr.msk.f32.gmra.mxu1 %vm5132_vm6, %v20238_v26 }
 0xaf3   :  { %14032 = vmatpush3.msra.mxu0 %v6238_v2  ;;  %13999 = vmatprep.subr.mxu1 %v12874_v3  ;;  %v6248_v2 = vld [vmem:[%s23852_s5 + $0x168] sm:$0xff]  ;;  %v6205_v3 = vld [vmem:[%s23852_s5 + $0x10] sm:$0xff] }
 0xaf4   :  { %14033 = vmatprep.subr.mxu0 %v6283_v54  ;;  %14000 = vmatpush3.msra.mxu1 %v12826_v27  ;;  %v6246_v54 = vld [vmem:[%s23852_s5 + $0x158] sm:$0xff]  ;;  %v6245_v27 = vld [vmem:[%s23852_s5 + $0x150] sm:$0xff] }
 0xaf5   :  { %14034 = vmatpush3.msra.mxu0 %v6235_v41  ;;  %14001 = vmatprep.subr.mxu1 %v12871_v38  ;;  %v6243_v41 = vld [vmem:[%s23852_s5 + $0x140] sm:$0xff]  ;;  %v6310_v38 = vld [vmem:[%s23852_s5 + $0x358] sm:$0xff] }
 0xaf6   :  { %14035 = vmatprep.subr.mxu0 %v6280_v8  ;;  %6764 = vmatprep.mubr.f32.mxu1 %v24048_v62  ;;  %v6307_v8 = vld [vmem:[%s23852_s5 + $0x340] sm:$0xff] }
 0xaf7   :  { %14002 = vmatpush3.msra.mxu1 %v12823_v55  ;;  %14036 = vmatpush3.msra.mxu0 %v6232_v49  ;;  %v6240_v55 = vld [vmem:[%s23852_s5 + $0x128] sm:$0xff]  ;;  %v6239_v49 = vld [vmem:[%s23852_s5 + $0x120] sm:$0xff] }
 0xaf8   :  { %12925 = vmatmul.mubr.msk.f32.gmra.mxu1 %vm5132_vm6, %v20264_v59  ;;  %14003 = vmatprep.subr.mxu1 %v12868_v29  ;;  %v6237_v29 = vld [vmem:[%s23852_s5 + $0x110] sm:$0xff] }
 0xaf9   :  { %14037 = vmatprep.subr.mxu0 %v6277_v4  ;;  %14004 = vmatpush3.msra.mxu1 %v12820_v50  ;;  %v6304_v4 = vld [vmem:[%s23852_s5 + $0x328] sm:$0xff]  ;;  %v6234_v50 = vld [vmem:[%s23852_s5 + $0xf8] sm:$0xff] }
 0xafa   :  { %14038 = vmatpush3.msra.mxu0 %v6229_v33  ;;  %14005 = vmatprep.subr.mxu1 %v12865_v14  ;;  %v6301_v33 = vld [vmem:[%s23852_s5 + $0x310] sm:$0xff] }
 0xafb   :  { %14039 = vmatprep.subr.mxu0 %v6274_v13  ;;  %14006 = vmatpush3.msra.mxu1 %v12817_v35  ;;  %v6233_v14 = vld [vmem:[%s23852_s5 + $0xf0] sm:$0xff]  ;;  %v6231_v13 = vld [vmem:[%s23852_s5 + $0xe0] sm:$0xff]  ;;  %v6230_v35 = vld [vmem:[%s23852_s5 + $0xd8] sm:$0xff] }
 0xafc   :  { %6835 = vmatprep.mubr.f32.mxu1 %v20204_v56  ;;  %14040 = vmatpush3.msra.mxu0 %v6226_v36  ;;  %v12922_v56 = vld [vmem:[%s23852_s5 + $0x6b8] sm:$0xff]  ;;  %v6225_v36 = vld [vmem:[%s23852_s5 + $0xb0] sm:$0xff] }
 0xafd   :  { %6836 = vmatmul.mubr.f32.vlgmr.msra.gmra.mxu1 %v20197_v53  ;;  %14041 = vmatprep.subr.mxu0 %v6271_v57  ;;  %v6217_v53 = vld [vmem:[%s23852_s5 + $0x70] sm:$0xff]  ;;  %v6224_v57 = vld [vmem:[%s23852_s5 + $0xa8] sm:$0xff] }
 0xafe   :  { %14042 = vmatpush3.msra.mxu0 %v6223_v52  ;;  %7170 = vmatprep.mubr.f32.mxu0 %v20183_v15  ;;  %v6222_v52 = vld [vmem:[%s23852_s5 + $0x98] sm:$0xff] }
 0xaff   :  { %14043 = vmatprep.subr.mxu0 %v6268_v22  ;;  %6840 = vmatprep.mubr.f32.mxu1 %v20230_v23  ;;  %v12919_v23 = vld [vmem:[%s23852_s5 + $0x6a0] sm:$0xff]  ;;  %v6221_v22 = vld [vmem:[%s23852_s5 + $0x90] sm:$0xff] }
 0xb00   :  { %14829 = vmatprep.subr.mxu1 %v24048_v62  ;;  %14044 = vmatpush3.msra.mxu0 %v6220_v19  ;;  %v6218_v19 = vld [vmem:[%s23852_s5 + $0x78] sm:$0xff] }
 0xb01   :  { %6841 = vmatmul.mubr.f32.gmra.mxu1 %v20221_v5  ;;  %14045 = vmatprep.subr.mxu0 %v6265_v60  ;;  %v12916_v5 = vld [vmem:[%s23852_s5 + $0x688] sm:$0xff] }
 0xb02   :  { %14830 = vmatpush3.msra.mxu1 %v12922_v56  ;;  %14046 = vmatpush3.msra.mxu0 %v6217_v53  ;;  %v6216_v60 = vld [vmem:[%s23852_s5 + $0x68] sm:$0xff]  ;;  %v6215_v56 = vld [vmem:[%s23852_s5 + $0x60] sm:$0xff] }
 0xb03   :  { %14831 = vmatprep.subr.mxu1 %v24048_v62  ;;  %14047 = vmatprep.subr.mxu0 %v6262_v7  ;;  %v6212_v53 = vld [vmem:[%s23852_s5 + $0x48] sm:$0xff]  ;;  %v6210_v7 = vld [vmem:[%s23852_s5 + $0x38] sm:$0xff] }
 0xb04   :  { %14832 = vmatpush3.msra.mxu1 %v12919_v23  ;;  %6845 = vmatprep.mubr.f32.mxu1 %v20256_v61  ;;  %v12913_v61 = vld [vmem:[%s23852_s5 + $0x670] sm:$0xff] }
 0xb05   :  { %14833 = vmatprep.subr.mxu1 %v24048_v62  ;;  %14048 = vmatpush3.msra.mxu0 %v6214_v44  ;;  %v12993_v23 = vld [vmem:[%s23852_s5 + $0x830] sm:$0xff] }
 0xb06   :  { %6846 = vmatmul.mubr.f32.gmra.mxu1 %v20247_v28  ;;  %14049 = vmatprep.subr.mxu0 %v6259_v10  ;;  %v6253_v28 = vld [vmem:[%s23852_s5 + $0x190] sm:$0xff] }
 0xb07   :  { %14834 = vmatpush3.msra.mxu1 %v12916_v5  ;;  %14050 = vmatpush3.msra.mxu0 %v6211_v24  ;;  %v6209_v44 = vld [vmem:[%s23852_s5 + $0x30] sm:$0xff]  ;;  %v6206_v5 = vld [vmem:[%s23852_s5 + $0x18] sm:$0xff]  ;;  %v12992_v24 = vld [vmem:[%s23852_s5 + $0x828] sm:$0xff] }
 0xb08   :  { %14835 = vmatprep.subr.mxu1 %v24048_v62  ;;  %14051 = vmatprep.subr.mxu0 %v6256_v6  ;;  %v20619_v10 = vld [vmem:[%s23851_s6 + $0x30] sm:$0xff]  ;;  %v6204_v6 = vld [vmem:[%s23852_s5 + $0x8] sm:$0xff] }
 0xb09   :  { %14836 = vmatpush3.msra.mxu1 %v12913_v61  ;;  %14837 = vmatprep.mubr.msk.f32.mxu1 %vm15093_vm4, %v24048_v62  ;;  %v12990_v61 = vld [vmem:[%s23852_s5 + $0x818] sm:$0xff] }
 0xb0a   :  { %6940 = vmatprep.subr.mxu1 %v6249_v30  ;;  %14052 = vmatpush3.msra.mxu0 %v6208_v39  ;;  %v6203_v30 = vld [vmem:[%s23852_s5] sm:$0xff]  ;;  %v20646_v39 = vld [vmem:[%s23851_s6 + $0x38] sm:$0xff] }
 0xb0b   :  { %14838 = vmatmul.mubr.msk.f32.vlgmr.msra.gmra.mxu1 %vm5132_vm6, %v20202_v20  ;;  %14053 = vmatprep.subr.mxu0 %v6253_v28  ;;  %v6242_v20 = vld [vmem:[%s23852_s5 + $0x138] sm:$0xff]  ;;  %v6297_v28 = vld [vmem:[%s23852_s5 + $0x2f0] sm:$0xff] }
 0xb0c   :  { %6941 = vmatpush1.msra.mxu1 %v6248_v2  ;;  %14054 = vmatpush3.msra.mxu0 %v6205_v3  ;;  %v6296_v2 = vld [vmem:[%s23852_s5 + $0x2e8] sm:$0xff]  ;;  %v12989_v3 = vld [vmem:[%s23852_s5 + $0x810] sm:$0xff] }
 0xb0d   :  { %6942 = vmatprep.subr.mxu1 %v6246_v54  ;;  %7171 = vmatmul.mubr.f32.vlgmr.msra.gmra.mxu0 %v20179_v32  ;;  %v6294_v54 = vld [vmem:[%s23852_s5 + $0x2d8] sm:$0xff] }
 0xb0e   :  { %6943 = vmatpush1.msra.mxu1 %v6245_v27  ;;  %14846 = vmatprep.subr.mxu0 %v24048_v62  ;;  %v12987_v27 = vld [vmem:[%s23852_s5 + $0x800] sm:$0xff] }
 0xb0f   :  { %14840 = vmatprep.mubr.msk.f32.mxu1 %vm15093_vm4, %v24048_v62  ;;  %6944 = vmatprep.subr.mxu1 %v6243_v41  ;;  %v6293_v41 = vld [vmem:[%s23852_s5 + $0x2d0] sm:$0xff] }
 0xb10   :  { %7175 = vmatprep.mubr.f32.mxu0 %v20187_v47  ;;  %14847 = vmatpush3.msra.mxu0 %v6310_v38  ;;  %v20672_v38 = vld [vmem:[%s23851_s6 + $0x40] sm:$0xf] }
 0xb11   :  { %14841 = vmatmul.mubr.msk.f32.gmra.mxu1 %vm5132_vm6, %v20238_v26  ;;  %14848 = vmatprep.subr.mxu0 %v24048_v62  ;;  %v6236_v26 = vld [vmem:[%s23852_s5 + $0x108] sm:$0xff] }
 0xb12   :  { %6945 = vmatpush1.msra.mxu1 %v6242_v20  ;;  %14849 = vmatpush3.msra.mxu0 %v6307_v8  ;;  %v6291_v20 = vld [vmem:[%s23852_s5 + $0x2c0] sm:$0xff]  ;;  %v12986_v8 = vld [vmem:[%s23852_s5 + $0x7f8] sm:$0xff] }
 0xb13   :  { %6946 = vmatprep.subr.mxu1 %v6240_v55  ;;  %7176 = vmatmul.mubr.f32.gmra.mxu0 %v20185_v43  ;;  %v6290_v55 = vld [vmem:[%s23852_s5 + $0x2b8] sm:$0xff] }
 0xb14   :  { %6947 = vmatpush1.msra.mxu1 %v6239_v49  ;;  %14850 = vmatprep.subr.mxu0 %v24048_v62  ;;  %v12984_v49 = vld [vmem:[%s23852_s5 + $0x7e8] sm:$0xff] }
 0xb15   :  { %14843 = vmatprep.mubr.msk.f32.mxu1 %vm15093_vm4, %v24048_v62  ;;  %6948 = vmatprep.subr.mxu1 %v6237_v29  ;;  %v6288_v29 = vld [vmem:[%s23852_s5 + $0x2a8] sm:$0xff] }
 0xb16   :  { %7180 = vmatprep.mubr.f32.mxu0 %v20193_v9  ;;  %14851 = vmatpush3.msra.mxu0 %v6304_v4  ;;  %v12983_v4 = vld [vmem:[%s23852_s5 + $0x7e0] sm:$0xff] }
 0xb17   :  { %14844 = vmatmul.mubr.msk.f32.gmra.mxu1 %vm5132_vm6, %v20264_v59  ;;  %14852 = vmatprep.subr.mxu0 %v24048_v62  ;;  %v6228_v59 = vld [vmem:[%s23852_s5 + $0xc8] sm:$0xff] }
 0xb18   :  { %6949 = vmatpush1.msra.mxu1 %v6236_v26  ;;  %7004 = vmatprep.mubr.f32.mxu1 %v20183_v15  ;;  %v6227_v15 = vld [vmem:[%s23852_s5 + $0xc0] sm:$0xff] }
 0xb19   :  { %6950 = vmatprep.subr.mxu1 %v6234_v50  ;;  %14853 = vmatpush3.msra.mxu0 %v6301_v33  ;;  %v6287_v26 = vld [vmem:[%s23852_s5 + $0x2a0] sm:$0xff]  ;;  %v12981_v50 = vld [vmem:[%s23852_s5 + $0x7d0] sm:$0xff] }
 0xb1a   :  { %6951 = vmatpush1.msra.mxu1 %v6233_v14  ;;  %7181 = vmatmul.mubr.f32.gmra.mxu0 %v20191_v21  ;;  %v6285_v33 = vld [vmem:[%s23852_s5 + $0x290] sm:$0xff]  ;;  %v12980_v14 = vld [vmem:[%s23852_s5 + $0x7c8] sm:$0xff] }
 0xb1b   :  { %12938 = vmatprep.subr.msk.mxu0 %vm160_vm1, %v19839_v11  ;;  %6952 = vmatprep.subr.mxu1 %v6231_v13  ;;  %v6284_v13 = vld [vmem:[%s23852_s5 + $0x288] sm:$0xff] }
 0xb1c   :  { %6953 = vmatpush1.msra.mxu1 %v6230_v35  ;;  %14854 = vmatprep.mubr.msk.f32.mxu0 %vm15093_vm4, %v24048_v62  ;;  %v12978_v35 = vld [vmem:[%s23852_s5 + $0x7b8] sm:$0xff] }
 0xb1d   :  { %6954 = vmatprep.subr.mxu1 %v6228_v59  ;;  %v6282_v59 = vld [vmem:[%s23852_s5 + $0x278] sm:$0xff] }
 0xb1e   :  { %6955 = vmatpush1.msra.mxu1 %v6227_v15  ;;  %14855 = vmatmul.mubr.msk.f32.vlgmr.msra.gmra.mxu0 %vm5132_vm6, %v20181_v18  ;;  %v6219_v18 = vld [vmem:[%s23852_s5 + $0x80] sm:$0xff]  ;;  %v12977_v15 = vld [vmem:[%s23852_s5 + $0x7b0] sm:$0xff] }
 0xb1f   :  { %12939 = vmatpush1.msk.msra.mxu0 %vm160_vm1, %v19841_v31  ;;  %6956 = vmatprep.subr.mxu1 %v6225_v36  ;;  %v6281_v36 = vld [vmem:[%s23852_s5 + $0x270] sm:$0xff] }
 0xb20   :  { %7303 = vmatprep.subr.mxu0 %v19832_v17  ;;  %6957 = vmatpush1.msra.mxu1 %v6224_v57  ;;  %v12975_v57 = vld [vmem:[%s23852_s5 + $0x7a0] sm:$0xff] }
 0xb21   :  { %7304 = vmatpush1.msra.mxu0 %v19830_v63  ;;  %6958 = vmatprep.subr.mxu1 %v6222_v52  ;;  %v6279_v52 = vld [vmem:[%s23852_s5 + $0x260] sm:$0xff] }
 0xb22   :  { %14857 = vmatprep.mubr.msk.f32.mxu0 %vm15093_vm4, %v24048_v62  ;;  %7305 = vmatprep.subr.mxu0 %v19834_v12 }
 0xb23   :  { %6959 = vmatpush1.msra.mxu1 %v6221_v22  ;;  %14858 = vmatmul.mubr.msk.f32.gmra.mxu0 %vm5132_vm6, %v20189_v1  ;;  %v6213_v1 = vld [vmem:[%s23852_s5 + $0x50] sm:$0xff]  ;;  %v12974_v22 = vld [vmem:[%s23852_s5 + $0x798] sm:$0xff] }
 0xb24   :  { %7306 = vmatpush1.msra.mxu0 %v19855_v37  ;;  %6960 = vmatprep.subr.mxu1 %v6219_v18  ;;  %v6278_v18 = vld [vmem:[%s23852_s5 + $0x258] sm:$0xff] }
 0xb25   :  { %7307 = vmatprep.subr.mxu0 %v19860_v48  ;;  %6961 = vmatpush1.msra.mxu1 %v6218_v19  ;;  %v12972_v19 = vld [vmem:[%s23852_s5 + $0x788] sm:$0xff] }
 0xb26   :  { %7308 = vmatpush1.msra.mxu0 %v19866_v16  ;;  %6962 = vmatprep.subr.mxu1 %v6216_v60  ;;  %v6276_v60 = vld [vmem:[%s23852_s5 + $0x248] sm:$0xff] }
 0xb27   :  { %14860 = vmatprep.mubr.msk.f32.mxu0 %vm15093_vm4, %v24048_v62  ;;  %7309 = vmatprep.subr.mxu0 %v19873_v58 }
 0xb28   :  { %6963 = vmatpush1.msra.mxu1 %v6215_v56  ;;  %14861 = vmatmul.mubr.msk.f32.gmra.mxu0 %vm5132_vm6, %v20195_v42  ;;  %v6207_v42 = vld [vmem:[%s23852_s5 + $0x20] sm:$0xff] }
 0xb29   :  { %7310 = vmatpush1.msra.mxu0 %v19877_v45  ;;  %6964 = vmatprep.subr.mxu1 %v6213_v1  ;;  %v12971_v56 = vld [vmem:[%s23852_s5 + $0x780] sm:$0xff] }
 0xb2a   :  { %6965 = vmatpush1.msra.mxu1 %v6212_v53  ;;  %7343 = vmatprep.mubr.f32.mxu0 %v24048_v62  ;;  %v6275_v1 = vld [vmem:[%s23852_s5 + $0x240] sm:$0xff]  ;;  %v12969_v53 = vld [vmem:[%s23852_s5 + $0x770] sm:$0xff] }
 0xb2b   :  { %6966 = vmatprep.subr.mxu1 %v6210_v7  ;;  %7560 = vmatprep.subr.mxu0 %v12993_v23  ;;  %v6273_v7 = vld [vmem:[%s23852_s5 + $0x230] sm:$0xff]  ;;  %v12968_v23 = vld [vmem:[%s23852_s5 + $0x768] sm:$0xff] }
 0xb2c   :  { %6967 = vmatpush1.msra.mxu1 %v6209_v44  ;;  %12940 = vmatmul.mubr.msk.f32.vlgmr.msra.gmra.mxu0 %vm6021_vm10, %v20619_v10  ;;  %v6272_v44 = vld [vmem:[%s23852_s5 + $0x228] sm:$0xff] }
 0xb2d   :  { %6968 = vmatprep.subr.mxu1 %v6207_v42  ;;  %7349 = vmatprep.mubr.f32.mxu0 %v24048_v62  ;;  %v12966_v42 = vld [vmem:[%s23852_s5 + $0x758] sm:$0xff] }
 0xb2e   :  { %6969 = vmatpush1.msra.mxu1 %v6206_v5  ;;  %7561 = vmatpush1.msra.mxu0 %v12992_v24  ;;  %v6270_v5 = vld [vmem:[%s23852_s5 + $0x218] sm:$0xff]  ;;  %v12965_v24 = vld [vmem:[%s23852_s5 + $0x750] sm:$0xff] }
 0xb2f   :  { %6970 = vmatprep.subr.mxu1 %v6204_v6  ;;  %7562 = vmatprep.subr.mxu0 %v12990_v61  ;;  %v6269_v6 = vld [vmem:[%s23852_s5 + $0x210] sm:$0xff]  ;;  %v12963_v61 = vld [vmem:[%s23852_s5 + $0x740] sm:$0xff] }
 0xb30   :  { %6971 = vmatpush1.msra.mxu1 %v6203_v30  ;;  %12941 = vmatmul.mubr.msk.f32.gmra.mxu0 %vm6021_vm10, %v20646_v39  ;;  %v6267_v30 = vld [vmem:[%s23852_s5 + $0x200] sm:$0xff] }
 0xb31   :  { %6972 = vmatprep.subr.mxu1 %v6297_v28  ;;  %7355 = vmatprep.mubr.f32.mxu0 %v24048_v62  ;;  %v12962_v28 = vld [vmem:[%s23852_s5 + $0x738] sm:$0xff] }
 0xb32   :  { %6973 = vmatpush2.msra.mxu1 %v6296_v2  ;;  %7563 = vmatpush1.msra.mxu0 %v12989_v3  ;;  %v6266_v2 = vld [vmem:[%s23852_s5 + $0x1f8] sm:$0xff]  ;;  %v12960_v3 = vld [vmem:[%s23852_s5 + $0x728] sm:$0xff] }
 0xb33   :  { %6974 = vmatprep.subr.mxu1 %v6294_v54  ;;  %7564 = vmatprep.subr.mxu0 %v12987_v27  ;;  %v6264_v54 = vld [vmem:[%s23852_s5 + $0x1e8] sm:$0xff]  ;;  %v12959_v27 = vld [vmem:[%s23852_s5 + $0x720] sm:$0xff] }
 0xb34   :  { %6975 = vmatpush2.msra.mxu1 %v6293_v41  ;;  %12942 = vmatmul.mubr.msk.f32.gmra.mxu0 %vm6021_vm10, %v20672_v38  ;;  %v6263_v41 = vld [vmem:[%s23852_s5 + $0x1e0] sm:$0xff] }
 0xb35   :  { %6976 = vmatprep.subr.mxu1 %v6291_v20  ;;  %7565 = vmatpush1.msra.mxu0 %v12986_v8  ;;  %v12957_v20 = vld [vmem:[%s23852_s5 + $0x710] sm:$0xff] }
 0xb36   :  { %6977 = vmatpush2.msra.mxu1 %v6290_v55  ;;  %7566 = vmatprep.subr.mxu0 %v12984_v49  ;;  %v6261_v8 = vld [vmem:[%s23852_s5 + $0x1d0] sm:$0xff]  ;;  %v12956_v55 = vld [vmem:[%s23852_s5 + $0x708] sm:$0xff] }
 0xb37   :  { %6978 = vmatprep.subr.mxu1 %v6288_v29  ;;  %7567 = vmatpush1.msra.mxu0 %v12983_v4  ;;  %v6260_v49 = vld [vmem:[%s23852_s5 + $0x1c8] sm:$0xff]  ;;  %v12954_v29 = vld [vmem:[%s23852_s5 + $0x6f8] sm:$0xff] }
 0xb38   :  { %6979 = vmatpush2.msra.mxu1 %v6287_v26  ;;  %7568 = vmatprep.subr.mxu0 %v12981_v50  ;;  %v6258_v4 = vld [vmem:[%s23852_s5 + $0x1b8] sm:$0xff]  ;;  %v12953_v26 = vld [vmem:[%s23852_s5 + $0x6f0] sm:$0xff] }
 0xb39   :  { %6980 = vmatprep.subr.mxu1 %v6285_v33  ;;  %7569 = vmatpush1.msra.mxu0 %v12980_v14  ;;  %v6257_v50 = vld [vmem:[%s23852_s5 + $0x1b0] sm:$0xff]  ;;  %v12951_v33 = vld [vmem:[%s23852_s5 + $0x6e0] sm:$0xff] }
 0xb3a   :  { %6981 = vmatpush2.msra.mxu1 %v6284_v13  ;;  %7570 = vmatprep.subr.mxu0 %v12978_v35  ;;  %v6255_v14 = vld [vmem:[%s23852_s5 + $0x1a0] sm:$0xff]  ;;  %v12950_v13 = vld [vmem:[%s23852_s5 + $0x6d8] sm:$0xff] }
 0xb3b   :  { %6982 = vmatprep.subr.mxu1 %v6282_v59  ;;  %7571 = vmatpush1.msra.mxu0 %v12977_v15  ;;  %v6254_v35 = vld [vmem:[%s23852_s5 + $0x198] sm:$0xff]  ;;  %v12948_v59 = vld [vmem:[%s23852_s5 + $0x6c8] sm:$0xff] }
 0xb3c   :  { %6983 = vmatpush2.msra.mxu1 %v6281_v36  ;;  %7572 = vmatprep.subr.mxu0 %v12975_v57  ;;  %v6252_v15 = vld [vmem:[%s23852_s5 + $0x188] sm:$0xff]  ;;  %v12947_v36 = vld [vmem:[%s23852_s5 + $0x6c0] sm:$0xff] }
 0xb3d   :  { %6984 = vmatprep.subr.mxu1 %v6279_v52  ;;  %7573 = vmatpush1.msra.mxu0 %v12974_v22  ;;  %v6251_v57 = vld [vmem:[%s23852_s5 + $0x180] sm:$0xff]  ;;  %v13041_v52 = vld [vmem:[%s23852_s5 + $0x9b0] sm:$0xff]  ;;  %v13040_v22 = vld [vmem:[%s23852_s5 + $0x9a8] sm:$0xff] }
 0xb3e   :  { %6985 = vmatpush2.msra.mxu1 %v6278_v18  ;;  %7574 = vmatprep.subr.mxu0 %v12972_v19  ;;  %v13038_v18 = vld [vmem:[%s23852_s5 + $0x998] sm:$0xff]  ;;  %v13031_v19 = vld [vmem:[%s23852_s5 + $0x960] sm:$0xff] }
 0xb3f   :  { %6986 = vmatprep.subr.mxu1 %v6276_v60  ;;  %7575 = vmatpush1.msra.mxu0 %v12971_v56  ;;  %v13028_v60 = vld [vmem:[%s23852_s5 + $0x948] sm:$0xff]  ;;  %v13026_v56 = vld [vmem:[%s23852_s5 + $0x938] sm:$0xff] }
 0xb40   :  { %6987 = vmatpush2.msra.mxu1 %v6275_v1  ;;  %7576 = vmatprep.subr.mxu0 %v12969_v53  ;;  %v13025_v1 = vld [vmem:[%s23852_s5 + $0x930] sm:$0xff]  ;;  %v13023_v53 = vld [vmem:[%s23852_s5 + $0x920] sm:$0xff] }
 0xb41   :  { %6988 = vmatprep.subr.mxu1 %v6273_v7  ;;  %7577 = vmatpush1.msra.mxu0 %v12968_v23  ;;  %v13020_v7 = vld [vmem:[%s23852_s5 + $0x908] sm:$0xff]  ;;  %v13019_v23 = vld [vmem:[%s23852_s5 + $0x900] sm:$0xff] }
 0xb42   :  { %6989 = vmatpush2.msra.mxu1 %v6272_v44  ;;  %7578 = vmatprep.subr.mxu0 %v12966_v42  ;;  %v13017_v44 = vld [vmem:[%s23852_s5 + $0x8f0] sm:$0xff]  ;;  %v13014_v42 = vld [vmem:[%s23852_s5 + $0x8d8] sm:$0xff] }
 0xb43   :  { %6990 = vmatprep.subr.mxu1 %v6270_v5  ;;  %7579 = vmatpush1.msra.mxu0 %v12965_v24  ;;  %v13013_v5 = vld [vmem:[%s23852_s5 + $0x8d0] sm:$0xff]  ;;  %v13011_v24 = vld [vmem:[%s23852_s5 + $0x8c0] sm:$0xff] }
 0xb44   :  { %6991 = vmatpush2.msra.mxu1 %v6269_v6  ;;  %7580 = vmatprep.subr.mxu0 %v12963_v61  ;;  %v13008_v6 = vld [vmem:[%s23852_s5 + $0x8a8] sm:$0xff]  ;;  %v13007_v61 = vld [vmem:[%s23852_s5 + $0x8a0] sm:$0xff] }
 0xb45   :  { %6992 = vmatprep.subr.mxu1 %v6267_v30  ;;  %7581 = vmatpush1.msra.mxu0 %v12962_v28  ;;  %v13005_v30 = vld [vmem:[%s23852_s5 + $0x890] sm:$0xff]  ;;  %v13004_v28 = vld [vmem:[%s23852_s5 + $0x888] sm:$0xff] }
 0xb46   :  { %6993 = vmatpush2.msra.mxu1 %v6266_v2  ;;  %7582 = vmatprep.subr.mxu0 %v12960_v3  ;;  %v13002_v2 = vld [vmem:[%s23852_s5 + $0x878] sm:$0xff]  ;;  %v13001_v3 = vld [vmem:[%s23852_s5 + $0x870] sm:$0xff] }
 0xb47   :  { %6994 = vmatprep.subr.mxu1 %v6264_v54  ;;  %7583 = vmatpush1.msra.mxu0 %v12959_v27  ;;  %v12999_v54 = vld [vmem:[%s23852_s5 + $0x860] sm:$0xff]  ;;  %v12998_v27 = vld [vmem:[%s23852_s5 + $0x858] sm:$0xff] }
 0xb48   :  { %6995 = vmatpush2.msra.mxu1 %v6263_v41  ;;  %7584 = vmatprep.subr.mxu0 %v12957_v20  ;;  %v12996_v41 = vld [vmem:[%s23852_s5 + $0x848] sm:$0xff]  ;;  %v12995_v20 = vld [vmem:[%s23852_s5 + $0x840] sm:$0xff] }
 0xb49   :  { %6996 = vmatprep.subr.mxu1 %v6261_v8  ;;  %7585 = vmatpush1.msra.mxu0 %v12956_v55  ;;  %v13053_v8 = vld [vmem:[%s23852_s5 + $0xa10] sm:$0xff]  ;;  %v13052_v55 = vld [vmem:[%s23852_s5 + $0xa08] sm:$0xff] }
 0xb4a   :  { %6997 = vmatpush2.msra.mxu1 %v6260_v49  ;;  %7586 = vmatprep.subr.mxu0 %v12954_v29  ;;  %v13050_v49 = vld [vmem:[%s23852_s5 + $0x9f8] sm:$0xff] }
 0xb4b   :  { %6998 = vmatprep.subr.mxu1 %v6258_v4  ;;  %7587 = vmatpush1.msra.mxu0 %v12953_v26  ;;  %v13049_v4 = vld [vmem:[%s23852_s5 + $0x9f0] sm:$0xff] }
 0xb4c   :  { %6999 = vmatpush2.msra.mxu1 %v6257_v50  ;;  %7588 = vmatprep.subr.mxu0 %v12951_v33  ;;  %v13047_v50 = vld [vmem:[%s23852_s5 + $0x9e0] sm:$0xff] }
 0xb4d   :  { %7000 = vmatprep.subr.mxu1 %v6255_v14  ;;  %7589 = vmatpush1.msra.mxu0 %v12950_v13  ;;  %v13046_v14 = vld [vmem:[%s23852_s5 + $0x9d8] sm:$0xff] }
 0xb4e   :  { %7001 = vmatpush2.msra.mxu1 %v6254_v35  ;;  %7590 = vmatprep.subr.mxu0 %v12948_v59  ;;  %v13044_v59 = vld [vmem:[%s23852_s5 + $0x9c8] sm:$0xff] }
 0xb4f   :  { %7002 = vmatprep.subr.mxu1 %v6252_v15  ;;  %7591 = vmatpush1.msra.mxu0 %v12947_v36  ;;  %v13043_v36 = vld [vmem:[%s23852_s5 + $0x9c0] sm:$0xff] }
 0xb50   :  { %7003 = vmatpush2.msra.mxu1 %v6251_v57  ;;  %7592 = vmatprep.subr.mxu0 %v13041_v52  ;;  %v13042_v57 = vld [vmem:[%s23852_s5 + $0x9b8] sm:$0xff] }
 0xb51   :  { %7005 = vmatmul.mubr.f32.vlgmr.msra.gmra.mxu1 %v20179_v32  ;;  %14863 = vmatprep.subr.mxu1 %v24048_v62  ;;  %v13037_v32 = vld [vmem:[%s23852_s5 + $0x990] sm:$0xff] }
 0xb52   :  { %7010 = vmatprep.mubr.f32.mxu1 %v20187_v47  ;;  %14864 = vmatpush3.msk.msra.mxu1 %vm160_vm1, %v19837_v40  ;;  %v13035_v47 = vld [vmem:[%s23852_s5 + $0x980] sm:$0xff] }
 0xb53   :  { %14865 = vmatprep.subr.mxu1 %v24048_v62  ;;  %7593 = vmatpush2.msra.mxu0 %v13040_v22 }
 0xb54   :  { %14866 = vmatpush3.msra.mxu1 %v19853_v0  ;;  %7594 = vmatprep.subr.mxu0 %v13038_v18 }
 0xb55   :  { %7011 = vmatmul.mubr.f32.gmra.mxu1 %v20185_v43  ;;  %14867 = vmatprep.subr.mxu1 %v24048_v62  ;;  %v13034_v43 = vld [vmem:[%s23852_s5 + $0x978] sm:$0xff] }
 0xb56   :  { %7016 = vmatprep.mubr.f32.mxu1 %v20193_v9  ;;  %14868 = vmatpush3.msra.mxu1 %v19864_v51  ;;  %v13032_v9 = vld [vmem:[%s23852_s5 + $0x968] sm:$0xff] }
 0xb57   :  { %14869 = vmatprep.subr.mxu1 %v24048_v62  ;;  %7595 = vmatpush2.msra.mxu0 %v13037_v32 }
 0xb58   :  { %14870 = vmatpush3.msra.mxu1 %v19871_v25  ;;  %7596 = vmatprep.subr.mxu0 %v13035_v47 }
 0xb59   :  { %7017 = vmatmul.mubr.f32.gmra.mxu1 %v20191_v21  ;;  %14871 = vmatprep.subr.mxu1 %v24048_v62  ;;  %v13029_v21 = vld [vmem:[%s23852_s5 + $0x950] sm:$0xff] }
 0xb5a   :  { %14872 = vmatpush3.msra.mxu1 %v19884_v46  ;;  %14873 = vmatprep.mubr.msk.f32.mxu1 %vm15093_vm4, %v24048_v62 }
 0xb5b   :  { %7597 = vmatpush2.msra.mxu0 %v13034_v43  ;;  %7667 = vmatprep.subr.mxu1 %v13053_v8 }
 0xb5c   :  { %7598 = vmatprep.subr.mxu0 %v13032_v9 }
 0xb5d   :  { %14874 = vmatmul.mubr.msk.f32.vlgmr.msra.gmra.mxu1 %vm6021_vm10, %v20619_v10  ;;  %7599 = vmatpush2.msra.mxu0 %v13031_v19  ;;  %v13022_v10 = vld [vmem:[%s23852_s5 + $0x918] sm:$0xff] }
 0xb5e   :  { %14876 = vmatprep.mubr.msk.f32.mxu1 %vm15093_vm4, %v24048_v62  ;;  %7600 = vmatprep.subr.mxu0 %v13029_v21 }
 0xb5f   :  { %7601 = vmatpush2.msra.mxu0 %v13028_v60  ;;  %7668 = vmatpush1.msra.mxu1 %v13052_v55 }
 0xb60   :  { %7602 = vmatprep.subr.mxu0 %v13026_v56  ;;  %7669 = vmatprep.subr.mxu1 %v13050_v49 }
 0xb61   :  { %14877 = vmatmul.mubr.msk.f32.gmra.mxu1 %vm6021_vm10, %v20646_v39  ;;  %7603 = vmatpush2.msra.mxu0 %v13025_v1  ;;  %v13016_v39 = vld [vmem:[%s23852_s5 + $0x8e8] sm:$0xff] }
 0xb62   :  { %14879 = vmatprep.mubr.msk.f32.mxu1 %vm15093_vm4, %v24048_v62  ;;  %7604 = vmatprep.subr.mxu0 %v13023_v53 }
 0xb63   :  { %7605 = vmatpush2.msra.mxu0 %v13022_v10  ;;  %7670 = vmatpush1.msra.mxu1 %v13049_v4 }
 0xb64   :  { %7606 = vmatprep.subr.mxu0 %v13020_v7  ;;  %7671 = vmatprep.subr.mxu1 %v13047_v50 }
 0xb65   :  { %14880 = vmatmul.mubr.msk.f32.gmra.mxu1 %vm6021_vm10, %v20672_v38  ;;  %7607 = vmatpush2.msra.mxu0 %v13019_v23  ;;  %v13010_v38 = vld [vmem:[%s23852_s5 + $0x8b8] sm:$0xff] }
 0xb66   :  { %7608 = vmatprep.subr.mxu0 %v13017_v44  ;;  %7707 = vmatprep.mubr.f32.mxu1 %v24048_v62 }
 0xb67   :  { %7609 = vmatpush2.msra.mxu0 %v13016_v39  ;;  %7672 = vmatpush1.msra.mxu1 %v13046_v14 }
 0xb68   :  { %7610 = vmatprep.subr.mxu0 %v13014_v42  ;;  %7673 = vmatprep.subr.mxu1 %v13044_v59 }
 0xb69   :  { %7611 = vmatpush2.msra.mxu0 %v13013_v5  ;;  %7674 = vmatpush1.msra.mxu1 %v13043_v36 }
 0xb6a   :  { %7612 = vmatprep.subr.mxu0 %v13011_v24  ;;  %14079 = vmatprep.subr.mxu1 %v13042_v57 }
 0xb6b   :  { %7613 = vmatpush2.msra.mxu0 %v13010_v38 }
 0xb6c   :  { %7614 = vmatprep.subr.mxu0 %v13008_v6 }
 0xb6d   :  { %7615 = vmatpush2.msra.mxu0 %v13007_v61 }
 0xb6e   :  { %7616 = vmatprep.subr.mxu0 %v13005_v30 }
 0xb6f   :  { %7617 = vmatpush2.msra.mxu0 %v13004_v28 }
 0xb70   :  { %7618 = vmatprep.subr.mxu0 %v13002_v2 }
 0xb71   :  { %7619 = vmatpush2.msra.mxu0 %v13001_v3 }
 0xb72   :  { %7620 = vmatprep.subr.mxu0 %v12999_v54 }
 0xb73   :  { %7621 = vmatpush2.msra.mxu0 %v12998_v27 }
 0xb74   :  { %7622 = vmatprep.subr.mxu0 %v12996_v41 }
 0xb75   :  { %7623 = vmatpush2.msra.mxu0 %v12995_v20 }
 0xb76   :  { %14899 = vmatprep.subr.mxu0 %v24048_v62 }
 0xb98   :  { %v6754_v29 = vpop.f32.mrf.mxu1 }
 0xb99   :  { %v6671_v26 = vpop.f32.mrf.mxu0 }
 0xb9a   :  { %v20982_v33 = vadd.f32 %v6754_v29, %v6671_v26  ;;  %v6756_v35 = vpop.f32.mrf.mxu1 }
 0xb9b   :  { %v6673_v13 = vpop.f32.mrf.mxu0 }
 0xb9c   :  { %v20990_v15 = vadd.f32 %v6756_v35, %v6673_v13 }
 0xb9d   :  { %v6677_v52 = vpop.f32.mrf.mxu0 }
 0xb9f   :  { %v6679_v22 = vpop.f32.mrf.mxu0 }
 0xba1   :  { %v6683_v18 = vpop.f32.mrf.mxu0 }
 0xba3   :  { %v6685_v47 = vpop.f32.mrf.mxu0 }
 0xba7   :  { %v21002_v21 = vpop.f32.mrf.mxu0 }
 0xba9   :  { %v21006_v53 = vpop.f32.mrf.mxu0 }
 0xbac   :  { %v21010_v23 = vpop.f32.mrf.mxu0 }
 0xbae   :  { %v21012_v5 = vpop.f32.mrf.mxu0 }
 0xbb2   :  { %v6760_v32 = vpop.f32.mrf.mxu1  ;;  %v21014_v61 = vpop.f32.mrf.mxu0 }
 0xbb3   :  { %v20998_v43 = vadd.f32 %v6760_v32, %v6677_v52 }
 0xbb4   :  { %v6762_v9 = vpop.f32.mrf.mxu1  ;;  %v21016_v2 = vpop.f32.mrf.mxu0 }
 0xbb5   :  { %v21000_v19 = vadd.f32 %v6762_v9, %v6679_v22 }
 0xbb8   :  { %v6766_v60 = vpop.f32.mrf.mxu1 }
 0xbb9   :  { %v21004_v56 = vadd.f32 %v6766_v60, %v6683_v18 }
 0xbba   :  { %v6768_v1 = vpop.f32.mrf.mxu1 }
 0xbbb   :  { %v21008_v10 = vadd.f32 %v6768_v1, %v6685_v47 }
 0xbbd   :  { %v14007_v7 = vpop.f32.mrf.mxu1 }
 0xbbf   :  { %v14008_v44 = vpop.f32.mrf.mxu1 }
 0xbc0   :  { %v14009_v39 = vadd.f32 %v14008_v44, %v14007_v7 }
 0xbc1   :  { %v14010_v42 = vpop.f32.mrf.mxu1 }
 0xbc3   :  { %v14011_v24 = vpop.f32.mrf.mxu1 }
 0xbc4   :  { %v14012_v38 = vadd.f32 %v14011_v24, %v14010_v42 }
 0xbc6   :  { %v14013_v6 = vpop.f32.mrf.mxu1 }
 0xbc8   :  { %v14014_v30 = vpop.f32.mrf.mxu1 }
 0xbc9   :  { %v14015_v28 = vadd.f32 %v14014_v30, %v14013_v6 }
 0xbcb   :  { %v6917_v3 = vpop.f32.mrf.mxu1 }
 0xbcc   :  { %v6918_v54 = vadd.f32 %v14009_v39, %v6917_v3 }
 0xbcd   :  { %v14839_v27 = vpop.f32.mrf.mxu1  ;;  %v14055_v41 = vpop.f32.mrf.mxu0 }
 0xbcf   :  { %v14056_v20 = vpop.f32.mrf.mxu0 }
 0xbd0   :  { %v14057_v8 = vadd.f32 %v14056_v20, %v14055_v41 }
 0xbd1   :  { %v6922_v55 = vpop.f32.mrf.mxu1 }
 0xbd2   :  { %v6923_v49 = vadd.f32 %v14012_v38, %v6922_v55  ;;  %v7173_v29 = vadd.f32 %v14057_v8, %v6918_v54 }
 0xbd3   :  { %v14842_v4 = vpop.f32.mrf.mxu1  ;;  %v14058_v26 = vpop.f32.mrf.mxu0 }
 0xbd5   :  { %v14059_v50 = vpop.f32.mrf.mxu0 }
 0xbd6   :  { %v14060_v14 = vadd.f32 %v14059_v50, %v14058_v26  ;;  %v12988_v50 = vld [vmem:[%s23852_s5 + $0x808] sm:$0xff] }
 0xbd7   :  { %v6927_v13 = vpop.f32.mrf.mxu1 }
 0xbd8   :  { %v6928_v35 = vadd.f32 %v14015_v28, %v6927_v13  ;;  %v7178_v59 = vadd.f32 %v14060_v14, %v6923_v49  ;;  %v13033_v13 = vld [vmem:[%s23852_s5 + $0x970] sm:$0xff] }
 0xbd9   :  { %v14845_v36 = vpop.f32.mrf.mxu1 }
 0xbda   :  { %v14061_v57 = vpop.f32.mrf.mxu0  ;;  %v13030_v36 = vld [vmem:[%s23852_s5 + $0x958] sm:$0xff] }
 0xbdc   :  { %v14062_v52 = vpop.f32.mrf.mxu0 }
 0xbdd   :  { %v14063_v22 = vadd.f32 %v14062_v52, %v14061_v57  ;;  %v12982_v57 = vld [vmem:[%s23852_s5 + $0x7d8] sm:$0xff] }
 0xbde   :  { %v7252_v18 = vpop.f32.mrf.mxu0 }
 0xbdf   :  { %v21018_v32 = vadd.f32 %v7252_v18, %v7173_v29  ;;  %v7183_v47 = vadd.f32 %v14063_v22, %v6928_v35  ;;  %v12985_v35 = vld [vmem:[%s23852_s5 + $0x7f0] sm:$0xff]  ;;  %v13027_v22 = vld [vmem:[%s23852_s5 + $0x940] sm:$0xff] }
 0xbe0   :  { %v14856_v9 = vpop.f32.mrf.mxu0  ;;  %v12979_v18 = vld [vmem:[%s23852_s5 + $0x7c0] sm:$0xff] }
 0xbe3   :  { %v7257_v60 = vpop.f32.mrf.mxu0 }
 0xbe4   :  { %v21020_v1 = vadd.f32 %v7257_v60, %v7178_v59  ;;  %v12976_v60 = vld [vmem:[%s23852_s5 + $0x7a8] sm:$0xff] }
 0xbe5   :  { %v14859_v7 = vpop.f32.mrf.mxu0 }
 0xbe6   :  { %v13021_v7 = vld [vmem:[%s23852_s5 + $0x910] sm:$0xff] }
 0xbe8   :  { %v7262_v44 = vpop.f32.mrf.mxu0 }
 0xbe9   :  { %v21022_v39 = vadd.f32 %v7262_v44, %v7183_v47  ;;  %v13024_v47 = vld [vmem:[%s23852_s5 + $0x928] sm:$0xff]  ;;  %v12973_v44 = vld [vmem:[%s23852_s5 + $0x790] sm:$0xff] }
 0xbea   :  { %v14862_v42 = vpop.f32.mrf.mxu0 }
 0xbeb   :  { %v13018_v42 = vld [vmem:[%s23852_s5 + $0x8f8] sm:$0xff] }
 0xbec   :  { %v21024_v24 = vpop.f32.mrf.mxu0 }
 0xbee   :  { %v21026_v38 = vpop.f32.mrf.mxu0 }
 0xbef   :  { %7624 = vmatprep.mubr.f32.mxu0 %v21026_v38 }
 0xbf0   :  { %7625 = vmatmul.mubr.f32.vlgmr.msra.gmra.mxu0 %v21024_v24  ;;  %v21030_v6 = vpop.f32.mrf.mxu0 }
 0xbf1   :  { %14900 = vmatpush3.msk.msra.mxu0 %vm160_vm1, %v19837_v40  ;;  %v21057_v40 = vld [vmem:[%s23851_s6 + $0x48] sm:$0xff] }
 0xbf2   :  { %14901 = vmatprep.subr.mxu0 %v24048_v62  ;;  %v21035_v30 = vpop.f32.mrf.mxu0 }
 0xbf3   :  { %14902 = vmatpush3.msra.mxu0 %v19853_v0  ;;  %7630 = vmatprep.mubr.f32.mxu0 %v21035_v30  ;;  %v21066_v0 = vld [vmem:[%s23851_s6 + $0x50] sm:$0xff] }
 0xbf4   :  { %14903 = vmatprep.subr.mxu0 %v24048_v62  ;;  %v21040_v28 = vpop.f32.mrf.mxu0  ;;  %7631 = vmatmul.mubr.f32.gmra.mxu0 %v21030_v6 }
 0xbf5   :  { %14904 = vmatpush3.msra.mxu0 %v19864_v51  ;;  %v21075_v51 = vld [vmem:[%s23851_s6 + $0x58] sm:$0xf] }
 0xbf6   :  { %14905 = vmatprep.subr.mxu0 %v24048_v62  ;;  %v21045_v3 = vpop.f32.mrf.mxu0 }
 0xbf7   :  { %14906 = vmatpush3.msra.mxu0 %v19871_v25  ;;  %7636 = vmatprep.mubr.f32.mxu0 %v21045_v3 }
 0xbf8   :  { %14907 = vmatprep.subr.mxu0 %v24048_v62  ;;  %7637 = vmatmul.mubr.f32.gmra.mxu0 %v21040_v28 }
 0xbf9   :  { %14908 = vmatpush3.msra.mxu0 %v19884_v46  ;;  %14909 = vmatprep.mubr.msk.f32.mxu0 %vm15093_vm4, %v24048_v62 }
 0xbfc   :  { %14910 = vmatmul.mubr.msk.f32.vlgmr.msra.gmra.mxu0 %vm6021_vm10, %v21057_v40 }
 0xbfd   :  { %14912 = vmatprep.mubr.msk.f32.mxu0 %vm15093_vm4, %v24048_v62 }
 0xc00   :  { %14913 = vmatmul.mubr.msk.f32.gmra.mxu0 %vm6021_vm10, %v21066_v0 }
 0xc01   :  { %14915 = vmatprep.mubr.msk.f32.mxu0 %vm15093_vm4, %v24048_v62 }
 0xc04   :  { %14916 = vmatmul.mubr.msk.f32.gmra.mxu0 %vm6021_vm10, %v21075_v51 }
 0xc05   :  { %8336 = vmatprep.mubr.f32.mxu0 %v24048_v62 }
 0xc11   :  { %v7006_v25 = vpop.f32.mrf.mxu1 }
 0xc12   :  { %v21081_v46 = vadd.f32 %v7006_v25, %v20982_v33  ;;  %v13015_v25 = vld [vmem:[%s23852_s5 + $0x8e0] sm:$0xff] }
 0xc13   :  { %v7008_v54 = vpop.f32.mrf.mxu1 }
 0xc14   :  { %v21084_v27 = vadd.f32 %v7008_v54, %v20990_v15  ;;  %v12994_v15 = vld [vmem:[%s23852_s5 + $0x838] sm:$0xff]  ;;  %v12967_v54 = vld [vmem:[%s23852_s5 + $0x760] sm:$0xff] }
 0xc15   :  { %v7012_v41 = vpop.f32.mrf.mxu1 }
 0xc16   :  { %v21087_v20 = vadd.f32 %v7012_v41, %v20998_v43  ;;  %v13039_v43 = vld [vmem:[%s23852_s5 + $0x9a0] sm:$0xff]  ;;  %v13012_v41 = vld [vmem:[%s23852_s5 + $0x8c8] sm:$0xff] }
 0xc17   :  { %v7014_v8 = vpop.f32.mrf.mxu1 }
 0xc18   :  { %v21090_v55 = vadd.f32 %v7014_v8, %v21000_v19  ;;  %v12991_v19 = vld [vmem:[%s23852_s5 + $0x820] sm:$0xff]  ;;  %v12964_v8 = vld [vmem:[%s23852_s5 + $0x748] sm:$0xff] }
 0xc19   :  { %v7018_v49 = vpop.f32.mrf.mxu1 }
 0xc1a   :  { %v21093_v29 = vadd.f32 %v7018_v49, %v21004_v56  ;;  %v13009_v49 = vld [vmem:[%s23852_s5 + $0x8b0] sm:$0xff] }
 0xc1b   :  { %v7020_v4 = vpop.f32.mrf.mxu1 }
 0xc1c   :  { %v21096_v33 = vadd.f32 %v7020_v4, %v21008_v10  ;;  %v13036_v10 = vld [vmem:[%s23852_s5 + $0x988] sm:$0xff]  ;;  %v12961_v4 = vld [vmem:[%s23852_s5 + $0x730] sm:$0xff] }
 0xc1d   :  { %v21101_v26 = vpop.f32.mrf.mxu1 }
 0xc1e   :  { %13055 = vmatmul.mubr.msk.f32.vlgmr.msra.gmra.mxu1 %vm5132_vm6, %v21101_v26 }
 0xc1f   :  { %14080 = vmatpush3.msra.mxu1 %v12994_v15  ;;  %v14875_v56 = vpop.f32.mrf.mxu1  ;;  %7713 = vmatprep.mubr.f32.mxu1 %v24048_v62  ;;  %v13006_v15 = vld [vmem:[%s23852_s5 + $0x898] sm:$0xff] }
 0xc20   :  { %14081 = vmatprep.subr.mxu1 %v13039_v43  ;;  %v12958_v43 = vld [vmem:[%s23852_s5 + $0x718] sm:$0xff]  ;;  %v12955_v56 = vld [vmem:[%s23852_s5 + $0x700] sm:$0xff] }
 0xc21   :  { %14082 = vmatpush3.msra.mxu1 %v12991_v19  ;;  %v21118_v14 = vpop.f32.mrf.mxu1  ;;  %v13003_v19 = vld [vmem:[%s23852_s5 + $0x880] sm:$0xff] }
 0xc22   :  { %14083 = vmatprep.subr.mxu1 %v13036_v10  ;;  %13056 = vmatmul.mubr.msk.f32.gmra.mxu1 %vm5132_vm6, %v21118_v14  ;;  %v13000_v10 = vld [vmem:[%s23852_s5 + $0x868] sm:$0xff] }
 0xc23   :  { %14084 = vmatpush3.msra.mxu1 %v12988_v50  ;;  %v14878_v59 = vpop.f32.mrf.mxu1  ;;  %7719 = vmatprep.mubr.f32.mxu1 %v24048_v62  ;;  %v12952_v50 = vld [vmem:[%s23852_s5 + $0x6e8] sm:$0xff] }
 0xc24   :  { %14085 = vmatprep.subr.mxu1 %v13033_v13  ;;  %v12997_v13 = vld [vmem:[%s23852_s5 + $0x850] sm:$0xff]  ;;  %v13054_v59 = vld [vmem:[%s23852_s5 + $0xa18] sm:$0xff] }
 0xc25   :  { %14086 = vmatpush3.msra.mxu1 %v12985_v35  ;;  %v21135_v52 = vpop.f32.mrf.mxu1  ;;  %v12949_v35 = vld [vmem:[%s23852_s5 + $0x6d0] sm:$0xff] }
 0xc26   :  { %14087 = vmatprep.subr.mxu1 %v13030_v36  ;;  %13057 = vmatmul.mubr.msk.f32.gmra.mxu1 %vm5132_vm6, %v21135_v52  ;;  %v13051_v36 = vld [vmem:[%s23852_s5 + $0xa00] sm:$0xff] }
 0xc27   :  { %14088 = vmatpush3.msra.mxu1 %v12982_v57  ;;  %7790 = vmatprep.mubr.f32.mxu1 %v21026_v38  ;;  %v14881_v9 = vpop.f32.mrf.mxu1  ;;  %v12970_v38 = vld [vmem:[%s23852_s5 + $0x778] sm:$0xff]  ;;  %v13048_v57 = vld [vmem:[%s23852_s5 + $0x9e8] sm:$0xff] }
 0xc28   :  { %14089 = vmatprep.subr.mxu1 %v13027_v22  ;;  %v13089_v22 = vld [vmem:[%s23852_s5 + $0xaa0] sm:$0xff]  ;;  %v13086_v9 = vld [vmem:[%s23852_s5 + $0xa88] sm:$0xff] }
 0xc29   :  { %14090 = vmatpush3.msra.mxu1 %v12979_v18  ;;  %v13088_v18 = vld [vmem:[%s23852_s5 + $0xa98] sm:$0xff] }
 0xc2a   :  { %14091 = vmatprep.subr.mxu1 %v13024_v47  ;;  %v13179_v47 = vld [vmem:[%s23852_s5 + $0xd70] sm:$0xff] }
 0xc2b   :  { %14092 = vmatpush3.msra.mxu1 %v12976_v60  ;;  %8296 = vmatprep.subr.mxu0 %v13179_v47  ;;  %v13178_v60 = vld [vmem:[%s23852_s5 + $0xd68] sm:$0xff]  ;;  %v13125_v47 = vld [vmem:[%s23852_s5 + $0xbc0] sm:$0xff] }
 0xc2c   :  { %14093 = vmatprep.subr.mxu1 %v13021_v7  ;;  %v13085_v7 = vld [vmem:[%s23852_s5 + $0xa80] sm:$0xff]  ;;  %8297 = vmatpush1.msra.mxu0 %v13178_v60  ;;  %v13122_v60 = vld [vmem:[%s23852_s5 + $0xba8] sm:$0xff] }
 0xc2d   :  { %14094 = vmatpush3.msra.mxu1 %v12973_v44  ;;  %v13176_v44 = vld [vmem:[%s23852_s5 + $0xd58] sm:$0xff] }
 0xc2e   :  { %14095 = vmatprep.subr.mxu1 %v13018_v42  ;;  %v13175_v42 = vld [vmem:[%s23852_s5 + $0xd50] sm:$0xff]  ;;  %8298 = vmatprep.subr.mxu0 %v13176_v44 }
 0xc2f   :  { %14096 = vmatpush3.msra.mxu1 %v12970_v38  ;;  %v13083_v38 = vld [vmem:[%s23852_s5 + $0xa70] sm:$0xff]  ;;  %8299 = vmatpush1.msra.mxu0 %v13175_v42 }
 0xc30   :  { %14097 = vmatprep.subr.mxu1 %v13015_v25  ;;  %v13173_v25 = vld [vmem:[%s23852_s5 + $0xd40] sm:$0xff] }
 0xc31   :  { %14098 = vmatpush3.msra.mxu1 %v12967_v54  ;;  %v13082_v54 = vld [vmem:[%s23852_s5 + $0xa68] sm:$0xff]  ;;  %8300 = vmatprep.subr.mxu0 %v13173_v25 }
 0xc32   :  { %14099 = vmatprep.subr.mxu1 %v13012_v41  ;;  %v13172_v41 = vld [vmem:[%s23852_s5 + $0xd38] sm:$0xff] }
 0xc33   :  { %14100 = vmatpush3.msra.mxu1 %v12964_v8  ;;  %v13170_v8 = vld [vmem:[%s23852_s5 + $0xd28] sm:$0xff]  ;;  %8301 = vmatpush1.msra.mxu0 %v13172_v41 }
 0xc34   :  { %14101 = vmatprep.subr.mxu1 %v13009_v49  ;;  %v13080_v49 = vld [vmem:[%s23852_s5 + $0xa58] sm:$0xff]  ;;  %8302 = vmatprep.subr.mxu0 %v13170_v8 }
 0xc35   :  { %14102 = vmatpush3.msra.mxu1 %v12961_v4  ;;  %v13169_v4 = vld [vmem:[%s23852_s5 + $0xd20] sm:$0xff]  ;;  %v13120_v8 = vld [vmem:[%s23852_s5 + $0xb98] sm:$0xff] }
 0xc36   :  { %14103 = vmatprep.subr.mxu1 %v13006_v15  ;;  %v13079_v15 = vld [vmem:[%s23852_s5 + $0xa50] sm:$0xff]  ;;  %8303 = vmatpush1.msra.mxu0 %v13169_v4  ;;  %v13165_v4 = vld [vmem:[%s23852_s5 + $0xd00] sm:$0xff] }
 0xc37   :  { %14104 = vmatpush3.msra.mxu1 %v12958_v43  ;;  %v13168_v43 = vld [vmem:[%s23852_s5 + $0xd18] sm:$0xff] }
 0xc38   :  { %14105 = vmatprep.subr.mxu1 %v13003_v19  ;;  %v13077_v19 = vld [vmem:[%s23852_s5 + $0xa40] sm:$0xff]  ;;  %14135 = vmatprep.subr.mxu0 %v13168_v43  ;;  %v13162_v43 = vld [vmem:[%s23852_s5 + $0xce8] sm:$0xff] }
 0xc39   :  { %14106 = vmatpush3.msra.mxu1 %v12955_v56  ;;  %v13076_v56 = vld [vmem:[%s23852_s5 + $0xa38] sm:$0xff] }
 0xc3a   :  { %14107 = vmatprep.subr.mxu1 %v13000_v10  ;;  %v13074_v10 = vld [vmem:[%s23852_s5 + $0xa28] sm:$0xff] }
 0xc3b   :  { %14108 = vmatpush3.msra.mxu1 %v12952_v50  ;;  %v13073_v50 = vld [vmem:[%s23852_s5 + $0xa20] sm:$0xff] }
 0xc3c   :  { %14109 = vmatprep.subr.mxu1 %v12997_v13  ;;  %v13167_v13 = vld [vmem:[%s23852_s5 + $0xd10] sm:$0xff] }
 0xc3d   :  { %14110 = vmatpush3.msra.mxu1 %v12949_v35  ;;  %v13166_v35 = vld [vmem:[%s23852_s5 + $0xd08] sm:$0xff] }
 0xc3e   :  { %7791 = vmatmul.mubr.f32.vlgmr.msra.gmra.mxu1 %v21024_v24  ;;  %14882 = vmatprep.subr.mxu1 %v24048_v62  ;;  %v13045_v24 = vld [vmem:[%s23852_s5 + $0x9d0] sm:$0xff] }
 0xc3f   :  { %7795 = vmatprep.mubr.f32.mxu1 %v21035_v30  ;;  %14883 = vmatpush3.msra.mxu1 %v13054_v59  ;;  %v13103_v30 = vld [vmem:[%s23852_s5 + $0xb10] sm:$0xff]  ;;  %v13164_v59 = vld [vmem:[%s23852_s5 + $0xcf8] sm:$0xff] }
 0xc40   :  { %14884 = vmatprep.subr.mxu1 %v24048_v62 }
 0xc41   :  { %14885 = vmatpush3.msra.mxu1 %v13051_v36  ;;  %v13163_v36 = vld [vmem:[%s23852_s5 + $0xcf0] sm:$0xff] }
 0xc42   :  { %7796 = vmatmul.mubr.f32.gmra.mxu1 %v21030_v6  ;;  %14886 = vmatprep.subr.mxu1 %v24048_v62  ;;  %v13104_v6 = vld [vmem:[%s23852_s5 + $0xb18] sm:$0xff] }
 0xc43   :  { %7800 = vmatprep.mubr.f32.mxu1 %v21045_v3  ;;  %14887 = vmatpush3.msra.mxu1 %v13048_v57  ;;  %v13100_v3 = vld [vmem:[%s23852_s5 + $0xaf8] sm:$0xff]  ;;  %v13161_v57 = vld [vmem:[%s23852_s5 + $0xce0] sm:$0xff] }
 0xc44   :  { %14888 = vmatprep.subr.mxu1 %v24048_v62 }
 0xc45   :  { %14889 = vmatpush3.msra.mxu1 %v13045_v24  ;;  %v13160_v24 = vld [vmem:[%s23852_s5 + $0xcd8] sm:$0xff] }
 0xc46   :  { %7801 = vmatmul.mubr.f32.gmra.mxu1 %v21040_v28  ;;  %13064 = vmatprep.subr.msk.mxu1 %vm160_vm1, %v19839_v11  ;;  %v13115_v11 = vld [vmem:[%s23852_s5 + $0xb70] sm:$0xff]  ;;  %v13101_v28 = vld [vmem:[%s23852_s5 + $0xb00] sm:$0xff] }
 0xc47   :  { %14890 = vmatprep.mubr.msk.f32.mxu1 %vm15093_vm4, %v24048_v62 }
 0xc4a   :  { %14891 = vmatmul.mubr.msk.f32.vlgmr.msra.gmra.mxu1 %vm5132_vm6, %v21101_v26  ;;  %v13094_v26 = vld [vmem:[%s23852_s5 + $0xac8] sm:$0xff] }
 0xc4b   :  { %13065 = vmatpush1.msk.msra.mxu1 %vm160_vm1, %v19841_v31  ;;  %14893 = vmatprep.mubr.msk.f32.mxu1 %vm15093_vm4, %v24048_v62  ;;  %v13113_v31 = vld [vmem:[%s23852_s5 + $0xb60] sm:$0xff] }
 0xc4c   :  { %7932 = vmatprep.subr.mxu1 %v19832_v17  ;;  %v13119_v17 = vld [vmem:[%s23852_s5 + $0xb90] sm:$0xff] }
 0xc4d   :  { %7933 = vmatpush1.msra.mxu1 %v19830_v63  ;;  %v13118_v63 = vld [vmem:[%s23852_s5 + $0xb88] sm:$0xff] }
 0xc4e   :  { %7934 = vmatprep.subr.mxu1 %v19834_v12  ;;  %14894 = vmatmul.mubr.msk.f32.gmra.mxu1 %vm5132_vm6, %v21118_v14  ;;  %v13116_v12 = vld [vmem:[%s23852_s5 + $0xb78] sm:$0xff] }
 0xc4f   :  { %7935 = vmatpush1.msra.mxu1 %v19855_v37  ;;  %14896 = vmatprep.mubr.msk.f32.mxu1 %vm15093_vm4, %v24048_v62  ;;  %v13112_v37 = vld [vmem:[%s23852_s5 + $0xb58] sm:$0xff] }
 0xc50   :  { %7936 = vmatprep.subr.mxu1 %v19860_v48  ;;  %v13110_v48 = vld [vmem:[%s23852_s5 + $0xb48] sm:$0xff]  ;;  %v13092_v14 = vld [vmem:[%s23852_s5 + $0xab8] sm:$0xff] }
 0xc51   :  { %7937 = vmatpush1.msra.mxu1 %v19866_v16  ;;  %v13109_v16 = vld [vmem:[%s23852_s5 + $0xb40] sm:$0xff] }
 0xc52   :  { %7938 = vmatprep.subr.mxu1 %v19873_v58  ;;  %14897 = vmatmul.mubr.msk.f32.gmra.mxu1 %vm5132_vm6, %v21135_v52  ;;  %v13107_v58 = vld [vmem:[%s23852_s5 + $0xb30] sm:$0xff] }
 0xc53   :  { %7939 = vmatpush1.msra.mxu1 %v19877_v45  ;;  %7972 = vmatprep.mubr.f32.mxu1 %v24048_v62  ;;  %v13106_v45 = vld [vmem:[%s23852_s5 + $0xb28] sm:$0xff]  ;;  %v13091_v52 = vld [vmem:[%s23852_s5 + $0xab0] sm:$0xff] }
 0xc54   :  { %8189 = vmatprep.subr.mxu1 %v13119_v17  ;;  %v13158_v17 = vld [vmem:[%s23852_s5 + $0xcc8] sm:$0xff] }
 0xc56   :  { %13066 = vmatmul.mubr.msk.f32.vlgmr.msra.gmra.mxu1 %vm6021_vm10, %v21057_v40  ;;  %v13098_v40 = vld [vmem:[%s23852_s5 + $0xae8] sm:$0xff] }
 0xc57   :  { %7978 = vmatprep.mubr.f32.mxu1 %v24048_v62  ;;  %8190 = vmatpush1.msra.mxu1 %v13118_v63  ;;  %v13157_v63 = vld [vmem:[%s23852_s5 + $0xcc0] sm:$0xff] }
 0xc58   :  { %8191 = vmatprep.subr.mxu1 %v13116_v12  ;;  %v13155_v12 = vld [vmem:[%s23852_s5 + $0xcb0] sm:$0xff] }
 0xc59   :  { %8192 = vmatpush1.msra.mxu1 %v13115_v11  ;;  %v13154_v11 = vld [vmem:[%s23852_s5 + $0xca8] sm:$0xff] }
 0xc5a   :  { %13067 = vmatmul.mubr.msk.f32.gmra.mxu1 %vm6021_vm10, %v21066_v0  ;;  %8193 = vmatprep.subr.mxu1 %v13113_v31  ;;  %v13097_v0 = vld [vmem:[%s23852_s5 + $0xae0] sm:$0xff]  ;;  %v13152_v31 = vld [vmem:[%s23852_s5 + $0xc98] sm:$0xff] }
 0xc5b   :  { %7984 = vmatprep.mubr.f32.mxu1 %v24048_v62  ;;  %8194 = vmatpush1.msra.mxu1 %v13112_v37  ;;  %v13151_v37 = vld [vmem:[%s23852_s5 + $0xc90] sm:$0xff] }
 0xc5c   :  { %8195 = vmatprep.subr.mxu1 %v13110_v48  ;;  %v13149_v48 = vld [vmem:[%s23852_s5 + $0xc80] sm:$0xff] }
 0xc5d   :  { %8196 = vmatpush1.msra.mxu1 %v13109_v16  ;;  %v13148_v16 = vld [vmem:[%s23852_s5 + $0xc78] sm:$0xff] }
 0xc5e   :  { %13068 = vmatmul.mubr.msk.f32.gmra.mxu1 %vm6021_vm10, %v21075_v51  ;;  %8197 = vmatprep.subr.mxu1 %v13107_v58  ;;  %v13095_v51 = vld [vmem:[%s23852_s5 + $0xad0] sm:$0xff]  ;;  %v13146_v58 = vld [vmem:[%s23852_s5 + $0xc68] sm:$0xff]  ;;  %vm11954_vm10 = vcmask 1024  }
 0xc5f   :  { %8198 = vmatpush1.msra.mxu1 %v13106_v45  ;;  %v13145_v45 = vld [vmem:[%s23852_s5 + $0xc60] sm:$0xff] }
 0xc60   :  { %8199 = vmatprep.subr.mxu1 %v13104_v6  ;;  %v13143_v6 = vld [vmem:[%s23852_s5 + $0xc50] sm:$0xff] }
 0xc61   :  { %8200 = vmatpush1.msra.mxu1 %v13103_v30  ;;  %v13142_v30 = vld [vmem:[%s23852_s5 + $0xc48] sm:$0xff] }
 0xc62   :  { %8201 = vmatprep.subr.mxu1 %v13101_v28  ;;  %v13140_v28 = vld [vmem:[%s23852_s5 + $0xc38] sm:$0xff] }
 0xc63   :  { %8202 = vmatpush1.msra.mxu1 %v13100_v3  ;;  %v13139_v3 = vld [vmem:[%s23852_s5 + $0xc30] sm:$0xff] }
 0xc64   :  { %8203 = vmatprep.subr.mxu1 %v13098_v40  ;;  %v13137_v40 = vld [vmem:[%s23852_s5 + $0xc20] sm:$0xff] }
 0xc65   :  { %8204 = vmatpush1.msra.mxu1 %v13097_v0  ;;  %v13136_v0 = vld [vmem:[%s23852_s5 + $0xc18] sm:$0xff] }
 0xc66   :  { %8205 = vmatprep.subr.mxu1 %v13095_v51  ;;  %v13134_v51 = vld [vmem:[%s23852_s5 + $0xc08] sm:$0xff] }
 0xc67   :  { %8206 = vmatpush1.msra.mxu1 %v13094_v26  ;;  %v13133_v26 = vld [vmem:[%s23852_s5 + $0xc00] sm:$0xff] }
 0xc68   :  { %8207 = vmatprep.subr.mxu1 %v13092_v14  ;;  %v13131_v14 = vld [vmem:[%s23852_s5 + $0xbf0] sm:$0xff] }
 0xc69   :  { %8208 = vmatpush1.msra.mxu1 %v13091_v52  ;;  %v13130_v52 = vld [vmem:[%s23852_s5 + $0xbe8] sm:$0xff] }
 0xc6a   :  { %8209 = vmatprep.subr.mxu1 %v13089_v22  ;;  %v13128_v22 = vld [vmem:[%s23852_s5 + $0xbd8] sm:$0xff] }
 0xc6b   :  { %8210 = vmatpush1.msra.mxu1 %v13088_v18  ;;  %v13127_v18 = vld [vmem:[%s23852_s5 + $0xbd0] sm:$0xff] }
 0xc6c   :  { %8211 = vmatprep.subr.mxu1 %v13086_v9  ;;  %v13124_v9 = vld [vmem:[%s23852_s5 + $0xbb8] sm:$0xff] }
 0xc6d   :  { %8212 = vmatpush1.msra.mxu1 %v13085_v7  ;;  %v13121_v7 = vld [vmem:[%s23852_s5 + $0xba0] sm:$0xff] }
 0xc6e   :  { %8213 = vmatprep.subr.mxu1 %v13083_v38 }
 0xc6f   :  { %8214 = vmatpush1.msra.mxu1 %v13082_v54 }
 0xc70   :  { %8215 = vmatprep.subr.mxu1 %v13080_v49 }
 0xc71   :  { %8216 = vmatpush1.msra.mxu1 %v13079_v15  ;;  %v13117_v15 = vld [vmem:[%s23852_s5 + $0xb80] sm:$0xff] }
 0xc72   :  { %8217 = vmatprep.subr.mxu1 %v13077_v19 }
 0xc73   :  { %8218 = vmatpush1.msra.mxu1 %v13076_v56  ;;  %v13114_v56 = vld [vmem:[%s23852_s5 + $0xb68] sm:$0xff] }
 0xc74   :  { %8219 = vmatprep.subr.mxu1 %v13074_v10  ;;  %v13159_v10 = vld [vmem:[%s23852_s5 + $0xcd0] sm:$0xff] }
 0xc75   :  { %8220 = vmatpush1.msra.mxu1 %v13073_v50 }
 0xc76   :  { %8221 = vmatprep.subr.mxu1 %v13167_v13  ;;  %v13111_v13 = vld [vmem:[%s23852_s5 + $0xb50] sm:$0xff] }
 0xc77   :  { %8222 = vmatpush2.msra.mxu1 %v13166_v35  ;;  %v13156_v35 = vld [vmem:[%s23852_s5 + $0xcb8] sm:$0xff] }
 0xc78   :  { %8223 = vmatprep.subr.mxu1 %v13164_v59 }
 0xc79   :  { %8224 = vmatpush2.msra.mxu1 %v13163_v36  ;;  %v13108_v36 = vld [vmem:[%s23852_s5 + $0xb38] sm:$0xff] }
 0xc7a   :  { %8225 = vmatprep.subr.mxu1 %v13161_v57  ;;  %v13153_v57 = vld [vmem:[%s23852_s5 + $0xca0] sm:$0xff] }
 0xc7b   :  { %8226 = vmatpush2.msra.mxu1 %v13160_v24 }
 0xc7c   :  { %8227 = vmatprep.subr.mxu1 %v13158_v17  ;;  %v13105_v17 = vld [vmem:[%s23852_s5 + $0xb20] sm:$0xff] }
 0xc7d   :  { %8228 = vmatpush2.msra.mxu1 %v13157_v63  ;;  %v13150_v63 = vld [vmem:[%s23852_s5 + $0xc88] sm:$0xff] }
 0xc7e   :  { %8229 = vmatprep.subr.mxu1 %v13155_v12 }
 0xc7f   :  { %8230 = vmatpush2.msra.mxu1 %v13154_v11  ;;  %v13102_v11 = vld [vmem:[%s23852_s5 + $0xb08] sm:$0xff] }
 0xc80   :  { %8231 = vmatprep.subr.mxu1 %v13152_v31  ;;  %v13147_v31 = vld [vmem:[%s23852_s5 + $0xc70] sm:$0xff] }
 0xc81   :  { %8232 = vmatpush2.msra.mxu1 %v13151_v37  ;;  %v13099_v37 = vld [vmem:[%s23852_s5 + $0xaf0] sm:$0xff] }
 0xc82   :  { %8233 = vmatprep.subr.mxu1 %v13149_v48  ;;  %v13144_v48 = vld [vmem:[%s23852_s5 + $0xc58] sm:$0xff] }
 0xc83   :  { %8234 = vmatpush2.msra.mxu1 %v13148_v16  ;;  %v13096_v16 = vld [vmem:[%s23852_s5 + $0xad8] sm:$0xff] }
 0xc84   :  { %8235 = vmatprep.subr.mxu1 %v13146_v58  ;;  %v13141_v58 = vld [vmem:[%s23852_s5 + $0xc40] sm:$0xff] }
 0xc85   :  { %8236 = vmatpush2.msra.mxu1 %v13145_v45  ;;  %v13093_v45 = vld [vmem:[%s23852_s5 + $0xac0] sm:$0xff] }
 0xc86   :  { %8237 = vmatprep.subr.mxu1 %v13143_v6  ;;  %v13138_v6 = vld [vmem:[%s23852_s5 + $0xc28] sm:$0xff] }
 0xc87   :  { %8238 = vmatpush2.msra.mxu1 %v13142_v30  ;;  %v13090_v30 = vld [vmem:[%s23852_s5 + $0xaa8] sm:$0xff] }
 0xc88   :  { %8239 = vmatprep.subr.mxu1 %v13140_v28  ;;  %v13135_v28 = vld [vmem:[%s23852_s5 + $0xc10] sm:$0xff] }
 0xc89   :  { %8240 = vmatpush2.msra.mxu1 %v13139_v3  ;;  %v13087_v3 = vld [vmem:[%s23852_s5 + $0xa90] sm:$0xff] }
 0xc8a   :  { %8241 = vmatprep.subr.mxu1 %v13137_v40  ;;  %v13132_v40 = vld [vmem:[%s23852_s5 + $0xbf8] sm:$0xff] }
 0xc8b   :  { %8242 = vmatpush2.msra.mxu1 %v13136_v0  ;;  %v13084_v0 = vld [vmem:[%s23852_s5 + $0xa78] sm:$0xff] }
 0xc8c   :  { %8243 = vmatprep.subr.mxu1 %v13134_v51  ;;  %v13129_v51 = vld [vmem:[%s23852_s5 + $0xbe0] sm:$0xff] }
 0xc8d   :  { %8244 = vmatpush2.msra.mxu1 %v13133_v26  ;;  %v13081_v26 = vld [vmem:[%s23852_s5 + $0xa60] sm:$0xff] }
 0xc8e   :  { %8245 = vmatprep.subr.mxu1 %v13131_v14  ;;  %v13126_v14 = vld [vmem:[%s23852_s5 + $0xbc8] sm:$0xff] }
 0xc8f   :  { %8246 = vmatpush2.msra.mxu1 %v13130_v52  ;;  %v13078_v52 = vld [vmem:[%s23852_s5 + $0xa48] sm:$0xff] }
 0xc90   :  { %8247 = vmatprep.subr.mxu1 %v13128_v22  ;;  %v13123_v22 = vld [vmem:[%s23852_s5 + $0xbb0] sm:$0xff] }
 0xc91   :  { %8248 = vmatpush2.msra.mxu1 %v13127_v18  ;;  %v13075_v18 = vld [vmem:[%s23852_s5 + $0xa30] sm:$0xff] }
 0xc92   :  { %8249 = vmatprep.subr.mxu1 %v13125_v47 }
 0xc93   :  { %8250 = vmatpush2.msra.mxu1 %v13124_v9  ;;  %v7090_v9 = vadd.f32 %v21002_v21, %v21081_v46  ;;  %v7098_v21 = vadd.f32 %v21012_v5, %v21090_v55 }
 0xc94   :  { %8251 = vmatprep.subr.mxu1 %v13122_v60 }
 0xc95   :  { %8252 = vmatpush2.msra.mxu1 %v13121_v7 }
 0xc96   :  { %14935 = vmatprep.subr.mxu1 %v24048_v62 }
 0xcb0   :  { %v21480_v44 = vpop.f32.mrf.mxu0 }
 0xcb2   :  { %v21482_v42 = vpop.f32.mrf.mxu0 }
 0xcb4   :  { %v21484_v38 = vpop.f32.mrf.mxu0 }
 0xcb6   :  { %v21486_v25 = vpop.f32.mrf.mxu0 }
 0xcb8   :  { %v21488_v54 = vpop.f32.mrf.mxu0 }
 0xcba   :  { %v21490_v41 = vpop.f32.mrf.mxu0 }
 0xcbc   :  { %v21495_v49 = vpop.f32.mrf.mxu0 }
 0xcbd   :  { %13181 = vmatmul.mubr.msk.f32.vlgmr.msra.gmra.mxu0 %vm5132_vm6, %v21495_v49 }
 0xcbe   :  { %14136 = vmatpush3.msra.mxu0 %v13120_v8  ;;  %v14911_v19 = vpop.f32.mrf.mxu0  ;;  %8342 = vmatprep.mubr.f32.mxu0 %v24048_v62  ;;  %v7092_v8 = vadd.f32 %v21006_v53, %v21084_v27 }
 0xcbf   :  { %14137 = vmatprep.subr.mxu0 %v13165_v4  ;;  %v7096_v19 = vadd.f32 %v21010_v23, %v21087_v20 }
 0xcc0   :  { %14138 = vmatpush3.msra.mxu0 %v13117_v15  ;;  %v21515_v50 = vpop.f32.mrf.mxu0 }
 0xcc1   :  { %14139 = vmatprep.subr.mxu0 %v13162_v43  ;;  %13182 = vmatmul.mubr.msk.f32.gmra.mxu0 %vm5132_vm6, %v21515_v50 }
 0xcc2   :  { %14140 = vmatpush3.msra.mxu0 %v13114_v56  ;;  %v14914_v59 = vpop.f32.mrf.mxu0  ;;  %8348 = vmatprep.mubr.f32.mxu0 %v24048_v62 }
 0xcc3   :  { %14141 = vmatprep.subr.mxu0 %v13159_v10 }
 0xcc4   :  { %14142 = vmatpush3.msra.mxu0 %v13111_v13  ;;  %v21532_v24 = vpop.f32.mrf.mxu0 }
 0xcc5   :  { %14143 = vmatprep.subr.mxu0 %v13156_v35  ;;  %13183 = vmatmul.mubr.msk.f32.gmra.mxu0 %vm5132_vm6, %v21532_v24 }
 0xcc6   :  { %14144 = vmatpush3.msra.mxu0 %v13108_v36  ;;  %v14917_v12 = vpop.f32.mrf.mxu0 }
 0xcc7   :  { %14145 = vmatprep.subr.mxu0 %v13153_v57 }
 0xcc8   :  { %14146 = vmatpush3.msra.mxu0 %v13105_v17 }
 0xcc9   :  { %14147 = vmatprep.subr.mxu0 %v13150_v63 }
 0xcca   :  { %14148 = vmatpush3.msra.mxu0 %v13102_v11 }
 0xccb   :  { %14149 = vmatprep.subr.mxu0 %v13147_v31 }
 0xccc   :  { %14150 = vmatpush3.msra.mxu0 %v13099_v37 }
 0xccd   :  { %14151 = vmatprep.subr.mxu0 %v13144_v48 }
 0xcce   :  { %14152 = vmatpush3.msra.mxu0 %v13096_v16 }
 0xccf   :  { %14153 = vmatprep.subr.mxu0 %v13141_v58 }
 0xcd0   :  { %14154 = vmatpush3.msra.mxu0 %v13093_v45 }
 0xcd1   :  { %14155 = vmatprep.subr.mxu0 %v13138_v6 }
 0xcd2   :  { %14156 = vmatpush3.msra.mxu0 %v13090_v30 }
 0xcd3   :  { %14157 = vmatprep.subr.mxu0 %v13135_v28 }
 0xcd4   :  { %14158 = vmatpush3.msra.mxu0 %v13087_v3  ;;  %v13180_v3 = vld [vmem:[%s23852_s5 + $0xd78] sm:$0xff] }
 0xcd5   :  { %14159 = vmatprep.subr.mxu0 %v13132_v40 }
 0xcd6   :  { %14160 = vmatpush3.msra.mxu0 %v13084_v0 }
 0xcd7   :  { %14161 = vmatprep.subr.mxu0 %v13129_v51  ;;  %v13174_v51 = vld [vmem:[%s23852_s5 + $0xd48] sm:$0xff] }
 0xcd8   :  { %14162 = vmatpush3.msra.mxu0 %v13081_v26  ;;  %v13171_v26 = vld [vmem:[%s23852_s5 + $0xd30] sm:$0xff] }
 0xcd9   :  { %14163 = vmatprep.subr.mxu0 %v13126_v14  ;;  %v21658_v14 = vld [vmem:[%s23853_s16 + $0xf8] sm:$0xff] }
 0xcda   :  { %14164 = vmatpush3.msra.mxu0 %v13078_v52  ;;  %v21664_v52 = vld [vmem:[%s23853_s16 + $0x78] sm:$0xff] }
 0xcdb   :  { %14165 = vmatprep.subr.mxu0 %v13123_v22  ;;  %v21671_v22 = vld [vmem:[%s23853_s16 + $0xf0] sm:$0xff] }
 0xcdc   :  { %14166 = vmatpush3.msra.mxu0 %v13075_v18  ;;  %v21679_v18 = vld [vmem:[%s23853_s16 + $0x70] sm:$0xff] }
 0xcdd   :  { %14918 = vmatprep.subr.mxu0 %v24048_v62 }
 0xcde   :  { %v7709_v47 = vpop.f32.mrf.mxu1 }
 0xcdf   :  { %v7710_v60 = vadd.f32 %v7709_v47, %v21480_v44  ;;  %v7102_v44 = vadd.f32 %v21014_v61, %v21093_v29  ;;  %v21687_v47 = vld [vmem:[%s23853_s16 + $0xe8] sm:$0xff] }
 0xce0   :  { %v7711_v7 = vpop.f32.mrf.mxu1 }
 0xce1   :  { %v21605_v4 = vadd.f32 %v7710_v60, %v7090_v9  ;;  %v7712_v15 = vadd.f32 %v7711_v7, %v21482_v42  ;;  %v21699_v9 = vld [vmem:[%s23853_s16 + $0xe0] sm:$0xff]  ;;  %v21715_v7 = vld [vmem:[%s23853_s16 + $0xd8] sm:$0xff] }
 0xce2   :  { %v7715_v43 = vpop.f32.mrf.mxu1  ;;  %v21707_v60 = vld [vmem:[%s23853_s16 + $0x60] sm:$0xff] }
 0xce3   :  { %v21610_v56 = vadd.f32 %v7712_v15, %v7092_v8  ;;  %v7716_v10 = vadd.f32 %v7715_v43, %v21484_v38  ;;  %v7104_v38 = vadd.f32 %v21016_v2, %v21096_v33  ;;  %v21727_v8 = vld [vmem:[%s23853_s16 + $0xd0] sm:$0xff]  ;;  %v21741_v43 = vld [vmem:[%s23853_s16 + $0xc8] sm:$0xff] }
 0xce4   :  { %v7717_v13 = vpop.f32.mrf.mxu1  ;;  %v21735_v15 = vld [vmem:[%s23853_s16 + $0x50] sm:$0xff] }
 0xce5   :  { %v21615_v46 = vadd.f32 %v7716_v10, %v7096_v19  ;;  %v7718_v53 = vadd.f32 %v7717_v13, %v21486_v25  ;;  %v21753_v19 = vld [vmem:[%s23853_s16 + $0xc0] sm:$0xff]  ;;  %v21765_v13 = vld [vmem:[%s23853_s16 + $0xb8] sm:$0xff] }
 0xce6   :  { %v7721_v27 = vpop.f32.mrf.mxu1  ;;  %v21759_v10 = vld [vmem:[%s23853_s16 + $0x40] sm:$0xff] }
 0xce7   :  { %v21620_v42 = vadd.f32 %v7718_v53, %v7098_v21  ;;  %v7722_v23 = vadd.f32 %v7721_v27, %v21488_v54  ;;  %v21771_v21 = vld [vmem:[%s23853_s16 + $0x38] sm:$0xff]  ;;  %v21777_v53 = vld [vmem:[%s23853_s16 + $0xb0] sm:$0xff] }
 0xce8   :  { %v7723_v20 = vpop.f32.mrf.mxu1  ;;  %v21783_v27 = vld [vmem:[%s23853_s16 + $0x30] sm:$0xff] }
 0xce9   :  { %v21625_v35 = vadd.f32 %v7722_v23, %v7102_v44  ;;  %v7724_v5 = vadd.f32 %v7723_v20, %v21490_v41  ;;  %v21789_v44 = vld [vmem:[%s23853_s16 + $0xa8] sm:$0xff]  ;;  %v21801_v20 = vld [vmem:[%s23853_s16 + $0xa0] sm:$0xff] }
 0xcea   :  { %v21795_v23 = vld [vmem:[%s23853_s16 + $0x28] sm:$0xff] }
 0xceb   :  { %v21628_v55 = vadd.f32 %v7724_v5, %v7104_v38  ;;  %v21807_v38 = vld [vmem:[%s23853_s16 + $0x20] sm:$0xff]  ;;  %v21813_v5 = vld [vmem:[%s23853_s16 + $0x98] sm:$0xff] }
 0xcfe   :  { %v14111_v59 = vpop.f32.mrf.mxu1 }
 0xd00   :  { %v14112_v25 = vpop.f32.mrf.mxu1 }
 0xd01   :  { %v14113_v36 = vadd.f32 %v14112_v25, %v14111_v59  ;;  %v21821_v59 = vld [vmem:[%s23853_s16 + $0x18] sm:$0xff]  ;;  %v21827_v25 = vld [vmem:[%s23853_s16 + $0x90] sm:$0xff] }
 0xd02   :  { %v14114_v57 = vpop.f32.mrf.mxu1  ;;  %24073 = vst [vmem:[#allocation16_spill] sm:$0xff] %v21821_v59  ;;  %24074 = vst [vmem:[#allocation11_spill] sm:$0xff] %v21827_v25 }
 0xd04   :  { %v14115_v17 = vpop.f32.mrf.mxu1 }
 0xd05   :  { %v14116_v61 = vadd.f32 %v14115_v17, %v14114_v57  ;;  %v21836_v57 = vld [vmem:[%s23853_s16 + $0x10] sm:$0xff]  ;;  %v21843_v17 = vld [vmem:[%s23853_s16 + $0x88] sm:$0xff] }
 0xd06   :  { %v14117_v29 = vpop.f32.mrf.mxu1  ;;  %24075 = vst [vmem:[#allocation17_spill] sm:$0xff] %v21836_v57  ;;  %24076 = vst [vmem:[#allocation7_spill] sm:$0xff] %v21843_v17 }
 0xd08   :  { %v14118_v63 = vpop.f32.mrf.mxu1 }
 0xd09   :  { %v14119_v12 = vadd.f32 %v14118_v63, %v14117_v29  ;;  %v21852_v29 = vld [vmem:[%s23853_s16 + $0x8] sm:$0xff]  ;;  %v21859_v63 = vld [vmem:[%s23853_s16 + $0x80] sm:$0xff] }
 0xd0a   :  { %v7872_v54 = vpop.f32.mrf.mxu1  ;;  %24077 = vst [vmem:[#allocation12_spill] sm:$0xff] %v21852_v29  ;;  %24078 = vst [vmem:[#allocation21_spill] sm:$0xff] %v21859_v63 }
 0xd0b   :  { %v7873_v11 = vadd.f32 %v14113_v36, %v7872_v54  ;;  %v8563_v36 = vld [vmem:[%s23853_s16 + $0x138] sm:$0xff]  ;;  %v21868_v54 = vld [vmem:[%s23853_s16] sm:$0xff] }
 0xd0c   :  { %v14892_v31 = vpop.f32.mrf.mxu1  ;;  %24079 = vst [vmem:[#allocation18_spill] sm:$0xff] %v21868_v54 }
 0xd0d   :  { %v21631_v2 = vadd.f32 %v7873_v11, %v21018_v32  ;;  %v21875_v11 = vld [vmem:[%s23853_s16 + $0x120] sm:$0xff]  ;;  %v21883_v31 = vld [vmem:[%s23853_s16 + $0x118] sm:$0xff] }
 0xd0e   :  { %v7877_v33 = vpop.f32.mrf.mxu1 }
 0xd0f   :  { %v7878_v37 = vadd.f32 %v14116_v61, %v7877_v33  ;;  %v8562_v61 = vld [vmem:[%s23853_s16 + $0x130] sm:$0xff] }
 0xd10   :  { %v14895_v41 = vpop.f32.mrf.mxu1  ;;  %v21890_v33 = vld [vmem:[%s23853_s16 + $0x110] sm:$0xff] }
 0xd11   :  { %v21634_v48 = vadd.f32 %v7878_v37, %v21020_v1  ;;  %v21897_v37 = vld [vmem:[%s23853_s16 + $0x108] sm:$0xff]  ;;  %v21904_v41 = vld [vmem:[%s23853_s16 + $0x100] sm:$0xff] }
 0xd12   :  { %v7882_v16 = vpop.f32.mrf.mxu1 }
 0xd13   :  { %v7883_v58 = vadd.f32 %v14119_v12, %v7882_v16  ;;  %v8561_v12 = vld [vmem:[%s23853_s16 + $0x128] sm:$0xff] }
 0xd14   :  { %v14898_v45 = vpop.f32.mrf.mxu1 }
 0xd15   :  { %v21637_v6 = vadd.f32 %v7883_v58, %v21022_v39  ;;  %v13177_v39 = vld [vmem:[%s23852_s5 + $0xd60] sm:$0xff] }
 0xd16   :  { %v7974_v30 = vpop.f32.mrf.mxu1 }
 0xd18   :  { %v7976_v28 = vpop.f32.mrf.mxu1 }
 0xd19   :  { %8253 = vmatprep.mubr.f32.mxu1 %v7976_v28  ;;  %8419 = vmatprep.mubr.f32.mxu0 %v7976_v28 }
 0xd1a   :  { %v7980_v32 = vpop.f32.mrf.mxu1  ;;  %8254 = vmatmul.mubr.f32.vlgmr.msra.gmra.mxu1 %v7974_v30  ;;  %8420 = vmatmul.mubr.f32.vlgmr.msra.gmra.mxu0 %v7974_v30 }
 0xd1b   :  { %14919 = vmatpush3.msra.mxu0 %v13180_v3  ;;  %14936 = vmatpush3.msra.mxu1 %v8563_v36 }
 0xd1c   :  { %v7982_v1 = vpop.f32.mrf.mxu1  ;;  %14920 = vmatprep.subr.mxu0 %v24048_v62  ;;  %14937 = vmatprep.subr.mxu1 %v24048_v62 }
 0xd1d   :  { %8259 = vmatprep.mubr.f32.mxu1 %v7982_v1  ;;  %8424 = vmatprep.mubr.f32.mxu0 %v7982_v1 }
 0xd1e   :  { %v7986_v40 = vpop.f32.mrf.mxu1  ;;  %8260 = vmatmul.mubr.f32.gmra.mxu1 %v7980_v32  ;;  %8425 = vmatmul.mubr.f32.gmra.mxu0 %v7980_v32 }
 0xd1f   :  { %14921 = vmatpush3.msra.mxu0 %v13177_v39  ;;  %14938 = vmatpush3.msra.mxu1 %v8562_v61 }
 0xd20   :  { %v7988_v0 = vpop.f32.mrf.mxu1  ;;  %14922 = vmatprep.subr.mxu0 %v24048_v62  ;;  %14939 = vmatprep.subr.mxu1 %v24048_v62 }
 0xd21   :  { %8265 = vmatprep.mubr.f32.mxu1 %v7988_v0  ;;  %8429 = vmatprep.mubr.f32.mxu0 %v7988_v0 }
 0xd22   :  { %8266 = vmatmul.mubr.f32.gmra.mxu1 %v7986_v40  ;;  %8430 = vmatmul.mubr.f32.gmra.mxu0 %v7986_v40 }
 0xd23   :  { %14923 = vmatpush3.msra.mxu0 %v13174_v51  ;;  %14926 = vmatprep.mubr.msk.f32.mxu0 %vm15093_vm4, %v24048_v62 }
 0xd24   :  { %14924 = vmatprep.subr.mxu0 %v24048_v62  ;;  %14951 = vmatprep.mubr.msk.f32.mxu1 %vm15093_vm4, %v24048_v62 }
 0xd25   :  { %14925 = vmatpush3.msra.mxu0 %v13171_v26  ;;  %14940 = vmatpush3.msra.mxu1 %v8561_v12 }
 0xd26   :  { %14927 = vmatmul.mubr.msk.f32.vlgmr.msra.gmra.mxu0 %vm5132_vm6, %v21495_v49  ;;  %14183 = vmatprep.subr.mxu0 %v21658_v14  ;;  %v21693_v49 = vld [vmem:[%s23853_s16 + $0x68] sm:$0xff] }
 0xd27   :  { %14929 = vmatprep.mubr.msk.f32.mxu0 %vm15093_vm4, %v24048_v62  ;;  %14184 = vmatpush3.msra.mxu0 %v21664_v52 }
 0xd28   :  { %14185 = vmatprep.subr.mxu0 %v21671_v22  ;;  %14941 = vmatprep.subr.mxu1 %v24048_v62 }
 0xd29   :  { %14186 = vmatpush3.msra.mxu0 %v21679_v18  ;;  %14942 = vmatpush3.msra.mxu1 %v21875_v11 }
 0xd2a   :  { %14930 = vmatmul.mubr.msk.f32.gmra.mxu0 %vm5132_vm6, %v21515_v50  ;;  %14187 = vmatprep.subr.mxu0 %v21687_v47  ;;  %v21721_v50 = vld [vmem:[%s23853_s16 + $0x58] sm:$0xff] }
 0xd2b   :  { %14932 = vmatprep.mubr.msk.f32.mxu0 %vm15093_vm4, %v24048_v62  ;;  %14188 = vmatpush3.msra.mxu0 %v21693_v49 }
 0xd2c   :  { %14189 = vmatprep.subr.mxu0 %v21699_v9  ;;  %14943 = vmatprep.subr.mxu1 %v24048_v62 }
 0xd2d   :  { %14190 = vmatpush3.msra.mxu0 %v21707_v60  ;;  %14944 = vmatpush3.msra.mxu1 %v21883_v31 }
 0xd2e   :  { %14933 = vmatmul.mubr.msk.f32.gmra.mxu0 %vm5132_vm6, %v21532_v24  ;;  %14191 = vmatprep.subr.mxu0 %v21715_v7  ;;  %v21747_v24 = vld [vmem:[%s23853_s16 + $0x48] sm:$0xff] }
 0xd2f   :  { %14192 = vmatpush3.msra.mxu0 %v21721_v50  ;;  %14945 = vmatprep.subr.mxu1 %v24048_v62 }
 0xd30   :  { %14193 = vmatprep.subr.mxu0 %v21727_v8  ;;  %14946 = vmatpush3.msra.mxu1 %v21890_v33 }
 0xd31   :  { %14194 = vmatpush3.msra.mxu0 %v21735_v15  ;;  %14947 = vmatprep.subr.mxu1 %v24048_v62 }
 0xd32   :  { %14195 = vmatprep.subr.mxu0 %v21741_v43  ;;  %14948 = vmatpush3.msra.mxu1 %v21897_v37 }
 0xd33   :  { %14196 = vmatpush3.msra.mxu0 %v21747_v24  ;;  %14949 = vmatprep.subr.mxu1 %v24048_v62 }
 0xd34   :  { %14197 = vmatprep.subr.mxu0 %v21753_v19  ;;  %14950 = vmatpush3.msra.mxu1 %v21904_v41 }
 0xd35   :  { %14198 = vmatpush3.msra.mxu0 %v21759_v10  ;;  %14235 = vmatprep.subr.mxu1 %v21658_v14 }
 0xd36   :  { %14199 = vmatprep.subr.mxu0 %v21765_v13 }
 0xd37   :  { %14200 = vmatpush3.msra.mxu0 %v21771_v21 }
 0xd38   :  { %14201 = vmatprep.subr.mxu0 %v21777_v53 }
 0xd39   :  { %14202 = vmatpush3.msra.mxu0 %v21783_v27 }
 0xd3a   :  { %14203 = vmatprep.subr.mxu0 %v21789_v44 }
 0xd3b   :  { %14204 = vmatpush3.msra.mxu0 %v21795_v23 }
 0xd3c   :  { %14205 = vmatprep.subr.mxu0 %v21801_v20 }
 0xd3d   :  { %14206 = vmatpush3.msra.mxu0 %v21807_v38 }
 0xd3e   :  { %14207 = vmatprep.subr.mxu0 %v21813_v5 }
 0xd3f   :  { %14208 = vmatpush3.msra.mxu0 %v21821_v59 }
 0xd40   :  { %14209 = vmatprep.subr.mxu0 %v21827_v25 }
 0xd41   :  { %14210 = vmatpush3.msra.mxu0 %v21836_v57 }
 0xd42   :  { %14211 = vmatprep.subr.mxu0 %v21843_v17 }
 0xd43   :  { %14212 = vmatpush3.msra.mxu0 %v21852_v29 }
 0xd44   :  { %14213 = vmatprep.subr.mxu0 %v21859_v63 }
 0xd45   :  { %14214 = vmatpush3.msra.mxu0 %v21868_v54 }
 0xd46   :  { %14960 = vmatprep.subr.mxu0 %v24048_v62 }
 0xd7d   :  { %v8338_v16 = vpop.f32.mrf.mxu0 }
 0xd7f   :  { %v8340_v58 = vpop.f32.mrf.mxu0 }
 0xd81   :  { %v8344_v45 = vpop.f32.mrf.mxu0 }
 0xd83   :  { %v8346_v30 = vpop.f32.mrf.mxu0 }
 0xd85   :  { %v8350_v28 = vpop.f32.mrf.mxu0 }
 0xd87   :  { %v8352_v3 = vpop.f32.mrf.mxu0 }
 0xdda   :  { %v8255_v32 = vpop.f32.mrf.mxu1  ;;  %v14167_v1 = vpop.f32.mrf.mxu0 }
 0xddb   :  { %v8339_v39 = vadd.f32 %v8338_v16, %v8255_v32 }
 0xddc   :  { %v8257_v40 = vpop.f32.mrf.mxu1  ;;  %v14168_v0 = vpop.f32.mrf.mxu0 }
 0xddd   :  { %v8341_v51 = vadd.f32 %v8340_v58, %v8257_v40  ;;  %v21912_v63 = vadd.f32 %v8339_v39, %v21605_v4  ;;  %v14169_v32 = vadd.f32 %v14168_v0, %v14167_v1 }
 0xdde   :  { %v8261_v26 = vpop.f32.mrf.mxu1  ;;  %v14170_v34 = vpop.f32.mrf.mxu0 }
 0xddf   :  { %v21909_v54 = vadd.f32 %v8341_v51, %v21610_v56  ;;  %v8345_v14 = vadd.f32 %v8344_v45, %v8261_v26 }
 0xde0   :  { %v8263_v29 = vpop.f32.mrf.mxu1  ;;  %v14171_v17 = vpop.f32.mrf.mxu0 }
 0xde1   :  { %v8347_v57 = vadd.f32 %v8346_v30, %v8263_v29  ;;  %8638 = vmatprep.mubr.f32.mxu0 %v21909_v54  ;;  %v21920_v56 = vadd.f32 %v8345_v14, %v21615_v46 }
 0xde2   :  { %v8267_v25 = vpop.f32.mrf.mxu1  ;;  %v14173_v59 = vpop.f32.mrf.mxu0  ;;  %8639 = vmatmul.mubr.f32.vlgmr.msra.gmra.mxu0 %v21912_v63 }
 0xde3   :  { %v21917_v16 = vadd.f32 %v8347_v57, %v21620_v42  ;;  %14961 = vmatpush3.msra.mxu0 %v8563_v36  ;;  %v8351_v58 = vadd.f32 %v8350_v28, %v8267_v25  ;;  %v14172_v57 = vadd.f32 %v14171_v17, %v14170_v34 }
 0xde4   :  { %14962 = vmatprep.subr.mxu0 %v24048_v62  ;;  %v8269_v4 = vpop.f32.mrf.mxu1  ;;  %v14174_v45 = vpop.f32.mrf.mxu0 }
 0xde5   :  { %v8353_v29 = vadd.f32 %v8352_v3, %v8269_v4  ;;  %14963 = vmatpush3.msra.mxu0 %v8562_v61  ;;  %8643 = vmatprep.mubr.f32.mxu0 %v21917_v16  ;;  %v21930_v25 = vadd.f32 %v8351_v58, %v21625_v35  ;;  %v14175_v35 = vadd.f32 %v14174_v45, %v14173_v59  ;;  %v22071_v59 = vld [vmem:[%s23854_s17 + $0x18] sm:$0xff] }
 0xde6   :  { %14964 = vmatprep.subr.mxu0 %v24048_v62  ;;  %v8501_v30 = vpop.f32.mrf.mxu0  ;;  %8644 = vmatmul.mubr.f32.gmra.mxu0 %v21920_v56 }
 0xde7   :  { %v21927_v42 = vadd.f32 %v8353_v29, %v21628_v55  ;;  %v8502_v46 = vadd.f32 %v14169_v32, %v8501_v30  ;;  %14965 = vmatpush3.msra.mxu0 %v8561_v12 }
 0xde8   :  { %14966 = vmatprep.subr.mxu0 %v24048_v62  ;;  %v14928_v36 = vpop.f32.mrf.mxu0 }
 0xde9   :  { %v21934_v61 = vadd.f32 %v8502_v46, %v21631_v2  ;;  %14967 = vmatpush3.msra.mxu0 %v21875_v11  ;;  %8648 = vmatprep.mubr.f32.mxu0 %v21927_v42 }
 0xdea   :  { %14968 = vmatprep.subr.mxu0 %v24048_v62  ;;  %v8506_v55 = vpop.f32.mrf.mxu0  ;;  %8649 = vmatmul.mubr.f32.gmra.mxu0 %v21930_v25 }
 0xdeb   :  { %v8507_v12 = vadd.f32 %v14172_v57, %v8506_v55  ;;  %14969 = vmatpush3.msra.mxu0 %v21883_v31  ;;  %14952 = vmatmul.mubr.msk.f32.vlgmr.msra.gmra.mxu1 %vm8564_vm11, %v21934_v61  ;;  %v22078_v31 = vld [vmem:[%s23854_s17 + $0x8] sm:$0xff] }
 0xdec   :  { %14236 = vmatpush3.msra.mxu1 %v21664_v52  ;;  %14970 = vmatprep.subr.mxu0 %v24048_v62  ;;  %v14931_v34 = vpop.f32.mrf.mxu0 }
 0xded   :  { %v21946_v2 = vadd.f32 %v8507_v12, %v21634_v48  ;;  %14237 = vmatprep.subr.mxu1 %v21671_v22  ;;  %14971 = vmatpush3.msra.mxu0 %v21890_v33  ;;  %v8748_v22 = vmul.f32 %v21934_v61, %v21934_v61  ;;  %v22083_v33 = vld [vmem:[%s23854_s17 + $0x10] sm:$0xff] }
 0xdee   :  { %14238 = vmatpush3.msra.mxu1 %v21679_v18  ;;  %14972 = vmatprep.subr.mxu0 %v24048_v62  ;;  %v8511_v17 = vpop.f32.mrf.mxu0 }
 0xdef   :  { %v8512_v11 = vadd.f32 %v14175_v35, %v8511_v17  ;;  %14954 = vmatprep.mubr.msk.f32.mxu1 %vm15093_vm4, %v24048_v62  ;;  %14239 = vmatprep.subr.mxu1 %v21687_v47  ;;  %v8751_v18 = vmul.f32 %v21946_v2, %v21946_v2 }
 0xdf0   :  { %14973 = vmatpush3.msra.mxu0 %v21897_v37  ;;  %14955 = vmatmul.mubr.msk.f32.gmra.mxu1 %vm8564_vm11, %v21946_v2  ;;  %v14934_v48 = vpop.f32.mrf.mxu0  ;;  %v22090_v37 = vld [vmem:[%s23854_s17] sm:$0xff] }
 0xdf1   :  { %v21959_v52 = vadd.f32 %v8512_v11, %v21637_v6  ;;  %14240 = vmatpush3.msra.mxu1 %v21693_v49  ;;  %14974 = vmatprep.subr.mxu0 %v24048_v62  ;;  %v8747_v6 = vmul.f32 %v21909_v54, %v21909_v54  ;;  %v24080_v49 = vld [vmem:[#allocation16_spill] sm:$0xff] }
 0xdf2   :  { %14241 = vmatprep.subr.mxu1 %v21699_v9  ;;  %14975 = vmatpush3.msra.mxu0 %v21904_v41  ;;  %v24081_v9 = vld [vmem:[#allocation11_spill] sm:$0xff] }
 0xdf3   :  { %14976 = vmatprep.mubr.msk.f32.mxu0 %vm15093_vm4, %v24048_v62  ;;  %14242 = vmatpush3.msra.mxu1 %v21707_v60  ;;  %v8754_v47 = vmul.f32 %v21959_v52, %v21959_v52  ;;  %v24082_v60 = vld [vmem:[#allocation17_spill] sm:$0xff] }
 0xdf4   :  { %14977 = vmatmul.mubr.msk.f32.vlgmr.msra.gmra.mxu0 %vm8564_vm11, %v8748_v22  ;;  %14957 = vmatprep.mubr.msk.f32.mxu1 %vm15093_vm4, %v24048_v62 }
 0xdf5   :  { %14243 = vmatprep.subr.mxu1 %v21715_v7  ;;  %14958 = vmatmul.mubr.msk.f32.gmra.mxu1 %vm8564_vm11, %v21959_v52  ;;  %v24083_v7 = vld [vmem:[#allocation7_spill] sm:$0xff] }
 0xdf6   :  { %14244 = vmatpush3.msra.mxu1 %v21721_v50  ;;  %8828 = vmatprep.mubr.f32.mxu1 %v8747_v6  ;;  %v24084_v50 = vld [vmem:[#allocation12_spill] sm:$0xff] }
 0xdf7   :  { %14245 = vmatprep.subr.mxu1 %v21727_v8  ;;  %14979 = vmatprep.mubr.msk.f32.mxu0 %vm15093_vm4, %v24048_v62  ;;  %v8746_v8 = vmul.f32 %v21912_v63, %v21912_v63 }
 0xdf8   :  { %14246 = vmatpush3.msra.mxu1 %v21735_v15  ;;  %14980 = vmatmul.mubr.msk.f32.gmra.mxu0 %vm8564_vm11, %v8751_v18  ;;  %v24085_v15 = vld [vmem:[#allocation21_spill] sm:$0xff] }
 0xdf9   :  { %14247 = vmatprep.subr.mxu1 %v21741_v43  ;;  %14982 = vmatprep.mubr.msk.f32.mxu0 %vm15093_vm4, %v24048_v62  ;;  %v24086_v43 = vld [vmem:[#allocation18_spill] sm:$0xff] }
 0xdfa   :  { %14248 = vmatpush3.msra.mxu1 %v21747_v24  ;;  %v8750_v24 = vmul.f32 %v21917_v16, %v21917_v16 }
 0xdfb   :  { %14249 = vmatprep.subr.mxu1 %v21753_v19  ;;  %v8749_v19 = vmul.f32 %v21920_v56, %v21920_v56 }
 0xdfc   :  { %14250 = vmatpush3.msra.mxu1 %v21759_v10  ;;  %14983 = vmatmul.mubr.msk.f32.gmra.mxu0 %vm8564_vm11, %v8754_v47  ;;  %v8753_v10 = vmul.f32 %v21927_v42, %v21927_v42 }
 0xdfd   :  { %14251 = vmatprep.subr.mxu1 %v21765_v13  ;;  %9025 = vmatprep.mubr.f32.mxu0 %v24048_v62  ;;  %v8752_v13 = vmul.f32 %v21930_v25, %v21930_v25 }
 0xdfe   :  { %14252 = vmatpush3.msra.mxu1 %v21771_v21  ;;  %v8956_v21 = vld [vmem:[%s23854_s17 + $0x50] sm:$0xff] }
 0xdff   :  { %14253 = vmatprep.subr.mxu1 %v21777_v53  ;;  %v22031_v53 = vld [vmem:[%s23854_s17 + $0x48] sm:$0xff]  ;;  %8985 = vmatprep.subr.mxu0 %v8956_v21 }
 0xe00   :  { %14254 = vmatpush3.msra.mxu1 %v21783_v27  ;;  %v22036_v27 = vld [vmem:[%s23854_s17 + $0x58] sm:$0xff]  ;;  %8986 = vmatpush1.msra.mxu0 %v22031_v53 }
 0xe01   :  { %14255 = vmatprep.subr.mxu1 %v21789_v44  ;;  %v22042_v44 = vld [vmem:[%s23854_s17 + $0x38] sm:$0xff] }
 0xe02   :  { %14256 = vmatpush3.msra.mxu1 %v21795_v23  ;;  %v22047_v23 = vld [vmem:[%s23854_s17 + $0x30] sm:$0xff]  ;;  %8987 = vmatprep.subr.mxu0 %v22042_v44 }
 0xe03   :  { %14257 = vmatprep.subr.mxu1 %v21801_v20  ;;  %v22052_v20 = vld [vmem:[%s23854_s17 + $0x40] sm:$0xff]  ;;  %8988 = vmatpush1.msra.mxu0 %v22047_v23 }
 0xe04   :  { %14258 = vmatpush3.msra.mxu1 %v21807_v38  ;;  %v22059_v38 = vld [vmem:[%s23854_s17 + $0x20] sm:$0xff] }
 0xe05   :  { %14259 = vmatprep.subr.mxu1 %v21813_v5  ;;  %v22064_v5 = vld [vmem:[%s23854_s17 + $0x28] sm:$0xff]  ;;  %8989 = vmatprep.subr.mxu0 %v22059_v38 }
 0xe06   :  { %14260 = vmatpush3.msra.mxu1 %v24080_v49  ;;  %8990 = vmatpush1.msra.mxu0 %v22071_v59 }
 0xe07   :  { %14261 = vmatprep.subr.mxu1 %v24081_v9  ;;  %8991 = vmatprep.subr.mxu0 %v22078_v31 }
 0xe08   :  { %14262 = vmatpush3.msra.mxu1 %v24082_v60  ;;  %8992 = vmatpush1.msra.mxu0 %v22090_v37 }
 0xe09   :  { %14263 = vmatprep.subr.mxu1 %v24083_v7  ;;  %9129 = vmatprep.subr.mxu0 %v8956_v21 }
 0xe0a   :  { %14264 = vmatpush3.msra.mxu1 %v24084_v50 }
 0xe0b   :  { %14265 = vmatprep.subr.mxu1 %v24085_v15 }
 0xe0c   :  { %14266 = vmatpush3.msra.mxu1 %v24086_v43 }
 0xe0d   :  { %8829 = vmatmul.mubr.f32.vlgmr.msra.gmra.mxu1 %v8746_v8  ;;  %14985 = vmatprep.subr.mxu1 %v24048_v62 }
 0xe0e   :  { %8833 = vmatprep.mubr.f32.mxu1 %v8750_v24  ;;  %14986 = vmatpush3.msra.mxu1 %v22036_v27 }
 0xe0f   :  { %14987 = vmatprep.subr.mxu1 %v24048_v62 }
 0xe10   :  { %14988 = vmatpush3.msra.mxu1 %v22052_v20 }
 0xe11   :  { %8834 = vmatmul.mubr.f32.gmra.mxu1 %v8749_v19  ;;  %14989 = vmatprep.subr.mxu1 %v24048_v62 }
 0xe12   :  { %8838 = vmatprep.mubr.f32.mxu1 %v8753_v10  ;;  %14990 = vmatpush3.msra.mxu1 %v22064_v5 }
 0xe13   :  { %14991 = vmatprep.subr.mxu1 %v24048_v62 }
 0xe14   :  { %14992 = vmatpush3.msra.mxu1 %v22083_v33 }
 0xe15   :  { %8839 = vmatmul.mubr.f32.gmra.mxu1 %v8752_v13  ;;  %14996 = vmatprep.subr.mxu1 %v24048_v62 }
 0xe16   :  { %14993 = vmatprep.mubr.msk.f32.mxu1 %vm15093_vm4, %v24048_v62 }
 0xea2   :  { %v14215_v41 = vpop.f32.mrf.mxu0 }
 0xea4   :  { %v14216_v28 = vpop.f32.mrf.mxu0 }
 0xea5   :  { %v14217_v55 = vadd.f32 %v14216_v28, %v14215_v41 }
 0xea6   :  { %v14218_v3 = vpop.f32.mrf.mxu0 }
 0xea8   :  { %v14219_v1 = vpop.f32.mrf.mxu0 }
 0xea9   :  { %v14220_v57 = vadd.f32 %v14219_v1, %v14218_v3 }
 0xeaa   :  { %v14221_v0 = vpop.f32.mrf.mxu0 }
 0xeab   :  { %v8720_v39 = vpop.f32.mrf.mxu1 }
 0xeac   :  { %v14222_v26 = vpop.f32.mrf.mxu0  ;;  %v8721_v35 = vadd.f32 %v14217_v55, %v8720_v39 }
 0xead   :  { %v14953_v40 = vpop.f32.mrf.mxu1  ;;  %v14223_v12 = vadd.f32 %v14222_v26, %v14221_v0 }
 0xeae   :  { %v8734_v48 = vsel %vm5132_vm6, %v8721_v35, 0.0 }
 0xeb0   :  { %v8725_v51 = vpop.f32.mrf.mxu1 }
 0xeb1   :  { %v8726_v34 = vadd.f32 %v14220_v57, %v8725_v51 }
 0xeb2   :  { %v14956_v14 = vpop.f32.mrf.mxu1 }
 0xeb3   :  { %v8735_v11 = vsel %vm5132_vm6, %v8726_v34, 0.0 }
 0xeb4   :  { %v8910_v58 = vpop.f32.mrf.mxu0  ;;  %v8736_v6 = vadd.f32 %v8735_v11, %v8734_v48  ;;  %v8943_v11 = vld [vmem:[%s23856_s19] sm:$0x1] }
 0xeb5   :  { %v8730_v4 = vpop.f32.mrf.mxu1 }
 0xeb6   :  { %v14978_v45 = vpop.f32.mrf.mxu0  ;;  %v8731_v17 = vadd.f32 %v14223_v12, %v8730_v4 }
 0xeb7   :  { %v14959_v32 = vpop.f32.mrf.mxu1 }
 0xeb8   :  { %v8915_v29 = vpop.f32.mrf.mxu0  ;;  %v8738_v22 = vsel %vm8737_vm12, %v8731_v17, 0.0 }
 0xeb9   :  { %v8739_v18 = vadd.f32 %v8738_v22, %v8736_v6 }
 0xeba   :  { %v14981_v30 = vpop.f32.mrf.mxu0 }
 0xebb   :  { %v8740_v49 = vrot.slane %v8739_v18, 4 }
 0xebc   :  { %v8920_v46 = vpop.f32.mrf.mxu0 }
 0xebd   :  { %v8741_v50 = vadd.f32 %v8740_v49, %v8739_v18 }
 0xebe   :  { %v14984_v36 = vpop.f32.mrf.mxu0 }
 0xebf   :  { %v8742_v10 = vrot.slane %v8741_v50, 2 }
 0xec1   :  { %v8743_v1 = vadd.f32 %v8742_v10, %v8741_v50 }
 0xec3   :  { %v8744_v51 = vrot.slane %v8743_v1, 1 }
 0xec5   :  { %v8745_v4 = vadd.f32 %v8744_v51, %v8743_v1 }
 0xec7   :  { %v8935_v32 = vmul.f32 0.0078125, %v8745_v4 }
 0xec9   :  { %v8937_v36 = vmul.f32 %v8935_v32, %v8935_v32 }
 0xecd   :  { %v14267_v47 = vpop.f32.mrf.mxu1 }
 0xecf   :  { %v14268_v9 = vpop.f32.mrf.mxu1 }
 0xed0   :  { %v14269_v7 = vadd.f32 %v14268_v9, %v14267_v47 }
 0xed1   :  { %v14270_v60 = vpop.f32.mrf.mxu1 }
 0xed2   :  { %v8911_v24 = vadd.f32 %v14269_v7, %v8910_v58 }
 0xed3   :  { %v14271_v8 = vpop.f32.mrf.mxu1 }
 0xed4   :  { %v14272_v15 = vadd.f32 %v14271_v8, %v14270_v60  ;;  %v8924_v28 = vsel %vm5132_vm6, %v8911_v24, 0.0 }
 0xed5   :  { %v14273_v43 = vpop.f32.mrf.mxu1 }
 0xed6   :  { %v8916_v19 = vadd.f32 %v14272_v15, %v8915_v29 }
 0xed7   :  { %v14274_v13 = vpop.f32.mrf.mxu1 }
 0xed8   :  { %v8925_v21 = vsel %vm5132_vm6, %v8916_v19, 0.0  ;;  %v14275_v41 = vadd.f32 %v14274_v13, %v14273_v43 }
 0xed9   :  { %v8926_v39 = vadd.f32 %v8925_v21, %v8924_v28 }
 0xeda   :  { %v8921_v3 = vadd.f32 %v14275_v41, %v8920_v46  ;;  %v8939_v46 = vld [vmem:[%s23855_s18] sm:$0x1] }
 0xedc   :  { %v8927_v40 = vsel %vm8737_vm12, %v8921_v3, 0.0 }
 0xedd   :  { %v8928_v0 = vadd.f32 %v8927_v40, %v8926_v39 }
 0xedf   :  { %v8929_v26 = vrot.slane %v8928_v0, 4 }
 0xee1   :  { %v8930_v14 = vadd.f32 %v8929_v26, %v8928_v0  ;;  %v9326_v26 = vpop.permute.xlu0 %9325 }
 0xee3   :  { %v8931_v45 = vrot.slane %v8930_v14, 2 }
 0xee5   :  { %v8932_v58 = vadd.f32 %v8931_v45, %v8930_v14 }
 0xee7   :  { %v8933_v29 = vrot.slane %v8932_v58, 1 }
 0xee9   :  { %v8934_v30 = vadd.f32 %v8933_v29, %v8932_v58 }
 0xeeb   :  { %v8936_v57 = vmul.f32 0.0078125, %v8934_v30 }
 0xeed   :  { %v8938_v55 = vsub.f32 %v8936_v57, %v8937_v36 }
 0xeef   :  { %v8940_v12 = vadd.f32 1e-05, %v8938_v55 }
 0xef1   :  { %15050 = vrsqrt.f32 %v8940_v12 }
 0xefe   :  { %v15051_v34 = vpop.eup %15050 }
 0xeff   :  { %v8942_v35 = vmul.f32 %v15051_v34, %v8939_v46 }
 0xf01   :  { %13193 = vmatmul.mubr.msk.f32.vlgmr.msra.gmra.mxu0 %vm5132_vm6, %v8942_v35  ;;  %14994 = vmatmul.mubr.msk.f32.vlgmr.msra.gmra.mxu1 %vm5132_vm6, %v8942_v35  ;;  %v8944_v17 = vmul.f32 %v8942_v35, %v8935_v32  ;;  %v9342_v35 = vld [vmem:[%s23857_s8] sm:$0xff] }
 0xf02   :  { %9130 = vmatpush1.msra.mxu0 %v22031_v53  ;;  %14997 = vmatpush3.msra.mxu1 %v22036_v27 }
 0xf03   :  { %9131 = vmatprep.subr.mxu0 %v22042_v44  ;;  %14998 = vmatprep.subr.mxu1 %v24048_v62  ;;  %v8945_v53 = vsub.f32 %v8943_v11, %v8944_v17 }
 0xf04   :  { %9132 = vmatpush1.msra.mxu0 %v22047_v23  ;;  %14999 = vmatpush3.msra.mxu1 %v22052_v20  ;;  %v24087_v20 = vld [vmem:[#allocation6_spill] sm:$0xff] }
 0xf05   :  { %9133 = vmatprep.subr.mxu0 %v22059_v38  ;;  %15000 = vmatprep.subr.mxu1 %v24048_v62 }
 0xf06   :  { %9134 = vmatpush1.msra.mxu0 %v22071_v59  ;;  %15001 = vmatpush3.msra.mxu1 %v22064_v5 }
 0xf07   :  { %9135 = vmatprep.subr.mxu0 %v22078_v31  ;;  %15002 = vmatprep.subr.mxu1 %v24048_v62 }
 0xf08   :  { %9136 = vmatpush1.msra.mxu0 %v22090_v37  ;;  %9169 = vmatprep.mubr.f32.mxu0 %v24048_v62 }
 0xf09   :  { %15003 = vmatpush3.msra.mxu1 %v22083_v33  ;;  %15004 = vmatprep.mubr.msk.f32.mxu1 %vm15093_vm4, %v24048_v62 }
 0xf0a   :  { %13195 = vmatmul.mubr.msk.f32.vlgmr.msra.gmra.mxu0 %vm5132_vm6, %v8945_v53  ;;  %15005 = vmatmul.mubr.msk.f32.vlgmr.msra.gmra.mxu1 %vm5132_vm6, %v8945_v53 }
 0xf0b   :  { %15007 = vmatprep.subr.mxu1 %v24048_v62  ;;  %15013 = vmatprep.mubr.msk.f32.mxu1 %vm15093_vm4, %v24048_v62 }
 0xf0c   :  { %9420 = vmatprep.mubr.f32.mxu0 %v24048_v62 }
 0xfc1   :  { %v9098_v27 = vpop.f32.mrf.mxu1  ;;  %v9027_v23 = vpop.f32.mrf.mxu0 }
 0xfc2   :  { %v9249_v38 = vrot.slane %v9027_v23, %v24087_v20  ;;  %v9257_v5 = vrot.slane %v9098_v27, %v24087_v20  ;;  %v13287_v23 = vld [vmem:[%s23858_s7 + $0x4f8] sm:$0xff] }
 0xfc3   :  { %v14995_v44 = vpop.f32.mrf.mxu1  ;;  %v9029_v59 = vpop.f32.mrf.mxu0 }
 0xfc4   :  { %v9264_v37 = vmul.f32 %v9249_v38, %v21930_v25  ;;  %v9253_v48 = vrot.slane %v9029_v59, %v24087_v20  ;;  %v9260_v18 = vmul.f32 %v9257_v5, %v21934_v61  ;;  %v9263_v47 = vmul.f32 %v9257_v5, %v21946_v2  ;;  %v13202_v44 = vld [vmem:[%s23857_s8 + $0x8] sm:$0xff]  ;;  %v13286_v59 = vld [vmem:[%s23858_s7 + $0x4f0] sm:$0xff] }
 0xfc5   :  { %v9266_v49 = vmul.f32 %v9257_v5, %v21959_v52  ;;  %v9258_v7 = vmul.f32 %v9249_v38, %v21912_v63  ;;  %v9261_v50 = vmul.f32 %v9249_v38, %v21920_v56  ;;  %v9331_v56 = vpop.permute.xlu1 %9330  ;;  %v13239_v38 = vld [vmem:[%s23858_s7 + $0x378] sm:$0xff]  ;;  %v13238_v5 = vld [vmem:[%s23858_s7 + $0x370] sm:$0xff] }
 0xfc6   :  { %v9259_v19 = vmul.f32 %v9253_v48, %v21909_v54  ;;  %v9262_v61 = vmul.f32 %v9253_v48, %v21917_v16  ;;  %v9265_v2 = vmul.f32 %v9253_v48, %v21927_v42  ;;  %v13284_v48 = vld [vmem:[%s23858_s7 + $0x4e0] sm:$0xff] }
 0xfc9   :  { %v9321_v30 = vpop.permute.xlu1 %9320 }
 0xfca   :  { %v9171_v31 = vpop.f32.mrf.mxu0  ;;  %v9242_v33 = vpop.f32.mrf.mxu1 }
 0xfcb   :  { %v9270_v22 = vrot.slane %v9171_v31, %v24087_v20  ;;  %v9278_v6 = vrot.slane %v9242_v33, %v24087_v20  ;;  %v13237_v31 = vld [vmem:[%s23858_s7 + $0x368] sm:$0xff] }
 0xfcc   :  { %v9173_v9 = vpop.f32.mrf.mxu0  ;;  %v15006_v60 = vpop.f32.mrf.mxu1  ;;  %v13285_v33 = vld [vmem:[%s23858_s7 + $0x4e8] sm:$0xff] }
 0xfcd   :  { %v9285_v8 = vadd.f32 %v9270_v22, %v9264_v37  ;;  %v9281_v25 = vadd.f32 %v9278_v6, %v9260_v18  ;;  %v9284_v15 = vadd.f32 %v9278_v6, %v9263_v47  ;;  %v9287_v43 = vadd.f32 %v9278_v6, %v9266_v49  ;;  %v13236_v37 = vld [vmem:[%s23858_s7 + $0x360] sm:$0xff]  ;;  %v13283_v6 = vld [vmem:[%s23858_s7 + $0x4d8] sm:$0xff]  ;;  %v13234_v18 = vld [vmem:[%s23858_s7 + $0x350] sm:$0xff] }
 0xfce   :  { %v9274_v24 = vrot.slane %v9173_v9, %v24087_v20  ;;  %v9282_v10 = vadd.f32 %v9270_v22, %v9261_v50  ;;  %v9279_v52 = vadd.f32 %v9270_v22, %v9258_v7  ;;  %v13235_v22 = vld [vmem:[%s23858_s7 + $0x358] sm:$0xff]  ;;  %v13282_v47 = vld [vmem:[%s23858_s7 + $0x4d0] sm:$0xff]  ;;  %v13233_v49 = vld [vmem:[%s23858_s7 + $0x348] sm:$0xff] }
 0xfcf   :  { %vm9293_vm6 = vcmp.ge.f32.partialorder %v9284_v15, 0.0  ;;  %v9303_v13 = vmul.f32 0.2, %v9285_v8  ;;  %vm9296_vm13 = vcmp.ge.f32.partialorder %v9287_v43, 0.0  ;;  %v9302_v63 = vmul.f32 0.2, %v9284_v15 }
 0xfd0   :  { %v9280_v21 = vadd.f32 %v9274_v24, %v9259_v19  ;;  %v9299_v41 = vmul.f32 0.2, %v9281_v25  ;;  %v9305_v28 = vmul.f32 0.2, %v9287_v43  ;;  %v9283_v3 = vadd.f32 %v9274_v24, %v9262_v61  ;;  %v13281_v9 = vld [vmem:[%s23858_s7 + $0x4c8] sm:$0xff]  ;;  %v13232_v60 = vld [vmem:[%s23858_s7 + $0x340] sm:$0xff] }
 0xfd1   :  { %v9286_v1 = vadd.f32 %v9274_v24, %v9265_v2  ;;  %vm9294_vm14 = vcmp.ge.f32.partialorder %v9285_v8, 0.0  ;;  %v9300_v39 = vmul.f32 0.2, %v9282_v10  ;;  %vm9290_vm15 = vcmp.ge.f32.partialorder %v9281_v25, 0.0  ;;  %v13280_v7 = vld [vmem:[%s23858_s7 + $0x4c0] sm:$0xff]  ;;  %v13231_v50 = vld [vmem:[%s23858_s7 + $0x338] sm:$0xff] }
 0xfd2   :  { %v9311_v54 = vsel %vm9293_vm6, %v9284_v15, %v9302_v63  ;;  %v9314_v40 = vsel %vm9296_vm13, %v9287_v43, %v9305_v28  ;;  %vm9292_vm0 = vcmp.ge.f32.partialorder %v9283_v3, 0.0  ;;  %v9301_v16 = vmul.f32 0.2, %v9283_v3  ;;  %v13278_v15 = vld [vmem:[%s23858_s7 + $0x4b0] sm:$0xff]  ;;  %v13229_v43 = vld [vmem:[%s23858_s7 + $0x328] sm:$0xff]  ;;  %v13228_v19 = vld [vmem:[%s23858_s7 + $0x320] sm:$0xff] }
 0xfd3   :  { %vm9295_vm2 = vcmp.ge.f32.partialorder %v9286_v1, 0.0  ;;  %vm9291_vm3 = vcmp.ge.f32.partialorder %v9282_v10, 0.0  ;;  %v22150_v42 = vmul.f32 %v9331_v56, %v9314_v40  ;;  %v9298_v0 = vmul.f32 0.2, %v9280_v21  ;;  %v13277_v24 = vld [vmem:[%s23858_s7 + $0x4a8] sm:$0xff]  ;;  %v13227_v61 = vld [vmem:[%s23858_s7 + $0x318] sm:$0xff] }
 0xfd4   :  { %v9304_v51 = vmul.f32 0.2, %v9286_v1  ;;  %v9297_v14 = vmul.f32 0.2, %v9279_v52  ;;  %v9312_v4 = vsel %vm9294_vm14, %v9285_v8, %v9303_v13  ;;  %vm9289_vm5 = vcmp.ge.f32.partialorder %v9280_v21, 0.0  ;;  %v13279_v8 = vld [vmem:[%s23858_s7 + $0x4b8] sm:$0xff] }
 0xfd5   :  { %v9308_v45 = vsel %vm9290_vm15, %v9281_v25, %v9299_v41  ;;  %vm9288_vm7 = vcmp.ge.f32.partialorder %v9279_v52, 0.0  ;;  %15008 = vmatpush3.msk.msra.mxu1 %vm160_vm1, %v22150_v42  ;;  %v22154_v32 = vmul.f32 %v9326_v26, %v9311_v54  ;;  %v9310_v29 = vsel %vm9292_vm0, %v9283_v3, %v9301_v16  ;;  %v13230_v25 = vld [vmem:[%s23858_s7 + $0x330] sm:$0xff]  ;;  %v13224_v13 = vld [vmem:[%s23858_s7 + $0x300] sm:$0xff]  ;;  %v13223_v63 = vld [vmem:[%s23858_s7 + $0x2f8] sm:$0xff] }
 0xfd6   :  { %v9313_v58 = vsel %vm9295_vm2, %v9286_v1, %v9304_v51  ;;  %15009 = vmatprep.subr.mxu1 %v24048_v62  ;;  %v9309_v57 = vsel %vm9291_vm3, %v9282_v10, %v9300_v39  ;;  %v22161_v55 = vmul.f32 %v9331_v56, %v9312_v4  ;;  %v22164_v12 = vmul.f32 %v9321_v30, %v9308_v45  ;;  %v13276_v10 = vld [vmem:[%s23858_s7 + $0x4a0] sm:$0xff]  ;;  %v13226_v2 = vld [vmem:[%s23858_s7 + $0x310] sm:$0xff]  ;;  %v13219_v28 = vld [vmem:[%s23858_s7 + $0x2d8] sm:$0xff] }
 0xfd7   :  { %v22158_v36 = vmul.f32 %v9331_v56, %v9313_v58  ;;  %15010 = vmatpush3.msra.mxu1 %v22154_v32  ;;  %v9307_v46 = vsel %vm9289_vm5, %v9280_v21, %v9298_v0  ;;  %v22169_v34 = vmul.f32 %v9326_v26, %v9310_v29  ;;  %v9306_v17 = vsel %vm9288_vm7, %v9279_v52, %v9297_v14  ;;  %v13225_v52 = vld [vmem:[%s23858_s7 + $0x308] sm:$0xff]  ;;  %v13222_v21 = vld [vmem:[%s23858_s7 + $0x2f0] sm:$0xff]  ;;  %v13220_v41 = vld [vmem:[%s23858_s7 + $0x2e0] sm:$0xff] }
 0xfd8   :  { %15011 = vmatprep.subr.mxu1 %v24048_v62  ;;  %v22178_v11 = vmul.f32 %v9326_v26, %v9309_v57  ;;  %v22182_v53 = vmul.f32 %v9321_v30, %v9307_v46  ;;  %v22186_v27 = vmul.f32 %v9321_v30, %v9306_v17  ;;  %v13221_v56 = vld [vmem:[%s23858_s7 + $0x2e8] sm:$0xff]  ;;  %v13218_v3 = vld [vmem:[%s23858_s7 + $0x2d0] sm:$0xff]  ;;  %v13216_v39 = vld [vmem:[%s23858_s7 + $0x2c0] sm:$0xff] }
 0xfd9   :  { %13197 = vmatprep.subr.msk.mxu0 %vm160_vm1, %v22158_v36  ;;  %15012 = vmatpush3.msra.mxu1 %v22164_v12  ;;  %v13217_v1 = vld [vmem:[%s23858_s7 + $0x2c8] sm:$0xff]  ;;  %v13215_v54 = vld [vmem:[%s23858_s7 + $0x2b8] sm:$0xff]  ;;  %v13214_v40 = vld [vmem:[%s23858_s7 + $0x2b0] sm:$0xff] }
 0xfda   :  { %13198 = vmatpush1.msk.msra.mxu0 %vm160_vm1, %v22161_v55  ;;  %15016 = vmatprep.subr.mxu1 %v24048_v62  ;;  %v13213_v16 = vld [vmem:[%s23858_s7 + $0x2a8] sm:$0xff]  ;;  %v13212_v0 = vld [vmem:[%s23858_s7 + $0x2a0] sm:$0xff]  ;;  %v13211_v51 = vld [vmem:[%s23858_s7 + $0x298] sm:$0xff] }
 0xfdb   :  { %9384 = vmatprep.subr.mxu0 %v22169_v34  ;;  %15014 = vmatmul.mubr.msk.f32.vlgmr.msra.gmra.mxu1 %vm9343_vm8, %v9342_v35  ;;  %v13210_v26 = vld [vmem:[%s23858_s7 + $0x290] sm:$0xff]  ;;  %v13209_v14 = vld [vmem:[%s23858_s7 + $0x288] sm:$0xff]  ;;  %v13208_v4 = vld [vmem:[%s23858_s7 + $0x280] sm:$0xff] }
 0xfdc   :  { %9385 = vmatpush1.msra.mxu0 %v22178_v11  ;;  %15017 = vmatpush3.msk.msra.mxu1 %vm160_vm1, %v22150_v42  ;;  %v13271_v45 = vld [vmem:[%s23858_s7 + $0x478] sm:$0xff]  ;;  %v13270_v58 = vld [vmem:[%s23858_s7 + $0x470] sm:$0xff]  ;;  %v13269_v29 = vld [vmem:[%s23858_s7 + $0x468] sm:$0xff] }
 0xfdd   :  { %9386 = vmatprep.subr.mxu0 %v22182_v53  ;;  %15018 = vmatprep.subr.mxu1 %v24048_v62  ;;  %v13268_v30 = vld [vmem:[%s23858_s7 + $0x460] sm:$0xff]  ;;  %v13267_v57 = vld [vmem:[%s23858_s7 + $0x458] sm:$0xff]  ;;  %v13266_v46 = vld [vmem:[%s23858_s7 + $0x450] sm:$0xff] }
 0xfde   :  { %9387 = vmatpush1.msra.mxu0 %v22186_v27  ;;  %15019 = vmatpush3.msra.mxu1 %v22154_v32  ;;  %v13264_v17 = vld [vmem:[%s23858_s7 + $0x440] sm:$0xff] }
 0xfdf   :  { %13203 = vmatprep.subr.msk.mxu0 %vm160_vm1, %v22158_v36  ;;  %13199 = vmatmul.mubr.msk.f32.vlgmr.msra.gmra.mxu0 %vm9343_vm8, %v9342_v35  ;;  %v13265_v35 = vld [vmem:[%s23858_s7 + $0x448] sm:$0xff] }
 0xfe0   :  { %15020 = vmatprep.subr.mxu1 %v24048_v62  ;;  %13204 = vmatpush1.msk.msra.mxu0 %vm160_vm1, %v22161_v55 }
 0xfe1   :  { %15021 = vmatpush3.msra.mxu1 %v22164_v12  ;;  %9610 = vmatprep.subr.mxu0 %v22169_v34 }
 0xfe2   :  { %15022 = vmatprep.mubr.msk.f32.mxu1 %vm15093_vm4, %v24048_v62  ;;  %9611 = vmatpush1.msra.mxu0 %v22178_v11 }
 0xfe3   :  { %15023 = vmatmul.mubr.msk.f32.vlgmr.msra.gmra.mxu1 %vm9343_vm8, %v13202_v44  ;;  %9612 = vmatprep.subr.mxu0 %v22182_v53 }
 0xfe4   :  { %9646 = vmatprep.mubr.f32.mxu0 %v24048_v62  ;;  %9613 = vmatpush1.msra.mxu0 %v22186_v27 }
 0xfe5   :  { %9894 = vmatprep.subr.mxu1 %v13287_v23  ;;  %13205 = vmatmul.mubr.msk.f32.vlgmr.msra.gmra.mxu0 %vm9343_vm8, %v13202_v44  ;;  %v13263_v44 = vld [vmem:[%s23858_s7 + $0x438] sm:$0xff]  ;;  %v13262_v23 = vld [vmem:[%s23858_s7 + $0x430] sm:$0xff] }
 0xfe6   :  { %9807 = vmatprep.subr.mxu0 %v13239_v38  ;;  %9895 = vmatpush1.msra.mxu1 %v13286_v59  ;;  %v13261_v38 = vld [vmem:[%s23858_s7 + $0x428] sm:$0xff]  ;;  %v13259_v59 = vld [vmem:[%s23858_s7 + $0x418] sm:$0xff] }
 0xfe7   :  { %9808 = vmatpush1.msra.mxu0 %v13238_v5  ;;  %9896 = vmatprep.subr.mxu1 %v13285_v33  ;;  %v13260_v5 = vld [vmem:[%s23858_s7 + $0x420] sm:$0xff]  ;;  %v13257_v33 = vld [vmem:[%s23858_s7 + $0x408] sm:$0xff] }
 0xfe8   :  { %9809 = vmatprep.subr.mxu0 %v13237_v31  ;;  %9897 = vmatpush1.msra.mxu1 %v13284_v48  ;;  %v13258_v31 = vld [vmem:[%s23858_s7 + $0x410] sm:$0xff]  ;;  %v13255_v48 = vld [vmem:[%s23858_s7 + $0x3f8] sm:$0xff] }
 0xfe9   :  { %9810 = vmatpush1.msra.mxu0 %v13236_v37  ;;  %9898 = vmatprep.subr.mxu1 %v13283_v6  ;;  %v13256_v37 = vld [vmem:[%s23858_s7 + $0x400] sm:$0xff]  ;;  %v13253_v6 = vld [vmem:[%s23858_s7 + $0x3e8] sm:$0xff] }
 0xfea   :  { %9811 = vmatprep.subr.mxu0 %v13235_v22  ;;  %9899 = vmatpush1.msra.mxu1 %v13282_v47  ;;  %v13254_v22 = vld [vmem:[%s23858_s7 + $0x3f0] sm:$0xff]  ;;  %v13251_v47 = vld [vmem:[%s23858_s7 + $0x3d8] sm:$0xff] }
 0xfeb   :  { %9812 = vmatpush1.msra.mxu0 %v13234_v18  ;;  %9900 = vmatprep.subr.mxu1 %v13281_v9  ;;  %v13252_v18 = vld [vmem:[%s23858_s7 + $0x3e0] sm:$0xff]  ;;  %v13249_v9 = vld [vmem:[%s23858_s7 + $0x3c8] sm:$0xff] }
 0xfec   :  { %9813 = vmatprep.subr.mxu0 %v13233_v49  ;;  %9901 = vmatpush1.msra.mxu1 %v13280_v7  ;;  %v13250_v49 = vld [vmem:[%s23858_s7 + $0x3d0] sm:$0xff]  ;;  %v13248_v7 = vld [vmem:[%s23858_s7 + $0x3c0] sm:$0xff] }
 0xfed   :  { %9814 = vmatpush1.msra.mxu0 %v13232_v60  ;;  %9902 = vmatprep.subr.mxu1 %v13279_v8  ;;  %v13275_v60 = vld [vmem:[%s23858_s7 + $0x498] sm:$0xff] }
 0xfee   :  { %9815 = vmatprep.subr.mxu0 %v13231_v50  ;;  %9903 = vmatpush1.msra.mxu1 %v13278_v15  ;;  %v13274_v50 = vld [vmem:[%s23858_s7 + $0x490] sm:$0xff]  ;;  %v13247_v8 = vld [vmem:[%s23858_s7 + $0x3b8] sm:$0xff] }
 0xfef   :  { %9816 = vmatpush1.msra.mxu0 %v13230_v25  ;;  %9904 = vmatprep.subr.mxu1 %v13277_v24  ;;  %v13273_v25 = vld [vmem:[%s23858_s7 + $0x488] sm:$0xff]  ;;  %v13246_v15 = vld [vmem:[%s23858_s7 + $0x3b0] sm:$0xff] }
 0xff0   :  { %9817 = vmatprep.subr.mxu0 %v13229_v43  ;;  %9905 = vmatpush1.msra.mxu1 %v13276_v10  ;;  %v13272_v43 = vld [vmem:[%s23858_s7 + $0x480] sm:$0xff]  ;;  %v13245_v24 = vld [vmem:[%s23858_s7 + $0x3a8] sm:$0xff] }
 0xff1   :  { %9818 = vmatpush1.msra.mxu0 %v13228_v19  ;;  %9942 = vmatprep.mubr.f32.mxu1 %v24048_v62  ;;  %v9528_v19 = vld [vmem:[%s23858_s7 + $0xf8] sm:$0xff]  ;;  %v13244_v10 = vld [vmem:[%s23858_s7 + $0x3a0] sm:$0xff] }
 0xff2   :  { %9819 = vmatprep.subr.mxu0 %v13227_v61  ;;  %9906 = vmatprep.subr.mxu1 %v13275_v60  ;;  %v13243_v61 = vld [vmem:[%s23858_s7 + $0x398] sm:$0xff]  ;;  %v9509_v60 = vld [vmem:[%s23858_s7 + $0x60] sm:$0xff] }
 0xff3   :  { %9820 = vmatpush1.msra.mxu0 %v13226_v2  ;;  %9907 = vmatpush1.msra.mxu1 %v13274_v50  ;;  %v13242_v2 = vld [vmem:[%s23858_s7 + $0x390] sm:$0xff]  ;;  %v9508_v50 = vld [vmem:[%s23858_s7 + $0x58] sm:$0xff] }
 0xff4   :  { %9821 = vmatprep.subr.mxu0 %v13225_v52  ;;  %9908 = vmatprep.subr.mxu1 %v13273_v25  ;;  %v13241_v52 = vld [vmem:[%s23858_s7 + $0x388] sm:$0xff]  ;;  %v9507_v25 = vld [vmem:[%s23858_s7 + $0x50] sm:$0xff] }
 0xff5   :  { %9822 = vmatpush1.msra.mxu0 %v13224_v13  ;;  %9909 = vmatpush1.msra.mxu1 %v13272_v43  ;;  %v13240_v13 = vld [vmem:[%s23858_s7 + $0x380] sm:$0xff]  ;;  %v9506_v43 = vld [vmem:[%s23858_s7 + $0x48] sm:$0xff] }
 0xff6   :  { %9823 = vmatprep.subr.mxu0 %v13223_v63  ;;  %9952 = vmatprep.subr.mxu1 %v9528_v19  ;;  %v9576_v63 = vld [vmem:[%s23858_s7 + $0x278] sm:$0xff] }
 0xff7   :  { %9824 = vmatpush1.msra.mxu0 %v13222_v21  ;;  %v9504_v19 = vld [vmem:[%s23858_s7 + $0x38] sm:$0xff] }
 0xff8   :  { %9825 = vmatprep.subr.mxu0 %v13221_v56 }
 0xff9   :  { %9826 = vmatpush1.msra.mxu0 %v13220_v41 }
 0xffa   :  { %9827 = vmatprep.subr.mxu0 %v13219_v28 }
 0xffb   :  { %9828 = vmatpush1.msra.mxu0 %v13218_v3  ;;  %v9527_v3 = vld [vmem:[%s23858_s7 + $0xf0] sm:$0xff] }
 0xffc   :  { %9829 = vmatprep.subr.mxu0 %v13217_v1 }
 0xffd   :  { %9830 = vmatpush1.msra.mxu0 %v13216_v39  ;;  %v9526_v39 = vld [vmem:[%s23858_s7 + $0xe8] sm:$0xff] }
 0xffe   :  { %9831 = vmatprep.subr.mxu0 %v13215_v54  ;;  %v9525_v54 = vld [vmem:[%s23858_s7 + $0xe0] sm:$0xff] }
 0xfff   :  { %9832 = vmatpush1.msra.mxu0 %v13214_v40  ;;  %v9524_v40 = vld [vmem:[%s23858_s7 + $0xd8] sm:$0xff] }
0x1000   :  { %9833 = vmatprep.subr.mxu0 %v13213_v16 }
0x1001   :  { %9834 = vmatpush1.msra.mxu0 %v13212_v0 }
0x1002   :  { %9835 = vmatprep.subr.mxu0 %v13211_v51  ;;  %v9523_v51 = vld [vmem:[%s23858_s7 + $0xd0] sm:$0xff] }
0x1003   :  { %9836 = vmatpush1.msra.mxu0 %v13210_v26  ;;  %v9522_v26 = vld [vmem:[%s23858_s7 + $0xc8] sm:$0xff] }
0x1004   :  { %9837 = vmatprep.subr.mxu0 %v13209_v14 }
0x1005   :  { %9838 = vmatpush1.msra.mxu0 %v13208_v4  ;;  %v9521_v4 = vld [vmem:[%s23858_s7 + $0xc0] sm:$0xff] }
0x1006   :  { %9839 = vmatprep.subr.mxu0 %v13271_v45  ;;  %v9575_v45 = vld [vmem:[%s23858_s7 + $0x270] sm:$0xff] }
0x1007   :  { %9840 = vmatpush2.msra.mxu0 %v13270_v58  ;;  %v9520_v58 = vld [vmem:[%s23858_s7 + $0xb8] sm:$0xff] }
0x1008   :  { %9841 = vmatprep.subr.mxu0 %v13269_v29  ;;  %v9574_v29 = vld [vmem:[%s23858_s7 + $0x268] sm:$0xff] }
0x1009   :  { %9842 = vmatpush2.msra.mxu0 %v13268_v30  ;;  %v9519_v30 = vld [vmem:[%s23858_s7 + $0xb0] sm:$0xff] }
0x100a   :  { %9843 = vmatprep.subr.mxu0 %v13267_v57  ;;  %v9573_v57 = vld [vmem:[%s23858_s7 + $0x260] sm:$0xff] }
0x100b   :  { %9844 = vmatpush2.msra.mxu0 %v13266_v46  ;;  %v9518_v46 = vld [vmem:[%s23858_s7 + $0xa8] sm:$0xff] }
0x100c   :  { %9845 = vmatprep.subr.mxu0 %v13265_v35  ;;  %v9572_v35 = vld [vmem:[%s23858_s7 + $0x258] sm:$0xff] }
0x100d   :  { %9846 = vmatpush2.msra.mxu0 %v13264_v17  ;;  %v9517_v17 = vld [vmem:[%s23858_s7 + $0xa0] sm:$0xff] }
0x100e   :  { %9847 = vmatprep.subr.mxu0 %v13263_v44  ;;  %v9571_v44 = vld [vmem:[%s23858_s7 + $0x250] sm:$0xff] }
0x100f   :  { %9848 = vmatpush2.msra.mxu0 %v13262_v23  ;;  %v9516_v23 = vld [vmem:[%s23858_s7 + $0x98] sm:$0xff] }
0x1010   :  { %9849 = vmatprep.subr.mxu0 %v13261_v38  ;;  %v9570_v38 = vld [vmem:[%s23858_s7 + $0x248] sm:$0xff] }
0x1011   :  { %9850 = vmatpush2.msra.mxu0 %v13260_v5  ;;  %v9515_v5 = vld [vmem:[%s23858_s7 + $0x90] sm:$0xff] }
0x1012   :  { %9851 = vmatprep.subr.mxu0 %v13259_v59  ;;  %v9569_v59 = vld [vmem:[%s23858_s7 + $0x240] sm:$0xff] }
0x1013   :  { %9852 = vmatpush2.msra.mxu0 %v13258_v31  ;;  %v9514_v31 = vld [vmem:[%s23858_s7 + $0x88] sm:$0xff] }
0x1014   :  { %9853 = vmatprep.subr.mxu0 %v13257_v33  ;;  %v9568_v33 = vld [vmem:[%s23858_s7 + $0x238] sm:$0xff] }
0x1015   :  { %9854 = vmatpush2.msra.mxu0 %v13256_v37  ;;  %v9513_v37 = vld [vmem:[%s23858_s7 + $0x80] sm:$0xff] }
0x1016   :  { %9855 = vmatprep.subr.mxu0 %v13255_v48  ;;  %v9567_v48 = vld [vmem:[%s23858_s7 + $0x230] sm:$0xff] }
0x1017   :  { %9856 = vmatpush2.msra.mxu0 %v13254_v22  ;;  %v9512_v22 = vld [vmem:[%s23858_s7 + $0x78] sm:$0xff] }
0x1018   :  { %9857 = vmatprep.subr.mxu0 %v13253_v6  ;;  %v9566_v6 = vld [vmem:[%s23858_s7 + $0x228] sm:$0xff] }
0x1019   :  { %9858 = vmatpush2.msra.mxu0 %v13252_v18  ;;  %v9511_v18 = vld [vmem:[%s23858_s7 + $0x70] sm:$0xff] }
0x101a   :  { %9859 = vmatprep.subr.mxu0 %v13251_v47  ;;  %v9565_v47 = vld [vmem:[%s23858_s7 + $0x220] sm:$0xff] }
0x101b   :  { %9860 = vmatpush2.msra.mxu0 %v13250_v49  ;;  %v9510_v49 = vld [vmem:[%s23858_s7 + $0x68] sm:$0xff] }
0x101c   :  { %9861 = vmatprep.subr.mxu0 %v13249_v9  ;;  %v9564_v9 = vld [vmem:[%s23858_s7 + $0x218] sm:$0xff] }
0x101d   :  { %9862 = vmatpush2.msra.mxu0 %v13248_v7  ;;  %v9563_v7 = vld [vmem:[%s23858_s7 + $0x210] sm:$0xff] }
0x101e   :  { %9863 = vmatprep.subr.mxu0 %v13247_v8  ;;  %v9562_v8 = vld [vmem:[%s23858_s7 + $0x208] sm:$0xff] }
0x101f   :  { %9864 = vmatpush2.msra.mxu0 %v13246_v15  ;;  %v9561_v15 = vld [vmem:[%s23858_s7 + $0x200] sm:$0xff] }
0x1020   :  { %9865 = vmatprep.subr.mxu0 %v13245_v24  ;;  %v9505_v24 = vld [vmem:[%s23858_s7 + $0x40] sm:$0xff] }
0x1021   :  { %9866 = vmatpush2.msra.mxu0 %v13244_v10  ;;  %v9503_v10 = vld [vmem:[%s23858_s7 + $0x30] sm:$0xff] }
0x1022   :  { %9867 = vmatprep.subr.mxu0 %v13243_v61  ;;  %v9502_v61 = vld [vmem:[%s23858_s7 + $0x28] sm:$0xff] }
0x1023   :  { %9868 = vmatpush2.msra.mxu0 %v13242_v2  ;;  %v9501_v2 = vld [vmem:[%s23858_s7 + $0x20] sm:$0xff] }
0x1024   :  { %9869 = vmatprep.subr.mxu0 %v13241_v52  ;;  %v9500_v52 = vld [vmem:[%s23858_s7 + $0x18] sm:$0xff] }
0x1025   :  { %9870 = vmatpush2.msra.mxu0 %v13240_v13  ;;  %v9499_v13 = vld [vmem:[%s23858_s7 + $0x10] sm:$0xff] }
0x1026   :  { %10039 = vmatprep.subr.mxu0 %v9576_v63  ;;  %v22610_v63 = vld [vmem:[%s23857_s8 + $0x10] sm:$0xff] }
0x109b   :  { %v22460_v21 = vpop.f32.mrf.mxu1 }
0x109d   :  { %v15015_v56 = vpop.f32.mrf.mxu1 }
0x109e   :  { %v13327_v56 = vld [vmem:[%s23858_s7 + $0x5f8] sm:$0xff] }
0x109f   :  { %v22462_v41 = vpop.f32.mrf.mxu0 }
0x10a1   :  { %v9424_v28 = vpop.f32.mrf.mxu0 }
0x10a3   :  { %v9719_v1 = vpop.f32.mrf.mxu1 }
0x10a4   :  { %13288 = vmatmul.mubr.msk.f32.vlgmr.msra.gmra.mxu1 %vm8564_vm11, %v9719_v1  ;;  %v9560_v1 = vld [vmem:[%s23858_s7 + $0x1f8] sm:$0xff] }
0x10a5   :  { %9953 = vmatpush1.msra.mxu1 %v9527_v3  ;;  %v15024_v16 = vpop.f32.mrf.mxu1  ;;  %10016 = vmatprep.mubr.f32.mxu1 %v9424_v28  ;;  %v9648_v0 = vpop.f32.mrf.mxu0  ;;  %v9497_v28 = vld [vmem:[%s23858_s7] sm:$0xff]  ;;  %v13326_v3 = vld [vmem:[%s23858_s7 + $0x5f0] sm:$0xff] }
0x10a6   :  { %9954 = vmatprep.subr.mxu1 %v9526_v39  ;;  %v13325_v39 = vld [vmem:[%s23858_s7 + $0x5e8] sm:$0xff] }
0x10a7   :  { %9955 = vmatpush1.msra.mxu1 %v9525_v54  ;;  %v9650_v14 = vpop.f32.mrf.mxu0  ;;  %v9559_v54 = vld [vmem:[%s23858_s7 + $0x1f0] sm:$0xff]  ;;  %v9558_v16 = vld [vmem:[%s23858_s7 + $0x1e8] sm:$0xff] }
0x10a8   :  { %9956 = vmatprep.subr.mxu1 %v9524_v40  ;;  %9871 = vmatprep.mubr.f32.mxu0 %v9650_v14  ;;  %v13324_v40 = vld [vmem:[%s23858_s7 + $0x5e0] sm:$0xff]  ;;  %v9556_v14 = vld [vmem:[%s23858_s7 + $0x1d8] sm:$0xff] }
0x10a9   :  { %9957 = vmatpush1.msra.mxu1 %v9523_v51  ;;  %9872 = vmatmul.mubr.f32.vlgmr.msra.gmra.mxu0 %v9648_v0  ;;  %v13323_v0 = vld [vmem:[%s23858_s7 + $0x5d8] sm:$0xff]  ;;  %v9557_v51 = vld [vmem:[%s23858_s7 + $0x1e0] sm:$0xff] }
0x10aa   :  { %9958 = vmatprep.subr.mxu1 %v9522_v26  ;;  %10040 = vmatpush1.msra.mxu0 %v9575_v45  ;;  %v13322_v26 = vld [vmem:[%s23858_s7 + $0x5d0] sm:$0xff] }
0x10ab   :  { %9959 = vmatpush1.msra.mxu1 %v9521_v4  ;;  %10041 = vmatprep.subr.mxu0 %v9574_v29  ;;  %v13321_v4 = vld [vmem:[%s23858_s7 + $0x5c8] sm:$0xff]  ;;  %v9555_v45 = vld [vmem:[%s23858_s7 + $0x1d0] sm:$0xff] }
0x10ac   :  { %9960 = vmatprep.subr.mxu1 %v9520_v58  ;;  %10042 = vmatpush1.msra.mxu0 %v9573_v57  ;;  %v13320_v58 = vld [vmem:[%s23858_s7 + $0x5c0] sm:$0xff]  ;;  %v9554_v29 = vld [vmem:[%s23858_s7 + $0x1c8] sm:$0xff]  ;;  %v9552_v57 = vld [vmem:[%s23858_s7 + $0x1b8] sm:$0xff] }
0x10ad   :  { %9961 = vmatpush1.msra.mxu1 %v9519_v30  ;;  %10043 = vmatprep.subr.mxu0 %v9572_v35  ;;  %v9553_v30 = vld [vmem:[%s23858_s7 + $0x1c0] sm:$0xff]  ;;  %v9550_v35 = vld [vmem:[%s23858_s7 + $0x1a8] sm:$0xff] }
0x10ae   :  { %9962 = vmatprep.subr.mxu1 %v9518_v46  ;;  %10044 = vmatpush1.msra.mxu0 %v9571_v44  ;;  %v9551_v46 = vld [vmem:[%s23858_s7 + $0x1b0] sm:$0xff]  ;;  %v9548_v44 = vld [vmem:[%s23858_s7 + $0x198] sm:$0xff] }
0x10af   :  { %9963 = vmatpush1.msra.mxu1 %v9517_v17  ;;  %10045 = vmatprep.subr.mxu0 %v9570_v38  ;;  %v9549_v17 = vld [vmem:[%s23858_s7 + $0x1a0] sm:$0xff]  ;;  %v9546_v38 = vld [vmem:[%s23858_s7 + $0x188] sm:$0xff] }
0x10b0   :  { %9964 = vmatprep.subr.mxu1 %v9516_v23  ;;  %10046 = vmatpush1.msra.mxu0 %v9569_v59  ;;  %v9547_v23 = vld [vmem:[%s23858_s7 + $0x190] sm:$0xff]  ;;  %v9544_v59 = vld [vmem:[%s23858_s7 + $0x178] sm:$0xff] }
0x10b1   :  { %9965 = vmatpush1.msra.mxu1 %v9515_v5  ;;  %10047 = vmatprep.subr.mxu0 %v9568_v33  ;;  %v9545_v5 = vld [vmem:[%s23858_s7 + $0x180] sm:$0xff]  ;;  %v9542_v33 = vld [vmem:[%s23858_s7 + $0x168] sm:$0xff] }
0x10b2   :  { %9966 = vmatprep.subr.mxu1 %v9514_v31  ;;  %10048 = vmatpush1.msra.mxu0 %v9567_v48  ;;  %v9543_v31 = vld [vmem:[%s23858_s7 + $0x170] sm:$0xff]  ;;  %v9540_v48 = vld [vmem:[%s23858_s7 + $0x158] sm:$0xff] }
0x10b3   :  { %9967 = vmatpush1.msra.mxu1 %v9513_v37  ;;  %10049 = vmatprep.subr.mxu0 %v9566_v6  ;;  %v9541_v37 = vld [vmem:[%s23858_s7 + $0x160] sm:$0xff]  ;;  %v9538_v6 = vld [vmem:[%s23858_s7 + $0x148] sm:$0xff] }
0x10b4   :  { %9968 = vmatprep.subr.mxu1 %v9512_v22  ;;  %10050 = vmatpush1.msra.mxu0 %v9565_v47  ;;  %v9539_v22 = vld [vmem:[%s23858_s7 + $0x150] sm:$0xff]  ;;  %v9536_v47 = vld [vmem:[%s23858_s7 + $0x138] sm:$0xff] }
0x10b5   :  { %9969 = vmatpush1.msra.mxu1 %v9511_v18  ;;  %10051 = vmatprep.subr.mxu0 %v9564_v9  ;;  %v9537_v18 = vld [vmem:[%s23858_s7 + $0x140] sm:$0xff]  ;;  %v9534_v9 = vld [vmem:[%s23858_s7 + $0x128] sm:$0xff] }
0x10b6   :  { %9970 = vmatprep.subr.mxu1 %v9510_v49  ;;  %10052 = vmatpush1.msra.mxu0 %v9563_v7  ;;  %v9535_v49 = vld [vmem:[%s23858_s7 + $0x130] sm:$0xff]  ;;  %v9532_v7 = vld [vmem:[%s23858_s7 + $0x118] sm:$0xff] }
0x10b7   :  { %9971 = vmatpush1.msra.mxu1 %v9509_v60  ;;  %10053 = vmatprep.subr.mxu0 %v9562_v8  ;;  %v9533_v60 = vld [vmem:[%s23858_s7 + $0x120] sm:$0xff]  ;;  %v9530_v8 = vld [vmem:[%s23858_s7 + $0x108] sm:$0xff] }
0x10b8   :  { %9972 = vmatprep.subr.mxu1 %v9508_v50  ;;  %10054 = vmatpush1.msra.mxu0 %v9561_v15  ;;  %v9531_v50 = vld [vmem:[%s23858_s7 + $0x110] sm:$0xff]  ;;  %v13375_v15 = vld [vmem:[%s23858_s7 + $0x778] sm:$0xff] }
0x10b9   :  { %9973 = vmatpush1.msra.mxu1 %v9507_v25  ;;  %10087 = vmatprep.mubr.f32.mxu0 %v24048_v62  ;;  %v9529_v25 = vld [vmem:[%s23858_s7 + $0x100] sm:$0xff] }
0x10ba   :  { %9974 = vmatprep.subr.mxu1 %v9506_v43  ;;  %13289 = vmatmul.mubr.msk.f32.vlgmr.msra.gmra.mxu0 %vm8564_vm11, %v22460_v21  ;;  %v9498_v21 = vld [vmem:[%s23858_s7 + $0x8] sm:$0xff] }
0x10bb   :  { %13291 = vmatprep.subr.msk.mxu0 %vm160_vm1, %v22158_v36  ;;  %9975 = vmatpush1.msra.mxu1 %v9505_v24  ;;  %v13373_v43 = vld [vmem:[%s23858_s7 + $0x768] sm:$0xff]  ;;  %v13372_v24 = vld [vmem:[%s23858_s7 + $0x760] sm:$0xff] }
0x10bc   :  { %13292 = vmatpush1.msk.msra.mxu0 %vm160_vm1, %v22161_v55  ;;  %9976 = vmatprep.subr.mxu1 %v9504_v19  ;;  %v13319_v19 = vld [vmem:[%s23858_s7 + $0x5b8] sm:$0xff] }
0x10bd   :  { %10127 = vmatprep.subr.mxu0 %v22169_v34  ;;  %9977 = vmatpush1.msra.mxu1 %v9503_v10  ;;  %v13318_v10 = vld [vmem:[%s23858_s7 + $0x5b0] sm:$0xff] }
0x10be   :  { %10128 = vmatpush1.msra.mxu0 %v22178_v11  ;;  %9978 = vmatprep.subr.mxu1 %v9502_v61  ;;  %v13371_v61 = vld [vmem:[%s23858_s7 + $0x758] sm:$0xff] }
0x10bf   :  { %10129 = vmatprep.subr.mxu0 %v22182_v53  ;;  %9979 = vmatpush1.msra.mxu1 %v9501_v2  ;;  %v13370_v2 = vld [vmem:[%s23858_s7 + $0x750] sm:$0xff] }
0x10c0   :  { %10130 = vmatpush1.msra.mxu0 %v22186_v27  ;;  %9980 = vmatprep.subr.mxu1 %v9500_v52  ;;  %v13317_v52 = vld [vmem:[%s23858_s7 + $0x5a8] sm:$0xff] }
0x10c1   :  { %10163 = vmatprep.mubr.f32.mxu0 %v24048_v62  ;;  %9981 = vmatpush1.msra.mxu1 %v9499_v13  ;;  %v13316_v13 = vld [vmem:[%s23858_s7 + $0x5a0] sm:$0xff] }
0x10c2   :  { %13293 = vmatmul.mubr.msk.f32.vlgmr.msra.gmra.mxu0 %vm9343_vm8, %v22610_v63  ;;  %9982 = vmatprep.subr.mxu1 %v9498_v21  ;;  %v13369_v21 = vld [vmem:[%s23858_s7 + $0x748] sm:$0xff] }
0x10c3   :  { %10324 = vmatprep.subr.mxu0 %v13327_v56  ;;  %9983 = vmatpush1.msra.mxu1 %v9497_v28  ;;  %v13314_v56 = vld [vmem:[%s23858_s7 + $0x590] sm:$0xff]  ;;  %v13368_v28 = vld [vmem:[%s23858_s7 + $0x740] sm:$0xff] }
0x10c4   :  { %10325 = vmatpush1.msra.mxu0 %v13326_v3  ;;  %9984 = vmatprep.subr.mxu1 %v9560_v1  ;;  %v13313_v3 = vld [vmem:[%s23858_s7 + $0x588] sm:$0xff]  ;;  %v13367_v1 = vld [vmem:[%s23858_s7 + $0x738] sm:$0xff] }
0x10c5   :  { %10326 = vmatprep.subr.mxu0 %v13325_v39  ;;  %9985 = vmatpush2.msra.mxu1 %v9559_v54  ;;  %v13366_v39 = vld [vmem:[%s23858_s7 + $0x730] sm:$0xff]  ;;  %v13365_v54 = vld [vmem:[%s23858_s7 + $0x728] sm:$0xff] }
0x10c6   :  { %10327 = vmatpush1.msra.mxu0 %v13324_v40  ;;  %9986 = vmatprep.subr.mxu1 %v9558_v16  ;;  %v13364_v40 = vld [vmem:[%s23858_s7 + $0x720] sm:$0xff]  ;;  %v13363_v16 = vld [vmem:[%s23858_s7 + $0x718] sm:$0xff] }
0x10c7   :  { %10328 = vmatprep.subr.mxu0 %v13323_v0  ;;  %9987 = vmatpush2.msra.mxu1 %v9557_v51  ;;  %v13362_v0 = vld [vmem:[%s23858_s7 + $0x710] sm:$0xff]  ;;  %v13361_v51 = vld [vmem:[%s23858_s7 + $0x708] sm:$0xff] }
0x10c8   :  { %10329 = vmatpush1.msra.mxu0 %v13322_v26  ;;  %9988 = vmatprep.subr.mxu1 %v9556_v14  ;;  %v13360_v26 = vld [vmem:[%s23858_s7 + $0x700] sm:$0xff] }
0x10c9   :  { %10330 = vmatprep.subr.mxu0 %v13321_v4  ;;  %9989 = vmatpush2.msra.mxu1 %v9555_v45  ;;  %v13312_v14 = vld [vmem:[%s23858_s7 + $0x580] sm:$0xff]  ;;  %v13311_v4 = vld [vmem:[%s23858_s7 + $0x578] sm:$0xff]  ;;  %v13310_v45 = vld [vmem:[%s23858_s7 + $0x570] sm:$0xff] }
0x10ca   :  { %10331 = vmatpush1.msra.mxu0 %v13320_v58  ;;  %9990 = vmatprep.subr.mxu1 %v9554_v29  ;;  %v13309_v58 = vld [vmem:[%s23858_s7 + $0x568] sm:$0xff]  ;;  %v13308_v29 = vld [vmem:[%s23858_s7 + $0x560] sm:$0xff] }
0x10cb   :  { %9991 = vmatpush2.msra.mxu1 %v9553_v30  ;;  %10332 = vmatprep.subr.mxu0 %v13319_v19  ;;  %v13306_v30 = vld [vmem:[%s23858_s7 + $0x550] sm:$0xff]  ;;  %v13341_v19 = vld [vmem:[%s23858_s7 + $0x668] sm:$0xff] }
0x10cc   :  { %9992 = vmatprep.subr.mxu1 %v9552_v57  ;;  %10333 = vmatpush1.msra.mxu0 %v13318_v10  ;;  %v13305_v57 = vld [vmem:[%s23858_s7 + $0x548] sm:$0xff]  ;;  %v13340_v10 = vld [vmem:[%s23858_s7 + $0x660] sm:$0xff] }
0x10cd   :  { %9993 = vmatpush2.msra.mxu1 %v9551_v46  ;;  %10334 = vmatprep.subr.mxu0 %v13317_v52  ;;  %v13304_v46 = vld [vmem:[%s23858_s7 + $0x540] sm:$0xff]  ;;  %v13337_v52 = vld [vmem:[%s23858_s7 + $0x648] sm:$0xff] }
0x10ce   :  { %9994 = vmatprep.subr.mxu1 %v9550_v35  ;;  %10335 = vmatpush1.msra.mxu0 %v13316_v13  ;;  %v13303_v35 = vld [vmem:[%s23858_s7 + $0x538] sm:$0xff]  ;;  %v13336_v13 = vld [vmem:[%s23858_s7 + $0x640] sm:$0xff] }
0x10cf   :  { %9995 = vmatpush2.msra.mxu1 %v9549_v17  ;;  %v13302_v17 = vld [vmem:[%s23858_s7 + $0x530] sm:$0xff] }
0x10d0   :  { %9996 = vmatprep.subr.mxu1 %v9548_v44  ;;  %v13301_v44 = vld [vmem:[%s23858_s7 + $0x528] sm:$0xff] }
0x10d1   :  { %9997 = vmatpush2.msra.mxu1 %v9547_v23  ;;  %v13300_v23 = vld [vmem:[%s23858_s7 + $0x520] sm:$0xff] }
0x10d2   :  { %9998 = vmatprep.subr.mxu1 %v9546_v38  ;;  %v13299_v38 = vld [vmem:[%s23858_s7 + $0x518] sm:$0xff] }
0x10d3   :  { %9999 = vmatpush2.msra.mxu1 %v9545_v5  ;;  %v13298_v5 = vld [vmem:[%s23858_s7 + $0x510] sm:$0xff] }
0x10d4   :  { %10000 = vmatprep.subr.mxu1 %v9544_v59  ;;  %v13297_v59 = vld [vmem:[%s23858_s7 + $0x508] sm:$0xff] }
0x10d5   :  { %10001 = vmatpush2.msra.mxu1 %v9543_v31  ;;  %v13296_v31 = vld [vmem:[%s23858_s7 + $0x500] sm:$0xff] }
0x10d6   :  { %10002 = vmatprep.subr.mxu1 %v9542_v33  ;;  %v13359_v33 = vld [vmem:[%s23858_s7 + $0x6f8] sm:$0xff] }
0x10d7   :  { %10003 = vmatpush2.msra.mxu1 %v9541_v37  ;;  %v13358_v37 = vld [vmem:[%s23858_s7 + $0x6f0] sm:$0xff] }
0x10d8   :  { %10004 = vmatprep.subr.mxu1 %v9540_v48  ;;  %v13357_v48 = vld [vmem:[%s23858_s7 + $0x6e8] sm:$0xff] }
0x10d9   :  { %10005 = vmatpush2.msra.mxu1 %v9539_v22  ;;  %v13356_v22 = vld [vmem:[%s23858_s7 + $0x6e0] sm:$0xff] }
0x10da   :  { %10006 = vmatprep.subr.mxu1 %v9538_v6  ;;  %v13355_v6 = vld [vmem:[%s23858_s7 + $0x6d8] sm:$0xff] }
0x10db   :  { %10007 = vmatpush2.msra.mxu1 %v9537_v18  ;;  %v13354_v18 = vld [vmem:[%s23858_s7 + $0x6d0] sm:$0xff] }
0x10dc   :  { %10008 = vmatprep.subr.mxu1 %v9536_v47  ;;  %v13353_v47 = vld [vmem:[%s23858_s7 + $0x6c8] sm:$0xff] }
0x10dd   :  { %10009 = vmatpush2.msra.mxu1 %v9535_v49  ;;  %v13352_v49 = vld [vmem:[%s23858_s7 + $0x6c0] sm:$0xff] }
0x10de   :  { %10010 = vmatprep.subr.mxu1 %v9534_v9  ;;  %v13351_v9 = vld [vmem:[%s23858_s7 + $0x6b8] sm:$0xff] }
0x10df   :  { %10011 = vmatpush2.msra.mxu1 %v9533_v60  ;;  %v13350_v60 = vld [vmem:[%s23858_s7 + $0x6b0] sm:$0xff] }
0x10e0   :  { %10012 = vmatprep.subr.mxu1 %v9532_v7  ;;  %v13349_v7 = vld [vmem:[%s23858_s7 + $0x6a8] sm:$0xff] }
0x10e1   :  { %10013 = vmatpush2.msra.mxu1 %v9531_v50  ;;  %v13348_v50 = vld [vmem:[%s23858_s7 + $0x6a0] sm:$0xff] }
0x10e2   :  { %10014 = vmatprep.subr.mxu1 %v9530_v8  ;;  %v13347_v8 = vld [vmem:[%s23858_s7 + $0x698] sm:$0xff] }
0x10e3   :  { %10015 = vmatpush2.msra.mxu1 %v9529_v25  ;;  %v13346_v25 = vld [vmem:[%s23858_s7 + $0x690] sm:$0xff] }
0x10e4   :  { %10017 = vmatmul.mubr.f32.vlgmr.msra.gmra.mxu1 %v22462_v41  ;;  %15025 = vmatprep.subr.mxu1 %v24048_v62  ;;  %v13374_v41 = vld [vmem:[%s23858_s7 + $0x770] sm:$0xff] }
0x10e5   :  { %15026 = vmatpush3.msk.msra.mxu1 %vm160_vm1, %v22150_v42  ;;  %15031 = vmatprep.mubr.msk.f32.mxu1 %vm15093_vm4, %v24048_v62 }
0x10e6   :  { %15027 = vmatprep.subr.mxu1 %v24048_v62 }
0x10e7   :  { %15028 = vmatpush3.msra.mxu1 %v22154_v32 }
0x10e8   :  { %15029 = vmatprep.subr.mxu1 %v24048_v62 }
0x10e9   :  { %15030 = vmatpush3.msra.mxu1 %v22164_v12 }
0x10ea   :  { %15032 = vmatmul.mubr.msk.f32.vlgmr.msra.gmra.mxu1 %vm9343_vm8, %v22610_v63  ;;  %10411 = vmatprep.subr.mxu1 %v13375_v15  ;;  %v13315_v63 = vld [vmem:[%s23858_s7 + $0x598] sm:$0xff]  ;;  %v13345_v15 = vld [vmem:[%s23858_s7 + $0x688] sm:$0xff] }
0x10eb   :  { %10412 = vmatpush1.msra.mxu1 %v13374_v41  ;;  %10336 = vmatprep.subr.mxu0 %v13315_v63  ;;  %v13344_v41 = vld [vmem:[%s23858_s7 + $0x680] sm:$0xff]  ;;  %v13335_v63 = vld [vmem:[%s23858_s7 + $0x638] sm:$0xff] }
0x10ec   :  { %10413 = vmatprep.subr.mxu1 %v13373_v43  ;;  %10337 = vmatpush1.msra.mxu0 %v13314_v56  ;;  %v13343_v43 = vld [vmem:[%s23858_s7 + $0x678] sm:$0xff]  ;;  %v13333_v56 = vld [vmem:[%s23858_s7 + $0x628] sm:$0xff] }
0x10ed   :  { %10414 = vmatpush1.msra.mxu1 %v13372_v24  ;;  %10338 = vmatprep.subr.mxu0 %v13313_v3  ;;  %v13342_v24 = vld [vmem:[%s23858_s7 + $0x670] sm:$0xff]  ;;  %v13331_v3 = vld [vmem:[%s23858_s7 + $0x618] sm:$0xff] }
0x10ee   :  { %10415 = vmatprep.subr.mxu1 %v13371_v61  ;;  %10459 = vmatprep.mubr.f32.mxu1 %v24048_v62  ;;  %v13339_v61 = vld [vmem:[%s23858_s7 + $0x658] sm:$0xff] }
0x10ef   :  { %10416 = vmatpush1.msra.mxu1 %v13370_v2  ;;  %10339 = vmatpush1.msra.mxu0 %v13312_v14  ;;  %v13338_v2 = vld [vmem:[%s23858_s7 + $0x650] sm:$0xff] }
0x10f0   :  { %10417 = vmatprep.subr.mxu1 %v13369_v21  ;;  %10340 = vmatprep.subr.mxu0 %v13311_v4  ;;  %v13334_v21 = vld [vmem:[%s23858_s7 + $0x630] sm:$0xff] }
0x10f1   :  { %10418 = vmatpush1.msra.mxu1 %v13368_v28  ;;  %10341 = vmatpush1.msra.mxu0 %v13310_v45  ;;  %v13332_v28 = vld [vmem:[%s23858_s7 + $0x620] sm:$0xff] }
0x10f2   :  { %10419 = vmatprep.subr.mxu1 %v13367_v1  ;;  %10342 = vmatprep.subr.mxu0 %v13309_v58  ;;  %v13330_v1 = vld [vmem:[%s23858_s7 + $0x610] sm:$0xff] }
0x10f3   :  { %10420 = vmatpush1.msra.mxu1 %v13366_v39  ;;  %10343 = vmatpush1.msra.mxu0 %v13308_v29  ;;  %v13329_v39 = vld [vmem:[%s23858_s7 + $0x608] sm:$0xff] }
0x10f4   :  { %10421 = vmatprep.subr.mxu1 %v13365_v54  ;;  %v13328_v54 = vld [vmem:[%s23858_s7 + $0x600] sm:$0xff] }
0x10f5   :  { %10422 = vmatpush1.msra.mxu1 %v13364_v40 }
0x10f6   :  { %10423 = vmatprep.subr.mxu1 %v13363_v16  ;;  %v13462_v16 = vld [vmem:[%s23858_s7 + $0x9f8] sm:$0xff] }
0x10f7   :  { %10424 = vmatpush1.msra.mxu1 %v13362_v0 }
0x10f8   :  { %10425 = vmatprep.subr.mxu1 %v13361_v51 }
0x10f9   :  { %10426 = vmatpush1.msra.mxu1 %v13360_v26 }
0x10fa   :  { %13378 = vmatprep.subr.msk.mxu1 %vm160_vm1, %v22158_v36  ;;  %v13307_v36 = vld [vmem:[%s23858_s7 + $0x558] sm:$0xff] }
0x10fb   :  { %10344 = vmatprep.subr.mxu0 %v13307_v36 }
0x10fc   :  { %10345 = vmatpush1.msra.mxu0 %v13306_v30  ;;  %v13461_v30 = vld [vmem:[%s23858_s7 + $0x9f0] sm:$0xff] }
0x10fd   :  { %10346 = vmatprep.subr.mxu0 %v13305_v57  ;;  %v13460_v57 = vld [vmem:[%s23858_s7 + $0x9e8] sm:$0xff] }
0x10fe   :  { %10347 = vmatpush1.msra.mxu0 %v13304_v46  ;;  %v13459_v46 = vld [vmem:[%s23858_s7 + $0x9e0] sm:$0xff] }
0x10ff   :  { %10348 = vmatprep.subr.mxu0 %v13303_v35 }
0x1100   :  { %10349 = vmatpush1.msra.mxu0 %v13302_v17 }
0x1101   :  { %10350 = vmatprep.subr.mxu0 %v13301_v44 }
0x1102   :  { %10351 = vmatpush1.msra.mxu0 %v13300_v23 }
0x1103   :  { %10352 = vmatprep.subr.mxu0 %v13299_v38 }
0x1104   :  { %10353 = vmatpush1.msra.mxu0 %v13298_v5 }
0x1105   :  { %10354 = vmatprep.subr.mxu0 %v13297_v59 }
0x1106   :  { %10355 = vmatpush1.msra.mxu0 %v13296_v31 }
0x1107   :  { %10356 = vmatprep.subr.mxu0 %v13359_v33  ;;  %v13377_v33 = vld [vmem:[%s23857_s8 + $0x18] sm:$0xff] }
0x1108   :  { %10357 = vmatpush2.msra.mxu0 %v13358_v37  ;;  %v13406_v37 = vld [vmem:[%s23858_s7 + $0x838] sm:$0xff] }
0x1109   :  { %10358 = vmatprep.subr.mxu0 %v13357_v48  ;;  %v13405_v48 = vld [vmem:[%s23858_s7 + $0x830] sm:$0xff] }
0x110a   :  { %10359 = vmatpush2.msra.mxu0 %v13356_v22  ;;  %v13404_v22 = vld [vmem:[%s23858_s7 + $0x828] sm:$0xff] }
0x110b   :  { %10360 = vmatprep.subr.mxu0 %v13355_v6  ;;  %v13403_v6 = vld [vmem:[%s23858_s7 + $0x820] sm:$0xff] }
0x110c   :  { %10361 = vmatpush2.msra.mxu0 %v13354_v18  ;;  %v13402_v18 = vld [vmem:[%s23858_s7 + $0x818] sm:$0xff] }
0x110d   :  { %10362 = vmatprep.subr.mxu0 %v13353_v47  ;;  %v13401_v47 = vld [vmem:[%s23858_s7 + $0x810] sm:$0xff] }
0x110e   :  { %10363 = vmatpush2.msra.mxu0 %v13352_v49  ;;  %v13400_v49 = vld [vmem:[%s23858_s7 + $0x808] sm:$0xff] }
0x110f   :  { %10364 = vmatprep.subr.mxu0 %v13351_v9  ;;  %v13399_v9 = vld [vmem:[%s23858_s7 + $0x800] sm:$0xff] }
0x1110   :  { %10365 = vmatpush2.msra.mxu0 %v13350_v60  ;;  %v13398_v60 = vld [vmem:[%s23858_s7 + $0x7f8] sm:$0xff] }
0x1111   :  { %10366 = vmatprep.subr.mxu0 %v13349_v7  ;;  %v13397_v7 = vld [vmem:[%s23858_s7 + $0x7f0] sm:$0xff] }
0x1112   :  { %10367 = vmatpush2.msra.mxu0 %v13348_v50  ;;  %v13396_v50 = vld [vmem:[%s23858_s7 + $0x7e8] sm:$0xff] }
0x1113   :  { %10368 = vmatprep.subr.mxu0 %v13347_v8  ;;  %v13395_v8 = vld [vmem:[%s23858_s7 + $0x7e0] sm:$0xff] }
0x1114   :  { %10369 = vmatpush2.msra.mxu0 %v13346_v25  ;;  %v13394_v25 = vld [vmem:[%s23858_s7 + $0x7d8] sm:$0xff] }
0x1115   :  { %10370 = vmatprep.subr.mxu0 %v13345_v15  ;;  %v13393_v15 = vld [vmem:[%s23858_s7 + $0x7d0] sm:$0xff] }
0x1116   :  { %10371 = vmatpush2.msra.mxu0 %v13344_v41  ;;  %v13392_v41 = vld [vmem:[%s23858_s7 + $0x7c8] sm:$0xff] }
0x1117   :  { %10372 = vmatprep.subr.mxu0 %v13343_v43  ;;  %v13391_v43 = vld [vmem:[%s23858_s7 + $0x7c0] sm:$0xff] }
0x1118   :  { %10373 = vmatpush2.msra.mxu0 %v13342_v24  ;;  %v13390_v24 = vld [vmem:[%s23858_s7 + $0x7b8] sm:$0xff] }
0x1119   :  { %10374 = vmatprep.subr.mxu0 %v13341_v19  ;;  %v13389_v19 = vld [vmem:[%s23858_s7 + $0x7b0] sm:$0xff] }
0x111a   :  { %10375 = vmatpush2.msra.mxu0 %v13340_v10  ;;  %v13388_v10 = vld [vmem:[%s23858_s7 + $0x7a8] sm:$0xff] }
0x111b   :  { %10376 = vmatprep.subr.mxu0 %v13339_v61  ;;  %v13387_v61 = vld [vmem:[%s23858_s7 + $0x7a0] sm:$0xff] }
0x111c   :  { %10377 = vmatpush2.msra.mxu0 %v13338_v2  ;;  %v13386_v2 = vld [vmem:[%s23858_s7 + $0x798] sm:$0xff] }
0x111d   :  { %10378 = vmatprep.subr.mxu0 %v13337_v52  ;;  %v13385_v52 = vld [vmem:[%s23858_s7 + $0x790] sm:$0xff] }
0x111e   :  { %10379 = vmatpush2.msra.mxu0 %v13336_v13  ;;  %v13384_v13 = vld [vmem:[%s23858_s7 + $0x788] sm:$0xff] }
0x111f   :  { %10380 = vmatprep.subr.mxu0 %v13335_v63  ;;  %v13383_v63 = vld [vmem:[%s23858_s7 + $0x780] sm:$0xff] }
0x1120   :  { %10381 = vmatpush2.msra.mxu0 %v13334_v21  ;;  %v13446_v21 = vld [vmem:[%s23858_s7 + $0x978] sm:$0xff] }
0x1121   :  { %10382 = vmatprep.subr.mxu0 %v13333_v56  ;;  %v13445_v56 = vld [vmem:[%s23858_s7 + $0x970] sm:$0xff] }
0x1122   :  { %10383 = vmatpush2.msra.mxu0 %v13332_v28  ;;  %v13444_v28 = vld [vmem:[%s23858_s7 + $0x968] sm:$0xff] }
0x1123   :  { %10384 = vmatprep.subr.mxu0 %v13331_v3  ;;  %v13443_v3 = vld [vmem:[%s23858_s7 + $0x960] sm:$0xff] }
0x1124   :  { %10385 = vmatpush2.msra.mxu0 %v13330_v1  ;;  %v13442_v1 = vld [vmem:[%s23858_s7 + $0x958] sm:$0xff] }
0x1125   :  { %10386 = vmatprep.subr.mxu0 %v13329_v39  ;;  %v13441_v39 = vld [vmem:[%s23858_s7 + $0x950] sm:$0xff] }
0x1126   :  { %10387 = vmatpush2.msra.mxu0 %v13328_v54  ;;  %v13440_v54 = vld [vmem:[%s23858_s7 + $0x948] sm:$0xff] }
0x1127   :  { %10785 = vmatprep.subr.mxu0 %v13462_v16  ;;  %v13438_v16 = vld [vmem:[%s23858_s7 + $0x938] sm:$0xff] }
0x1164   :  { %v9944_v40 = vpop.f32.mrf.mxu1 }
0x1166   :  { %v9946_v14 = vpop.f32.mrf.mxu1 }
0x1169   :  { %v9873_v0 = vpop.f32.mrf.mxu0 }
0x116a   :  { %v9945_v51 = vadd.f32 %v9944_v40, %v9873_v0  ;;  %v13439_v40 = vld [vmem:[%s23858_s7 + $0x940] sm:$0xff]  ;;  %v13437_v0 = vld [vmem:[%s23858_s7 + $0x930] sm:$0xff] }
0x116b   :  { %v9875_v26 = vpop.f32.mrf.mxu0 }
0x116c   :  { %v9947_v4 = vadd.f32 %v9946_v14, %v9875_v26  ;;  %v13435_v26 = vld [vmem:[%s23858_s7 + $0x920] sm:$0xff]  ;;  %v13434_v14 = vld [vmem:[%s23858_s7 + $0x918] sm:$0xff] }
0x117a   :  { %v10089_v45 = vpop.f32.mrf.mxu0 }
0x117c   :  { %v10091_v58 = vpop.f32.mrf.mxu0 }
0x1182   :  { %v10165_v29 = vpop.f32.mrf.mxu0 }
0x1184   :  { %v10167_v36 = vpop.f32.mrf.mxu0 }
0x1185   :  { %10388 = vmatprep.mubr.f32.mxu0 %v10167_v36  ;;  %v13429_v36 = vld [vmem:[%s23858_s7 + $0x8f0] sm:$0xff] }
0x1186   :  { %10389 = vmatmul.mubr.f32.vlgmr.msra.gmra.mxu0 %v10165_v29  ;;  %v13430_v29 = vld [vmem:[%s23858_s7 + $0x8f8] sm:$0xff] }
0x1187   :  { %10786 = vmatpush1.msra.mxu0 %v13461_v30  ;;  %10833 = vmatprep.mubr.f32.mxu0 %v24048_v62  ;;  %v13428_v30 = vld [vmem:[%s23858_s7 + $0x8e8] sm:$0xff] }
0x1188   :  { %10787 = vmatprep.subr.mxu0 %v13460_v57  ;;  %v13427_v57 = vld [vmem:[%s23858_s7 + $0x8e0] sm:$0xff] }
0x1189   :  { %10788 = vmatpush1.msra.mxu0 %v13459_v46  ;;  %v13426_v46 = vld [vmem:[%s23858_s7 + $0x8d8] sm:$0xff] }
0x11a4   :  { %v10018_v35 = vpop.f32.mrf.mxu1 }
0x11a5   :  { %v10019_v17 = vadd.f32 %v10018_v35, %v9945_v51  ;;  %v13436_v51 = vld [vmem:[%s23858_s7 + $0x928] sm:$0xff]  ;;  %v13425_v35 = vld [vmem:[%s23858_s7 + $0x8d0] sm:$0xff] }
0x11a6   :  { %v10020_v44 = vpop.f32.mrf.mxu1 }
0x11a7   :  { %v22986_v23 = vadd.f32 %v10089_v45, %v10019_v17  ;;  %v10021_v38 = vadd.f32 %v10020_v44, %v9947_v4  ;;  %v13433_v4 = vld [vmem:[%s23858_s7 + $0x910] sm:$0xff]  ;;  %v13432_v45 = vld [vmem:[%s23858_s7 + $0x908] sm:$0xff]  ;;  %v13458_v44 = vld [vmem:[%s23858_s7 + $0x9d8] sm:$0xff] }
0x11a8   :  { %v13424_v17 = vld [vmem:[%s23858_s7 + $0x8c8] sm:$0xff]  ;;  %10789 = vmatprep.subr.mxu0 %v13458_v44 }
0x11a9   :  { %v22988_v5 = vadd.f32 %v10091_v58, %v10021_v38  ;;  %v13431_v58 = vld [vmem:[%s23858_s7 + $0x900] sm:$0xff]  ;;  %v10843_v44 = vld [vmem:[%s23859_s21 + $0x8] sm:$0xff] }
0x11aa   :  { %v10236_v59 = vpop.f32.mrf.mxu1  ;;  %v13423_v38 = vld [vmem:[%s23858_s7 + $0x8c0] sm:$0xff] }
0x11ab   :  { %13376 = vmatmul.mubr.msk.f32.vlgmr.msra.gmra.mxu1 %vm8564_vm11, %v10236_v59  ;;  %v13457_v59 = vld [vmem:[%s23858_s7 + $0x9d0] sm:$0xff] }
0x11ac   :  { %13379 = vmatpush1.msk.msra.mxu1 %vm160_vm1, %v22161_v55  ;;  %10537 = vmatprep.mubr.f32.mxu1 %v24048_v62  ;;  %v15033_v31 = vpop.f32.mrf.mxu1  ;;  %v13414_v55 = vld [vmem:[%s23858_s7 + $0x878] sm:$0xff] }
0x11ad   :  { %10501 = vmatprep.subr.mxu1 %v22169_v34  ;;  %v13413_v34 = vld [vmem:[%s23858_s7 + $0x870] sm:$0xff]  ;;  %v13422_v31 = vld [vmem:[%s23858_s7 + $0x8b8] sm:$0xff]  ;;  %10790 = vmatpush1.msra.mxu0 %v13457_v59  ;;  %v10842_v59 = vld [vmem:[%s23859_s21] sm:$0xff] }
0x11ae   :  { %10502 = vmatpush1.msra.mxu1 %v22178_v11  ;;  %v13410_v11 = vld [vmem:[%s23858_s7 + $0x858] sm:$0xff] }
0x11af   :  { %10503 = vmatprep.subr.mxu1 %v22182_v53  ;;  %v13408_v53 = vld [vmem:[%s23858_s7 + $0x848] sm:$0xff] }
0x11b0   :  { %10504 = vmatpush1.msra.mxu1 %v22186_v27  ;;  %v13407_v27 = vld [vmem:[%s23858_s7 + $0x840] sm:$0xff] }
0x11b1   :  { %15034 = vmatprep.subr.mxu1 %v24048_v62  ;;  %13380 = vmatmul.mubr.msk.f32.vlgmr.msra.gmra.mxu1 %vm9343_vm8, %v13377_v33 }
0x11b2   :  { %15035 = vmatpush3.msk.msra.mxu1 %vm160_vm1, %v22150_v42  ;;  %15040 = vmatprep.mubr.msk.f32.mxu1 %vm15093_vm4, %v24048_v62  ;;  %v13412_v42 = vld [vmem:[%s23858_s7 + $0x868] sm:$0xff] }
0x11b3   :  { %15036 = vmatprep.subr.mxu1 %v24048_v62 }
0x11b4   :  { %15037 = vmatpush3.msra.mxu1 %v22154_v32  ;;  %v13411_v32 = vld [vmem:[%s23858_s7 + $0x860] sm:$0xff] }
0x11b5   :  { %15038 = vmatprep.subr.mxu1 %v24048_v62 }
0x11b6   :  { %15039 = vmatpush3.msra.mxu1 %v22164_v12  ;;  %v13409_v12 = vld [vmem:[%s23858_s7 + $0x850] sm:$0xff] }
0x11b7   :  { %15041 = vmatmul.mubr.msk.f32.vlgmr.msra.gmra.mxu1 %vm9343_vm8, %v13377_v33  ;;  %10698 = vmatprep.subr.mxu1 %v13414_v55  ;;  %v13456_v33 = vld [vmem:[%s23858_s7 + $0x9c8] sm:$0xff]  ;;  %v13421_v55 = vld [vmem:[%s23858_s7 + $0x8b0] sm:$0xff] }
0x11b8   :  { %10699 = vmatpush1.msra.mxu1 %v13413_v34  ;;  %10791 = vmatprep.subr.mxu0 %v13456_v33  ;;  %v13455_v34 = vld [vmem:[%s23858_s7 + $0x9c0] sm:$0xff] }
0x11b9   :  { %10700 = vmatprep.subr.mxu1 %v13412_v42  ;;  %v13420_v42 = vld [vmem:[%s23858_s7 + $0x8a8] sm:$0xff]  ;;  %10792 = vmatpush1.msra.mxu0 %v13455_v34 }
0x11ba   :  { %10701 = vmatpush1.msra.mxu1 %v13411_v32  ;;  %v13454_v32 = vld [vmem:[%s23858_s7 + $0x9b8] sm:$0xff] }
0x11bb   :  { %10702 = vmatprep.subr.mxu1 %v13410_v11  ;;  %v13419_v11 = vld [vmem:[%s23858_s7 + $0x8a0] sm:$0xff]  ;;  %10793 = vmatprep.subr.mxu0 %v13454_v32 }
0x11bc   :  { %10703 = vmatpush1.msra.mxu1 %v13409_v12  ;;  %v13453_v12 = vld [vmem:[%s23858_s7 + $0x9b0] sm:$0xff] }
0x11bd   :  { %10704 = vmatprep.subr.mxu1 %v13408_v53  ;;  %v13452_v53 = vld [vmem:[%s23858_s7 + $0x9a8] sm:$0xff]  ;;  %10794 = vmatpush1.msra.mxu0 %v13453_v12 }
0x11be   :  { %10705 = vmatpush1.msra.mxu1 %v13407_v27  ;;  %v13418_v27 = vld [vmem:[%s23858_s7 + $0x898] sm:$0xff]  ;;  %10795 = vmatprep.subr.mxu0 %v13452_v53 }
0x11bf   :  { %10706 = vmatprep.subr.mxu1 %v13406_v37  ;;  %v13451_v37 = vld [vmem:[%s23858_s7 + $0x9a0] sm:$0xff] }
0x11c0   :  { %10707 = vmatpush1.msra.mxu1 %v13405_v48  ;;  %v13450_v48 = vld [vmem:[%s23858_s7 + $0x998] sm:$0xff]  ;;  %10796 = vmatpush1.msra.mxu0 %v13451_v37 }
0x11c1   :  { %10708 = vmatprep.subr.mxu1 %v13404_v22  ;;  %v13417_v22 = vld [vmem:[%s23858_s7 + $0x890] sm:$0xff]  ;;  %10797 = vmatprep.subr.mxu0 %v13450_v48  ;;  %v11056_v37 = vld [vmem:[%s23860_s22 + $0x78] sm:$0xff] }
0x11c2   :  { %10709 = vmatpush1.msra.mxu1 %v13403_v6  ;;  %v13416_v6 = vld [vmem:[%s23858_s7 + $0x888] sm:$0xff]  ;;  %v11055_v48 = vld [vmem:[%s23860_s22 + $0x70] sm:$0xff] }
0x11c3   :  { %10710 = vmatprep.subr.mxu1 %v13402_v18  ;;  %v13449_v18 = vld [vmem:[%s23858_s7 + $0x990] sm:$0xff] }
0x11c4   :  { %10711 = vmatpush1.msra.mxu1 %v13401_v47  ;;  %v13448_v47 = vld [vmem:[%s23858_s7 + $0x988] sm:$0xff]  ;;  %10798 = vmatpush1.msra.mxu0 %v13449_v18  ;;  %v11052_v18 = vld [vmem:[%s23860_s22 + $0x58] sm:$0xff] }
0x11c5   :  { %10712 = vmatprep.subr.mxu1 %v13400_v49  ;;  %v13415_v49 = vld [vmem:[%s23858_s7 + $0x880] sm:$0xff]  ;;  %10799 = vmatprep.subr.mxu0 %v13448_v47  ;;  %v11051_v47 = vld [vmem:[%s23860_s22 + $0x50] sm:$0xff] }
0x11c6   :  { %10713 = vmatpush1.msra.mxu1 %v13399_v9  ;;  %v13447_v9 = vld [vmem:[%s23858_s7 + $0x980] sm:$0xff] }
0x11c7   :  { %10714 = vmatprep.subr.mxu1 %v13398_v60  ;;  %10800 = vmatpush1.msra.mxu0 %v13447_v9  ;;  %v10873_v60 = vld [vmem:[%s23859_s21 + $0xf8] sm:$0xff]  ;;  %v11049_v9 = vld [vmem:[%s23860_s22 + $0x40] sm:$0xff] }
0x11c8   :  { %10715 = vmatpush1.msra.mxu1 %v13397_v7  ;;  %14313 = vmatprep.subr.mxu0 %v10873_v60 }
0x11c9   :  { %10716 = vmatprep.subr.mxu1 %v13396_v50 }
0x11ca   :  { %10717 = vmatpush1.msra.mxu1 %v13395_v8 }
0x11cb   :  { %10718 = vmatprep.subr.mxu1 %v13394_v25 }
0x11cc   :  { %10719 = vmatpush1.msra.mxu1 %v13393_v15 }
0x11cd   :  { %10720 = vmatprep.subr.mxu1 %v13392_v41 }
0x11ce   :  { %10721 = vmatpush1.msra.mxu1 %v13391_v43 }
0x11cf   :  { %10722 = vmatprep.subr.mxu1 %v13390_v24 }
0x11d0   :  { %10723 = vmatpush1.msra.mxu1 %v13389_v19 }
0x11d1   :  { %10724 = vmatprep.subr.mxu1 %v13388_v10 }
0x11d2   :  { %10725 = vmatpush1.msra.mxu1 %v13387_v61  ;;  %v10857_v61 = vld [vmem:[%s23859_s21 + $0x78] sm:$0xff] }
0x11d3   :  { %10726 = vmatprep.subr.mxu1 %v13386_v2  ;;  %v10872_v2 = vld [vmem:[%s23859_s21 + $0xf0] sm:$0xff] }
0x11d4   :  { %10727 = vmatpush1.msra.mxu1 %v13385_v52 }
0x11d5   :  { %10728 = vmatprep.subr.mxu1 %v13384_v13 }
0x11d6   :  { %10729 = vmatpush1.msra.mxu1 %v13383_v63  ;;  %v10855_v63 = vld [vmem:[%s23859_s21 + $0x68] sm:$0xff] }
0x11d7   :  { %10730 = vmatprep.subr.mxu1 %v13446_v21  ;;  %v10870_v21 = vld [vmem:[%s23859_s21 + $0xe0] sm:$0xff] }
0x11d8   :  { %10731 = vmatpush2.msra.mxu1 %v13445_v56  ;;  %v10854_v56 = vld [vmem:[%s23859_s21 + $0x60] sm:$0xff] }
0x11d9   :  { %10732 = vmatprep.subr.mxu1 %v13444_v28  ;;  %v10869_v28 = vld [vmem:[%s23859_s21 + $0xd8] sm:$0xff] }
0x11da   :  { %10733 = vmatpush2.msra.mxu1 %v13443_v3  ;;  %v10853_v3 = vld [vmem:[%s23859_s21 + $0x58] sm:$0xff] }
0x11db   :  { %10734 = vmatprep.subr.mxu1 %v13442_v1  ;;  %v10868_v1 = vld [vmem:[%s23859_s21 + $0xd0] sm:$0xff] }
0x11dc   :  { %10735 = vmatpush2.msra.mxu1 %v13441_v39  ;;  %v10852_v39 = vld [vmem:[%s23859_s21 + $0x50] sm:$0xff] }
0x11dd   :  { %10736 = vmatprep.subr.mxu1 %v13440_v54  ;;  %v10867_v54 = vld [vmem:[%s23859_s21 + $0xc8] sm:$0xff] }
0x11de   :  { %10737 = vmatpush2.msra.mxu1 %v13439_v40  ;;  %v10851_v40 = vld [vmem:[%s23859_s21 + $0x48] sm:$0xff] }
0x11df   :  { %10738 = vmatprep.subr.mxu1 %v13438_v16  ;;  %v10866_v16 = vld [vmem:[%s23859_s21 + $0xc0] sm:$0xff] }
0x11e0   :  { %10739 = vmatpush2.msra.mxu1 %v13437_v0  ;;  %v10850_v0 = vld [vmem:[%s23859_s21 + $0x40] sm:$0xff] }
0x11e1   :  { %10740 = vmatprep.subr.mxu1 %v13436_v51  ;;  %v10865_v51 = vld [vmem:[%s23859_s21 + $0xb8] sm:$0xff] }
0x11e2   :  { %10741 = vmatpush2.msra.mxu1 %v13435_v26  ;;  %v10849_v26 = vld [vmem:[%s23859_s21 + $0x38] sm:$0xff] }
0x11e3   :  { %10742 = vmatprep.subr.mxu1 %v13434_v14  ;;  %v10864_v14 = vld [vmem:[%s23859_s21 + $0xb0] sm:$0xff] }
0x11e4   :  { %10743 = vmatpush2.msra.mxu1 %v13433_v4  ;;  %v10848_v4 = vld [vmem:[%s23859_s21 + $0x30] sm:$0xff] }
0x11e5   :  { %10744 = vmatprep.subr.mxu1 %v13432_v45  ;;  %v10863_v45 = vld [vmem:[%s23859_s21 + $0xa8] sm:$0xff] }
0x11e6   :  { %10745 = vmatpush2.msra.mxu1 %v13431_v58  ;;  %v10847_v58 = vld [vmem:[%s23859_s21 + $0x28] sm:$0xff] }
0x11e7   :  { %10746 = vmatprep.subr.mxu1 %v13430_v29  ;;  %v10862_v29 = vld [vmem:[%s23859_s21 + $0xa0] sm:$0xff] }
0x11e8   :  { %10747 = vmatpush2.msra.mxu1 %v13429_v36  ;;  %v10846_v36 = vld [vmem:[%s23859_s21 + $0x20] sm:$0xff] }
0x11e9   :  { %10748 = vmatprep.subr.mxu1 %v13428_v30  ;;  %v10861_v30 = vld [vmem:[%s23859_s21 + $0x98] sm:$0xff] }
0x11ea   :  { %10749 = vmatpush2.msra.mxu1 %v13427_v57  ;;  %v10845_v57 = vld [vmem:[%s23859_s21 + $0x18] sm:$0xff] }
0x11eb   :  { %10750 = vmatprep.subr.mxu1 %v13426_v46  ;;  %v10860_v46 = vld [vmem:[%s23859_s21 + $0x90] sm:$0xff] }
0x11ec   :  { %10751 = vmatpush2.msra.mxu1 %v13425_v35  ;;  %v10844_v35 = vld [vmem:[%s23859_s21 + $0x10] sm:$0xff] }
0x11ed   :  { %10752 = vmatprep.subr.mxu1 %v13424_v17  ;;  %v10859_v17 = vld [vmem:[%s23859_s21 + $0x88] sm:$0xff] }
0x11ee   :  { %10753 = vmatpush2.msra.mxu1 %v13423_v38  ;;  %v10858_v38 = vld [vmem:[%s23859_s21 + $0x80] sm:$0xff] }
0x11ef   :  { %10754 = vmatprep.subr.mxu1 %v13422_v31 }
0x11f0   :  { %10755 = vmatpush2.msra.mxu1 %v13421_v55 }
0x11f1   :  { %10756 = vmatprep.subr.mxu1 %v13420_v42 }
0x11f2   :  { %10757 = vmatpush2.msra.mxu1 %v13419_v11 }
0x11f3   :  { %10758 = vmatprep.subr.mxu1 %v13418_v27 }
0x11f4   :  { %10759 = vmatpush2.msra.mxu1 %v13417_v22  ;;  %v11054_v22 = vld [vmem:[%s23860_s22 + $0x68] sm:$0xff] }
0x11f5   :  { %10760 = vmatprep.subr.mxu1 %v13416_v6  ;;  %v11053_v6 = vld [vmem:[%s23860_s22 + $0x60] sm:$0xff] }
0x11f6   :  { %10761 = vmatpush2.msra.mxu1 %v13415_v49  ;;  %v11050_v49 = vld [vmem:[%s23860_s22 + $0x48] sm:$0xff] }
0x11f7   :  { %14348 = vmatprep.subr.mxu1 %v10873_v60  ;;  %v11048_v60 = vld [vmem:[%s23860_s22 + $0x38] sm:$0xff] }
0x1246   :  { %v10390_v7 = vpop.f32.mrf.mxu0 }
0x1248   :  { %v10392_v8 = vpop.f32.mrf.mxu0 }
0x126b   :  { %v10461_v50 = vpop.f32.mrf.mxu1 }
0x126c   :  { %v10462_v25 = vadd.f32 %v10461_v50, %v10390_v7  ;;  %v11047_v7 = vld [vmem:[%s23860_s22 + $0x30] sm:$0xff]  ;;  %v11046_v50 = vld [vmem:[%s23860_s22 + $0x28] sm:$0xff] }
0x126d   :  { %v10463_v15 = vpop.f32.mrf.mxu1 }
0x126e   :  { %v23244_v41 = vadd.f32 %v10462_v25, %v22986_v23  ;;  %v10464_v43 = vadd.f32 %v10463_v15, %v10392_v8  ;;  %v10856_v23 = vld [vmem:[%s23859_s21 + $0x70] sm:$0xff]  ;;  %v11045_v8 = vld [vmem:[%s23860_s22 + $0x20] sm:$0xff]  ;;  %v11044_v25 = vld [vmem:[%s23860_s22 + $0x18] sm:$0xff] }
0x126f   :  { %v11043_v15 = vld [vmem:[%s23860_s22 + $0x10] sm:$0xff] }
0x1270   :  { %v23247_v24 = vadd.f32 %v10464_v43, %v22988_v5  ;;  %v10871_v5 = vld [vmem:[%s23859_s21 + $0xe8] sm:$0xff]  ;;  %v11041_v43 = vld [vmem:[%s23860_s22] sm:$0xff] }
0x1271   :  { %v10539_v19 = vpop.f32.mrf.mxu1 }
0x1273   :  { %v10541_v10 = vpop.f32.mrf.mxu1 }
0x1274   :  { %10762 = vmatprep.mubr.f32.mxu1 %v10541_v10 }
0x1275   :  { %10763 = vmatmul.mubr.f32.vlgmr.msra.gmra.mxu1 %v10539_v19 }
0x1276   :  { %14349 = vmatpush3.msra.mxu1 %v10857_v61 }
0x1277   :  { %v10610_v52 = vpop.f32.mrf.mxu1  ;;  %14350 = vmatprep.subr.mxu1 %v10872_v2 }
0x1278   :  { %13463 = vmatmul.mubr.msk.f32.vlgmr.msra.gmra.mxu0 %vm8564_vm11, %v10610_v52  ;;  %14351 = vmatpush3.msra.mxu1 %v10856_v23 }
0x1279   :  { %v15042_v13 = vpop.f32.mrf.mxu1  ;;  %14314 = vmatpush3.msra.mxu0 %v10857_v61  ;;  %14352 = vmatprep.subr.mxu1 %v10871_v5 }
0x127a   :  { %14315 = vmatprep.subr.mxu0 %v10872_v2  ;;  %14353 = vmatpush3.msra.mxu1 %v10855_v63 }
0x127b   :  { %14316 = vmatpush3.msra.mxu0 %v10856_v23  ;;  %14354 = vmatprep.subr.mxu1 %v10870_v21 }
0x127c   :  { %14317 = vmatprep.subr.mxu0 %v10871_v5  ;;  %14355 = vmatpush3.msra.mxu1 %v10854_v56 }
0x127d   :  { %14318 = vmatpush3.msra.mxu0 %v10855_v63  ;;  %14356 = vmatprep.subr.mxu1 %v10869_v28 }
0x127e   :  { %14319 = vmatprep.subr.mxu0 %v10870_v21  ;;  %14357 = vmatpush3.msra.mxu1 %v10853_v3 }
0x127f   :  { %14320 = vmatpush3.msra.mxu0 %v10854_v56  ;;  %14358 = vmatprep.subr.mxu1 %v10868_v1 }
0x1280   :  { %14321 = vmatprep.subr.mxu0 %v10869_v28  ;;  %14359 = vmatpush3.msra.mxu1 %v10852_v39 }
0x1281   :  { %14322 = vmatpush3.msra.mxu0 %v10853_v3  ;;  %14360 = vmatprep.subr.mxu1 %v10867_v54 }
0x1282   :  { %14323 = vmatprep.subr.mxu0 %v10868_v1  ;;  %14361 = vmatpush3.msra.mxu1 %v10851_v40 }
0x1283   :  { %14324 = vmatpush3.msra.mxu0 %v10852_v39  ;;  %14362 = vmatprep.subr.mxu1 %v10866_v16 }
0x1284   :  { %14325 = vmatprep.subr.mxu0 %v10867_v54  ;;  %14363 = vmatpush3.msra.mxu1 %v10850_v0 }
0x1285   :  { %14326 = vmatpush3.msra.mxu0 %v10851_v40  ;;  %14364 = vmatprep.subr.mxu1 %v10865_v51 }
0x1286   :  { %14327 = vmatprep.subr.mxu0 %v10866_v16  ;;  %14365 = vmatpush3.msra.mxu1 %v10849_v26 }
0x1287   :  { %14328 = vmatpush3.msra.mxu0 %v10850_v0  ;;  %14366 = vmatprep.subr.mxu1 %v10864_v14 }
0x1288   :  { %14329 = vmatprep.subr.mxu0 %v10865_v51  ;;  %14367 = vmatpush3.msra.mxu1 %v10848_v4 }
0x1289   :  { %14330 = vmatpush3.msra.mxu0 %v10849_v26  ;;  %14368 = vmatprep.subr.mxu1 %v10863_v45 }
0x128a   :  { %14331 = vmatprep.subr.mxu0 %v10864_v14  ;;  %14369 = vmatpush3.msra.mxu1 %v10847_v58 }
0x128b   :  { %14332 = vmatpush3.msra.mxu0 %v10848_v4  ;;  %14370 = vmatprep.subr.mxu1 %v10862_v29 }
0x128c   :  { %14333 = vmatprep.subr.mxu0 %v10863_v45  ;;  %14371 = vmatpush3.msra.mxu1 %v10846_v36 }
0x128d   :  { %14334 = vmatpush3.msra.mxu0 %v10847_v58  ;;  %14372 = vmatprep.subr.mxu1 %v10861_v30 }
0x128e   :  { %14335 = vmatprep.subr.mxu0 %v10862_v29  ;;  %14373 = vmatpush3.msra.mxu1 %v10845_v57  ;;  %v11034_v29 = vld [vmem:[%s23862_s23] sm:$0x1] }
0x128f   :  { %14336 = vmatpush3.msra.mxu0 %v10846_v36  ;;  %14374 = vmatprep.subr.mxu1 %v10860_v46 }
0x1290   :  { %14337 = vmatprep.subr.mxu0 %v10861_v30  ;;  %14375 = vmatpush3.msra.mxu1 %v10844_v35 }
0x1291   :  { %14338 = vmatpush3.msra.mxu0 %v10845_v57  ;;  %14376 = vmatprep.subr.mxu1 %v10859_v17  ;;  %v11038_v57 = vld [vmem:[%s23863_s24] sm:$0x1] }
0x1292   :  { %14339 = vmatprep.subr.mxu0 %v10860_v46  ;;  %14377 = vmatpush3.msra.mxu1 %v10843_v44 }
0x1293   :  { %14340 = vmatpush3.msra.mxu0 %v10844_v35  ;;  %14378 = vmatprep.subr.mxu1 %v10858_v38 }
0x1294   :  { %14341 = vmatprep.subr.mxu0 %v10859_v17  ;;  %14379 = vmatpush3.msra.mxu1 %v10842_v59  ;;  %v11322_v17 = vld [vmem:[%s23861_s9 + $0x78] sm:$0xff] }
0x1295   :  { %14342 = vmatpush3.msra.mxu0 %v10843_v44  ;;  %11150 = vmatprep.subr.mxu1 %v11056_v37  ;;  %v11337_v44 = vld [vmem:[%s23861_s9 + $0xf0] sm:$0xff] }
0x1296   :  { %14343 = vmatprep.subr.mxu0 %v10858_v38  ;;  %v11321_v38 = vld [vmem:[%s23861_s9 + $0x70] sm:$0xff] }
0x1297   :  { %14344 = vmatpush3.msra.mxu0 %v10842_v59  ;;  %v11336_v59 = vld [vmem:[%s23861_s9 + $0xe8] sm:$0xff] }
0x1298   :  { %11076 = vmatprep.subr.mxu0 %v11056_v37  ;;  %v11316_v37 = vld [vmem:[%s23861_s9 + $0x48] sm:$0xff] }
0x1335   :  { %v10764_v31 = vpop.f32.mrf.mxu1 }
0x1337   :  { %v10766_v34 = vpop.f32.mrf.mxu1 }
0x1338   :  { %v10835_v33 = vpop.f32.mrf.mxu0 }
0x1339   :  { %v10836_v55 = vadd.f32 %v10835_v33, %v10764_v31  ;;  %v11320_v31 = vld [vmem:[%s23861_s9 + $0x68] sm:$0xff]  ;;  %v11335_v33 = vld [vmem:[%s23861_s9 + $0xe0] sm:$0xff] }
0x133a   :  { %v10837_v42 = vpop.f32.mrf.mxu0 }
0x133b   :  { %v10838_v32 = vadd.f32 %v10837_v42, %v10766_v34  ;;  %v23344_v11 = vadd.f32 %v10836_v55, %v23244_v41  ;;  %v11042_v41 = vld [vmem:[%s23860_s22 + $0x8] sm:$0xff]  ;;  %v11319_v55 = vld [vmem:[%s23861_s9 + $0x60] sm:$0xff]  ;;  %v11334_v34 = vld [vmem:[%s23861_s9 + $0xd8] sm:$0xff] }
0x133c   :  { %v11318_v42 = vld [vmem:[%s23861_s9 + $0x58] sm:$0xff] }
0x133d   :  { %v23347_v12 = vadd.f32 %v10838_v32, %v23247_v24  ;;  %v10951_v27 = vmul.f32 %v23344_v11, %v23344_v11  ;;  %v11338_v24 = vld [vmem:[%s23861_s9 + $0xf8] sm:$0xff]  ;;  %v11333_v32 = vld [vmem:[%s23861_s9 + $0xd0] sm:$0xff] }
0x133f   :  { %10938 = vmatprep.mubr.f32.mxu0 %v23347_v12  ;;  %v10952_v53 = vmul.f32 %v23347_v12, %v23347_v12 }
0x1340   :  { %10939 = vmatmul.mubr.f32.vlgmr.msra.gmra.mxu0 %v23344_v11 }
0x1341   :  { %11017 = vmatprep.mubr.f32.mxu1 %v10952_v53  ;;  %11124 = vmatprep.mubr.f32.mxu0 %v24048_v62  ;;  %v11317_v53 = vld [vmem:[%s23861_s9 + $0x50] sm:$0xff] }
0x1342   :  { %11018 = vmatmul.mubr.f32.vlgmr.msra.gmra.mxu1 %v10951_v27  ;;  %11077 = vmatpush1.msra.mxu0 %v11055_v48  ;;  %v11332_v27 = vld [vmem:[%s23861_s9 + $0xc8] sm:$0xff] }
0x1343   :  { %11198 = vmatprep.mubr.f32.mxu1 %v24048_v62  ;;  %11151 = vmatpush1.msra.mxu1 %v11055_v48  ;;  %v11331_v48 = vld [vmem:[%s23861_s9 + $0xc0] sm:$0xff] }
0x1344   :  { %11078 = vmatprep.subr.mxu0 %v11054_v22  ;;  %11152 = vmatprep.subr.mxu1 %v11054_v22  ;;  %v11315_v22 = vld [vmem:[%s23861_s9 + $0x40] sm:$0xff] }
0x1345   :  { %11079 = vmatpush1.msra.mxu0 %v11053_v6  ;;  %11153 = vmatpush1.msra.mxu1 %v11053_v6  ;;  %v11330_v6 = vld [vmem:[%s23861_s9 + $0xb8] sm:$0xff] }
0x1346   :  { %11080 = vmatprep.subr.mxu0 %v11052_v18  ;;  %11154 = vmatprep.subr.mxu1 %v11052_v18  ;;  %v11314_v18 = vld [vmem:[%s23861_s9 + $0x38] sm:$0xff] }
0x1347   :  { %11081 = vmatpush1.msra.mxu0 %v11051_v47  ;;  %11155 = vmatpush1.msra.mxu1 %v11051_v47  ;;  %v11329_v47 = vld [vmem:[%s23861_s9 + $0xb0] sm:$0xff] }
0x1348   :  { %11082 = vmatprep.subr.mxu0 %v11050_v49  ;;  %11156 = vmatprep.subr.mxu1 %v11050_v49  ;;  %v11313_v49 = vld [vmem:[%s23861_s9 + $0x30] sm:$0xff] }
0x1349   :  { %11083 = vmatpush1.msra.mxu0 %v11049_v9  ;;  %11157 = vmatpush1.msra.mxu1 %v11049_v9  ;;  %v11328_v9 = vld [vmem:[%s23861_s9 + $0xa8] sm:$0xff] }
0x134a   :  { %11084 = vmatprep.subr.mxu0 %v11048_v60  ;;  %11158 = vmatprep.subr.mxu1 %v11048_v60  ;;  %v11312_v60 = vld [vmem:[%s23861_s9 + $0x28] sm:$0xff] }
0x134b   :  { %11085 = vmatpush1.msra.mxu0 %v11047_v7  ;;  %11159 = vmatpush1.msra.mxu1 %v11047_v7  ;;  %v11327_v7 = vld [vmem:[%s23861_s9 + $0xa0] sm:$0xff] }
0x134c   :  { %11086 = vmatprep.subr.mxu0 %v11046_v50  ;;  %11160 = vmatprep.subr.mxu1 %v11046_v50  ;;  %v11311_v50 = vld [vmem:[%s23861_s9 + $0x20] sm:$0xff] }
0x134d   :  { %11087 = vmatpush1.msra.mxu0 %v11045_v8  ;;  %11161 = vmatpush1.msra.mxu1 %v11045_v8  ;;  %v11326_v8 = vld [vmem:[%s23861_s9 + $0x98] sm:$0xff] }
0x134e   :  { %11088 = vmatprep.subr.mxu0 %v11044_v25  ;;  %11162 = vmatprep.subr.mxu1 %v11044_v25  ;;  %v11310_v25 = vld [vmem:[%s23861_s9 + $0x18] sm:$0xff] }
0x134f   :  { %11089 = vmatpush1.msra.mxu0 %v11043_v15  ;;  %11163 = vmatpush1.msra.mxu1 %v11043_v15  ;;  %v11325_v15 = vld [vmem:[%s23861_s9 + $0x90] sm:$0xff] }
0x1350   :  { %11090 = vmatprep.subr.mxu0 %v11042_v41  ;;  %11164 = vmatprep.subr.mxu1 %v11042_v41  ;;  %v11309_v41 = vld [vmem:[%s23861_s9 + $0x10] sm:$0xff] }
0x1351   :  { %11091 = vmatpush1.msra.mxu0 %v11041_v43  ;;  %11165 = vmatpush1.msra.mxu1 %v11041_v43  ;;  %v11324_v43 = vld [vmem:[%s23861_s9 + $0x88] sm:$0xff] }
0x1352   :  { %14418 = vmatprep.subr.mxu1 %v11338_v24  ;;  %v11308_v24 = vld [vmem:[%s23861_s9 + $0x8] sm:$0xff] }
0x1400   :  { %v14345_v19 = vpop.f32.mrf.mxu0 }
0x1402   :  { %v14346_v10 = vpop.f32.mrf.mxu0  ;;  %v14380_v61 = vpop.f32.mrf.mxu1 }
0x1403   :  { %v14347_v2 = vadd.f32 %v14346_v10, %v14345_v19  ;;  %v11323_v19 = vld [vmem:[%s23861_s9 + $0x80] sm:$0xff] }
0x1404   :  { %v14381_v52 = vpop.f32.mrf.mxu1  ;;  %v11307_v10 = vld [vmem:[%s23861_s9] sm:$0xff] }
0x1405   :  { %v10944_v23 = vsel %vm8564_vm11, %v14347_v2, 0.0  ;;  %v14382_v5 = vadd.f32 %v14381_v52, %v14380_v61 }
0x1406   :  { %v10945_v13 = vrot.slane %v10944_v23, 4 }
0x1407   :  { %v11023_v63 = vsel %vm8564_vm11, %v14382_v5, 0.0 }
0x1408   :  { %v10946_v21 = vadd.f32 %v10945_v13, %v10944_v23  ;;  %v11024_v56 = vrot.slane %v11023_v63, 4 }
0x140a   :  { %v10947_v28 = vrot.slane %v10946_v21, 2  ;;  %v11025_v3 = vadd.f32 %v11024_v56, %v11023_v63 }
0x140c   :  { %v10948_v1 = vadd.f32 %v10947_v28, %v10946_v21  ;;  %v11026_v39 = vrot.slane %v11025_v3, 2 }
0x140e   :  { %v10949_v54 = vrot.slane %v10948_v1, 1  ;;  %v11027_v40 = vadd.f32 %v11026_v39, %v11025_v3 }
0x1410   :  { %v10950_v16 = vadd.f32 %v10949_v54, %v10948_v1  ;;  %v11028_v0 = vrot.slane %v11027_v40, 1 }
0x1412   :  { %v11030_v51 = vmul.f32 0.03125, %v10950_v16  ;;  %v11029_v26 = vadd.f32 %v11028_v0, %v11027_v40  ;;  %v11231_v16 = vld [vmem:[%s23864_s10] sm:$0x3]  ;;  %v13484_v0 = vld [vmem:[%s23861_s9 + $0x178] sm:$0xff] }
0x1414   :  { %v11032_v14 = vmul.f32 %v11030_v51, %v11030_v51  ;;  %v11031_v4 = vmul.f32 0.03125, %v11029_v26  ;;  %v13483_v26 = vld [vmem:[%s23861_s9 + $0x170] sm:$0xff] }
0x1416   :  { %v11033_v45 = vsub.f32 %v11031_v4, %v11032_v14  ;;  %v13498_v14 = vld [vmem:[%s23861_s9 + $0x1e8] sm:$0xff] }
0x1417   :  { %v13482_v4 = vld [vmem:[%s23861_s9 + $0x168] sm:$0xff] }
0x1418   :  { %v11035_v58 = vadd.f32 1e-05, %v11033_v45  ;;  %v13497_v45 = vld [vmem:[%s23861_s9 + $0x1e0] sm:$0xff] }
0x141a   :  { %15052 = vrsqrt.f32 %v11035_v58  ;;  %v13481_v58 = vld [vmem:[%s23861_s9 + $0x160] sm:$0xff] }
0x1427   :  { %v15053_v36 = vpop.eup %15052 }
0x1428   :  { %v11037_v30 = vmul.f32 %v15053_v36, %v11034_v29  ;;  %v13496_v29 = vld [vmem:[%s23861_s9 + $0x1d8] sm:$0xff] }
0x1429   :  { %v13480_v36 = vld [vmem:[%s23861_s9 + $0x158] sm:$0xff] }
0x142a   :  { %13464 = vmatmul.mubr.msk.f32.vlgmr.msra.gmra.mxu0 %vm8564_vm11, %v11037_v30  ;;  %v11039_v46 = vmul.f32 %v11037_v30, %v11030_v51  ;;  %v13499_v51 = vld [vmem:[%s23861_s9 + $0x1f0] sm:$0xff] }
0x142b   :  { %11300 = vmatprep.mubr.f32.mxu0 %v24048_v62  ;;  %v13495_v30 = vld [vmem:[%s23861_s9 + $0x1d0] sm:$0xff] }
0x142c   :  { %v11040_v35 = vsub.f32 %v11038_v57, %v11039_v46  ;;  %v13479_v57 = vld [vmem:[%s23861_s9 + $0x150] sm:$0xff]  ;;  %v13494_v46 = vld [vmem:[%s23861_s9 + $0x1c8] sm:$0xff] }
0x142e   :  { %13465 = vmatmul.mubr.msk.f32.vlgmr.msra.gmra.mxu1 %vm8564_vm11, %v11040_v35  ;;  %v13478_v35 = vld [vmem:[%s23861_s9 + $0x148] sm:$0xff] }
0x142f   :  { %14419 = vmatpush3.msra.mxu1 %v11322_v17  ;;  %v13493_v17 = vld [vmem:[%s23861_s9 + $0x1c0] sm:$0xff] }
0x1430   :  { %14420 = vmatprep.subr.mxu1 %v11337_v44  ;;  %v13477_v44 = vld [vmem:[%s23861_s9 + $0x140] sm:$0xff] }
0x1431   :  { %14421 = vmatpush3.msra.mxu1 %v11321_v38  ;;  %v13492_v38 = vld [vmem:[%s23861_s9 + $0x1b8] sm:$0xff] }
0x1432   :  { %14422 = vmatprep.subr.mxu1 %v11336_v59  ;;  %v13476_v59 = vld [vmem:[%s23861_s9 + $0x138] sm:$0xff] }
0x1433   :  { %14423 = vmatpush3.msra.mxu1 %v11320_v31  ;;  %v13491_v31 = vld [vmem:[%s23861_s9 + $0x1b0] sm:$0xff] }
0x1434   :  { %14424 = vmatprep.subr.mxu1 %v11335_v33  ;;  %v13475_v33 = vld [vmem:[%s23861_s9 + $0x130] sm:$0xff] }
0x1435   :  { %14425 = vmatpush3.msra.mxu1 %v11319_v55  ;;  %v13490_v55 = vld [vmem:[%s23861_s9 + $0x1a8] sm:$0xff] }
0x1436   :  { %14426 = vmatprep.subr.mxu1 %v11334_v34  ;;  %v13474_v34 = vld [vmem:[%s23861_s9 + $0x128] sm:$0xff] }
0x1437   :  { %14427 = vmatpush3.msra.mxu1 %v11318_v42  ;;  %v13489_v42 = vld [vmem:[%s23861_s9 + $0x1a0] sm:$0xff] }
0x1438   :  { %14428 = vmatprep.subr.mxu1 %v11333_v32  ;;  %v13473_v32 = vld [vmem:[%s23861_s9 + $0x120] sm:$0xff] }
0x1439   :  { %14429 = vmatpush3.msra.mxu1 %v11317_v53  ;;  %v13488_v53 = vld [vmem:[%s23861_s9 + $0x198] sm:$0xff] }
0x143a   :  { %14430 = vmatprep.subr.mxu1 %v11332_v27  ;;  %v13472_v27 = vld [vmem:[%s23861_s9 + $0x118] sm:$0xff] }
0x143b   :  { %14431 = vmatpush3.msra.mxu1 %v11316_v37  ;;  %v13487_v37 = vld [vmem:[%s23861_s9 + $0x190] sm:$0xff] }
0x143c   :  { %14432 = vmatprep.subr.mxu1 %v11331_v48  ;;  %v13471_v48 = vld [vmem:[%s23861_s9 + $0x110] sm:$0xff] }
0x143d   :  { %14433 = vmatpush3.msra.mxu1 %v11315_v22  ;;  %v13486_v22 = vld [vmem:[%s23861_s9 + $0x188] sm:$0xff] }
0x143e   :  { %14434 = vmatprep.subr.mxu1 %v11330_v6  ;;  %v13470_v6 = vld [vmem:[%s23861_s9 + $0x108] sm:$0xff] }
0x143f   :  { %14435 = vmatpush3.msra.mxu1 %v11314_v18  ;;  %v13485_v18 = vld [vmem:[%s23861_s9 + $0x180] sm:$0xff] }
0x1440   :  { %14436 = vmatprep.subr.mxu1 %v11329_v47  ;;  %v13469_v47 = vld [vmem:[%s23861_s9 + $0x100] sm:$0xff] }
0x1441   :  { %14437 = vmatpush3.msra.mxu1 %v11313_v49 }
0x1442   :  { %14438 = vmatprep.subr.mxu1 %v11328_v9 }
0x1443   :  { %14439 = vmatpush3.msra.mxu1 %v11312_v60  ;;  %v13568_v60 = vld [vmem:[%s23861_s9 + $0x3f8] sm:$0xff] }
0x1444   :  { %14440 = vmatprep.subr.mxu1 %v11327_v7 }
0x1445   :  { %14441 = vmatpush3.msra.mxu1 %v11311_v50  ;;  %v13535_v50 = vld [vmem:[%s23864_s10 + $0x6] sm:$0x3] }
0x1446   :  { %14442 = vmatprep.subr.mxu1 %v11326_v8 }
0x1447   :  { %14443 = vmatpush3.msra.mxu1 %v11310_v25  ;;  %v13534_v25 = vld [vmem:[%s23861_s9 + $0x2f8] sm:$0xff] }
0x1448   :  { %14444 = vmatprep.subr.mxu1 %v11325_v15  ;;  %v13552_v15 = vld [vmem:[%s23861_s9 + $0x378] sm:$0xff] }
0x1449   :  { %14445 = vmatpush3.msra.mxu1 %v11309_v41  ;;  %v13567_v41 = vld [vmem:[%s23861_s9 + $0x3f0] sm:$0xff] }
0x144a   :  { %14446 = vmatprep.subr.mxu1 %v11324_v43  ;;  %v13501_v43 = vld [vmem:[%s23864_s10 + $0x4] sm:$0x3] }
0x144b   :  { %14447 = vmatpush3.msra.mxu1 %v11308_v24  ;;  %v13551_v24 = vld [vmem:[%s23861_s9 + $0x370] sm:$0xff] }
0x144c   :  { %14448 = vmatprep.subr.mxu1 %v11323_v19  ;;  %v13518_v19 = vld [vmem:[%s23861_s9 + $0x278] sm:$0xff] }
0x144d   :  { %14449 = vmatpush3.msra.mxu1 %v11307_v10  ;;  %v13566_v10 = vld [vmem:[%s23861_s9 + $0x3e8] sm:$0xff] }
0x14ea   :  { %v11126_v61 = vpop.f32.mrf.mxu0 }
0x14eb   :  { %v11208_v2 = vrot.slane %v11126_v61, %v24087_v20  ;;  %v13550_v61 = vld [vmem:[%s23861_s9 + $0x368] sm:$0xff] }
0x14ec   :  { %v11128_v52 = vpop.f32.mrf.mxu0 }
0x14ed   :  { %v11212_v23 = vrot.slane %v11128_v52, %v24087_v20  ;;  %v11213_v13 = vmul.f32 %v11208_v2, %v23344_v11  ;;  %v13517_v2 = vld [vmem:[%s23861_s9 + $0x270] sm:$0xff]  ;;  %v13565_v52 = vld [vmem:[%s23861_s9 + $0x3e0] sm:$0xff] }
0x14ee   :  { %v11200_v5 = vpop.f32.mrf.mxu1 }
0x14ef   :  { %v11218_v63 = vrot.slane %v11200_v5, %v24087_v20  ;;  %v11214_v56 = vmul.f32 %v11212_v23, %v23347_v12  ;;  %v13467_v12 = vld [vmem:[%s23864_s10 + $0x2] sm:$0x3]  ;;  %v13532_v23 = vld [vmem:[%s23861_s9 + $0x2e8] sm:$0xff] }
0x14f0   :  { %v11202_v21 = vpop.f32.mrf.mxu1  ;;  %v13549_v5 = vld [vmem:[%s23861_s9 + $0x360] sm:$0xff] }
0x14f1   :  { %v11223_v28 = vadd.f32 %v11218_v63, %v11213_v13  ;;  %v11222_v3 = vrot.slane %v11202_v21, %v24087_v20  ;;  %v13500_v20 = vld [vmem:[%s23861_s9 + $0x1f8] sm:$0xff]  ;;  %v13516_v13 = vld [vmem:[%s23861_s9 + $0x268] sm:$0xff]  ;;  %v13531_v21 = vld [vmem:[%s23861_s9 + $0x2e0] sm:$0xff] }
0x14f2   :  { %v13564_v63 = vld [vmem:[%s23861_s9 + $0x3d8] sm:$0xff] }
0x14f3   :  { %v11224_v1 = vadd.f32 %v11222_v3, %v11214_v56  ;;  %v11227_v39 = vmul.f32 0.2, %v11223_v28  ;;  %vm11225_vm4 = vcmp.ge.f32.partialorder %v11223_v28, 0.0  ;;  %v13548_v56 = vld [vmem:[%s23861_s9 + $0x358] sm:$0xff]  ;;  %v13563_v3 = vld [vmem:[%s23861_s9 + $0x3d0] sm:$0xff] }
0x14f5   :  { %v11228_v54 = vmul.f32 0.2, %v11224_v1  ;;  %vm11226_vm1 = vcmp.ge.f32.partialorder %v11224_v1, 0.0  ;;  %v23525_v11 = vsel %vm11225_vm4, %v11223_v28, %v11227_v39  ;;  %v13515_v28 = vld [vmem:[%s23861_s9 + $0x260] sm:$0xff]  ;;  %v13547_v39 = vld [vmem:[%s23861_s9 + $0x350] sm:$0xff] }
0x14f7   :  { %v23518_v40 = vsel %vm11226_vm1, %v11224_v1, %v11228_v54  ;;  %v13530_v1 = vld [vmem:[%s23861_s9 + $0x2d8] sm:$0xff] }
0x14f8   :  { %11266 = vmatprep.subr.mxu0 %v23518_v40  ;;  %11803 = vmatprep.subr.mxu1 %v23518_v40  ;;  %v13514_v54 = vld [vmem:[%s23861_s9 + $0x258] sm:$0xff] }
0x14f9   :  { %11267 = vmatpush1.msra.mxu0 %v23525_v11 }
0x14fa   :  { %13466 = vmatmul.mubr.msk.f32.vlgmr.msra.gmra.mxu0 %vm11232_vm9, %v11231_v16  ;;  %11374 = vmatprep.subr.mxu0 %v23518_v40  ;;  %v13529_v16 = vld [vmem:[%s23861_s9 + $0x2d0] sm:$0xff] }
0x14fb   :  { %11375 = vmatpush1.msra.mxu0 %v23525_v11  ;;  %11408 = vmatprep.mubr.f32.mxu0 %v24048_v62 }
0x14fc   :  { %14383 = vmatprep.subr.mxu0 %v13500_v20  ;;  %v13513_v20 = vld [vmem:[%s23861_s9 + $0x250] sm:$0xff] }
0x14fe   :  { %13468 = vmatmul.mubr.msk.f32.vlgmr.msra.gmra.mxu0 %vm11232_vm9, %v13467_v12  ;;  %v13561_v12 = vld [vmem:[%s23861_s9 + $0x3c0] sm:$0xff] }
0x14ff   :  { %14384 = vmatpush3.msra.mxu0 %v13484_v0  ;;  %v13528_v0 = vld [vmem:[%s23861_s9 + $0x2c8] sm:$0xff] }
0x1500   :  { %14385 = vmatprep.subr.mxu0 %v13499_v51  ;;  %v13545_v51 = vld [vmem:[%s23861_s9 + $0x340] sm:$0xff] }
0x1501   :  { %14386 = vmatpush3.msra.mxu0 %v13483_v26  ;;  %v13512_v26 = vld [vmem:[%s23861_s9 + $0x248] sm:$0xff] }
0x1502   :  { %14387 = vmatprep.subr.mxu0 %v13498_v14  ;;  %v13560_v14 = vld [vmem:[%s23861_s9 + $0x3b8] sm:$0xff] }
0x1503   :  { %14388 = vmatpush3.msra.mxu0 %v13482_v4  ;;  %v13527_v4 = vld [vmem:[%s23861_s9 + $0x2c0] sm:$0xff] }
0x1504   :  { %14389 = vmatprep.subr.mxu0 %v13497_v45  ;;  %v13544_v45 = vld [vmem:[%s23861_s9 + $0x338] sm:$0xff] }
0x1505   :  { %14390 = vmatpush3.msra.mxu0 %v13481_v58  ;;  %v13511_v58 = vld [vmem:[%s23861_s9 + $0x240] sm:$0xff] }
0x1506   :  { %14391 = vmatprep.subr.mxu0 %v13496_v29  ;;  %v13559_v29 = vld [vmem:[%s23861_s9 + $0x3b0] sm:$0xff] }
0x1507   :  { %14392 = vmatpush3.msra.mxu0 %v13480_v36  ;;  %v13526_v36 = vld [vmem:[%s23861_s9 + $0x2b8] sm:$0xff] }
0x1508   :  { %14393 = vmatprep.subr.mxu0 %v13495_v30  ;;  %v13543_v30 = vld [vmem:[%s23861_s9 + $0x330] sm:$0xff] }
0x1509   :  { %14394 = vmatpush3.msra.mxu0 %v13479_v57  ;;  %v13510_v57 = vld [vmem:[%s23861_s9 + $0x238] sm:$0xff] }
0x150a   :  { %14395 = vmatprep.subr.mxu0 %v13494_v46  ;;  %v13558_v46 = vld [vmem:[%s23861_s9 + $0x3a8] sm:$0xff] }
0x150b   :  { %14396 = vmatpush3.msra.mxu0 %v13478_v35  ;;  %v13525_v35 = vld [vmem:[%s23861_s9 + $0x2b0] sm:$0xff] }
0x150c   :  { %14397 = vmatprep.subr.mxu0 %v13493_v17  ;;  %v13542_v17 = vld [vmem:[%s23861_s9 + $0x328] sm:$0xff] }
0x150d   :  { %14398 = vmatpush3.msra.mxu0 %v13477_v44  ;;  %v13509_v44 = vld [vmem:[%s23861_s9 + $0x230] sm:$0xff] }
0x150e   :  { %14399 = vmatprep.subr.mxu0 %v13492_v38  ;;  %v13524_v38 = vld [vmem:[%s23861_s9 + $0x2a8] sm:$0xff] }
0x150f   :  { %14400 = vmatpush3.msra.mxu0 %v13476_v59  ;;  %v13508_v59 = vld [vmem:[%s23861_s9 + $0x228] sm:$0xff] }
0x1510   :  { %14401 = vmatprep.subr.mxu0 %v13491_v31  ;;  %v13523_v31 = vld [vmem:[%s23861_s9 + $0x2a0] sm:$0xff] }
0x1511   :  { %14402 = vmatpush3.msra.mxu0 %v13475_v33  ;;  %v13507_v33 = vld [vmem:[%s23861_s9 + $0x220] sm:$0xff] }
0x1512   :  { %14403 = vmatprep.subr.mxu0 %v13490_v55  ;;  %v13557_v55 = vld [vmem:[%s23861_s9 + $0x3a0] sm:$0xff] }
0x1513   :  { %14404 = vmatpush3.msra.mxu0 %v13474_v34  ;;  %v13541_v34 = vld [vmem:[%s23861_s9 + $0x320] sm:$0xff] }
0x1514   :  { %14405 = vmatprep.subr.mxu0 %v13489_v42  ;;  %v13556_v42 = vld [vmem:[%s23861_s9 + $0x398] sm:$0xff] }
0x1515   :  { %14406 = vmatpush3.msra.mxu0 %v13473_v32  ;;  %v13540_v32 = vld [vmem:[%s23861_s9 + $0x318] sm:$0xff] }
0x1516   :  { %14407 = vmatprep.subr.mxu0 %v13488_v53  ;;  %v13555_v53 = vld [vmem:[%s23861_s9 + $0x390] sm:$0xff] }
0x1517   :  { %14408 = vmatpush3.msra.mxu0 %v13472_v27  ;;  %v13522_v27 = vld [vmem:[%s23861_s9 + $0x298] sm:$0xff] }
0x1518   :  { %14409 = vmatprep.subr.mxu0 %v13487_v37  ;;  %v13506_v37 = vld [vmem:[%s23861_s9 + $0x218] sm:$0xff] }
0x1519   :  { %14410 = vmatpush3.msra.mxu0 %v13471_v48  ;;  %v13539_v48 = vld [vmem:[%s23861_s9 + $0x310] sm:$0xff] }
0x151a   :  { %14411 = vmatprep.subr.mxu0 %v13486_v22  ;;  %v13554_v22 = vld [vmem:[%s23861_s9 + $0x388] sm:$0xff] }
0x151b   :  { %14412 = vmatpush3.msra.mxu0 %v13470_v6  ;;  %v13521_v6 = vld [vmem:[%s23861_s9 + $0x290] sm:$0xff] }
0x151c   :  { %14413 = vmatprep.subr.mxu0 %v13485_v18  ;;  %v13538_v18 = vld [vmem:[%s23861_s9 + $0x308] sm:$0xff] }
0x151d   :  { %14414 = vmatpush3.msra.mxu0 %v13469_v47  ;;  %v13505_v47 = vld [vmem:[%s23861_s9 + $0x210] sm:$0xff] }
0x151e   :  { %11623 = vmatprep.subr.mxu0 %v23518_v40  ;;  %v13562_v40 = vld [vmem:[%s23861_s9 + $0x3c8] sm:$0xff] }
0x15ba   :  { %v11302_v49 = vpop.f32.mrf.mxu0 }
0x15bc   :  { %v11304_v9 = vpop.f32.mrf.mxu0 }
0x15bd   :  { %11582 = vmatprep.mubr.f32.mxu1 %v11304_v9  ;;  %v13520_v9 = vld [vmem:[%s23861_s9 + $0x288] sm:$0xff] }
0x15be   :  { %v11410_v7 = vpop.f32.mrf.mxu0  ;;  %11583 = vmatmul.mubr.f32.vlgmr.msra.gmra.mxu1 %v11302_v49  ;;  %v13553_v49 = vld [vmem:[%s23861_s9 + $0x380] sm:$0xff] }
0x15bf   :  { %11804 = vmatpush1.msra.mxu1 %v23525_v11  ;;  %11837 = vmatprep.mubr.f32.mxu1 %v24048_v62 }
0x15c0   :  { %v11412_v8 = vpop.f32.mrf.mxu0  ;;  %14488 = vmatprep.subr.mxu1 %v13568_v60  ;;  %v13537_v60 = vld [vmem:[%s23861_s9 + $0x300] sm:$0xff] }
0x15c1   :  { %11512 = vmatprep.mubr.f32.mxu0 %v11412_v8  ;;  %v13503_v8 = vld [vmem:[%s23861_s9 + $0x200] sm:$0xff] }
0x15c2   :  { %11513 = vmatmul.mubr.f32.vlgmr.msra.gmra.mxu0 %v11410_v7  ;;  %13536 = vmatmul.mubr.msk.f32.vlgmr.msra.gmra.mxu1 %vm11232_vm9, %v13535_v50  ;;  %v13504_v7 = vld [vmem:[%s23861_s9 + $0x208] sm:$0xff]  ;;  %v13519_v50 = vld [vmem:[%s23861_s9 + $0x280] sm:$0xff] }
0x15c3   :  { %11624 = vmatpush1.msra.mxu0 %v23525_v11  ;;  %11657 = vmatprep.mubr.f32.mxu0 %v24048_v62  ;;  %v13533_v62 = vld [vmem:[%s23861_s9 + $0x2f0] sm:$0xff]  ;;  %v13546_v11 = vld [vmem:[%s23861_s9 + $0x348] sm:$0xff] }
0x15c4   :  { %14453 = vmatprep.subr.mxu0 %v13534_v25  ;;  %14489 = vmatpush3.msra.mxu1 %v13552_v15 }
0x15c5   :  { %14490 = vmatprep.subr.mxu1 %v13567_v41 }
0x15c6   :  { %13502 = vmatmul.mubr.msk.f32.vlgmr.msra.gmra.mxu0 %vm11232_vm9, %v13501_v43  ;;  %14491 = vmatpush3.msra.mxu1 %v13551_v24 }
0x15c7   :  { %14454 = vmatpush3.msra.mxu0 %v13518_v19  ;;  %14492 = vmatprep.subr.mxu1 %v13566_v10 }
0x15c8   :  { %14455 = vmatprep.subr.mxu0 %v13533_v62  ;;  %14493 = vmatpush3.msra.mxu1 %v13550_v61 }
0x15c9   :  { %14456 = vmatpush3.msra.mxu0 %v13517_v2  ;;  %14494 = vmatprep.subr.mxu1 %v13565_v52 }
0x15ca   :  { %14457 = vmatprep.subr.mxu0 %v13532_v23  ;;  %14495 = vmatpush3.msra.mxu1 %v13549_v5 }
0x15cb   :  { %14458 = vmatpush3.msra.mxu0 %v13516_v13  ;;  %14496 = vmatprep.subr.mxu1 %v13564_v63 }
0x15cc   :  { %14459 = vmatprep.subr.mxu0 %v13531_v21  ;;  %14497 = vmatpush3.msra.mxu1 %v13548_v56 }
0x15cd   :  { %14460 = vmatpush3.msra.mxu0 %v13515_v28  ;;  %14498 = vmatprep.subr.mxu1 %v13563_v3 }
0x15ce   :  { %14461 = vmatprep.subr.mxu0 %v13530_v1  ;;  %14499 = vmatpush3.msra.mxu1 %v13547_v39 }
0x15cf   :  { %14462 = vmatpush3.msra.mxu0 %v13514_v54  ;;  %14500 = vmatprep.subr.mxu1 %v13562_v40 }
0x15d0   :  { %14463 = vmatprep.subr.mxu0 %v13529_v16  ;;  %14501 = vmatpush3.msra.mxu1 %v13546_v11 }
0x15d1   :  { %14464 = vmatpush3.msra.mxu0 %v13513_v20  ;;  %14502 = vmatprep.subr.mxu1 %v13561_v12 }
0x15d2   :  { %14465 = vmatprep.subr.mxu0 %v13528_v0  ;;  %14503 = vmatpush3.msra.mxu1 %v13545_v51 }
0x15d3   :  { %14466 = vmatpush3.msra.mxu0 %v13512_v26  ;;  %14504 = vmatprep.subr.mxu1 %v13560_v14 }
0x15d4   :  { %14467 = vmatprep.subr.mxu0 %v13527_v4  ;;  %14505 = vmatpush3.msra.mxu1 %v13544_v45 }
0x15d5   :  { %14468 = vmatpush3.msra.mxu0 %v13511_v58  ;;  %14506 = vmatprep.subr.mxu1 %v13559_v29 }
0x15d6   :  { %14469 = vmatprep.subr.mxu0 %v13526_v36  ;;  %14507 = vmatpush3.msra.mxu1 %v13543_v30 }
0x15d7   :  { %14470 = vmatpush3.msra.mxu0 %v13510_v57  ;;  %14508 = vmatprep.subr.mxu1 %v13558_v46 }
0x15d8   :  { %14471 = vmatprep.subr.mxu0 %v13525_v35  ;;  %14509 = vmatpush3.msra.mxu1 %v13542_v17 }
0x15d9   :  { %14472 = vmatpush3.msra.mxu0 %v13509_v44  ;;  %14510 = vmatprep.subr.mxu1 %v13557_v55 }
0x15da   :  { %14473 = vmatprep.subr.mxu0 %v13524_v38  ;;  %14511 = vmatpush3.msra.mxu1 %v13541_v34 }
0x15db   :  { %14474 = vmatpush3.msra.mxu0 %v13508_v59  ;;  %14512 = vmatprep.subr.mxu1 %v13556_v42 }
0x15dc   :  { %14475 = vmatprep.subr.mxu0 %v13523_v31  ;;  %14513 = vmatpush3.msra.mxu1 %v13540_v32 }
0x15dd   :  { %14476 = vmatpush3.msra.mxu0 %v13507_v33  ;;  %14514 = vmatprep.subr.mxu1 %v13555_v53 }
0x15de   :  { %14477 = vmatprep.subr.mxu0 %v13522_v27  ;;  %14515 = vmatpush3.msra.mxu1 %v13539_v48 }
0x15df   :  { %14478 = vmatpush3.msra.mxu0 %v13506_v37  ;;  %14516 = vmatprep.subr.mxu1 %v13554_v22 }
0x15e0   :  { %14479 = vmatprep.subr.mxu0 %v13521_v6  ;;  %14517 = vmatpush3.msra.mxu1 %v13538_v18 }
0x15e1   :  { %14480 = vmatpush3.msra.mxu0 %v13505_v47  ;;  %14518 = vmatprep.subr.mxu1 %v13553_v49 }
0x15e2   :  { %14481 = vmatprep.subr.mxu0 %v13520_v9  ;;  %14519 = vmatpush3.msra.mxu1 %v13537_v60 }
0x15e3   :  { %14482 = vmatpush3.msra.mxu0 %v13504_v7 }
0x15e4   :  { %14483 = vmatprep.subr.mxu0 %v13519_v50 }
0x15e5   :  { %14484 = vmatpush3.msra.mxu0 %v13503_v8 }
0x167e   :  { %v14450_v25 = vpop.f32.mrf.mxu1 }
0x1680   :  { %v14451_v15 = vpop.f32.mrf.mxu1 }
0x1681   :  { %v14452_v41 = vadd.f32 %v14451_v15, %v14450_v25 }
0x1682   :  { %v14415_v43 = vpop.f32.mrf.mxu0  ;;  %v11839_v24 = vpop.f32.mrf.mxu1 }
0x1684   :  { %v14416_v19 = vpop.f32.mrf.mxu0  ;;  %v11841_v10 = vpop.f32.mrf.mxu1 }
0x1685   :  { %v14417_v62 = vadd.f32 %v14416_v19, %v14415_v43  ;;  %11941 = vmatprep.mubr.f32.mxu1 %v11841_v10 }
0x1686   :  { %v11659_v61 = vpop.f32.mrf.mxu0  ;;  %11942 = vmatmul.mubr.f32.vlgmr.msra.gmra.mxu1 %v11839_v24 }
0x1687   :  { %v11585_v2 = vadd.f32 %v14452_v41, %v14417_v62 }
0x1688   :  { %v11661_v52 = vpop.f32.mrf.mxu0 }
0x1689   :  { %11761 = vmatprep.mubr.f32.mxu0 %v11661_v52 }
0x168a   :  { %11762 = vmatmul.mubr.f32.vlgmr.msra.gmra.mxu0 %v11659_v61 }
0x1746   :  { %v14520_v23 = vpop.f32.mrf.mxu1 }
0x1748   :  { %v14521_v63 = vpop.f32.mrf.mxu1 }
0x1749   :  { %v14522_v28 = vadd.f32 %v14521_v63, %v14520_v23 }
0x174a   :  { %v14485_v5 = vpop.f32.mrf.mxu0 }
0x174c   :  { %v14486_v13 = vpop.f32.mrf.mxu0 }
0x174d   :  { %v14487_v21 = vadd.f32 %v14486_v13, %v14485_v5 }
0x174f   :  { %v11767_v56 = vadd.f32 %v14487_v21, %v11585_v2 }
0x1751   :  { %v11947_v3 = vadd.f32 %v14522_v28, %v11767_v56 }
0x1753   :  { %v11948_v1 = vsub.f32 0.0, %v11947_v3 }
0x1755   :  { %v11949_v39 = vmul.f32 1.442695, %v11948_v1 }
0x1757   :  { %15054 = vpow2.f32 %v11949_v39 }
0x1764   :  { %v15055_v54 = vpop.eup %15054 }
0x1765   :  { %v11951_v40 = vadd.f32 1.0, %v15055_v54 }
0x1767   :  { %15056 = vrcp.f32 %v11951_v40 }
0x1774   :  { %v15057_v16 = vpop.eup %15056 }
0x1775   :  { %11955 = vst.msk [vmem:[%s23865_s25] sm:$0x3] %vm11954_vm10, %v15057_v16 }

</bundles_post_ra>
